<compile_context>
chip_gen: v5e
topology: v5e:2x2
jax: 0.10.0
libtpu: 0.0.40
codegen_flags: <defaults>
</compile_context>

<pallas_src>
import math
from functools import partial

import jax
import jax.numpy as jnp
from jax.experimental import pallas as pl
from jax.experimental.pallas import tpu as pltpu  # noqa: F401  (TPU backend)

# ---------------- hyper-parameters (small, consistent with the module) ----------------
D_MODEL = 32
NUM_HEADS = 4
D_K = D_MODEL // NUM_HEADS
D_FF = 64
NUM_LAYERS = 2
VOCAB_SIZE = 50
VOCAB_PAD = 128          # lane-dense padded vocab width for the output projection
SEQ_LEN = 8
BATCH = 2
LN_EPS = 1e-6
NEG_INF = 1e9            # reference uses masked_fill_(mask == 0, -1e9)


# ================================ in-kernel building blocks ================================

def _layer_norm(x, g, b):
    mean = jnp.mean(x, axis=-1, keepdims=True)
    var = jnp.mean(jnp.square(x - mean), axis=-1, keepdims=True)
    return (x - mean) * jax.lax.rsqrt(var + LN_EPS) * g + b


def _softmax_rows(s):
    s = s - jnp.max(s, axis=-1, keepdims=True)
    e = jnp.exp(s)
    return e * pl.reciprocal(jnp.sum(e, axis=-1, keepdims=True), approx=True)


def _mha(x_q, x_kv, bias, w_qkv, b_qkv, w_o, b_o, self_attn):
    """Multi-head attention on batch-flattened activations.

    x_q: (Nq, D), x_kv: (Nk, D).  bias: (Nq, Nk) additive mask (0 / -1e9) that is
    block-diagonal over the batch, so every batch & head runs in the same matmuls.
    """
    if self_attn:
        qkv = jnp.dot(x_q, w_qkv, preferred_element_type=jnp.float32) + b_qkv
        q = qkv[:, :D_MODEL]
        k = qkv[:, D_MODEL:2 * D_MODEL]
        v = qkv[:, 2 * D_MODEL:]
    else:  # cross attention: Q from decoder stream, K/V from encoder output
        q = jnp.dot(x_q, w_qkv[:, :D_MODEL],
                    preferred_element_type=jnp.float32) + b_qkv[:, :D_MODEL]
        kv = jnp.dot(x_kv, w_qkv[:, D_MODEL:],
                     preferred_element_type=jnp.float32) + b_qkv[:, D_MODEL:]
        k = kv[:, :D_MODEL]
        v = kv[:, D_MODEL:]

    scale = 1.0 / math.sqrt(D_K)
    qk_dims = (((1,), (1,)), ((), ()))        # contract over d_k (q @ k.T without transpose op)
    out = None
    for h in range(NUM_HEADS):                # unrolled; all inside one kernel
        sl = slice(h * D_K, (h + 1) * D_K)
        s = jax.lax.dot_general(q[:, sl], k[:, sl], qk_dims,
                                preferred_element_type=jnp.float32) * scale + bias
        p_attn = _softmax_rows(s)
        hv = jnp.dot(p_attn, v[:, sl], preferred_element_type=jnp.float32)      # (Nq, dk)
        # fold concat + output projection: concat(heads) @ Wo == sum_h head_h @ Wo[rows_h]
        contrib = jnp.dot(hv, w_o[sl, :], preferred_element_type=jnp.float32)   # (Nq, D)
        out = contrib if out is None else out + contrib
    return out + b_o


def _feed_forward(x, w1, b1, w2, b2):
    h = jnp.maximum(jnp.dot(x, w1, preferred_element_type=jnp.float32) + b1, 0.0)
    return jnp.dot(h, w2, preferred_element_type=jnp.float32) + b2


# ================================ the single fused kernel ================================

def _make_fused_kernel(treedef, n_params):
    def kernel(*refs):
        src_ref, trg_ref, eb_ref, cb_ref, db_ref = refs[:5]
        param_refs = refs[5:5 + n_params]
        out_ref = refs[5 + n_params]
        p = jax.tree_util.tree_unflatten(treedef, param_refs)

        e_bias = eb_ref[...]      # (B*Ls, B*Ls) encoder self-attn bias
        c_bias = cb_ref[...]      # (B*Lt, B*Ls) decoder cross-attn bias
        d_bias = db_ref[...]      # (B*Lt, B*Lt) decoder self-attn (pad+causal) bias

        # ------------------------------- encoder -------------------------------
        x = src_ref[...]                                   # (B*Ls, D)
        enc = p["enc"]
        for l in range(NUM_LAYERS):
            x1 = _layer_norm(x, enc["ln1_g"][l], enc["ln1_b"][l])
            x = x + _mha(x1, x1, e_bias, enc["w_qkv"][l], enc["b_qkv"][l],
                         enc["w_o"][l], enc["b_o"][l], self_attn=True)
            x2 = _layer_norm(x, enc["ln2_g"][l], enc["ln2_b"][l])
            x = x + _feed_forward(x2, enc["w1"][l], enc["b1"][l],
                                  enc["w2"][l], enc["b2"][l])
        e_out = _layer_norm(x, p["enc_ln_g"][...], p["enc_ln_b"][...])

        # ------------------------------- decoder -------------------------------
        y = trg_ref[...]                                   # (B*Lt, D)
        dec = p["dec"]
        for l in range(NUM_LAYERS):
            y1 = _layer_norm(y, dec["ln1_g"][l], dec["ln1_b"][l])
            y = y + _mha(y1, y1, d_bias, dec["sa_w_qkv"][l], dec["sa_b_qkv"][l],
                         dec["sa_w_o"][l], dec["sa_b_o"][l], self_attn=True)
            y2 = _layer_norm(y, dec["ln2_g"][l], dec["ln2_b"][l])
            y = y + _mha(y2, e_out, c_bias, dec["ca_w_qkv"][l], dec["ca_b_qkv"][l],
                         dec["ca_w_o"][l], dec["ca_b_o"][l], self_attn=False)
            y3 = _layer_norm(y, dec["ln3_g"][l], dec["ln3_b"][l])
            y = y + _feed_forward(y3, dec["w1"][l], dec["b1"][l],
                                  dec["w2"][l], dec["b2"][l])
        d_out = _layer_norm(y, p["dec_ln_g"][...], p["dec_ln_b"][...])

        # ------------------ output projection (padded to 128 lanes) + log-softmax ------------------
        logits = jnp.dot(d_out, p["out_w"][...],
                         preferred_element_type=jnp.float32) + p["out_b"][...]   # (B*Lt, 128)
        m = jnp.max(logits, axis=-1, keepdims=True)
        s = logits - m
        lse = jnp.log(jnp.sum(jnp.exp(s), axis=-1, keepdims=True))
        out_ref[...] = (s - lse).astype(out_ref.dtype)

    return kernel


# ================================ wrapper-side plumbing ================================

def _block_diag_bias(mask_bqk):
    """(B, Lq, Lk) bool mask -> (B*Lq, B*Lk) f32 additive bias (0 keep / -1e9 mask),
    block-diagonal over the batch so the kernel runs one attention per head for all batches."""
    B, Lq, Lk = mask_bqk.shape
    eye = jnp.eye(B, dtype=bool)
    keep = eye[:, None, :, None] & mask_bqk[:, :, None, :]      # (B, Lq, B, Lk)
    keep = keep.reshape(B * Lq, B * Lk)
    return jnp.where(keep, 0.0, -NEG_INF).astype(jnp.float32)


def _prep_kernel_params(params):
    """Re-pack PyTorch-style params: fuse QKV, stack per-layer weights, pad vocab to 128."""
    def cat_qkv(m):
        w = jnp.concatenate([m["wq"], m["wk"], m["wv"]], axis=1)                 # (D, 3D)
        b = jnp.concatenate([m["bq"], m["bk"], m["bv"]], axis=0).reshape(1, 3 * D_MODEL)
        return w, b

    def stack(fn, layers):
        return jnp.stack([fn(lp) for lp in layers], axis=0)

    enc_layers = params["encoder"]["layers"]
    dec_layers = params["decoder"]["layers"]

    enc = dict(
        ln1_g=stack(lambda lp: lp["ln1"]["gamma"].reshape(1, D_MODEL), enc_layers),
        ln1_b=stack(lambda lp: lp["ln1"]["beta"].reshape(1, D_MODEL), enc_layers),
        w_qkv=stack(lambda lp: cat_qkv(lp["mha"])[0], enc_layers),
        b_qkv=stack(lambda lp: cat_qkv(lp["mha"])[1], enc_layers),
        w_o=stack(lambda lp: lp["mha"]["wo"], enc_layers),
        b_o=stack(lambda lp: lp["mha"]["bo"].reshape(1, D_MODEL), enc_layers),
        ln2_g=stack(lambda lp: lp["ln2"]["gamma"].reshape(1, D_MODEL), enc_layers),
        ln2_b=stack(lambda lp: lp["ln2"]["beta"].reshape(1, D_MODEL), enc_layers),
        w1=stack(lambda lp: lp["ff"]["w1"], enc_layers),
        b1=stack(lambda lp: lp["ff"]["b1"].reshape(1, D_FF), enc_layers),
        w2=stack(lambda lp: lp["ff"]["w2"], enc_layers),
        b2=stack(lambda lp: lp["ff"]["b2"].reshape(1, D_MODEL), enc_layers),
    )
    dec = dict(
        ln1_g=stack(lambda lp: lp["ln1"]["gamma"].reshape(1, D_MODEL), dec_layers),
        ln1_b=stack(lambda lp: lp["ln1"]["beta"].reshape(1, D_MODEL), dec_layers),
        sa_w_qkv=stack(lambda lp: cat_qkv(lp["self_mha"])[0], dec_layers),
        sa_b_qkv=stack(lambda lp: cat_qkv(lp["self_mha"])[1], dec_layers),
        sa_w_o=stack(lambda lp: lp["self_mha"]["wo"], dec_layers),
        sa_b_o=stack(lambda lp: lp["self_mha"]["bo"].reshape(1, D_MODEL), dec_layers),
        ln2_g=stack(lambda lp: lp["ln2"]["gamma"].reshape(1, D_MODEL), dec_layers),
        ln2_b=stack(lambda lp: lp["ln2"]["beta"].reshape(1, D_MODEL), dec_layers),
        ca_w_qkv=stack(lambda lp: cat_qkv(lp["cross_mha"])[0], dec_layers),
        ca_b_qkv=stack(lambda lp: cat_qkv(lp["cross_mha"])[1], dec_layers),
        ca_w_o=stack(lambda lp: lp["cross_mha"]["wo"], dec_layers),
        ca_b_o=stack(lambda lp: lp["cross_mha"]["bo"].reshape(1, D_MODEL), dec_layers),
        ln3_g=stack(lambda lp: lp["ln3"]["gamma"].reshape(1, D_MODEL), dec_layers),
        ln3_b=stack(lambda lp: lp["ln3"]["beta"].reshape(1, D_MODEL), dec_layers),
        w1=stack(lambda lp: lp["ff"]["w1"], dec_layers),
        b1=stack(lambda lp: lp["ff"]["b1"].reshape(1, D_FF), dec_layers),
        w2=stack(lambda lp: lp["ff"]["w2"], dec_layers),
        b2=stack(lambda lp: lp["ff"]["b2"].reshape(1, D_MODEL), dec_layers),
    )
    # lane-dense vocab projection: zero weight columns, -1e9 bias -> padded logits vanish
    # under log-softmax; the wrapper slices the real 50 columns afterwards.
    out_w = jnp.concatenate(
        [params["out_w"], jnp.zeros((D_MODEL, VOCAB_PAD - VOCAB_SIZE), jnp.float32)], axis=1)
    out_b = jnp.concatenate(
        [params["out_b"], jnp.full((VOCAB_PAD - VOCAB_SIZE,), -NEG_INF, jnp.float32)],
        axis=0).reshape(1, VOCAB_PAD)

    return dict(
        enc=enc,
        enc_ln_g=params["encoder"]["ln"]["gamma"].reshape(1, D_MODEL),
        enc_ln_b=params["encoder"]["ln"]["beta"].reshape(1, D_MODEL),
        dec=dec,
        dec_ln_g=params["decoder"]["ln"]["gamma"].reshape(1, D_MODEL),
        dec_ln_b=params["decoder"]["ln"]["beta"].reshape(1, D_MODEL),
        out_w=out_w, out_b=out_b,
    )


@jax.jit
def transformer_forward(params, src_ids, trg_ids, e_mask, d_mask):
    B, Ls = src_ids.shape
    Lt = trg_ids.shape[1]

    # embedding + positional encoding kept in JAX (a single gather + add; negligible)
    pe = params["pe"]
    src = (params["embedding"][src_ids] * math.sqrt(D_MODEL)
           + pe[None, :Ls, :]).reshape(B * Ls, D_MODEL)
    trg = (params["embedding"][trg_ids] * math.sqrt(D_MODEL)
           + pe[None, :Lt, :]).reshape(B * Lt, D_MODEL)

    # additive attention biases (block-diagonal over the batch), built once from the
    # module's e_mask / d_mask and reused by every layer & head inside the kernel.
    e_self = _block_diag_bias(jnp.broadcast_to(e_mask != 0, (B, Ls, Ls)))
    e_cross = _block_diag_bias(jnp.broadcast_to(e_mask != 0, (B, Lt, Ls)))
    d_self = _block_diag_bias(jnp.broadcast_to(d_mask != 0, (B, Lt, Lt)))

    kp = _prep_kernel_params(params)
    leaves, treedef = jax.tree_util.tree_flatten(kp)

    # Single fused pallas_call: no grid -> single TensorCore, everything resident in VMEM.
    out = pl.pallas_call(
        _make_fused_kernel(treedef, len(leaves)),
        out_shape=jax.ShapeDtypeStruct((B * Lt, VOCAB_PAD), jnp.float32),
    )(src, trg, e_self, e_cross, d_self, *leaves)

    return out[:, :VOCAB_SIZE].reshape(B, Lt, VOCAB_SIZE)


# ================================ parameter init ================================

def make_positional_encoding(seq_len, d_model):
    pe = [[math.sin(pos / (10000 ** (2 * i / d_model))) if i % 2 == 0
           else math.cos(pos / (10000 ** (2 * i / d_model)))
           for i in range(d_model)] for pos in range(seq_len)]
    return jnp.array(pe, dtype=jnp.float32)


def init_params(key):
    keys = iter(jax.random.split(key, 256))

    def lin(d_in, d_out):
        kw, kb = jax.random.split(next(keys))
        bound = 1.0 / math.sqrt(d_in)
        w = jax.random.uniform(kw, (d_in, d_out), jnp.float32, -bound, bound)
        b = jax.random.uniform(kb, (d_out,), jnp.float32, -bound, bound)
        return w, b

    def ln_params():
        return dict(gamma=jnp.ones((D_MODEL,), jnp.float32),
                    beta=jnp.zeros((D_MODEL,), jnp.float32))

    def mha_params():
        wq, bq = lin(D_MODEL, D_MODEL)
        wk, bk = lin(D_MODEL, D_MODEL)
        wv, bv = lin(D_MODEL, D_MODEL)
        wo, bo = lin(D_MODEL, D_MODEL)
        return dict(wq=wq, bq=bq, wk=wk, bk=bk, wv=wv, bv=bv, wo=wo, bo=bo)

    def ff_params():
        w1, b1 = lin(D_MODEL, D_FF)
        w2, b2 = lin(D_FF, D_MODEL)
        return dict(w1=w1, b1=b1, w2=w2, b2=b2)

    def enc_layer():
        return dict(ln1=ln_params(), mha=mha_params(), ln2=ln_params(), ff=ff_params())

    def dec_layer():
        return dict(ln1=ln_params(), self_mha=mha_params(), ln2=ln_params(),
                    cross_mha=mha_params(), ln3=ln_params(), ff=ff_params())

    emb = jax.random.normal(next(keys), (VOCAB_SIZE, D_MODEL), jnp.float32)
    out_w, out_b = lin(D_MODEL, VOCAB_SIZE)

    return dict(
        embedding=emb,
        pe=make_positional_encoding(SEQ_LEN, D_MODEL),
        encoder=dict(layers=[enc_layer() for _ in range(NUM_LAYERS)], ln=ln_params()),
        decoder=dict(layers=[dec_layer() for _ in range(NUM_LAYERS)], ln=ln_params()),
        out_w=out_w, out_b=out_b,
    )


# ================================ main ================================

if __name__ == "__main__":
    root = jax.random.PRNGKey(0)
    k_param, k_src, k_trg = jax.random.split(root, 3)

    params = init_params(k_param)

    pad_id = 0
    src_ids = jax.random.randint(k_src, (BATCH, SEQ_LEN), 1, VOCAB_SIZE)
    trg_ids = jax.random.randint(k_trg, (BATCH, SEQ_LEN), 1, VOCAB_SIZE)
    # introduce some padding on the source side
    src_ids = src_ids.at[:, -2:].set(pad_id)

    e_mask = (src_ids != pad_id)[:, None, :]                     # (B, 1, L_src)
    trg_pad = (trg_ids != pad_id)[:, None, :]                    # (B, 1, L_trg)
    nopeak = jnp.tril(jnp.ones((1, SEQ_LEN, SEQ_LEN), dtype=bool))
    d_mask = trg_pad & nopeak                                    # (B, L_trg, L_trg)

    out = transformer_forward(params, src_ids, trg_ids, e_mask, d_mask)
    out = jax.block_until_ready(out)

    assert out.shape == (BATCH, SEQ_LEN, VOCAB_SIZE)
    assert bool(jnp.all(jnp.isfinite(out)))
    # log-softmax rows must (approximately) sum to 1 in prob space
    assert bool(jnp.allclose(jnp.sum(jnp.exp(out), axis=-1), 1.0, atol=1e-3))
    print("KERNEL_OK")
</pallas_src>

<mosaic_0001>
module attributes {stable_mosaic.version = 11 : i64} {
  func.func @kernel(%arg0: memref<16x32xf32, #tpu.memory_space<vmem>>, %arg1: memref<16x32xf32, #tpu.memory_space<vmem>>, %arg2: memref<16x16xf32, #tpu.memory_space<vmem>>, %arg3: memref<16x16xf32, #tpu.memory_space<vmem>>, %arg4: memref<16x16xf32, #tpu.memory_space<vmem>>, %arg5: memref<2x1x64xf32, #tpu.memory_space<vmem>>, %arg6: memref<2x1x32xf32, #tpu.memory_space<vmem>>, %arg7: memref<2x1x32xf32, #tpu.memory_space<vmem>>, %arg8: memref<2x1x96xf32, #tpu.memory_space<vmem>>, %arg9: memref<2x32x32xf32, #tpu.memory_space<vmem>>, %arg10: memref<2x32x96xf32, #tpu.memory_space<vmem>>, %arg11: memref<2x1x32xf32, #tpu.memory_space<vmem>>, %arg12: memref<2x1x32xf32, #tpu.memory_space<vmem>>, %arg13: memref<2x1x32xf32, #tpu.memory_space<vmem>>, %arg14: memref<2x1x32xf32, #tpu.memory_space<vmem>>, %arg15: memref<2x1x32xf32, #tpu.memory_space<vmem>>, %arg16: memref<2x1x32xf32, #tpu.memory_space<vmem>>, %arg17: memref<2x1x32xf32, #tpu.memory_space<vmem>>, %arg18: memref<2x1x96xf32, #tpu.memory_space<vmem>>, %arg19: memref<2x32x32xf32, #tpu.memory_space<vmem>>, %arg20: memref<2x32x96xf32, #tpu.memory_space<vmem>>, %arg21: memref<2x32x64xf32, #tpu.memory_space<vmem>>, %arg22: memref<2x64x32xf32, #tpu.memory_space<vmem>>, %arg23: memref<1x32xf32, #tpu.memory_space<vmem>>, %arg24: memref<1x32xf32, #tpu.memory_space<vmem>>, %arg25: memref<2x1x64xf32, #tpu.memory_space<vmem>>, %arg26: memref<2x1x32xf32, #tpu.memory_space<vmem>>, %arg27: memref<2x1x32xf32, #tpu.memory_space<vmem>>, %arg28: memref<2x1x96xf32, #tpu.memory_space<vmem>>, %arg29: memref<2x1x32xf32, #tpu.memory_space<vmem>>, %arg30: memref<2x1x32xf32, #tpu.memory_space<vmem>>, %arg31: memref<2x1x32xf32, #tpu.memory_space<vmem>>, %arg32: memref<2x1x32xf32, #tpu.memory_space<vmem>>, %arg33: memref<2x32x64xf32, #tpu.memory_space<vmem>>, %arg34: memref<2x64x32xf32, #tpu.memory_space<vmem>>, %arg35: memref<2x32x32xf32, #tpu.memory_space<vmem>>, %arg36: memref<2x32x96xf32, #tpu.memory_space<vmem>>, %arg37: memref<1x32xf32, #tpu.memory_space<vmem>>, %arg38: memref<1x32xf32, #tpu.memory_space<vmem>>, %arg39: memref<1x128xf32, #tpu.memory_space<vmem>>, %arg40: memref<32x128xf32, #tpu.memory_space<vmem>>, %arg41: memref<16x128xf32, #tpu.memory_space<vmem>>) attributes {dimension_semantics = [], scalar_prefetch = 0 : i64, scratch_operands = 0 : i64, tpu.core_type = #tpu.core_type<tc>} {
    %c0 = arith.constant 0 : index
    %c0_0 = arith.constant 0 : index
    %0 = vector.load %arg2[%c0, %c0_0] : memref<16x16xf32, #tpu.memory_space<vmem>>, vector<16x16xf32>
    %c0_1 = arith.constant 0 : index
    %c0_2 = arith.constant 0 : index
    %1 = vector.load %arg3[%c0_1, %c0_2] : memref<16x16xf32, #tpu.memory_space<vmem>>, vector<16x16xf32>
    %c0_3 = arith.constant 0 : index
    %c0_4 = arith.constant 0 : index
    %2 = vector.load %arg4[%c0_3, %c0_4] : memref<16x16xf32, #tpu.memory_space<vmem>>, vector<16x16xf32>
    %c0_5 = arith.constant 0 : index
    %c0_6 = arith.constant 0 : index
    %3 = vector.load %arg0[%c0_5, %c0_6] : memref<16x32xf32, #tpu.memory_space<vmem>>, vector<16x32xf32>
    %c0_7 = arith.constant 0 : index
    %c0_8 = arith.constant 0 : index
    %c0_9 = arith.constant 0 : index
    %4 = vector.load %arg30[%c0_7, %c0_8, %c0_9] : memref<2x1x32xf32, #tpu.memory_space<vmem>>, vector<1x1x32xf32>
    %5 = vector.shape_cast %4 : vector<1x1x32xf32> to vector<1x32xf32>
    %c0_10 = arith.constant 0 : index
    %c0_11 = arith.constant 0 : index
    %c0_12 = arith.constant 0 : index
    %6 = vector.load %arg29[%c0_10, %c0_11, %c0_12] : memref<2x1x32xf32, #tpu.memory_space<vmem>>, vector<1x1x32xf32>
    %7 = vector.shape_cast %6 : vector<1x1x32xf32> to vector<1x32xf32>
    %cst = arith.constant dense<0.000000e+00> : vector<16xf32>
    %8 = vector.multi_reduction <add>, %3, %cst [1] : vector<16x32xf32> to vector<16xf32>
    %9 = vector.shape_cast %8 : vector<16xf32> to vector<16x1xf32>
    %cst_13 = arith.constant 3.200000e+01 : f32
    %10 = vector.broadcast %cst_13 : f32 to vector<16x1xf32>
    %11 = arith.divf %9, %10 : vector<16x1xf32>
    %12 = vector.broadcast %11 : vector<16x1xf32> to vector<16x32xf32>
    %13 = arith.subf %3, %12 : vector<16x32xf32>
    %14 = arith.mulf %13, %13 : vector<16x32xf32>
    %cst_14 = arith.constant dense<0.000000e+00> : vector<16xf32>
    %15 = vector.multi_reduction <add>, %14, %cst_14 [1] : vector<16x32xf32> to vector<16xf32>
    %16 = vector.shape_cast %15 : vector<16xf32> to vector<16x1xf32>
    %cst_15 = arith.constant 3.200000e+01 : f32
    %17 = vector.broadcast %cst_15 : f32 to vector<16x1xf32>
    %18 = arith.divf %16, %17 : vector<16x1xf32>
    %19 = vector.broadcast %11 : vector<16x1xf32> to vector<16x32xf32>
    %20 = arith.subf %3, %19 : vector<16x32xf32>
    %cst_16 = arith.constant 9.99999997E-7 : f32
    %21 = vector.broadcast %cst_16 : f32 to vector<16x1xf32>
    %22 = arith.addf %18, %21 : vector<16x1xf32>
    %23 = math.rsqrt %22 : vector<16x1xf32>
    %24 = vector.broadcast %23 : vector<16x1xf32> to vector<16x32xf32>
    %25 = arith.mulf %20, %24 : vector<16x32xf32>
    %26 = vector.broadcast %5 : vector<1x32xf32> to vector<16x32xf32>
    %27 = arith.mulf %25, %26 : vector<16x32xf32>
    %28 = vector.broadcast %7 : vector<1x32xf32> to vector<16x32xf32>
    %29 = arith.addf %27, %28 : vector<16x32xf32>
    %c0_17 = arith.constant 0 : index
    %c0_18 = arith.constant 0 : index
    %c0_19 = arith.constant 0 : index
    %30 = vector.load %arg36[%c0_17, %c0_18, %c0_19] : memref<2x32x96xf32, #tpu.memory_space<vmem>>, vector<1x32x96xf32>
    %31 = vector.shape_cast %30 : vector<1x32x96xf32> to vector<32x96xf32>
    %c0_20 = arith.constant 0 : index
    %c0_21 = arith.constant 0 : index
    %c0_22 = arith.constant 0 : index
    %32 = vector.load %arg28[%c0_20, %c0_21, %c0_22] : memref<2x1x96xf32, #tpu.memory_space<vmem>>, vector<1x1x96xf32>
    %33 = vector.shape_cast %32 : vector<1x1x96xf32> to vector<1x96xf32>
    %c0_23 = arith.constant 0 : index
    %c0_24 = arith.constant 0 : index
    %c0_25 = arith.constant 0 : index
    %34 = vector.load %arg35[%c0_23, %c0_24, %c0_25] : memref<2x32x32xf32, #tpu.memory_space<vmem>>, vector<1x32x32xf32>
    %35 = vector.shape_cast %34 : vector<1x32x32xf32> to vector<32x32xf32>
    %c0_26 = arith.constant 0 : index
    %c0_27 = arith.constant 0 : index
    %c0_28 = arith.constant 0 : index
    %36 = vector.load %arg27[%c0_26, %c0_27, %c0_28] : memref<2x1x32xf32, #tpu.memory_space<vmem>>, vector<1x1x32xf32>
    %37 = vector.shape_cast %36 : vector<1x1x32xf32> to vector<1x32xf32>
    %cst_29 = arith.constant dense<0.000000e+00> : vector<16x96xf32>
    %38 = tpu.matmul %29, %31, %cst_29 {dimension_numbers = #tpu.dot_dimension_numbers<[1], [0], [0], [1], [0, 0, 1, 1], [], []>} : vector<16x32xf32>, vector<32x96xf32>, vector<16x96xf32> -> vector<16x96xf32>
    %39 = vector.broadcast %33 : vector<1x96xf32> to vector<16x96xf32>
    %40 = arith.addf %38, %39 : vector<16x96xf32>
    %41 = vector.extract_strided_slice %40 {offsets = [0, 0], sizes = [16, 32], strides = [1, 1]} : vector<16x96xf32> to vector<16x32xf32>
    %42 = vector.extract_strided_slice %40 {offsets = [0, 32], sizes = [16, 32], strides = [1, 1]} : vector<16x96xf32> to vector<16x32xf32>
    %43 = vector.extract_strided_slice %40 {offsets = [0, 64], sizes = [16, 32], strides = [1, 1]} : vector<16x96xf32> to vector<16x32xf32>
    %44 = vector.extract_strided_slice %41 {offsets = [0, 0], sizes = [16, 8], strides = [1, 1]} : vector<16x32xf32> to vector<16x8xf32>
    %45 = vector.extract_strided_slice %42 {offsets = [0, 0], sizes = [16, 8], strides = [1, 1]} : vector<16x32xf32> to vector<16x8xf32>
    %cst_30 = arith.constant dense<0.000000e+00> : vector<16x16xf32>
    %46 = tpu.matmul %44, %45, %cst_30 {dimension_numbers = #tpu.dot_dimension_numbers<[1], [1], [0], [0], [0, 0, 1, 0], [], []>} : vector<16x8xf32>, vector<16x8xf32>, vector<16x16xf32> -> vector<16x16xf32>
    %cst_31 = arith.constant 0.353553385 : f32
    %47 = vector.broadcast %cst_31 : f32 to vector<16x16xf32>
    %48 = arith.mulf %46, %47 : vector<16x16xf32>
    %49 = arith.addf %48, %0 : vector<16x16xf32>
    %cst_32 = arith.constant dense<0xFF800000> : vector<16xf32>
    %50 = vector.multi_reduction <maximumf>, %49, %cst_32 [1] : vector<16x16xf32> to vector<16xf32>
    %51 = vector.shape_cast %50 : vector<16xf32> to vector<16x1xf32>
    %52 = vector.broadcast %51 : vector<16x1xf32> to vector<16x16xf32>
    %53 = arith.subf %49, %52 : vector<16x16xf32>
    %54 = math.exp %53 : vector<16x16xf32>
    %cst_33 = arith.constant dense<0.000000e+00> : vector<16xf32>
    %55 = vector.multi_reduction <add>, %54, %cst_33 [1] : vector<16x16xf32> to vector<16xf32>
    %56 = vector.shape_cast %55 : vector<16xf32> to vector<16x1xf32>
    %57 = tpu.reciprocal %56 {approx = true} : vector<16x1xf32> -> vector<16x1xf32>
    %58 = vector.broadcast %57 : vector<16x1xf32> to vector<16x16xf32>
    %59 = arith.mulf %54, %58 : vector<16x16xf32>
    %60 = vector.extract_strided_slice %43 {offsets = [0, 0], sizes = [16, 8], strides = [1, 1]} : vector<16x32xf32> to vector<16x8xf32>
    %cst_34 = arith.constant dense<0.000000e+00> : vector<16x8xf32>
    %61 = tpu.matmul %59, %60, %cst_34 {dimension_numbers = #tpu.dot_dimension_numbers<[1], [0], [0], [1], [0, 0, 1, 1], [], []>} : vector<16x16xf32>, vector<16x8xf32>, vector<16x8xf32> -> vector<16x8xf32>
    %62 = vector.extract_strided_slice %35 {offsets = [0, 0], sizes = [8, 32], strides = [1, 1]} : vector<32x32xf32> to vector<8x32xf32>
    %cst_35 = arith.constant dense<0.000000e+00> : vector<16x32xf32>
    %63 = tpu.matmul %61, %62, %cst_35 {dimension_numbers = #tpu.dot_dimension_numbers<[1], [0], [0], [1], [0, 0, 1, 1], [], []>} : vector<16x8xf32>, vector<8x32xf32>, vector<16x32xf32> -> vector<16x32xf32>
    %64 = vector.extract_strided_slice %41 {offsets = [0, 8], sizes = [16, 8], strides = [1, 1]} : vector<16x32xf32> to vector<16x8xf32>
    %65 = vector.extract_strided_slice %42 {offsets = [0, 8], sizes = [16, 8], strides = [1, 1]} : vector<16x32xf32> to vector<16x8xf32>
    %cst_36 = arith.constant dense<0.000000e+00> : vector<16x16xf32>
    %66 = tpu.matmul %64, %65, %cst_36 {dimension_numbers = #tpu.dot_dimension_numbers<[1], [1], [0], [0], [0, 0, 1, 0], [], []>} : vector<16x8xf32>, vector<16x8xf32>, vector<16x16xf32> -> vector<16x16xf32>
    %cst_37 = arith.constant 0.353553385 : f32
    %67 = vector.broadcast %cst_37 : f32 to vector<16x16xf32>
    %68 = arith.mulf %66, %67 : vector<16x16xf32>
    %69 = arith.addf %68, %0 : vector<16x16xf32>
    %cst_38 = arith.constant dense<0xFF800000> : vector<16xf32>
    %70 = vector.multi_reduction <maximumf>, %69, %cst_38 [1] : vector<16x16xf32> to vector<16xf32>
    %71 = vector.shape_cast %70 : vector<16xf32> to vector<16x1xf32>
    %72 = vector.broadcast %71 : vector<16x1xf32> to vector<16x16xf32>
    %73 = arith.subf %69, %72 : vector<16x16xf32>
    %74 = math.exp %73 : vector<16x16xf32>
    %cst_39 = arith.constant dense<0.000000e+00> : vector<16xf32>
    %75 = vector.multi_reduction <add>, %74, %cst_39 [1] : vector<16x16xf32> to vector<16xf32>
    %76 = vector.shape_cast %75 : vector<16xf32> to vector<16x1xf32>
    %77 = tpu.reciprocal %76 {approx = true} : vector<16x1xf32> -> vector<16x1xf32>
    %78 = vector.broadcast %77 : vector<16x1xf32> to vector<16x16xf32>
    %79 = arith.mulf %74, %78 : vector<16x16xf32>
    %80 = vector.extract_strided_slice %43 {offsets = [0, 8], sizes = [16, 8], strides = [1, 1]} : vector<16x32xf32> to vector<16x8xf32>
    %cst_40 = arith.constant dense<0.000000e+00> : vector<16x8xf32>
    %81 = tpu.matmul %79, %80, %cst_40 {dimension_numbers = #tpu.dot_dimension_numbers<[1], [0], [0], [1], [0, 0, 1, 1], [], []>} : vector<16x16xf32>, vector<16x8xf32>, vector<16x8xf32> -> vector<16x8xf32>
    %82 = vector.extract_strided_slice %35 {offsets = [8, 0], sizes = [8, 32], strides = [1, 1]} : vector<32x32xf32> to vector<8x32xf32>
    %cst_41 = arith.constant dense<0.000000e+00> : vector<16x32xf32>
    %83 = tpu.matmul %81, %82, %cst_41 {dimension_numbers = #tpu.dot_dimension_numbers<[1], [0], [0], [1], [0, 0, 1, 1], [], []>} : vector<16x8xf32>, vector<8x32xf32>, vector<16x32xf32> -> vector<16x32xf32>
    %84 = arith.addf %63, %83 : vector<16x32xf32>
    %85 = vector.extract_strided_slice %41 {offsets = [0, 16], sizes = [16, 8], strides = [1, 1]} : vector<16x32xf32> to vector<16x8xf32>
    %86 = vector.extract_strided_slice %42 {offsets = [0, 16], sizes = [16, 8], strides = [1, 1]} : vector<16x32xf32> to vector<16x8xf32>
    %cst_42 = arith.constant dense<0.000000e+00> : vector<16x16xf32>
    %87 = tpu.matmul %85, %86, %cst_42 {dimension_numbers = #tpu.dot_dimension_numbers<[1], [1], [0], [0], [0, 0, 1, 0], [], []>} : vector<16x8xf32>, vector<16x8xf32>, vector<16x16xf32> -> vector<16x16xf32>
    %cst_43 = arith.constant 0.353553385 : f32
    %88 = vector.broadcast %cst_43 : f32 to vector<16x16xf32>
    %89 = arith.mulf %87, %88 : vector<16x16xf32>
    %90 = arith.addf %89, %0 : vector<16x16xf32>
    %cst_44 = arith.constant dense<0xFF800000> : vector<16xf32>
    %91 = vector.multi_reduction <maximumf>, %90, %cst_44 [1] : vector<16x16xf32> to vector<16xf32>
    %92 = vector.shape_cast %91 : vector<16xf32> to vector<16x1xf32>
    %93 = vector.broadcast %92 : vector<16x1xf32> to vector<16x16xf32>
    %94 = arith.subf %90, %93 : vector<16x16xf32>
    %95 = math.exp %94 : vector<16x16xf32>
    %cst_45 = arith.constant dense<0.000000e+00> : vector<16xf32>
    %96 = vector.multi_reduction <add>, %95, %cst_45 [1] : vector<16x16xf32> to vector<16xf32>
    %97 = vector.shape_cast %96 : vector<16xf32> to vector<16x1xf32>
    %98 = tpu.reciprocal %97 {approx = true} : vector<16x1xf32> -> vector<16x1xf32>
    %99 = vector.broadcast %98 : vector<16x1xf32> to vector<16x16xf32>
    %100 = arith.mulf %95, %99 : vector<16x16xf32>
    %101 = vector.extract_strided_slice %43 {offsets = [0, 16], sizes = [16, 8], strides = [1, 1]} : vector<16x32xf32> to vector<16x8xf32>
    %cst_46 = arith.constant dense<0.000000e+00> : vector<16x8xf32>
    %102 = tpu.matmul %100, %101, %cst_46 {dimension_numbers = #tpu.dot_dimension_numbers<[1], [0], [0], [1], [0, 0, 1, 1], [], []>} : vector<16x16xf32>, vector<16x8xf32>, vector<16x8xf32> -> vector<16x8xf32>
    %103 = vector.extract_strided_slice %35 {offsets = [16, 0], sizes = [8, 32], strides = [1, 1]} : vector<32x32xf32> to vector<8x32xf32>
    %cst_47 = arith.constant dense<0.000000e+00> : vector<16x32xf32>
    %104 = tpu.matmul %102, %103, %cst_47 {dimension_numbers = #tpu.dot_dimension_numbers<[1], [0], [0], [1], [0, 0, 1, 1], [], []>} : vector<16x8xf32>, vector<8x32xf32>, vector<16x32xf32> -> vector<16x32xf32>
    %105 = arith.addf %84, %104 : vector<16x32xf32>
    %106 = vector.extract_strided_slice %41 {offsets = [0, 24], sizes = [16, 8], strides = [1, 1]} : vector<16x32xf32> to vector<16x8xf32>
    %107 = vector.extract_strided_slice %42 {offsets = [0, 24], sizes = [16, 8], strides = [1, 1]} : vector<16x32xf32> to vector<16x8xf32>
    %cst_48 = arith.constant dense<0.000000e+00> : vector<16x16xf32>
    %108 = tpu.matmul %106, %107, %cst_48 {dimension_numbers = #tpu.dot_dimension_numbers<[1], [1], [0], [0], [0, 0, 1, 0], [], []>} : vector<16x8xf32>, vector<16x8xf32>, vector<16x16xf32> -> vector<16x16xf32>
    %cst_49 = arith.constant 0.353553385 : f32
    %109 = vector.broadcast %cst_49 : f32 to vector<16x16xf32>
    %110 = arith.mulf %108, %109 : vector<16x16xf32>
    %111 = arith.addf %110, %0 : vector<16x16xf32>
    %cst_50 = arith.constant dense<0xFF800000> : vector<16xf32>
    %112 = vector.multi_reduction <maximumf>, %111, %cst_50 [1] : vector<16x16xf32> to vector<16xf32>
    %113 = vector.shape_cast %112 : vector<16xf32> to vector<16x1xf32>
    %114 = vector.broadcast %113 : vector<16x1xf32> to vector<16x16xf32>
    %115 = arith.subf %111, %114 : vector<16x16xf32>
    %116 = math.exp %115 : vector<16x16xf32>
    %cst_51 = arith.constant dense<0.000000e+00> : vector<16xf32>
    %117 = vector.multi_reduction <add>, %116, %cst_51 [1] : vector<16x16xf32> to vector<16xf32>
    %118 = vector.shape_cast %117 : vector<16xf32> to vector<16x1xf32>
    %119 = tpu.reciprocal %118 {approx = true} : vector<16x1xf32> -> vector<16x1xf32>
    %120 = vector.broadcast %119 : vector<16x1xf32> to vector<16x16xf32>
    %121 = arith.mulf %116, %120 : vector<16x16xf32>
    %122 = vector.extract_strided_slice %43 {offsets = [0, 24], sizes = [16, 8], strides = [1, 1]} : vector<16x32xf32> to vector<16x8xf32>
    %cst_52 = arith.constant dense<0.000000e+00> : vector<16x8xf32>
    %123 = tpu.matmul %121, %122, %cst_52 {dimension_numbers = #tpu.dot_dimension_numbers<[1], [0], [0], [1], [0, 0, 1, 1], [], []>} : vector<16x16xf32>, vector<16x8xf32>, vector<16x8xf32> -> vector<16x8xf32>
    %124 = vector.extract_strided_slice %35 {offsets = [24, 0], sizes = [8, 32], strides = [1, 1]} : vector<32x32xf32> to vector<8x32xf32>
    %cst_53 = arith.constant dense<0.000000e+00> : vector<16x32xf32>
    %125 = tpu.matmul %123, %124, %cst_53 {dimension_numbers = #tpu.dot_dimension_numbers<[1], [0], [0], [1], [0, 0, 1, 1], [], []>} : vector<16x8xf32>, vector<8x32xf32>, vector<16x32xf32> -> vector<16x32xf32>
    %126 = arith.addf %105, %125 : vector<16x32xf32>
    %127 = vector.broadcast %37 : vector<1x32xf32> to vector<16x32xf32>
    %128 = arith.addf %126, %127 : vector<16x32xf32>
    %129 = arith.addf %3, %128 : vector<16x32xf32>
    %c0_54 = arith.constant 0 : index
    %c0_55 = arith.constant 0 : index
    %c0_56 = arith.constant 0 : index
    %130 = vector.load %arg32[%c0_54, %c0_55, %c0_56] : memref<2x1x32xf32, #tpu.memory_space<vmem>>, vector<1x1x32xf32>
    %131 = vector.shape_cast %130 : vector<1x1x32xf32> to vector<1x32xf32>
    %c0_57 = arith.constant 0 : index
    %c0_58 = arith.constant 0 : index
    %c0_59 = arith.constant 0 : index
    %132 = vector.load %arg31[%c0_57, %c0_58, %c0_59] : memref<2x1x32xf32, #tpu.memory_space<vmem>>, vector<1x1x32xf32>
    %133 = vector.shape_cast %132 : vector<1x1x32xf32> to vector<1x32xf32>
    %cst_60 = arith.constant dense<0.000000e+00> : vector<16xf32>
    %134 = vector.multi_reduction <add>, %129, %cst_60 [1] : vector<16x32xf32> to vector<16xf32>
    %135 = vector.shape_cast %134 : vector<16xf32> to vector<16x1xf32>
    %cst_61 = arith.constant 3.200000e+01 : f32
    %136 = vector.broadcast %cst_61 : f32 to vector<16x1xf32>
    %137 = arith.divf %135, %136 : vector<16x1xf32>
    %138 = vector.broadcast %137 : vector<16x1xf32> to vector<16x32xf32>
    %139 = arith.subf %129, %138 : vector<16x32xf32>
    %140 = arith.mulf %139, %139 : vector<16x32xf32>
    %cst_62 = arith.constant dense<0.000000e+00> : vector<16xf32>
    %141 = vector.multi_reduction <add>, %140, %cst_62 [1] : vector<16x32xf32> to vector<16xf32>
    %142 = vector.shape_cast %141 : vector<16xf32> to vector<16x1xf32>
    %cst_63 = arith.constant 3.200000e+01 : f32
    %143 = vector.broadcast %cst_63 : f32 to vector<16x1xf32>
    %144 = arith.divf %142, %143 : vector<16x1xf32>
    %145 = vector.broadcast %137 : vector<16x1xf32> to vector<16x32xf32>
    %146 = arith.subf %129, %145 : vector<16x32xf32>
    %cst_64 = arith.constant 9.99999997E-7 : f32
    %147 = vector.broadcast %cst_64 : f32 to vector<16x1xf32>
    %148 = arith.addf %144, %147 : vector<16x1xf32>
    %149 = math.rsqrt %148 : vector<16x1xf32>
    %150 = vector.broadcast %149 : vector<16x1xf32> to vector<16x32xf32>
    %151 = arith.mulf %146, %150 : vector<16x32xf32>
    %152 = vector.broadcast %131 : vector<1x32xf32> to vector<16x32xf32>
    %153 = arith.mulf %151, %152 : vector<16x32xf32>
    %154 = vector.broadcast %133 : vector<1x32xf32> to vector<16x32xf32>
    %155 = arith.addf %153, %154 : vector<16x32xf32>
    %c0_65 = arith.constant 0 : index
    %c0_66 = arith.constant 0 : index
    %c0_67 = arith.constant 0 : index
    %156 = vector.load %arg33[%c0_65, %c0_66, %c0_67] : memref<2x32x64xf32, #tpu.memory_space<vmem>>, vector<1x32x64xf32>
    %157 = vector.shape_cast %156 : vector<1x32x64xf32> to vector<32x64xf32>
    %c0_68 = arith.constant 0 : index
    %c0_69 = arith.constant 0 : index
    %c0_70 = arith.constant 0 : index
    %158 = vector.load %arg25[%c0_68, %c0_69, %c0_70] : memref<2x1x64xf32, #tpu.memory_space<vmem>>, vector<1x1x64xf32>
    %159 = vector.shape_cast %158 : vector<1x1x64xf32> to vector<1x64xf32>
    %c0_71 = arith.constant 0 : index
    %c0_72 = arith.constant 0 : index
    %c0_73 = arith.constant 0 : index
    %160 = vector.load %arg34[%c0_71, %c0_72, %c0_73] : memref<2x64x32xf32, #tpu.memory_space<vmem>>, vector<1x64x32xf32>
    %161 = vector.shape_cast %160 : vector<1x64x32xf32> to vector<64x32xf32>
    %c0_74 = arith.constant 0 : index
    %c0_75 = arith.constant 0 : index
    %c0_76 = arith.constant 0 : index
    %162 = vector.load %arg26[%c0_74, %c0_75, %c0_76] : memref<2x1x32xf32, #tpu.memory_space<vmem>>, vector<1x1x32xf32>
    %163 = vector.shape_cast %162 : vector<1x1x32xf32> to vector<1x32xf32>
    %cst_77 = arith.constant dense<0.000000e+00> : vector<16x64xf32>
    %164 = tpu.matmul %155, %157, %cst_77 {dimension_numbers = #tpu.dot_dimension_numbers<[1], [0], [0], [1], [0, 0, 1, 1], [], []>} : vector<16x32xf32>, vector<32x64xf32>, vector<16x64xf32> -> vector<16x64xf32>
    %165 = vector.broadcast %159 : vector<1x64xf32> to vector<16x64xf32>
    %166 = arith.addf %164, %165 : vector<16x64xf32>
    %cst_78 = arith.constant 0.000000e+00 : f32
    %167 = vector.broadcast %cst_78 : f32 to vector<16x64xf32>
    %168 = arith.maximumf %166, %167 : vector<16x64xf32>
    %cst_79 = arith.constant dense<0.000000e+00> : vector<16x32xf32>
    %169 = tpu.matmul %168, %161, %cst_79 {dimension_numbers = #tpu.dot_dimension_numbers<[1], [0], [0], [1], [0, 0, 1, 1], [], []>} : vector<16x64xf32>, vector<64x32xf32>, vector<16x32xf32> -> vector<16x32xf32>
    %170 = vector.broadcast %163 : vector<1x32xf32> to vector<16x32xf32>
    %171 = arith.addf %169, %170 : vector<16x32xf32>
    %172 = arith.addf %129, %171 : vector<16x32xf32>
    %c1 = arith.constant 1 : index
    %c0_80 = arith.constant 0 : index
    %c0_81 = arith.constant 0 : index
    %173 = vector.load %arg30[%c1, %c0_80, %c0_81] : memref<2x1x32xf32, #tpu.memory_space<vmem>>, vector<1x1x32xf32>
    %174 = vector.shape_cast %173 : vector<1x1x32xf32> to vector<1x32xf32>
    %c1_82 = arith.constant 1 : index
    %c0_83 = arith.constant 0 : index
    %c0_84 = arith.constant 0 : index
    %175 = vector.load %arg29[%c1_82, %c0_83, %c0_84] : memref<2x1x32xf32, #tpu.memory_space<vmem>>, vector<1x1x32xf32>
    %176 = vector.shape_cast %175 : vector<1x1x32xf32> to vector<1x32xf32>
    %cst_85 = arith.constant dense<0.000000e+00> : vector<16xf32>
    %177 = vector.multi_reduction <add>, %172, %cst_85 [1] : vector<16x32xf32> to vector<16xf32>
    %178 = vector.shape_cast %177 : vector<16xf32> to vector<16x1xf32>
    %cst_86 = arith.constant 3.200000e+01 : f32
    %179 = vector.broadcast %cst_86 : f32 to vector<16x1xf32>
    %180 = arith.divf %178, %179 : vector<16x1xf32>
    %181 = vector.broadcast %180 : vector<16x1xf32> to vector<16x32xf32>
    %182 = arith.subf %172, %181 : vector<16x32xf32>
    %183 = arith.mulf %182, %182 : vector<16x32xf32>
    %cst_87 = arith.constant dense<0.000000e+00> : vector<16xf32>
    %184 = vector.multi_reduction <add>, %183, %cst_87 [1] : vector<16x32xf32> to vector<16xf32>
    %185 = vector.shape_cast %184 : vector<16xf32> to vector<16x1xf32>
    %cst_88 = arith.constant 3.200000e+01 : f32
    %186 = vector.broadcast %cst_88 : f32 to vector<16x1xf32>
    %187 = arith.divf %185, %186 : vector<16x1xf32>
    %188 = vector.broadcast %180 : vector<16x1xf32> to vector<16x32xf32>
    %189 = arith.subf %172, %188 : vector<16x32xf32>
    %cst_89 = arith.constant 9.99999997E-7 : f32
    %190 = vector.broadcast %cst_89 : f32 to vector<16x1xf32>
    %191 = arith.addf %187, %190 : vector<16x1xf32>
    %192 = math.rsqrt %191 : vector<16x1xf32>
    %193 = vector.broadcast %192 : vector<16x1xf32> to vector<16x32xf32>
    %194 = arith.mulf %189, %193 : vector<16x32xf32>
    %195 = vector.broadcast %174 : vector<1x32xf32> to vector<16x32xf32>
    %196 = arith.mulf %194, %195 : vector<16x32xf32>
    %197 = vector.broadcast %176 : vector<1x32xf32> to vector<16x32xf32>
    %198 = arith.addf %196, %197 : vector<16x32xf32>
    %c1_90 = arith.constant 1 : index
    %c0_91 = arith.constant 0 : index
    %c0_92 = arith.constant 0 : index
    %199 = vector.load %arg36[%c1_90, %c0_91, %c0_92] : memref<2x32x96xf32, #tpu.memory_space<vmem>>, vector<1x32x96xf32>
    %200 = vector.shape_cast %199 : vector<1x32x96xf32> to vector<32x96xf32>
    %c1_93 = arith.constant 1 : index
    %c0_94 = arith.constant 0 : index
    %c0_95 = arith.constant 0 : index
    %201 = vector.load %arg28[%c1_93, %c0_94, %c0_95] : memref<2x1x96xf32, #tpu.memory_space<vmem>>, vector<1x1x96xf32>
    %202 = vector.shape_cast %201 : vector<1x1x96xf32> to vector<1x96xf32>
    %c1_96 = arith.constant 1 : index
    %c0_97 = arith.constant 0 : index
    %c0_98 = arith.constant 0 : index
    %203 = vector.load %arg35[%c1_96, %c0_97, %c0_98] : memref<2x32x32xf32, #tpu.memory_space<vmem>>, vector<1x32x32xf32>
    %204 = vector.shape_cast %203 : vector<1x32x32xf32> to vector<32x32xf32>
    %c1_99 = arith.constant 1 : index
    %c0_100 = arith.constant 0 : index
    %c0_101 = arith.constant 0 : index
    %205 = vector.load %arg27[%c1_99, %c0_100, %c0_101] : memref<2x1x32xf32, #tpu.memory_space<vmem>>, vector<1x1x32xf32>
    %206 = vector.shape_cast %205 : vector<1x1x32xf32> to vector<1x32xf32>
    %cst_102 = arith.constant dense<0.000000e+00> : vector<16x96xf32>
    %207 = tpu.matmul %198, %200, %cst_102 {dimension_numbers = #tpu.dot_dimension_numbers<[1], [0], [0], [1], [0, 0, 1, 1], [], []>} : vector<16x32xf32>, vector<32x96xf32>, vector<16x96xf32> -> vector<16x96xf32>
    %208 = vector.broadcast %202 : vector<1x96xf32> to vector<16x96xf32>
    %209 = arith.addf %207, %208 : vector<16x96xf32>
    %210 = vector.extract_strided_slice %209 {offsets = [0, 0], sizes = [16, 32], strides = [1, 1]} : vector<16x96xf32> to vector<16x32xf32>
    %211 = vector.extract_strided_slice %209 {offsets = [0, 32], sizes = [16, 32], strides = [1, 1]} : vector<16x96xf32> to vector<16x32xf32>
    %212 = vector.extract_strided_slice %209 {offsets = [0, 64], sizes = [16, 32], strides = [1, 1]} : vector<16x96xf32> to vector<16x32xf32>
    %213 = vector.extract_strided_slice %210 {offsets = [0, 0], sizes = [16, 8], strides = [1, 1]} : vector<16x32xf32> to vector<16x8xf32>
    %214 = vector.extract_strided_slice %211 {offsets = [0, 0], sizes = [16, 8], strides = [1, 1]} : vector<16x32xf32> to vector<16x8xf32>
    %cst_103 = arith.constant dense<0.000000e+00> : vector<16x16xf32>
    %215 = tpu.matmul %213, %214, %cst_103 {dimension_numbers = #tpu.dot_dimension_numbers<[1], [1], [0], [0], [0, 0, 1, 0], [], []>} : vector<16x8xf32>, vector<16x8xf32>, vector<16x16xf32> -> vector<16x16xf32>
    %cst_104 = arith.constant 0.353553385 : f32
    %216 = vector.broadcast %cst_104 : f32 to vector<16x16xf32>
    %217 = arith.mulf %215, %216 : vector<16x16xf32>
    %218 = arith.addf %217, %0 : vector<16x16xf32>
    %cst_105 = arith.constant dense<0xFF800000> : vector<16xf32>
    %219 = vector.multi_reduction <maximumf>, %218, %cst_105 [1] : vector<16x16xf32> to vector<16xf32>
    %220 = vector.shape_cast %219 : vector<16xf32> to vector<16x1xf32>
    %221 = vector.broadcast %220 : vector<16x1xf32> to vector<16x16xf32>
    %222 = arith.subf %218, %221 : vector<16x16xf32>
    %223 = math.exp %222 : vector<16x16xf32>
    %cst_106 = arith.constant dense<0.000000e+00> : vector<16xf32>
    %224 = vector.multi_reduction <add>, %223, %cst_106 [1] : vector<16x16xf32> to vector<16xf32>
    %225 = vector.shape_cast %224 : vector<16xf32> to vector<16x1xf32>
    %226 = tpu.reciprocal %225 {approx = true} : vector<16x1xf32> -> vector<16x1xf32>
    %227 = vector.broadcast %226 : vector<16x1xf32> to vector<16x16xf32>
    %228 = arith.mulf %223, %227 : vector<16x16xf32>
    %229 = vector.extract_strided_slice %212 {offsets = [0, 0], sizes = [16, 8], strides = [1, 1]} : vector<16x32xf32> to vector<16x8xf32>
    %cst_107 = arith.constant dense<0.000000e+00> : vector<16x8xf32>
    %230 = tpu.matmul %228, %229, %cst_107 {dimension_numbers = #tpu.dot_dimension_numbers<[1], [0], [0], [1], [0, 0, 1, 1], [], []>} : vector<16x16xf32>, vector<16x8xf32>, vector<16x8xf32> -> vector<16x8xf32>
    %231 = vector.extract_strided_slice %204 {offsets = [0, 0], sizes = [8, 32], strides = [1, 1]} : vector<32x32xf32> to vector<8x32xf32>
    %cst_108 = arith.constant dense<0.000000e+00> : vector<16x32xf32>
    %232 = tpu.matmul %230, %231, %cst_108 {dimension_numbers = #tpu.dot_dimension_numbers<[1], [0], [0], [1], [0, 0, 1, 1], [], []>} : vector<16x8xf32>, vector<8x32xf32>, vector<16x32xf32> -> vector<16x32xf32>
    %233 = vector.extract_strided_slice %210 {offsets = [0, 8], sizes = [16, 8], strides = [1, 1]} : vector<16x32xf32> to vector<16x8xf32>
    %234 = vector.extract_strided_slice %211 {offsets = [0, 8], sizes = [16, 8], strides = [1, 1]} : vector<16x32xf32> to vector<16x8xf32>
    %cst_109 = arith.constant dense<0.000000e+00> : vector<16x16xf32>
    %235 = tpu.matmul %233, %234, %cst_109 {dimension_numbers = #tpu.dot_dimension_numbers<[1], [1], [0], [0], [0, 0, 1, 0], [], []>} : vector<16x8xf32>, vector<16x8xf32>, vector<16x16xf32> -> vector<16x16xf32>
    %cst_110 = arith.constant 0.353553385 : f32
    %236 = vector.broadcast %cst_110 : f32 to vector<16x16xf32>
    %237 = arith.mulf %235, %236 : vector<16x16xf32>
    %238 = arith.addf %237, %0 : vector<16x16xf32>
    %cst_111 = arith.constant dense<0xFF800000> : vector<16xf32>
    %239 = vector.multi_reduction <maximumf>, %238, %cst_111 [1] : vector<16x16xf32> to vector<16xf32>
    %240 = vector.shape_cast %239 : vector<16xf32> to vector<16x1xf32>
    %241 = vector.broadcast %240 : vector<16x1xf32> to vector<16x16xf32>
    %242 = arith.subf %238, %241 : vector<16x16xf32>
    %243 = math.exp %242 : vector<16x16xf32>
    %cst_112 = arith.constant dense<0.000000e+00> : vector<16xf32>
    %244 = vector.multi_reduction <add>, %243, %cst_112 [1] : vector<16x16xf32> to vector<16xf32>
    %245 = vector.shape_cast %244 : vector<16xf32> to vector<16x1xf32>
    %246 = tpu.reciprocal %245 {approx = true} : vector<16x1xf32> -> vector<16x1xf32>
    %247 = vector.broadcast %246 : vector<16x1xf32> to vector<16x16xf32>
    %248 = arith.mulf %243, %247 : vector<16x16xf32>
    %249 = vector.extract_strided_slice %212 {offsets = [0, 8], sizes = [16, 8], strides = [1, 1]} : vector<16x32xf32> to vector<16x8xf32>
    %cst_113 = arith.constant dense<0.000000e+00> : vector<16x8xf32>
    %250 = tpu.matmul %248, %249, %cst_113 {dimension_numbers = #tpu.dot_dimension_numbers<[1], [0], [0], [1], [0, 0, 1, 1], [], []>} : vector<16x16xf32>, vector<16x8xf32>, vector<16x8xf32> -> vector<16x8xf32>
    %251 = vector.extract_strided_slice %204 {offsets = [8, 0], sizes = [8, 32], strides = [1, 1]} : vector<32x32xf32> to vector<8x32xf32>
    %cst_114 = arith.constant dense<0.000000e+00> : vector<16x32xf32>
    %252 = tpu.matmul %250, %251, %cst_114 {dimension_numbers = #tpu.dot_dimension_numbers<[1], [0], [0], [1], [0, 0, 1, 1], [], []>} : vector<16x8xf32>, vector<8x32xf32>, vector<16x32xf32> -> vector<16x32xf32>
    %253 = arith.addf %232, %252 : vector<16x32xf32>
    %254 = vector.extract_strided_slice %210 {offsets = [0, 16], sizes = [16, 8], strides = [1, 1]} : vector<16x32xf32> to vector<16x8xf32>
    %255 = vector.extract_strided_slice %211 {offsets = [0, 16], sizes = [16, 8], strides = [1, 1]} : vector<16x32xf32> to vector<16x8xf32>
    %cst_115 = arith.constant dense<0.000000e+00> : vector<16x16xf32>
    %256 = tpu.matmul %254, %255, %cst_115 {dimension_numbers = #tpu.dot_dimension_numbers<[1], [1], [0], [0], [0, 0, 1, 0], [], []>} : vector<16x8xf32>, vector<16x8xf32>, vector<16x16xf32> -> vector<16x16xf32>
    %cst_116 = arith.constant 0.353553385 : f32
    %257 = vector.broadcast %cst_116 : f32 to vector<16x16xf32>
    %258 = arith.mulf %256, %257 : vector<16x16xf32>
    %259 = arith.addf %258, %0 : vector<16x16xf32>
    %cst_117 = arith.constant dense<0xFF800000> : vector<16xf32>
    %260 = vector.multi_reduction <maximumf>, %259, %cst_117 [1] : vector<16x16xf32> to vector<16xf32>
    %261 = vector.shape_cast %260 : vector<16xf32> to vector<16x1xf32>
    %262 = vector.broadcast %261 : vector<16x1xf32> to vector<16x16xf32>
    %263 = arith.subf %259, %262 : vector<16x16xf32>
    %264 = math.exp %263 : vector<16x16xf32>
    %cst_118 = arith.constant dense<0.000000e+00> : vector<16xf32>
    %265 = vector.multi_reduction <add>, %264, %cst_118 [1] : vector<16x16xf32> to vector<16xf32>
    %266 = vector.shape_cast %265 : vector<16xf32> to vector<16x1xf32>
    %267 = tpu.reciprocal %266 {approx = true} : vector<16x1xf32> -> vector<16x1xf32>
    %268 = vector.broadcast %267 : vector<16x1xf32> to vector<16x16xf32>
    %269 = arith.mulf %264, %268 : vector<16x16xf32>
    %270 = vector.extract_strided_slice %212 {offsets = [0, 16], sizes = [16, 8], strides = [1, 1]} : vector<16x32xf32> to vector<16x8xf32>
    %cst_119 = arith.constant dense<0.000000e+00> : vector<16x8xf32>
    %271 = tpu.matmul %269, %270, %cst_119 {dimension_numbers = #tpu.dot_dimension_numbers<[1], [0], [0], [1], [0, 0, 1, 1], [], []>} : vector<16x16xf32>, vector<16x8xf32>, vector<16x8xf32> -> vector<16x8xf32>
    %272 = vector.extract_strided_slice %204 {offsets = [16, 0], sizes = [8, 32], strides = [1, 1]} : vector<32x32xf32> to vector<8x32xf32>
    %cst_120 = arith.constant dense<0.000000e+00> : vector<16x32xf32>
    %273 = tpu.matmul %271, %272, %cst_120 {dimension_numbers = #tpu.dot_dimension_numbers<[1], [0], [0], [1], [0, 0, 1, 1], [], []>} : vector<16x8xf32>, vector<8x32xf32>, vector<16x32xf32> -> vector<16x32xf32>
    %274 = arith.addf %253, %273 : vector<16x32xf32>
    %275 = vector.extract_strided_slice %210 {offsets = [0, 24], sizes = [16, 8], strides = [1, 1]} : vector<16x32xf32> to vector<16x8xf32>
    %276 = vector.extract_strided_slice %211 {offsets = [0, 24], sizes = [16, 8], strides = [1, 1]} : vector<16x32xf32> to vector<16x8xf32>
    %cst_121 = arith.constant dense<0.000000e+00> : vector<16x16xf32>
    %277 = tpu.matmul %275, %276, %cst_121 {dimension_numbers = #tpu.dot_dimension_numbers<[1], [1], [0], [0], [0, 0, 1, 0], [], []>} : vector<16x8xf32>, vector<16x8xf32>, vector<16x16xf32> -> vector<16x16xf32>
    %cst_122 = arith.constant 0.353553385 : f32
    %278 = vector.broadcast %cst_122 : f32 to vector<16x16xf32>
    %279 = arith.mulf %277, %278 : vector<16x16xf32>
    %280 = arith.addf %279, %0 : vector<16x16xf32>
    %cst_123 = arith.constant dense<0xFF800000> : vector<16xf32>
    %281 = vector.multi_reduction <maximumf>, %280, %cst_123 [1] : vector<16x16xf32> to vector<16xf32>
    %282 = vector.shape_cast %281 : vector<16xf32> to vector<16x1xf32>
    %283 = vector.broadcast %282 : vector<16x1xf32> to vector<16x16xf32>
    %284 = arith.subf %280, %283 : vector<16x16xf32>
    %285 = math.exp %284 : vector<16x16xf32>
    %cst_124 = arith.constant dense<0.000000e+00> : vector<16xf32>
    %286 = vector.multi_reduction <add>, %285, %cst_124 [1] : vector<16x16xf32> to vector<16xf32>
    %287 = vector.shape_cast %286 : vector<16xf32> to vector<16x1xf32>
    %288 = tpu.reciprocal %287 {approx = true} : vector<16x1xf32> -> vector<16x1xf32>
    %289 = vector.broadcast %288 : vector<16x1xf32> to vector<16x16xf32>
    %290 = arith.mulf %285, %289 : vector<16x16xf32>
    %291 = vector.extract_strided_slice %212 {offsets = [0, 24], sizes = [16, 8], strides = [1, 1]} : vector<16x32xf32> to vector<16x8xf32>
    %cst_125 = arith.constant dense<0.000000e+00> : vector<16x8xf32>
    %292 = tpu.matmul %290, %291, %cst_125 {dimension_numbers = #tpu.dot_dimension_numbers<[1], [0], [0], [1], [0, 0, 1, 1], [], []>} : vector<16x16xf32>, vector<16x8xf32>, vector<16x8xf32> -> vector<16x8xf32>
    %293 = vector.extract_strided_slice %204 {offsets = [24, 0], sizes = [8, 32], strides = [1, 1]} : vector<32x32xf32> to vector<8x32xf32>
    %cst_126 = arith.constant dense<0.000000e+00> : vector<16x32xf32>
    %294 = tpu.matmul %292, %293, %cst_126 {dimension_numbers = #tpu.dot_dimension_numbers<[1], [0], [0], [1], [0, 0, 1, 1], [], []>} : vector<16x8xf32>, vector<8x32xf32>, vector<16x32xf32> -> vector<16x32xf32>
    %295 = arith.addf %274, %294 : vector<16x32xf32>
    %296 = vector.broadcast %206 : vector<1x32xf32> to vector<16x32xf32>
    %297 = arith.addf %295, %296 : vector<16x32xf32>
    %298 = arith.addf %172, %297 : vector<16x32xf32>
    %c1_127 = arith.constant 1 : index
    %c0_128 = arith.constant 0 : index
    %c0_129 = arith.constant 0 : index
    %299 = vector.load %arg32[%c1_127, %c0_128, %c0_129] : memref<2x1x32xf32, #tpu.memory_space<vmem>>, vector<1x1x32xf32>
    %300 = vector.shape_cast %299 : vector<1x1x32xf32> to vector<1x32xf32>
    %c1_130 = arith.constant 1 : index
    %c0_131 = arith.constant 0 : index
    %c0_132 = arith.constant 0 : index
    %301 = vector.load %arg31[%c1_130, %c0_131, %c0_132] : memref<2x1x32xf32, #tpu.memory_space<vmem>>, vector<1x1x32xf32>
    %302 = vector.shape_cast %301 : vector<1x1x32xf32> to vector<1x32xf32>
    %cst_133 = arith.constant dense<0.000000e+00> : vector<16xf32>
    %303 = vector.multi_reduction <add>, %298, %cst_133 [1] : vector<16x32xf32> to vector<16xf32>
    %304 = vector.shape_cast %303 : vector<16xf32> to vector<16x1xf32>
    %cst_134 = arith.constant 3.200000e+01 : f32
    %305 = vector.broadcast %cst_134 : f32 to vector<16x1xf32>
    %306 = arith.divf %304, %305 : vector<16x1xf32>
    %307 = vector.broadcast %306 : vector<16x1xf32> to vector<16x32xf32>
    %308 = arith.subf %298, %307 : vector<16x32xf32>
    %309 = arith.mulf %308, %308 : vector<16x32xf32>
    %cst_135 = arith.constant dense<0.000000e+00> : vector<16xf32>
    %310 = vector.multi_reduction <add>, %309, %cst_135 [1] : vector<16x32xf32> to vector<16xf32>
    %311 = vector.shape_cast %310 : vector<16xf32> to vector<16x1xf32>
    %cst_136 = arith.constant 3.200000e+01 : f32
    %312 = vector.broadcast %cst_136 : f32 to vector<16x1xf32>
    %313 = arith.divf %311, %312 : vector<16x1xf32>
    %314 = vector.broadcast %306 : vector<16x1xf32> to vector<16x32xf32>
    %315 = arith.subf %298, %314 : vector<16x32xf32>
    %cst_137 = arith.constant 9.99999997E-7 : f32
    %316 = vector.broadcast %cst_137 : f32 to vector<16x1xf32>
    %317 = arith.addf %313, %316 : vector<16x1xf32>
    %318 = math.rsqrt %317 : vector<16x1xf32>
    %319 = vector.broadcast %318 : vector<16x1xf32> to vector<16x32xf32>
    %320 = arith.mulf %315, %319 : vector<16x32xf32>
    %321 = vector.broadcast %300 : vector<1x32xf32> to vector<16x32xf32>
    %322 = arith.mulf %320, %321 : vector<16x32xf32>
    %323 = vector.broadcast %302 : vector<1x32xf32> to vector<16x32xf32>
    %324 = arith.addf %322, %323 : vector<16x32xf32>
    %c1_138 = arith.constant 1 : index
    %c0_139 = arith.constant 0 : index
    %c0_140 = arith.constant 0 : index
    %325 = vector.load %arg33[%c1_138, %c0_139, %c0_140] : memref<2x32x64xf32, #tpu.memory_space<vmem>>, vector<1x32x64xf32>
    %326 = vector.shape_cast %325 : vector<1x32x64xf32> to vector<32x64xf32>
    %c1_141 = arith.constant 1 : index
    %c0_142 = arith.constant 0 : index
    %c0_143 = arith.constant 0 : index
    %327 = vector.load %arg25[%c1_141, %c0_142, %c0_143] : memref<2x1x64xf32, #tpu.memory_space<vmem>>, vector<1x1x64xf32>
    %328 = vector.shape_cast %327 : vector<1x1x64xf32> to vector<1x64xf32>
    %c1_144 = arith.constant 1 : index
    %c0_145 = arith.constant 0 : index
    %c0_146 = arith.constant 0 : index
    %329 = vector.load %arg34[%c1_144, %c0_145, %c0_146] : memref<2x64x32xf32, #tpu.memory_space<vmem>>, vector<1x64x32xf32>
    %330 = vector.shape_cast %329 : vector<1x64x32xf32> to vector<64x32xf32>
    %c1_147 = arith.constant 1 : index
    %c0_148 = arith.constant 0 : index
    %c0_149 = arith.constant 0 : index
    %331 = vector.load %arg26[%c1_147, %c0_148, %c0_149] : memref<2x1x32xf32, #tpu.memory_space<vmem>>, vector<1x1x32xf32>
    %332 = vector.shape_cast %331 : vector<1x1x32xf32> to vector<1x32xf32>
    %cst_150 = arith.constant dense<0.000000e+00> : vector<16x64xf32>
    %333 = tpu.matmul %324, %326, %cst_150 {dimension_numbers = #tpu.dot_dimension_numbers<[1], [0], [0], [1], [0, 0, 1, 1], [], []>} : vector<16x32xf32>, vector<32x64xf32>, vector<16x64xf32> -> vector<16x64xf32>
    %334 = vector.broadcast %328 : vector<1x64xf32> to vector<16x64xf32>
    %335 = arith.addf %333, %334 : vector<16x64xf32>
    %cst_151 = arith.constant 0.000000e+00 : f32
    %336 = vector.broadcast %cst_151 : f32 to vector<16x64xf32>
    %337 = arith.maximumf %335, %336 : vector<16x64xf32>
    %cst_152 = arith.constant dense<0.000000e+00> : vector<16x32xf32>
    %338 = tpu.matmul %337, %330, %cst_152 {dimension_numbers = #tpu.dot_dimension_numbers<[1], [0], [0], [1], [0, 0, 1, 1], [], []>} : vector<16x64xf32>, vector<64x32xf32>, vector<16x32xf32> -> vector<16x32xf32>
    %339 = vector.broadcast %332 : vector<1x32xf32> to vector<16x32xf32>
    %340 = arith.addf %338, %339 : vector<16x32xf32>
    %341 = arith.addf %298, %340 : vector<16x32xf32>
    %c0_153 = arith.constant 0 : index
    %c0_154 = arith.constant 0 : index
    %342 = vector.load %arg38[%c0_153, %c0_154] : memref<1x32xf32, #tpu.memory_space<vmem>>, vector<1x32xf32>
    %c0_155 = arith.constant 0 : index
    %c0_156 = arith.constant 0 : index
    %343 = vector.load %arg37[%c0_155, %c0_156] : memref<1x32xf32, #tpu.memory_space<vmem>>, vector<1x32xf32>
    %cst_157 = arith.constant dense<0.000000e+00> : vector<16xf32>
    %344 = vector.multi_reduction <add>, %341, %cst_157 [1] : vector<16x32xf32> to vector<16xf32>
    %345 = vector.shape_cast %344 : vector<16xf32> to vector<16x1xf32>
    %cst_158 = arith.constant 3.200000e+01 : f32
    %346 = vector.broadcast %cst_158 : f32 to vector<16x1xf32>
    %347 = arith.divf %345, %346 : vector<16x1xf32>
    %348 = vector.broadcast %347 : vector<16x1xf32> to vector<16x32xf32>
    %349 = arith.subf %341, %348 : vector<16x32xf32>
    %350 = arith.mulf %349, %349 : vector<16x32xf32>
    %cst_159 = arith.constant dense<0.000000e+00> : vector<16xf32>
    %351 = vector.multi_reduction <add>, %350, %cst_159 [1] : vector<16x32xf32> to vector<16xf32>
    %352 = vector.shape_cast %351 : vector<16xf32> to vector<16x1xf32>
    %cst_160 = arith.constant 3.200000e+01 : f32
    %353 = vector.broadcast %cst_160 : f32 to vector<16x1xf32>
    %354 = arith.divf %352, %353 : vector<16x1xf32>
    %355 = vector.broadcast %347 : vector<16x1xf32> to vector<16x32xf32>
    %356 = arith.subf %341, %355 : vector<16x32xf32>
    %cst_161 = arith.constant 9.99999997E-7 : f32
    %357 = vector.broadcast %cst_161 : f32 to vector<16x1xf32>
    %358 = arith.addf %354, %357 : vector<16x1xf32>
    %359 = math.rsqrt %358 : vector<16x1xf32>
    %360 = vector.broadcast %359 : vector<16x1xf32> to vector<16x32xf32>
    %361 = arith.mulf %356, %360 : vector<16x32xf32>
    %362 = vector.broadcast %342 : vector<1x32xf32> to vector<16x32xf32>
    %363 = arith.mulf %361, %362 : vector<16x32xf32>
    %364 = vector.broadcast %343 : vector<1x32xf32> to vector<16x32xf32>
    %365 = arith.addf %363, %364 : vector<16x32xf32>
    %c0_162 = arith.constant 0 : index
    %c0_163 = arith.constant 0 : index
    %366 = vector.load %arg1[%c0_162, %c0_163] : memref<16x32xf32, #tpu.memory_space<vmem>>, vector<16x32xf32>
    %c0_164 = arith.constant 0 : index
    %c0_165 = arith.constant 0 : index
    %c0_166 = arith.constant 0 : index
    %367 = vector.load %arg12[%c0_164, %c0_165, %c0_166] : memref<2x1x32xf32, #tpu.memory_space<vmem>>, vector<1x1x32xf32>
    %368 = vector.shape_cast %367 : vector<1x1x32xf32> to vector<1x32xf32>
    %c0_167 = arith.constant 0 : index
    %c0_168 = arith.constant 0 : index
    %c0_169 = arith.constant 0 : index
    %369 = vector.load %arg11[%c0_167, %c0_168, %c0_169] : memref<2x1x32xf32, #tpu.memory_space<vmem>>, vector<1x1x32xf32>
    %370 = vector.shape_cast %369 : vector<1x1x32xf32> to vector<1x32xf32>
    %cst_170 = arith.constant dense<0.000000e+00> : vector<16xf32>
    %371 = vector.multi_reduction <add>, %366, %cst_170 [1] : vector<16x32xf32> to vector<16xf32>
    %372 = vector.shape_cast %371 : vector<16xf32> to vector<16x1xf32>
    %cst_171 = arith.constant 3.200000e+01 : f32
    %373 = vector.broadcast %cst_171 : f32 to vector<16x1xf32>
    %374 = arith.divf %372, %373 : vector<16x1xf32>
    %375 = vector.broadcast %374 : vector<16x1xf32> to vector<16x32xf32>
    %376 = arith.subf %366, %375 : vector<16x32xf32>
    %377 = arith.mulf %376, %376 : vector<16x32xf32>
    %cst_172 = arith.constant dense<0.000000e+00> : vector<16xf32>
    %378 = vector.multi_reduction <add>, %377, %cst_172 [1] : vector<16x32xf32> to vector<16xf32>
    %379 = vector.shape_cast %378 : vector<16xf32> to vector<16x1xf32>
    %cst_173 = arith.constant 3.200000e+01 : f32
    %380 = vector.broadcast %cst_173 : f32 to vector<16x1xf32>
    %381 = arith.divf %379, %380 : vector<16x1xf32>
    %382 = vector.broadcast %374 : vector<16x1xf32> to vector<16x32xf32>
    %383 = arith.subf %366, %382 : vector<16x32xf32>
    %cst_174 = arith.constant 9.99999997E-7 : f32
    %384 = vector.broadcast %cst_174 : f32 to vector<16x1xf32>
    %385 = arith.addf %381, %384 : vector<16x1xf32>
    %386 = math.rsqrt %385 : vector<16x1xf32>
    %387 = vector.broadcast %386 : vector<16x1xf32> to vector<16x32xf32>
    %388 = arith.mulf %383, %387 : vector<16x32xf32>
    %389 = vector.broadcast %368 : vector<1x32xf32> to vector<16x32xf32>
    %390 = arith.mulf %388, %389 : vector<16x32xf32>
    %391 = vector.broadcast %370 : vector<1x32xf32> to vector<16x32xf32>
    %392 = arith.addf %390, %391 : vector<16x32xf32>
    %c0_175 = arith.constant 0 : index
    %c0_176 = arith.constant 0 : index
    %c0_177 = arith.constant 0 : index
    %393 = vector.load %arg20[%c0_175, %c0_176, %c0_177] : memref<2x32x96xf32, #tpu.memory_space<vmem>>, vector<1x32x96xf32>
    %394 = vector.shape_cast %393 : vector<1x32x96xf32> to vector<32x96xf32>
    %c0_178 = arith.constant 0 : index
    %c0_179 = arith.constant 0 : index
    %c0_180 = arith.constant 0 : index
    %395 = vector.load %arg18[%c0_178, %c0_179, %c0_180] : memref<2x1x96xf32, #tpu.memory_space<vmem>>, vector<1x1x96xf32>
    %396 = vector.shape_cast %395 : vector<1x1x96xf32> to vector<1x96xf32>
    %c0_181 = arith.constant 0 : index
    %c0_182 = arith.constant 0 : index
    %c0_183 = arith.constant 0 : index
    %397 = vector.load %arg19[%c0_181, %c0_182, %c0_183] : memref<2x32x32xf32, #tpu.memory_space<vmem>>, vector<1x32x32xf32>
    %398 = vector.shape_cast %397 : vector<1x32x32xf32> to vector<32x32xf32>
    %c0_184 = arith.constant 0 : index
    %c0_185 = arith.constant 0 : index
    %c0_186 = arith.constant 0 : index
    %399 = vector.load %arg17[%c0_184, %c0_185, %c0_186] : memref<2x1x32xf32, #tpu.memory_space<vmem>>, vector<1x1x32xf32>
    %400 = vector.shape_cast %399 : vector<1x1x32xf32> to vector<1x32xf32>
    %cst_187 = arith.constant dense<0.000000e+00> : vector<16x96xf32>
    %401 = tpu.matmul %392, %394, %cst_187 {dimension_numbers = #tpu.dot_dimension_numbers<[1], [0], [0], [1], [0, 0, 1, 1], [], []>} : vector<16x32xf32>, vector<32x96xf32>, vector<16x96xf32> -> vector<16x96xf32>
    %402 = vector.broadcast %396 : vector<1x96xf32> to vector<16x96xf32>
    %403 = arith.addf %401, %402 : vector<16x96xf32>
    %404 = vector.extract_strided_slice %403 {offsets = [0, 0], sizes = [16, 32], strides = [1, 1]} : vector<16x96xf32> to vector<16x32xf32>
    %405 = vector.extract_strided_slice %403 {offsets = [0, 32], sizes = [16, 32], strides = [1, 1]} : vector<16x96xf32> to vector<16x32xf32>
    %406 = vector.extract_strided_slice %403 {offsets = [0, 64], sizes = [16, 32], strides = [1, 1]} : vector<16x96xf32> to vector<16x32xf32>
    %407 = vector.extract_strided_slice %404 {offsets = [0, 0], sizes = [16, 8], strides = [1, 1]} : vector<16x32xf32> to vector<16x8xf32>
    %408 = vector.extract_strided_slice %405 {offsets = [0, 0], sizes = [16, 8], strides = [1, 1]} : vector<16x32xf32> to vector<16x8xf32>
    %cst_188 = arith.constant dense<0.000000e+00> : vector<16x16xf32>
    %409 = tpu.matmul %407, %408, %cst_188 {dimension_numbers = #tpu.dot_dimension_numbers<[1], [1], [0], [0], [0, 0, 1, 0], [], []>} : vector<16x8xf32>, vector<16x8xf32>, vector<16x16xf32> -> vector<16x16xf32>
    %cst_189 = arith.constant 0.353553385 : f32
    %410 = vector.broadcast %cst_189 : f32 to vector<16x16xf32>
    %411 = arith.mulf %409, %410 : vector<16x16xf32>
    %412 = arith.addf %411, %2 : vector<16x16xf32>
    %cst_190 = arith.constant dense<0xFF800000> : vector<16xf32>
    %413 = vector.multi_reduction <maximumf>, %412, %cst_190 [1] : vector<16x16xf32> to vector<16xf32>
    %414 = vector.shape_cast %413 : vector<16xf32> to vector<16x1xf32>
    %415 = vector.broadcast %414 : vector<16x1xf32> to vector<16x16xf32>
    %416 = arith.subf %412, %415 : vector<16x16xf32>
    %417 = math.exp %416 : vector<16x16xf32>
    %cst_191 = arith.constant dense<0.000000e+00> : vector<16xf32>
    %418 = vector.multi_reduction <add>, %417, %cst_191 [1] : vector<16x16xf32> to vector<16xf32>
    %419 = vector.shape_cast %418 : vector<16xf32> to vector<16x1xf32>
    %420 = tpu.reciprocal %419 {approx = true} : vector<16x1xf32> -> vector<16x1xf32>
    %421 = vector.broadcast %420 : vector<16x1xf32> to vector<16x16xf32>
    %422 = arith.mulf %417, %421 : vector<16x16xf32>
    %423 = vector.extract_strided_slice %406 {offsets = [0, 0], sizes = [16, 8], strides = [1, 1]} : vector<16x32xf32> to vector<16x8xf32>
    %cst_192 = arith.constant dense<0.000000e+00> : vector<16x8xf32>
    %424 = tpu.matmul %422, %423, %cst_192 {dimension_numbers = #tpu.dot_dimension_numbers<[1], [0], [0], [1], [0, 0, 1, 1], [], []>} : vector<16x16xf32>, vector<16x8xf32>, vector<16x8xf32> -> vector<16x8xf32>
    %425 = vector.extract_strided_slice %398 {offsets = [0, 0], sizes = [8, 32], strides = [1, 1]} : vector<32x32xf32> to vector<8x32xf32>
    %cst_193 = arith.constant dense<0.000000e+00> : vector<16x32xf32>
    %426 = tpu.matmul %424, %425, %cst_193 {dimension_numbers = #tpu.dot_dimension_numbers<[1], [0], [0], [1], [0, 0, 1, 1], [], []>} : vector<16x8xf32>, vector<8x32xf32>, vector<16x32xf32> -> vector<16x32xf32>
    %427 = vector.extract_strided_slice %404 {offsets = [0, 8], sizes = [16, 8], strides = [1, 1]} : vector<16x32xf32> to vector<16x8xf32>
    %428 = vector.extract_strided_slice %405 {offsets = [0, 8], sizes = [16, 8], strides = [1, 1]} : vector<16x32xf32> to vector<16x8xf32>
    %cst_194 = arith.constant dense<0.000000e+00> : vector<16x16xf32>
    %429 = tpu.matmul %427, %428, %cst_194 {dimension_numbers = #tpu.dot_dimension_numbers<[1], [1], [0], [0], [0, 0, 1, 0], [], []>} : vector<16x8xf32>, vector<16x8xf32>, vector<16x16xf32> -> vector<16x16xf32>
    %cst_195 = arith.constant 0.353553385 : f32
    %430 = vector.broadcast %cst_195 : f32 to vector<16x16xf32>
    %431 = arith.mulf %429, %430 : vector<16x16xf32>
    %432 = arith.addf %431, %2 : vector<16x16xf32>
    %cst_196 = arith.constant dense<0xFF800000> : vector<16xf32>
    %433 = vector.multi_reduction <maximumf>, %432, %cst_196 [1] : vector<16x16xf32> to vector<16xf32>
    %434 = vector.shape_cast %433 : vector<16xf32> to vector<16x1xf32>
    %435 = vector.broadcast %434 : vector<16x1xf32> to vector<16x16xf32>
    %436 = arith.subf %432, %435 : vector<16x16xf32>
    %437 = math.exp %436 : vector<16x16xf32>
    %cst_197 = arith.constant dense<0.000000e+00> : vector<16xf32>
    %438 = vector.multi_reduction <add>, %437, %cst_197 [1] : vector<16x16xf32> to vector<16xf32>
    %439 = vector.shape_cast %438 : vector<16xf32> to vector<16x1xf32>
    %440 = tpu.reciprocal %439 {approx = true} : vector<16x1xf32> -> vector<16x1xf32>
    %441 = vector.broadcast %440 : vector<16x1xf32> to vector<16x16xf32>
    %442 = arith.mulf %437, %441 : vector<16x16xf32>
    %443 = vector.extract_strided_slice %406 {offsets = [0, 8], sizes = [16, 8], strides = [1, 1]} : vector<16x32xf32> to vector<16x8xf32>
    %cst_198 = arith.constant dense<0.000000e+00> : vector<16x8xf32>
    %444 = tpu.matmul %442, %443, %cst_198 {dimension_numbers = #tpu.dot_dimension_numbers<[1], [0], [0], [1], [0, 0, 1, 1], [], []>} : vector<16x16xf32>, vector<16x8xf32>, vector<16x8xf32> -> vector<16x8xf32>
    %445 = vector.extract_strided_slice %398 {offsets = [8, 0], sizes = [8, 32], strides = [1, 1]} : vector<32x32xf32> to vector<8x32xf32>
    %cst_199 = arith.constant dense<0.000000e+00> : vector<16x32xf32>
    %446 = tpu.matmul %444, %445, %cst_199 {dimension_numbers = #tpu.dot_dimension_numbers<[1], [0], [0], [1], [0, 0, 1, 1], [], []>} : vector<16x8xf32>, vector<8x32xf32>, vector<16x32xf32> -> vector<16x32xf32>
    %447 = arith.addf %426, %446 : vector<16x32xf32>
    %448 = vector.extract_strided_slice %404 {offsets = [0, 16], sizes = [16, 8], strides = [1, 1]} : vector<16x32xf32> to vector<16x8xf32>
    %449 = vector.extract_strided_slice %405 {offsets = [0, 16], sizes = [16, 8], strides = [1, 1]} : vector<16x32xf32> to vector<16x8xf32>
    %cst_200 = arith.constant dense<0.000000e+00> : vector<16x16xf32>
    %450 = tpu.matmul %448, %449, %cst_200 {dimension_numbers = #tpu.dot_dimension_numbers<[1], [1], [0], [0], [0, 0, 1, 0], [], []>} : vector<16x8xf32>, vector<16x8xf32>, vector<16x16xf32> -> vector<16x16xf32>
    %cst_201 = arith.constant 0.353553385 : f32
    %451 = vector.broadcast %cst_201 : f32 to vector<16x16xf32>
    %452 = arith.mulf %450, %451 : vector<16x16xf32>
    %453 = arith.addf %452, %2 : vector<16x16xf32>
    %cst_202 = arith.constant dense<0xFF800000> : vector<16xf32>
    %454 = vector.multi_reduction <maximumf>, %453, %cst_202 [1] : vector<16x16xf32> to vector<16xf32>
    %455 = vector.shape_cast %454 : vector<16xf32> to vector<16x1xf32>
    %456 = vector.broadcast %455 : vector<16x1xf32> to vector<16x16xf32>
    %457 = arith.subf %453, %456 : vector<16x16xf32>
    %458 = math.exp %457 : vector<16x16xf32>
    %cst_203 = arith.constant dense<0.000000e+00> : vector<16xf32>
    %459 = vector.multi_reduction <add>, %458, %cst_203 [1] : vector<16x16xf32> to vector<16xf32>
    %460 = vector.shape_cast %459 : vector<16xf32> to vector<16x1xf32>
    %461 = tpu.reciprocal %460 {approx = true} : vector<16x1xf32> -> vector<16x1xf32>
    %462 = vector.broadcast %461 : vector<16x1xf32> to vector<16x16xf32>
    %463 = arith.mulf %458, %462 : vector<16x16xf32>
    %464 = vector.extract_strided_slice %406 {offsets = [0, 16], sizes = [16, 8], strides = [1, 1]} : vector<16x32xf32> to vector<16x8xf32>
    %cst_204 = arith.constant dense<0.000000e+00> : vector<16x8xf32>
    %465 = tpu.matmul %463, %464, %cst_204 {dimension_numbers = #tpu.dot_dimension_numbers<[1], [0], [0], [1], [0, 0, 1, 1], [], []>} : vector<16x16xf32>, vector<16x8xf32>, vector<16x8xf32> -> vector<16x8xf32>
    %466 = vector.extract_strided_slice %398 {offsets = [16, 0], sizes = [8, 32], strides = [1, 1]} : vector<32x32xf32> to vector<8x32xf32>
    %cst_205 = arith.constant dense<0.000000e+00> : vector<16x32xf32>
    %467 = tpu.matmul %465, %466, %cst_205 {dimension_numbers = #tpu.dot_dimension_numbers<[1], [0], [0], [1], [0, 0, 1, 1], [], []>} : vector<16x8xf32>, vector<8x32xf32>, vector<16x32xf32> -> vector<16x32xf32>
    %468 = arith.addf %447, %467 : vector<16x32xf32>
    %469 = vector.extract_strided_slice %404 {offsets = [0, 24], sizes = [16, 8], strides = [1, 1]} : vector<16x32xf32> to vector<16x8xf32>
    %470 = vector.extract_strided_slice %405 {offsets = [0, 24], sizes = [16, 8], strides = [1, 1]} : vector<16x32xf32> to vector<16x8xf32>
    %cst_206 = arith.constant dense<0.000000e+00> : vector<16x16xf32>
    %471 = tpu.matmul %469, %470, %cst_206 {dimension_numbers = #tpu.dot_dimension_numbers<[1], [1], [0], [0], [0, 0, 1, 0], [], []>} : vector<16x8xf32>, vector<16x8xf32>, vector<16x16xf32> -> vector<16x16xf32>
    %cst_207 = arith.constant 0.353553385 : f32
    %472 = vector.broadcast %cst_207 : f32 to vector<16x16xf32>
    %473 = arith.mulf %471, %472 : vector<16x16xf32>
    %474 = arith.addf %473, %2 : vector<16x16xf32>
    %cst_208 = arith.constant dense<0xFF800000> : vector<16xf32>
    %475 = vector.multi_reduction <maximumf>, %474, %cst_208 [1] : vector<16x16xf32> to vector<16xf32>
    %476 = vector.shape_cast %475 : vector<16xf32> to vector<16x1xf32>
    %477 = vector.broadcast %476 : vector<16x1xf32> to vector<16x16xf32>
    %478 = arith.subf %474, %477 : vector<16x16xf32>
    %479 = math.exp %478 : vector<16x16xf32>
    %cst_209 = arith.constant dense<0.000000e+00> : vector<16xf32>
    %480 = vector.multi_reduction <add>, %479, %cst_209 [1] : vector<16x16xf32> to vector<16xf32>
    %481 = vector.shape_cast %480 : vector<16xf32> to vector<16x1xf32>
    %482 = tpu.reciprocal %481 {approx = true} : vector<16x1xf32> -> vector<16x1xf32>
    %483 = vector.broadcast %482 : vector<16x1xf32> to vector<16x16xf32>
    %484 = arith.mulf %479, %483 : vector<16x16xf32>
    %485 = vector.extract_strided_slice %406 {offsets = [0, 24], sizes = [16, 8], strides = [1, 1]} : vector<16x32xf32> to vector<16x8xf32>
    %cst_210 = arith.constant dense<0.000000e+00> : vector<16x8xf32>
    %486 = tpu.matmul %484, %485, %cst_210 {dimension_numbers = #tpu.dot_dimension_numbers<[1], [0], [0], [1], [0, 0, 1, 1], [], []>} : vector<16x16xf32>, vector<16x8xf32>, vector<16x8xf32> -> vector<16x8xf32>
    %487 = vector.extract_strided_slice %398 {offsets = [24, 0], sizes = [8, 32], strides = [1, 1]} : vector<32x32xf32> to vector<8x32xf32>
    %cst_211 = arith.constant dense<0.000000e+00> : vector<16x32xf32>
    %488 = tpu.matmul %486, %487, %cst_211 {dimension_numbers = #tpu.dot_dimension_numbers<[1], [0], [0], [1], [0, 0, 1, 1], [], []>} : vector<16x8xf32>, vector<8x32xf32>, vector<16x32xf32> -> vector<16x32xf32>
    %489 = arith.addf %468, %488 : vector<16x32xf32>
    %490 = vector.broadcast %400 : vector<1x32xf32> to vector<16x32xf32>
    %491 = arith.addf %489, %490 : vector<16x32xf32>
    %492 = arith.addf %366, %491 : vector<16x32xf32>
    %c0_212 = arith.constant 0 : index
    %c0_213 = arith.constant 0 : index
    %c0_214 = arith.constant 0 : index
    %493 = vector.load %arg14[%c0_212, %c0_213, %c0_214] : memref<2x1x32xf32, #tpu.memory_space<vmem>>, vector<1x1x32xf32>
    %494 = vector.shape_cast %493 : vector<1x1x32xf32> to vector<1x32xf32>
    %c0_215 = arith.constant 0 : index
    %c0_216 = arith.constant 0 : index
    %c0_217 = arith.constant 0 : index
    %495 = vector.load %arg13[%c0_215, %c0_216, %c0_217] : memref<2x1x32xf32, #tpu.memory_space<vmem>>, vector<1x1x32xf32>
    %496 = vector.shape_cast %495 : vector<1x1x32xf32> to vector<1x32xf32>
    %cst_218 = arith.constant dense<0.000000e+00> : vector<16xf32>
    %497 = vector.multi_reduction <add>, %492, %cst_218 [1] : vector<16x32xf32> to vector<16xf32>
    %498 = vector.shape_cast %497 : vector<16xf32> to vector<16x1xf32>
    %cst_219 = arith.constant 3.200000e+01 : f32
    %499 = vector.broadcast %cst_219 : f32 to vector<16x1xf32>
    %500 = arith.divf %498, %499 : vector<16x1xf32>
    %501 = vector.broadcast %500 : vector<16x1xf32> to vector<16x32xf32>
    %502 = arith.subf %492, %501 : vector<16x32xf32>
    %503 = arith.mulf %502, %502 : vector<16x32xf32>
    %cst_220 = arith.constant dense<0.000000e+00> : vector<16xf32>
    %504 = vector.multi_reduction <add>, %503, %cst_220 [1] : vector<16x32xf32> to vector<16xf32>
    %505 = vector.shape_cast %504 : vector<16xf32> to vector<16x1xf32>
    %cst_221 = arith.constant 3.200000e+01 : f32
    %506 = vector.broadcast %cst_221 : f32 to vector<16x1xf32>
    %507 = arith.divf %505, %506 : vector<16x1xf32>
    %508 = vector.broadcast %500 : vector<16x1xf32> to vector<16x32xf32>
    %509 = arith.subf %492, %508 : vector<16x32xf32>
    %cst_222 = arith.constant 9.99999997E-7 : f32
    %510 = vector.broadcast %cst_222 : f32 to vector<16x1xf32>
    %511 = arith.addf %507, %510 : vector<16x1xf32>
    %512 = math.rsqrt %511 : vector<16x1xf32>
    %513 = vector.broadcast %512 : vector<16x1xf32> to vector<16x32xf32>
    %514 = arith.mulf %509, %513 : vector<16x32xf32>
    %515 = vector.broadcast %494 : vector<1x32xf32> to vector<16x32xf32>
    %516 = arith.mulf %514, %515 : vector<16x32xf32>
    %517 = vector.broadcast %496 : vector<1x32xf32> to vector<16x32xf32>
    %518 = arith.addf %516, %517 : vector<16x32xf32>
    %c0_223 = arith.constant 0 : index
    %c0_224 = arith.constant 0 : index
    %c0_225 = arith.constant 0 : index
    %519 = vector.load %arg10[%c0_223, %c0_224, %c0_225] : memref<2x32x96xf32, #tpu.memory_space<vmem>>, vector<1x32x96xf32>
    %520 = vector.shape_cast %519 : vector<1x32x96xf32> to vector<32x96xf32>
    %c0_226 = arith.constant 0 : index
    %c0_227 = arith.constant 0 : index
    %c0_228 = arith.constant 0 : index
    %521 = vector.load %arg8[%c0_226, %c0_227, %c0_228] : memref<2x1x96xf32, #tpu.memory_space<vmem>>, vector<1x1x96xf32>
    %522 = vector.shape_cast %521 : vector<1x1x96xf32> to vector<1x96xf32>
    %c0_229 = arith.constant 0 : index
    %c0_230 = arith.constant 0 : index
    %c0_231 = arith.constant 0 : index
    %523 = vector.load %arg9[%c0_229, %c0_230, %c0_231] : memref<2x32x32xf32, #tpu.memory_space<vmem>>, vector<1x32x32xf32>
    %524 = vector.shape_cast %523 : vector<1x32x32xf32> to vector<32x32xf32>
    %c0_232 = arith.constant 0 : index
    %c0_233 = arith.constant 0 : index
    %c0_234 = arith.constant 0 : index
    %525 = vector.load %arg7[%c0_232, %c0_233, %c0_234] : memref<2x1x32xf32, #tpu.memory_space<vmem>>, vector<1x1x32xf32>
    %526 = vector.shape_cast %525 : vector<1x1x32xf32> to vector<1x32xf32>
    %527 = vector.extract_strided_slice %520 {offsets = [0, 0], sizes = [32, 32], strides = [1, 1]} : vector<32x96xf32> to vector<32x32xf32>
    %cst_235 = arith.constant dense<0.000000e+00> : vector<16x32xf32>
    %528 = tpu.matmul %518, %527, %cst_235 {dimension_numbers = #tpu.dot_dimension_numbers<[1], [0], [0], [1], [0, 0, 1, 1], [], []>} : vector<16x32xf32>, vector<32x32xf32>, vector<16x32xf32> -> vector<16x32xf32>
    %529 = vector.extract_strided_slice %522 {offsets = [0, 0], sizes = [1, 32], strides = [1, 1]} : vector<1x96xf32> to vector<1x32xf32>
    %530 = vector.broadcast %529 : vector<1x32xf32> to vector<16x32xf32>
    %531 = arith.addf %528, %530 : vector<16x32xf32>
    %532 = vector.extract_strided_slice %520 {offsets = [0, 32], sizes = [32, 64], strides = [1, 1]} : vector<32x96xf32> to vector<32x64xf32>
    %cst_236 = arith.constant dense<0.000000e+00> : vector<16x64xf32>
    %533 = tpu.matmul %365, %532, %cst_236 {dimension_numbers = #tpu.dot_dimension_numbers<[1], [0], [0], [1], [0, 0, 1, 1], [], []>} : vector<16x32xf32>, vector<32x64xf32>, vector<16x64xf32> -> vector<16x64xf32>
    %534 = vector.extract_strided_slice %522 {offsets = [0, 32], sizes = [1, 64], strides = [1, 1]} : vector<1x96xf32> to vector<1x64xf32>
    %535 = vector.broadcast %534 : vector<1x64xf32> to vector<16x64xf32>
    %536 = arith.addf %533, %535 : vector<16x64xf32>
    %537 = vector.extract_strided_slice %536 {offsets = [0, 0], sizes = [16, 32], strides = [1, 1]} : vector<16x64xf32> to vector<16x32xf32>
    %538 = vector.extract_strided_slice %536 {offsets = [0, 32], sizes = [16, 32], strides = [1, 1]} : vector<16x64xf32> to vector<16x32xf32>
    %539 = vector.extract_strided_slice %531 {offsets = [0, 0], sizes = [16, 8], strides = [1, 1]} : vector<16x32xf32> to vector<16x8xf32>
    %540 = vector.extract_strided_slice %537 {offsets = [0, 0], sizes = [16, 8], strides = [1, 1]} : vector<16x32xf32> to vector<16x8xf32>
    %cst_237 = arith.constant dense<0.000000e+00> : vector<16x16xf32>
    %541 = tpu.matmul %539, %540, %cst_237 {dimension_numbers = #tpu.dot_dimension_numbers<[1], [1], [0], [0], [0, 0, 1, 0], [], []>} : vector<16x8xf32>, vector<16x8xf32>, vector<16x16xf32> -> vector<16x16xf32>
    %cst_238 = arith.constant 0.353553385 : f32
    %542 = vector.broadcast %cst_238 : f32 to vector<16x16xf32>
    %543 = arith.mulf %541, %542 : vector<16x16xf32>
    %544 = arith.addf %543, %1 : vector<16x16xf32>
    %cst_239 = arith.constant dense<0xFF800000> : vector<16xf32>
    %545 = vector.multi_reduction <maximumf>, %544, %cst_239 [1] : vector<16x16xf32> to vector<16xf32>
    %546 = vector.shape_cast %545 : vector<16xf32> to vector<16x1xf32>
    %547 = vector.broadcast %546 : vector<16x1xf32> to vector<16x16xf32>
    %548 = arith.subf %544, %547 : vector<16x16xf32>
    %549 = math.exp %548 : vector<16x16xf32>
    %cst_240 = arith.constant dense<0.000000e+00> : vector<16xf32>
    %550 = vector.multi_reduction <add>, %549, %cst_240 [1] : vector<16x16xf32> to vector<16xf32>
    %551 = vector.shape_cast %550 : vector<16xf32> to vector<16x1xf32>
    %552 = tpu.reciprocal %551 {approx = true} : vector<16x1xf32> -> vector<16x1xf32>
    %553 = vector.broadcast %552 : vector<16x1xf32> to vector<16x16xf32>
    %554 = arith.mulf %549, %553 : vector<16x16xf32>
    %555 = vector.extract_strided_slice %538 {offsets = [0, 0], sizes = [16, 8], strides = [1, 1]} : vector<16x32xf32> to vector<16x8xf32>
    %cst_241 = arith.constant dense<0.000000e+00> : vector<16x8xf32>
    %556 = tpu.matmul %554, %555, %cst_241 {dimension_numbers = #tpu.dot_dimension_numbers<[1], [0], [0], [1], [0, 0, 1, 1], [], []>} : vector<16x16xf32>, vector<16x8xf32>, vector<16x8xf32> -> vector<16x8xf32>
    %557 = vector.extract_strided_slice %524 {offsets = [0, 0], sizes = [8, 32], strides = [1, 1]} : vector<32x32xf32> to vector<8x32xf32>
    %cst_242 = arith.constant dense<0.000000e+00> : vector<16x32xf32>
    %558 = tpu.matmul %556, %557, %cst_242 {dimension_numbers = #tpu.dot_dimension_numbers<[1], [0], [0], [1], [0, 0, 1, 1], [], []>} : vector<16x8xf32>, vector<8x32xf32>, vector<16x32xf32> -> vector<16x32xf32>
    %559 = vector.extract_strided_slice %531 {offsets = [0, 8], sizes = [16, 8], strides = [1, 1]} : vector<16x32xf32> to vector<16x8xf32>
    %560 = vector.extract_strided_slice %537 {offsets = [0, 8], sizes = [16, 8], strides = [1, 1]} : vector<16x32xf32> to vector<16x8xf32>
    %cst_243 = arith.constant dense<0.000000e+00> : vector<16x16xf32>
    %561 = tpu.matmul %559, %560, %cst_243 {dimension_numbers = #tpu.dot_dimension_numbers<[1], [1], [0], [0], [0, 0, 1, 0], [], []>} : vector<16x8xf32>, vector<16x8xf32>, vector<16x16xf32> -> vector<16x16xf32>
    %cst_244 = arith.constant 0.353553385 : f32
    %562 = vector.broadcast %cst_244 : f32 to vector<16x16xf32>
    %563 = arith.mulf %561, %562 : vector<16x16xf32>
    %564 = arith.addf %563, %1 : vector<16x16xf32>
    %cst_245 = arith.constant dense<0xFF800000> : vector<16xf32>
    %565 = vector.multi_reduction <maximumf>, %564, %cst_245 [1] : vector<16x16xf32> to vector<16xf32>
    %566 = vector.shape_cast %565 : vector<16xf32> to vector<16x1xf32>
    %567 = vector.broadcast %566 : vector<16x1xf32> to vector<16x16xf32>
    %568 = arith.subf %564, %567 : vector<16x16xf32>
    %569 = math.exp %568 : vector<16x16xf32>
    %cst_246 = arith.constant dense<0.000000e+00> : vector<16xf32>
    %570 = vector.multi_reduction <add>, %569, %cst_246 [1] : vector<16x16xf32> to vector<16xf32>
    %571 = vector.shape_cast %570 : vector<16xf32> to vector<16x1xf32>
    %572 = tpu.reciprocal %571 {approx = true} : vector<16x1xf32> -> vector<16x1xf32>
    %573 = vector.broadcast %572 : vector<16x1xf32> to vector<16x16xf32>
    %574 = arith.mulf %569, %573 : vector<16x16xf32>
    %575 = vector.extract_strided_slice %538 {offsets = [0, 8], sizes = [16, 8], strides = [1, 1]} : vector<16x32xf32> to vector<16x8xf32>
    %cst_247 = arith.constant dense<0.000000e+00> : vector<16x8xf32>
    %576 = tpu.matmul %574, %575, %cst_247 {dimension_numbers = #tpu.dot_dimension_numbers<[1], [0], [0], [1], [0, 0, 1, 1], [], []>} : vector<16x16xf32>, vector<16x8xf32>, vector<16x8xf32> -> vector<16x8xf32>
    %577 = vector.extract_strided_slice %524 {offsets = [8, 0], sizes = [8, 32], strides = [1, 1]} : vector<32x32xf32> to vector<8x32xf32>
    %cst_248 = arith.constant dense<0.000000e+00> : vector<16x32xf32>
    %578 = tpu.matmul %576, %577, %cst_248 {dimension_numbers = #tpu.dot_dimension_numbers<[1], [0], [0], [1], [0, 0, 1, 1], [], []>} : vector<16x8xf32>, vector<8x32xf32>, vector<16x32xf32> -> vector<16x32xf32>
    %579 = arith.addf %558, %578 : vector<16x32xf32>
    %580 = vector.extract_strided_slice %531 {offsets = [0, 16], sizes = [16, 8], strides = [1, 1]} : vector<16x32xf32> to vector<16x8xf32>
    %581 = vector.extract_strided_slice %537 {offsets = [0, 16], sizes = [16, 8], strides = [1, 1]} : vector<16x32xf32> to vector<16x8xf32>
    %cst_249 = arith.constant dense<0.000000e+00> : vector<16x16xf32>
    %582 = tpu.matmul %580, %581, %cst_249 {dimension_numbers = #tpu.dot_dimension_numbers<[1], [1], [0], [0], [0, 0, 1, 0], [], []>} : vector<16x8xf32>, vector<16x8xf32>, vector<16x16xf32> -> vector<16x16xf32>
    %cst_250 = arith.constant 0.353553385 : f32
    %583 = vector.broadcast %cst_250 : f32 to vector<16x16xf32>
    %584 = arith.mulf %582, %583 : vector<16x16xf32>
    %585 = arith.addf %584, %1 : vector<16x16xf32>
    %cst_251 = arith.constant dense<0xFF800000> : vector<16xf32>
    %586 = vector.multi_reduction <maximumf>, %585, %cst_251 [1] : vector<16x16xf32> to vector<16xf32>
    %587 = vector.shape_cast %586 : vector<16xf32> to vector<16x1xf32>
    %588 = vector.broadcast %587 : vector<16x1xf32> to vector<16x16xf32>
    %589 = arith.subf %585, %588 : vector<16x16xf32>
    %590 = math.exp %589 : vector<16x16xf32>
    %cst_252 = arith.constant dense<0.000000e+00> : vector<16xf32>
    %591 = vector.multi_reduction <add>, %590, %cst_252 [1] : vector<16x16xf32> to vector<16xf32>
    %592 = vector.shape_cast %591 : vector<16xf32> to vector<16x1xf32>
    %593 = tpu.reciprocal %592 {approx = true} : vector<16x1xf32> -> vector<16x1xf32>
    %594 = vector.broadcast %593 : vector<16x1xf32> to vector<16x16xf32>
    %595 = arith.mulf %590, %594 : vector<16x16xf32>
    %596 = vector.extract_strided_slice %538 {offsets = [0, 16], sizes = [16, 8], strides = [1, 1]} : vector<16x32xf32> to vector<16x8xf32>
    %cst_253 = arith.constant dense<0.000000e+00> : vector<16x8xf32>
    %597 = tpu.matmul %595, %596, %cst_253 {dimension_numbers = #tpu.dot_dimension_numbers<[1], [0], [0], [1], [0, 0, 1, 1], [], []>} : vector<16x16xf32>, vector<16x8xf32>, vector<16x8xf32> -> vector<16x8xf32>
    %598 = vector.extract_strided_slice %524 {offsets = [16, 0], sizes = [8, 32], strides = [1, 1]} : vector<32x32xf32> to vector<8x32xf32>
    %cst_254 = arith.constant dense<0.000000e+00> : vector<16x32xf32>
    %599 = tpu.matmul %597, %598, %cst_254 {dimension_numbers = #tpu.dot_dimension_numbers<[1], [0], [0], [1], [0, 0, 1, 1], [], []>} : vector<16x8xf32>, vector<8x32xf32>, vector<16x32xf32> -> vector<16x32xf32>
    %600 = arith.addf %579, %599 : vector<16x32xf32>
    %601 = vector.extract_strided_slice %531 {offsets = [0, 24], sizes = [16, 8], strides = [1, 1]} : vector<16x32xf32> to vector<16x8xf32>
    %602 = vector.extract_strided_slice %537 {offsets = [0, 24], sizes = [16, 8], strides = [1, 1]} : vector<16x32xf32> to vector<16x8xf32>
    %cst_255 = arith.constant dense<0.000000e+00> : vector<16x16xf32>
    %603 = tpu.matmul %601, %602, %cst_255 {dimension_numbers = #tpu.dot_dimension_numbers<[1], [1], [0], [0], [0, 0, 1, 0], [], []>} : vector<16x8xf32>, vector<16x8xf32>, vector<16x16xf32> -> vector<16x16xf32>
    %cst_256 = arith.constant 0.353553385 : f32
    %604 = vector.broadcast %cst_256 : f32 to vector<16x16xf32>
    %605 = arith.mulf %603, %604 : vector<16x16xf32>
    %606 = arith.addf %605, %1 : vector<16x16xf32>
    %cst_257 = arith.constant dense<0xFF800000> : vector<16xf32>
    %607 = vector.multi_reduction <maximumf>, %606, %cst_257 [1] : vector<16x16xf32> to vector<16xf32>
    %608 = vector.shape_cast %607 : vector<16xf32> to vector<16x1xf32>
    %609 = vector.broadcast %608 : vector<16x1xf32> to vector<16x16xf32>
    %610 = arith.subf %606, %609 : vector<16x16xf32>
    %611 = math.exp %610 : vector<16x16xf32>
    %cst_258 = arith.constant dense<0.000000e+00> : vector<16xf32>
    %612 = vector.multi_reduction <add>, %611, %cst_258 [1] : vector<16x16xf32> to vector<16xf32>
    %613 = vector.shape_cast %612 : vector<16xf32> to vector<16x1xf32>
    %614 = tpu.reciprocal %613 {approx = true} : vector<16x1xf32> -> vector<16x1xf32>
    %615 = vector.broadcast %614 : vector<16x1xf32> to vector<16x16xf32>
    %616 = arith.mulf %611, %615 : vector<16x16xf32>
    %617 = vector.extract_strided_slice %538 {offsets = [0, 24], sizes = [16, 8], strides = [1, 1]} : vector<16x32xf32> to vector<16x8xf32>
    %cst_259 = arith.constant dense<0.000000e+00> : vector<16x8xf32>
    %618 = tpu.matmul %616, %617, %cst_259 {dimension_numbers = #tpu.dot_dimension_numbers<[1], [0], [0], [1], [0, 0, 1, 1], [], []>} : vector<16x16xf32>, vector<16x8xf32>, vector<16x8xf32> -> vector<16x8xf32>
    %619 = vector.extract_strided_slice %524 {offsets = [24, 0], sizes = [8, 32], strides = [1, 1]} : vector<32x32xf32> to vector<8x32xf32>
    %cst_260 = arith.constant dense<0.000000e+00> : vector<16x32xf32>
    %620 = tpu.matmul %618, %619, %cst_260 {dimension_numbers = #tpu.dot_dimension_numbers<[1], [0], [0], [1], [0, 0, 1, 1], [], []>} : vector<16x8xf32>, vector<8x32xf32>, vector<16x32xf32> -> vector<16x32xf32>
    %621 = arith.addf %600, %620 : vector<16x32xf32>
    %622 = vector.broadcast %526 : vector<1x32xf32> to vector<16x32xf32>
    %623 = arith.addf %621, %622 : vector<16x32xf32>
    %624 = arith.addf %492, %623 : vector<16x32xf32>
    %c0_261 = arith.constant 0 : index
    %c0_262 = arith.constant 0 : index
    %c0_263 = arith.constant 0 : index
    %625 = vector.load %arg16[%c0_261, %c0_262, %c0_263] : memref<2x1x32xf32, #tpu.memory_space<vmem>>, vector<1x1x32xf32>
    %626 = vector.shape_cast %625 : vector<1x1x32xf32> to vector<1x32xf32>
    %c0_264 = arith.constant 0 : index
    %c0_265 = arith.constant 0 : index
    %c0_266 = arith.constant 0 : index
    %627 = vector.load %arg15[%c0_264, %c0_265, %c0_266] : memref<2x1x32xf32, #tpu.memory_space<vmem>>, vector<1x1x32xf32>
    %628 = vector.shape_cast %627 : vector<1x1x32xf32> to vector<1x32xf32>
    %cst_267 = arith.constant dense<0.000000e+00> : vector<16xf32>
    %629 = vector.multi_reduction <add>, %624, %cst_267 [1] : vector<16x32xf32> to vector<16xf32>
    %630 = vector.shape_cast %629 : vector<16xf32> to vector<16x1xf32>
    %cst_268 = arith.constant 3.200000e+01 : f32
    %631 = vector.broadcast %cst_268 : f32 to vector<16x1xf32>
    %632 = arith.divf %630, %631 : vector<16x1xf32>
    %633 = vector.broadcast %632 : vector<16x1xf32> to vector<16x32xf32>
    %634 = arith.subf %624, %633 : vector<16x32xf32>
    %635 = arith.mulf %634, %634 : vector<16x32xf32>
    %cst_269 = arith.constant dense<0.000000e+00> : vector<16xf32>
    %636 = vector.multi_reduction <add>, %635, %cst_269 [1] : vector<16x32xf32> to vector<16xf32>
    %637 = vector.shape_cast %636 : vector<16xf32> to vector<16x1xf32>
    %cst_270 = arith.constant 3.200000e+01 : f32
    %638 = vector.broadcast %cst_270 : f32 to vector<16x1xf32>
    %639 = arith.divf %637, %638 : vector<16x1xf32>
    %640 = vector.broadcast %632 : vector<16x1xf32> to vector<16x32xf32>
    %641 = arith.subf %624, %640 : vector<16x32xf32>
    %cst_271 = arith.constant 9.99999997E-7 : f32
    %642 = vector.broadcast %cst_271 : f32 to vector<16x1xf32>
    %643 = arith.addf %639, %642 : vector<16x1xf32>
    %644 = math.rsqrt %643 : vector<16x1xf32>
    %645 = vector.broadcast %644 : vector<16x1xf32> to vector<16x32xf32>
    %646 = arith.mulf %641, %645 : vector<16x32xf32>
    %647 = vector.broadcast %626 : vector<1x32xf32> to vector<16x32xf32>
    %648 = arith.mulf %646, %647 : vector<16x32xf32>
    %649 = vector.broadcast %628 : vector<1x32xf32> to vector<16x32xf32>
    %650 = arith.addf %648, %649 : vector<16x32xf32>
    %c0_272 = arith.constant 0 : index
    %c0_273 = arith.constant 0 : index
    %c0_274 = arith.constant 0 : index
    %651 = vector.load %arg21[%c0_272, %c0_273, %c0_274] : memref<2x32x64xf32, #tpu.memory_space<vmem>>, vector<1x32x64xf32>
    %652 = vector.shape_cast %651 : vector<1x32x64xf32> to vector<32x64xf32>
    %c0_275 = arith.constant 0 : index
    %c0_276 = arith.constant 0 : index
    %c0_277 = arith.constant 0 : index
    %653 = vector.load %arg5[%c0_275, %c0_276, %c0_277] : memref<2x1x64xf32, #tpu.memory_space<vmem>>, vector<1x1x64xf32>
    %654 = vector.shape_cast %653 : vector<1x1x64xf32> to vector<1x64xf32>
    %c0_278 = arith.constant 0 : index
    %c0_279 = arith.constant 0 : index
    %c0_280 = arith.constant 0 : index
    %655 = vector.load %arg22[%c0_278, %c0_279, %c0_280] : memref<2x64x32xf32, #tpu.memory_space<vmem>>, vector<1x64x32xf32>
    %656 = vector.shape_cast %655 : vector<1x64x32xf32> to vector<64x32xf32>
    %c0_281 = arith.constant 0 : index
    %c0_282 = arith.constant 0 : index
    %c0_283 = arith.constant 0 : index
    %657 = vector.load %arg6[%c0_281, %c0_282, %c0_283] : memref<2x1x32xf32, #tpu.memory_space<vmem>>, vector<1x1x32xf32>
    %658 = vector.shape_cast %657 : vector<1x1x32xf32> to vector<1x32xf32>
    %cst_284 = arith.constant dense<0.000000e+00> : vector<16x64xf32>
    %659 = tpu.matmul %650, %652, %cst_284 {dimension_numbers = #tpu.dot_dimension_numbers<[1], [0], [0], [1], [0, 0, 1, 1], [], []>} : vector<16x32xf32>, vector<32x64xf32>, vector<16x64xf32> -> vector<16x64xf32>
    %660 = vector.broadcast %654 : vector<1x64xf32> to vector<16x64xf32>
    %661 = arith.addf %659, %660 : vector<16x64xf32>
    %cst_285 = arith.constant 0.000000e+00 : f32
    %662 = vector.broadcast %cst_285 : f32 to vector<16x64xf32>
    %663 = arith.maximumf %661, %662 : vector<16x64xf32>
    %cst_286 = arith.constant dense<0.000000e+00> : vector<16x32xf32>
    %664 = tpu.matmul %663, %656, %cst_286 {dimension_numbers = #tpu.dot_dimension_numbers<[1], [0], [0], [1], [0, 0, 1, 1], [], []>} : vector<16x64xf32>, vector<64x32xf32>, vector<16x32xf32> -> vector<16x32xf32>
    %665 = vector.broadcast %658 : vector<1x32xf32> to vector<16x32xf32>
    %666 = arith.addf %664, %665 : vector<16x32xf32>
    %667 = arith.addf %624, %666 : vector<16x32xf32>
    %c1_287 = arith.constant 1 : index
    %c0_288 = arith.constant 0 : index
    %c0_289 = arith.constant 0 : index
    %668 = vector.load %arg12[%c1_287, %c0_288, %c0_289] : memref<2x1x32xf32, #tpu.memory_space<vmem>>, vector<1x1x32xf32>
    %669 = vector.shape_cast %668 : vector<1x1x32xf32> to vector<1x32xf32>
    %c1_290 = arith.constant 1 : index
    %c0_291 = arith.constant 0 : index
    %c0_292 = arith.constant 0 : index
    %670 = vector.load %arg11[%c1_290, %c0_291, %c0_292] : memref<2x1x32xf32, #tpu.memory_space<vmem>>, vector<1x1x32xf32>
    %671 = vector.shape_cast %670 : vector<1x1x32xf32> to vector<1x32xf32>
    %cst_293 = arith.constant dense<0.000000e+00> : vector<16xf32>
    %672 = vector.multi_reduction <add>, %667, %cst_293 [1] : vector<16x32xf32> to vector<16xf32>
    %673 = vector.shape_cast %672 : vector<16xf32> to vector<16x1xf32>
    %cst_294 = arith.constant 3.200000e+01 : f32
    %674 = vector.broadcast %cst_294 : f32 to vector<16x1xf32>
    %675 = arith.divf %673, %674 : vector<16x1xf32>
    %676 = vector.broadcast %675 : vector<16x1xf32> to vector<16x32xf32>
    %677 = arith.subf %667, %676 : vector<16x32xf32>
    %678 = arith.mulf %677, %677 : vector<16x32xf32>
    %cst_295 = arith.constant dense<0.000000e+00> : vector<16xf32>
    %679 = vector.multi_reduction <add>, %678, %cst_295 [1] : vector<16x32xf32> to vector<16xf32>
    %680 = vector.shape_cast %679 : vector<16xf32> to vector<16x1xf32>
    %cst_296 = arith.constant 3.200000e+01 : f32
    %681 = vector.broadcast %cst_296 : f32 to vector<16x1xf32>
    %682 = arith.divf %680, %681 : vector<16x1xf32>
    %683 = vector.broadcast %675 : vector<16x1xf32> to vector<16x32xf32>
    %684 = arith.subf %667, %683 : vector<16x32xf32>
    %cst_297 = arith.constant 9.99999997E-7 : f32
    %685 = vector.broadcast %cst_297 : f32 to vector<16x1xf32>
    %686 = arith.addf %682, %685 : vector<16x1xf32>
    %687 = math.rsqrt %686 : vector<16x1xf32>
    %688 = vector.broadcast %687 : vector<16x1xf32> to vector<16x32xf32>
    %689 = arith.mulf %684, %688 : vector<16x32xf32>
    %690 = vector.broadcast %669 : vector<1x32xf32> to vector<16x32xf32>
    %691 = arith.mulf %689, %690 : vector<16x32xf32>
    %692 = vector.broadcast %671 : vector<1x32xf32> to vector<16x32xf32>
    %693 = arith.addf %691, %692 : vector<16x32xf32>
    %c1_298 = arith.constant 1 : index
    %c0_299 = arith.constant 0 : index
    %c0_300 = arith.constant 0 : index
    %694 = vector.load %arg20[%c1_298, %c0_299, %c0_300] : memref<2x32x96xf32, #tpu.memory_space<vmem>>, vector<1x32x96xf32>
    %695 = vector.shape_cast %694 : vector<1x32x96xf32> to vector<32x96xf32>
    %c1_301 = arith.constant 1 : index
    %c0_302 = arith.constant 0 : index
    %c0_303 = arith.constant 0 : index
    %696 = vector.load %arg18[%c1_301, %c0_302, %c0_303] : memref<2x1x96xf32, #tpu.memory_space<vmem>>, vector<1x1x96xf32>
    %697 = vector.shape_cast %696 : vector<1x1x96xf32> to vector<1x96xf32>
    %c1_304 = arith.constant 1 : index
    %c0_305 = arith.constant 0 : index
    %c0_306 = arith.constant 0 : index
    %698 = vector.load %arg19[%c1_304, %c0_305, %c0_306] : memref<2x32x32xf32, #tpu.memory_space<vmem>>, vector<1x32x32xf32>
    %699 = vector.shape_cast %698 : vector<1x32x32xf32> to vector<32x32xf32>
    %c1_307 = arith.constant 1 : index
    %c0_308 = arith.constant 0 : index
    %c0_309 = arith.constant 0 : index
    %700 = vector.load %arg17[%c1_307, %c0_308, %c0_309] : memref<2x1x32xf32, #tpu.memory_space<vmem>>, vector<1x1x32xf32>
    %701 = vector.shape_cast %700 : vector<1x1x32xf32> to vector<1x32xf32>
    %cst_310 = arith.constant dense<0.000000e+00> : vector<16x96xf32>
    %702 = tpu.matmul %693, %695, %cst_310 {dimension_numbers = #tpu.dot_dimension_numbers<[1], [0], [0], [1], [0, 0, 1, 1], [], []>} : vector<16x32xf32>, vector<32x96xf32>, vector<16x96xf32> -> vector<16x96xf32>
    %703 = vector.broadcast %697 : vector<1x96xf32> to vector<16x96xf32>
    %704 = arith.addf %702, %703 : vector<16x96xf32>
    %705 = vector.extract_strided_slice %704 {offsets = [0, 0], sizes = [16, 32], strides = [1, 1]} : vector<16x96xf32> to vector<16x32xf32>
    %706 = vector.extract_strided_slice %704 {offsets = [0, 32], sizes = [16, 32], strides = [1, 1]} : vector<16x96xf32> to vector<16x32xf32>
    %707 = vector.extract_strided_slice %704 {offsets = [0, 64], sizes = [16, 32], strides = [1, 1]} : vector<16x96xf32> to vector<16x32xf32>
    %708 = vector.extract_strided_slice %705 {offsets = [0, 0], sizes = [16, 8], strides = [1, 1]} : vector<16x32xf32> to vector<16x8xf32>
    %709 = vector.extract_strided_slice %706 {offsets = [0, 0], sizes = [16, 8], strides = [1, 1]} : vector<16x32xf32> to vector<16x8xf32>
    %cst_311 = arith.constant dense<0.000000e+00> : vector<16x16xf32>
    %710 = tpu.matmul %708, %709, %cst_311 {dimension_numbers = #tpu.dot_dimension_numbers<[1], [1], [0], [0], [0, 0, 1, 0], [], []>} : vector<16x8xf32>, vector<16x8xf32>, vector<16x16xf32> -> vector<16x16xf32>
    %cst_312 = arith.constant 0.353553385 : f32
    %711 = vector.broadcast %cst_312 : f32 to vector<16x16xf32>
    %712 = arith.mulf %710, %711 : vector<16x16xf32>
    %713 = arith.addf %712, %2 : vector<16x16xf32>
    %cst_313 = arith.constant dense<0xFF800000> : vector<16xf32>
    %714 = vector.multi_reduction <maximumf>, %713, %cst_313 [1] : vector<16x16xf32> to vector<16xf32>
    %715 = vector.shape_cast %714 : vector<16xf32> to vector<16x1xf32>
    %716 = vector.broadcast %715 : vector<16x1xf32> to vector<16x16xf32>
    %717 = arith.subf %713, %716 : vector<16x16xf32>
    %718 = math.exp %717 : vector<16x16xf32>
    %cst_314 = arith.constant dense<0.000000e+00> : vector<16xf32>
    %719 = vector.multi_reduction <add>, %718, %cst_314 [1] : vector<16x16xf32> to vector<16xf32>
    %720 = vector.shape_cast %719 : vector<16xf32> to vector<16x1xf32>
    %721 = tpu.reciprocal %720 {approx = true} : vector<16x1xf32> -> vector<16x1xf32>
    %722 = vector.broadcast %721 : vector<16x1xf32> to vector<16x16xf32>
    %723 = arith.mulf %718, %722 : vector<16x16xf32>
    %724 = vector.extract_strided_slice %707 {offsets = [0, 0], sizes = [16, 8], strides = [1, 1]} : vector<16x32xf32> to vector<16x8xf32>
    %cst_315 = arith.constant dense<0.000000e+00> : vector<16x8xf32>
    %725 = tpu.matmul %723, %724, %cst_315 {dimension_numbers = #tpu.dot_dimension_numbers<[1], [0], [0], [1], [0, 0, 1, 1], [], []>} : vector<16x16xf32>, vector<16x8xf32>, vector<16x8xf32> -> vector<16x8xf32>
    %726 = vector.extract_strided_slice %699 {offsets = [0, 0], sizes = [8, 32], strides = [1, 1]} : vector<32x32xf32> to vector<8x32xf32>
    %cst_316 = arith.constant dense<0.000000e+00> : vector<16x32xf32>
    %727 = tpu.matmul %725, %726, %cst_316 {dimension_numbers = #tpu.dot_dimension_numbers<[1], [0], [0], [1], [0, 0, 1, 1], [], []>} : vector<16x8xf32>, vector<8x32xf32>, vector<16x32xf32> -> vector<16x32xf32>
    %728 = vector.extract_strided_slice %705 {offsets = [0, 8], sizes = [16, 8], strides = [1, 1]} : vector<16x32xf32> to vector<16x8xf32>
    %729 = vector.extract_strided_slice %706 {offsets = [0, 8], sizes = [16, 8], strides = [1, 1]} : vector<16x32xf32> to vector<16x8xf32>
    %cst_317 = arith.constant dense<0.000000e+00> : vector<16x16xf32>
    %730 = tpu.matmul %728, %729, %cst_317 {dimension_numbers = #tpu.dot_dimension_numbers<[1], [1], [0], [0], [0, 0, 1, 0], [], []>} : vector<16x8xf32>, vector<16x8xf32>, vector<16x16xf32> -> vector<16x16xf32>
    %cst_318 = arith.constant 0.353553385 : f32
    %731 = vector.broadcast %cst_318 : f32 to vector<16x16xf32>
    %732 = arith.mulf %730, %731 : vector<16x16xf32>
    %733 = arith.addf %732, %2 : vector<16x16xf32>
    %cst_319 = arith.constant dense<0xFF800000> : vector<16xf32>
    %734 = vector.multi_reduction <maximumf>, %733, %cst_319 [1] : vector<16x16xf32> to vector<16xf32>
    %735 = vector.shape_cast %734 : vector<16xf32> to vector<16x1xf32>
    %736 = vector.broadcast %735 : vector<16x1xf32> to vector<16x16xf32>
    %737 = arith.subf %733, %736 : vector<16x16xf32>
    %738 = math.exp %737 : vector<16x16xf32>
    %cst_320 = arith.constant dense<0.000000e+00> : vector<16xf32>
    %739 = vector.multi_reduction <add>, %738, %cst_320 [1] : vector<16x16xf32> to vector<16xf32>
    %740 = vector.shape_cast %739 : vector<16xf32> to vector<16x1xf32>
    %741 = tpu.reciprocal %740 {approx = true} : vector<16x1xf32> -> vector<16x1xf32>
    %742 = vector.broadcast %741 : vector<16x1xf32> to vector<16x16xf32>
    %743 = arith.mulf %738, %742 : vector<16x16xf32>
    %744 = vector.extract_strided_slice %707 {offsets = [0, 8], sizes = [16, 8], strides = [1, 1]} : vector<16x32xf32> to vector<16x8xf32>
    %cst_321 = arith.constant dense<0.000000e+00> : vector<16x8xf32>
    %745 = tpu.matmul %743, %744, %cst_321 {dimension_numbers = #tpu.dot_dimension_numbers<[1], [0], [0], [1], [0, 0, 1, 1], [], []>} : vector<16x16xf32>, vector<16x8xf32>, vector<16x8xf32> -> vector<16x8xf32>
    %746 = vector.extract_strided_slice %699 {offsets = [8, 0], sizes = [8, 32], strides = [1, 1]} : vector<32x32xf32> to vector<8x32xf32>
    %cst_322 = arith.constant dense<0.000000e+00> : vector<16x32xf32>
    %747 = tpu.matmul %745, %746, %cst_322 {dimension_numbers = #tpu.dot_dimension_numbers<[1], [0], [0], [1], [0, 0, 1, 1], [], []>} : vector<16x8xf32>, vector<8x32xf32>, vector<16x32xf32> -> vector<16x32xf32>
    %748 = arith.addf %727, %747 : vector<16x32xf32>
    %749 = vector.extract_strided_slice %705 {offsets = [0, 16], sizes = [16, 8], strides = [1, 1]} : vector<16x32xf32> to vector<16x8xf32>
    %750 = vector.extract_strided_slice %706 {offsets = [0, 16], sizes = [16, 8], strides = [1, 1]} : vector<16x32xf32> to vector<16x8xf32>
    %cst_323 = arith.constant dense<0.000000e+00> : vector<16x16xf32>
    %751 = tpu.matmul %749, %750, %cst_323 {dimension_numbers = #tpu.dot_dimension_numbers<[1], [1], [0], [0], [0, 0, 1, 0], [], []>} : vector<16x8xf32>, vector<16x8xf32>, vector<16x16xf32> -> vector<16x16xf32>
    %cst_324 = arith.constant 0.353553385 : f32
    %752 = vector.broadcast %cst_324 : f32 to vector<16x16xf32>
    %753 = arith.mulf %751, %752 : vector<16x16xf32>
    %754 = arith.addf %753, %2 : vector<16x16xf32>
    %cst_325 = arith.constant dense<0xFF800000> : vector<16xf32>
    %755 = vector.multi_reduction <maximumf>, %754, %cst_325 [1] : vector<16x16xf32> to vector<16xf32>
    %756 = vector.shape_cast %755 : vector<16xf32> to vector<16x1xf32>
    %757 = vector.broadcast %756 : vector<16x1xf32> to vector<16x16xf32>
    %758 = arith.subf %754, %757 : vector<16x16xf32>
    %759 = math.exp %758 : vector<16x16xf32>
    %cst_326 = arith.constant dense<0.000000e+00> : vector<16xf32>
    %760 = vector.multi_reduction <add>, %759, %cst_326 [1] : vector<16x16xf32> to vector<16xf32>
    %761 = vector.shape_cast %760 : vector<16xf32> to vector<16x1xf32>
    %762 = tpu.reciprocal %761 {approx = true} : vector<16x1xf32> -> vector<16x1xf32>
    %763 = vector.broadcast %762 : vector<16x1xf32> to vector<16x16xf32>
    %764 = arith.mulf %759, %763 : vector<16x16xf32>
    %765 = vector.extract_strided_slice %707 {offsets = [0, 16], sizes = [16, 8], strides = [1, 1]} : vector<16x32xf32> to vector<16x8xf32>
    %cst_327 = arith.constant dense<0.000000e+00> : vector<16x8xf32>
    %766 = tpu.matmul %764, %765, %cst_327 {dimension_numbers = #tpu.dot_dimension_numbers<[1], [0], [0], [1], [0, 0, 1, 1], [], []>} : vector<16x16xf32>, vector<16x8xf32>, vector<16x8xf32> -> vector<16x8xf32>
    %767 = vector.extract_strided_slice %699 {offsets = [16, 0], sizes = [8, 32], strides = [1, 1]} : vector<32x32xf32> to vector<8x32xf32>
    %cst_328 = arith.constant dense<0.000000e+00> : vector<16x32xf32>
    %768 = tpu.matmul %766, %767, %cst_328 {dimension_numbers = #tpu.dot_dimension_numbers<[1], [0], [0], [1], [0, 0, 1, 1], [], []>} : vector<16x8xf32>, vector<8x32xf32>, vector<16x32xf32> -> vector<16x32xf32>
    %769 = arith.addf %748, %768 : vector<16x32xf32>
    %770 = vector.extract_strided_slice %705 {offsets = [0, 24], sizes = [16, 8], strides = [1, 1]} : vector<16x32xf32> to vector<16x8xf32>
    %771 = vector.extract_strided_slice %706 {offsets = [0, 24], sizes = [16, 8], strides = [1, 1]} : vector<16x32xf32> to vector<16x8xf32>
    %cst_329 = arith.constant dense<0.000000e+00> : vector<16x16xf32>
    %772 = tpu.matmul %770, %771, %cst_329 {dimension_numbers = #tpu.dot_dimension_numbers<[1], [1], [0], [0], [0, 0, 1, 0], [], []>} : vector<16x8xf32>, vector<16x8xf32>, vector<16x16xf32> -> vector<16x16xf32>
    %cst_330 = arith.constant 0.353553385 : f32
    %773 = vector.broadcast %cst_330 : f32 to vector<16x16xf32>
    %774 = arith.mulf %772, %773 : vector<16x16xf32>
    %775 = arith.addf %774, %2 : vector<16x16xf32>
    %cst_331 = arith.constant dense<0xFF800000> : vector<16xf32>
    %776 = vector.multi_reduction <maximumf>, %775, %cst_331 [1] : vector<16x16xf32> to vector<16xf32>
    %777 = vector.shape_cast %776 : vector<16xf32> to vector<16x1xf32>
    %778 = vector.broadcast %777 : vector<16x1xf32> to vector<16x16xf32>
    %779 = arith.subf %775, %778 : vector<16x16xf32>
    %780 = math.exp %779 : vector<16x16xf32>
    %cst_332 = arith.constant dense<0.000000e+00> : vector<16xf32>
    %781 = vector.multi_reduction <add>, %780, %cst_332 [1] : vector<16x16xf32> to vector<16xf32>
    %782 = vector.shape_cast %781 : vector<16xf32> to vector<16x1xf32>
    %783 = tpu.reciprocal %782 {approx = true} : vector<16x1xf32> -> vector<16x1xf32>
    %784 = vector.broadcast %783 : vector<16x1xf32> to vector<16x16xf32>
    %785 = arith.mulf %780, %784 : vector<16x16xf32>
    %786 = vector.extract_strided_slice %707 {offsets = [0, 24], sizes = [16, 8], strides = [1, 1]} : vector<16x32xf32> to vector<16x8xf32>
    %cst_333 = arith.constant dense<0.000000e+00> : vector<16x8xf32>
    %787 = tpu.matmul %785, %786, %cst_333 {dimension_numbers = #tpu.dot_dimension_numbers<[1], [0], [0], [1], [0, 0, 1, 1], [], []>} : vector<16x16xf32>, vector<16x8xf32>, vector<16x8xf32> -> vector<16x8xf32>
    %788 = vector.extract_strided_slice %699 {offsets = [24, 0], sizes = [8, 32], strides = [1, 1]} : vector<32x32xf32> to vector<8x32xf32>
    %cst_334 = arith.constant dense<0.000000e+00> : vector<16x32xf32>
    %789 = tpu.matmul %787, %788, %cst_334 {dimension_numbers = #tpu.dot_dimension_numbers<[1], [0], [0], [1], [0, 0, 1, 1], [], []>} : vector<16x8xf32>, vector<8x32xf32>, vector<16x32xf32> -> vector<16x32xf32>
    %790 = arith.addf %769, %789 : vector<16x32xf32>
    %791 = vector.broadcast %701 : vector<1x32xf32> to vector<16x32xf32>
    %792 = arith.addf %790, %791 : vector<16x32xf32>
    %793 = arith.addf %667, %792 : vector<16x32xf32>
    %c1_335 = arith.constant 1 : index
    %c0_336 = arith.constant 0 : index
    %c0_337 = arith.constant 0 : index
    %794 = vector.load %arg14[%c1_335, %c0_336, %c0_337] : memref<2x1x32xf32, #tpu.memory_space<vmem>>, vector<1x1x32xf32>
    %795 = vector.shape_cast %794 : vector<1x1x32xf32> to vector<1x32xf32>
    %c1_338 = arith.constant 1 : index
    %c0_339 = arith.constant 0 : index
    %c0_340 = arith.constant 0 : index
    %796 = vector.load %arg13[%c1_338, %c0_339, %c0_340] : memref<2x1x32xf32, #tpu.memory_space<vmem>>, vector<1x1x32xf32>
    %797 = vector.shape_cast %796 : vector<1x1x32xf32> to vector<1x32xf32>
    %cst_341 = arith.constant dense<0.000000e+00> : vector<16xf32>
    %798 = vector.multi_reduction <add>, %793, %cst_341 [1] : vector<16x32xf32> to vector<16xf32>
    %799 = vector.shape_cast %798 : vector<16xf32> to vector<16x1xf32>
    %cst_342 = arith.constant 3.200000e+01 : f32
    %800 = vector.broadcast %cst_342 : f32 to vector<16x1xf32>
    %801 = arith.divf %799, %800 : vector<16x1xf32>
    %802 = vector.broadcast %801 : vector<16x1xf32> to vector<16x32xf32>
    %803 = arith.subf %793, %802 : vector<16x32xf32>
    %804 = arith.mulf %803, %803 : vector<16x32xf32>
    %cst_343 = arith.constant dense<0.000000e+00> : vector<16xf32>
    %805 = vector.multi_reduction <add>, %804, %cst_343 [1] : vector<16x32xf32> to vector<16xf32>
    %806 = vector.shape_cast %805 : vector<16xf32> to vector<16x1xf32>
    %cst_344 = arith.constant 3.200000e+01 : f32
    %807 = vector.broadcast %cst_344 : f32 to vector<16x1xf32>
    %808 = arith.divf %806, %807 : vector<16x1xf32>
    %809 = vector.broadcast %801 : vector<16x1xf32> to vector<16x32xf32>
    %810 = arith.subf %793, %809 : vector<16x32xf32>
    %cst_345 = arith.constant 9.99999997E-7 : f32
    %811 = vector.broadcast %cst_345 : f32 to vector<16x1xf32>
    %812 = arith.addf %808, %811 : vector<16x1xf32>
    %813 = math.rsqrt %812 : vector<16x1xf32>
    %814 = vector.broadcast %813 : vector<16x1xf32> to vector<16x32xf32>
    %815 = arith.mulf %810, %814 : vector<16x32xf32>
    %816 = vector.broadcast %795 : vector<1x32xf32> to vector<16x32xf32>
    %817 = arith.mulf %815, %816 : vector<16x32xf32>
    %818 = vector.broadcast %797 : vector<1x32xf32> to vector<16x32xf32>
    %819 = arith.addf %817, %818 : vector<16x32xf32>
    %c1_346 = arith.constant 1 : index
    %c0_347 = arith.constant 0 : index
    %c0_348 = arith.constant 0 : index
    %820 = vector.load %arg10[%c1_346, %c0_347, %c0_348] : memref<2x32x96xf32, #tpu.memory_space<vmem>>, vector<1x32x96xf32>
    %821 = vector.shape_cast %820 : vector<1x32x96xf32> to vector<32x96xf32>
    %c1_349 = arith.constant 1 : index
    %c0_350 = arith.constant 0 : index
    %c0_351 = arith.constant 0 : index
    %822 = vector.load %arg8[%c1_349, %c0_350, %c0_351] : memref<2x1x96xf32, #tpu.memory_space<vmem>>, vector<1x1x96xf32>
    %823 = vector.shape_cast %822 : vector<1x1x96xf32> to vector<1x96xf32>
    %c1_352 = arith.constant 1 : index
    %c0_353 = arith.constant 0 : index
    %c0_354 = arith.constant 0 : index
    %824 = vector.load %arg9[%c1_352, %c0_353, %c0_354] : memref<2x32x32xf32, #tpu.memory_space<vmem>>, vector<1x32x32xf32>
    %825 = vector.shape_cast %824 : vector<1x32x32xf32> to vector<32x32xf32>
    %c1_355 = arith.constant 1 : index
    %c0_356 = arith.constant 0 : index
    %c0_357 = arith.constant 0 : index
    %826 = vector.load %arg7[%c1_355, %c0_356, %c0_357] : memref<2x1x32xf32, #tpu.memory_space<vmem>>, vector<1x1x32xf32>
    %827 = vector.shape_cast %826 : vector<1x1x32xf32> to vector<1x32xf32>
    %828 = vector.extract_strided_slice %821 {offsets = [0, 0], sizes = [32, 32], strides = [1, 1]} : vector<32x96xf32> to vector<32x32xf32>
    %cst_358 = arith.constant dense<0.000000e+00> : vector<16x32xf32>
    %829 = tpu.matmul %819, %828, %cst_358 {dimension_numbers = #tpu.dot_dimension_numbers<[1], [0], [0], [1], [0, 0, 1, 1], [], []>} : vector<16x32xf32>, vector<32x32xf32>, vector<16x32xf32> -> vector<16x32xf32>
    %830 = vector.extract_strided_slice %823 {offsets = [0, 0], sizes = [1, 32], strides = [1, 1]} : vector<1x96xf32> to vector<1x32xf32>
    %831 = vector.broadcast %830 : vector<1x32xf32> to vector<16x32xf32>
    %832 = arith.addf %829, %831 : vector<16x32xf32>
    %833 = vector.extract_strided_slice %821 {offsets = [0, 32], sizes = [32, 64], strides = [1, 1]} : vector<32x96xf32> to vector<32x64xf32>
    %cst_359 = arith.constant dense<0.000000e+00> : vector<16x64xf32>
    %834 = tpu.matmul %365, %833, %cst_359 {dimension_numbers = #tpu.dot_dimension_numbers<[1], [0], [0], [1], [0, 0, 1, 1], [], []>} : vector<16x32xf32>, vector<32x64xf32>, vector<16x64xf32> -> vector<16x64xf32>
    %835 = vector.extract_strided_slice %823 {offsets = [0, 32], sizes = [1, 64], strides = [1, 1]} : vector<1x96xf32> to vector<1x64xf32>
    %836 = vector.broadcast %835 : vector<1x64xf32> to vector<16x64xf32>
    %837 = arith.addf %834, %836 : vector<16x64xf32>
    %838 = vector.extract_strided_slice %837 {offsets = [0, 0], sizes = [16, 32], strides = [1, 1]} : vector<16x64xf32> to vector<16x32xf32>
    %839 = vector.extract_strided_slice %837 {offsets = [0, 32], sizes = [16, 32], strides = [1, 1]} : vector<16x64xf32> to vector<16x32xf32>
    %840 = vector.extract_strided_slice %832 {offsets = [0, 0], sizes = [16, 8], strides = [1, 1]} : vector<16x32xf32> to vector<16x8xf32>
    %841 = vector.extract_strided_slice %838 {offsets = [0, 0], sizes = [16, 8], strides = [1, 1]} : vector<16x32xf32> to vector<16x8xf32>
    %cst_360 = arith.constant dense<0.000000e+00> : vector<16x16xf32>
    %842 = tpu.matmul %840, %841, %cst_360 {dimension_numbers = #tpu.dot_dimension_numbers<[1], [1], [0], [0], [0, 0, 1, 0], [], []>} : vector<16x8xf32>, vector<16x8xf32>, vector<16x16xf32> -> vector<16x16xf32>
    %cst_361 = arith.constant 0.353553385 : f32
    %843 = vector.broadcast %cst_361 : f32 to vector<16x16xf32>
    %844 = arith.mulf %842, %843 : vector<16x16xf32>
    %845 = arith.addf %844, %1 : vector<16x16xf32>
    %cst_362 = arith.constant dense<0xFF800000> : vector<16xf32>
    %846 = vector.multi_reduction <maximumf>, %845, %cst_362 [1] : vector<16x16xf32> to vector<16xf32>
    %847 = vector.shape_cast %846 : vector<16xf32> to vector<16x1xf32>
    %848 = vector.broadcast %847 : vector<16x1xf32> to vector<16x16xf32>
    %849 = arith.subf %845, %848 : vector<16x16xf32>
    %850 = math.exp %849 : vector<16x16xf32>
    %cst_363 = arith.constant dense<0.000000e+00> : vector<16xf32>
    %851 = vector.multi_reduction <add>, %850, %cst_363 [1] : vector<16x16xf32> to vector<16xf32>
    %852 = vector.shape_cast %851 : vector<16xf32> to vector<16x1xf32>
    %853 = tpu.reciprocal %852 {approx = true} : vector<16x1xf32> -> vector<16x1xf32>
    %854 = vector.broadcast %853 : vector<16x1xf32> to vector<16x16xf32>
    %855 = arith.mulf %850, %854 : vector<16x16xf32>
    %856 = vector.extract_strided_slice %839 {offsets = [0, 0], sizes = [16, 8], strides = [1, 1]} : vector<16x32xf32> to vector<16x8xf32>
    %cst_364 = arith.constant dense<0.000000e+00> : vector<16x8xf32>
    %857 = tpu.matmul %855, %856, %cst_364 {dimension_numbers = #tpu.dot_dimension_numbers<[1], [0], [0], [1], [0, 0, 1, 1], [], []>} : vector<16x16xf32>, vector<16x8xf32>, vector<16x8xf32> -> vector<16x8xf32>
    %858 = vector.extract_strided_slice %825 {offsets = [0, 0], sizes = [8, 32], strides = [1, 1]} : vector<32x32xf32> to vector<8x32xf32>
    %cst_365 = arith.constant dense<0.000000e+00> : vector<16x32xf32>
    %859 = tpu.matmul %857, %858, %cst_365 {dimension_numbers = #tpu.dot_dimension_numbers<[1], [0], [0], [1], [0, 0, 1, 1], [], []>} : vector<16x8xf32>, vector<8x32xf32>, vector<16x32xf32> -> vector<16x32xf32>
    %860 = vector.extract_strided_slice %832 {offsets = [0, 8], sizes = [16, 8], strides = [1, 1]} : vector<16x32xf32> to vector<16x8xf32>
    %861 = vector.extract_strided_slice %838 {offsets = [0, 8], sizes = [16, 8], strides = [1, 1]} : vector<16x32xf32> to vector<16x8xf32>
    %cst_366 = arith.constant dense<0.000000e+00> : vector<16x16xf32>
    %862 = tpu.matmul %860, %861, %cst_366 {dimension_numbers = #tpu.dot_dimension_numbers<[1], [1], [0], [0], [0, 0, 1, 0], [], []>} : vector<16x8xf32>, vector<16x8xf32>, vector<16x16xf32> -> vector<16x16xf32>
    %cst_367 = arith.constant 0.353553385 : f32
    %863 = vector.broadcast %cst_367 : f32 to vector<16x16xf32>
    %864 = arith.mulf %862, %863 : vector<16x16xf32>
    %865 = arith.addf %864, %1 : vector<16x16xf32>
    %cst_368 = arith.constant dense<0xFF800000> : vector<16xf32>
    %866 = vector.multi_reduction <maximumf>, %865, %cst_368 [1] : vector<16x16xf32> to vector<16xf32>
    %867 = vector.shape_cast %866 : vector<16xf32> to vector<16x1xf32>
    %868 = vector.broadcast %867 : vector<16x1xf32> to vector<16x16xf32>
    %869 = arith.subf %865, %868 : vector<16x16xf32>
    %870 = math.exp %869 : vector<16x16xf32>
    %cst_369 = arith.constant dense<0.000000e+00> : vector<16xf32>
    %871 = vector.multi_reduction <add>, %870, %cst_369 [1] : vector<16x16xf32> to vector<16xf32>
    %872 = vector.shape_cast %871 : vector<16xf32> to vector<16x1xf32>
    %873 = tpu.reciprocal %872 {approx = true} : vector<16x1xf32> -> vector<16x1xf32>
    %874 = vector.broadcast %873 : vector<16x1xf32> to vector<16x16xf32>
    %875 = arith.mulf %870, %874 : vector<16x16xf32>
    %876 = vector.extract_strided_slice %839 {offsets = [0, 8], sizes = [16, 8], strides = [1, 1]} : vector<16x32xf32> to vector<16x8xf32>
    %cst_370 = arith.constant dense<0.000000e+00> : vector<16x8xf32>
    %877 = tpu.matmul %875, %876, %cst_370 {dimension_numbers = #tpu.dot_dimension_numbers<[1], [0], [0], [1], [0, 0, 1, 1], [], []>} : vector<16x16xf32>, vector<16x8xf32>, vector<16x8xf32> -> vector<16x8xf32>
    %878 = vector.extract_strided_slice %825 {offsets = [8, 0], sizes = [8, 32], strides = [1, 1]} : vector<32x32xf32> to vector<8x32xf32>
    %cst_371 = arith.constant dense<0.000000e+00> : vector<16x32xf32>
    %879 = tpu.matmul %877, %878, %cst_371 {dimension_numbers = #tpu.dot_dimension_numbers<[1], [0], [0], [1], [0, 0, 1, 1], [], []>} : vector<16x8xf32>, vector<8x32xf32>, vector<16x32xf32> -> vector<16x32xf32>
    %880 = arith.addf %859, %879 : vector<16x32xf32>
    %881 = vector.extract_strided_slice %832 {offsets = [0, 16], sizes = [16, 8], strides = [1, 1]} : vector<16x32xf32> to vector<16x8xf32>
    %882 = vector.extract_strided_slice %838 {offsets = [0, 16], sizes = [16, 8], strides = [1, 1]} : vector<16x32xf32> to vector<16x8xf32>
    %cst_372 = arith.constant dense<0.000000e+00> : vector<16x16xf32>
    %883 = tpu.matmul %881, %882, %cst_372 {dimension_numbers = #tpu.dot_dimension_numbers<[1], [1], [0], [0], [0, 0, 1, 0], [], []>} : vector<16x8xf32>, vector<16x8xf32>, vector<16x16xf32> -> vector<16x16xf32>
    %cst_373 = arith.constant 0.353553385 : f32
    %884 = vector.broadcast %cst_373 : f32 to vector<16x16xf32>
    %885 = arith.mulf %883, %884 : vector<16x16xf32>
    %886 = arith.addf %885, %1 : vector<16x16xf32>
    %cst_374 = arith.constant dense<0xFF800000> : vector<16xf32>
    %887 = vector.multi_reduction <maximumf>, %886, %cst_374 [1] : vector<16x16xf32> to vector<16xf32>
    %888 = vector.shape_cast %887 : vector<16xf32> to vector<16x1xf32>
    %889 = vector.broadcast %888 : vector<16x1xf32> to vector<16x16xf32>
    %890 = arith.subf %886, %889 : vector<16x16xf32>
    %891 = math.exp %890 : vector<16x16xf32>
    %cst_375 = arith.constant dense<0.000000e+00> : vector<16xf32>
    %892 = vector.multi_reduction <add>, %891, %cst_375 [1] : vector<16x16xf32> to vector<16xf32>
    %893 = vector.shape_cast %892 : vector<16xf32> to vector<16x1xf32>
    %894 = tpu.reciprocal %893 {approx = true} : vector<16x1xf32> -> vector<16x1xf32>
    %895 = vector.broadcast %894 : vector<16x1xf32> to vector<16x16xf32>
    %896 = arith.mulf %891, %895 : vector<16x16xf32>
    %897 = vector.extract_strided_slice %839 {offsets = [0, 16], sizes = [16, 8], strides = [1, 1]} : vector<16x32xf32> to vector<16x8xf32>
    %cst_376 = arith.constant dense<0.000000e+00> : vector<16x8xf32>
    %898 = tpu.matmul %896, %897, %cst_376 {dimension_numbers = #tpu.dot_dimension_numbers<[1], [0], [0], [1], [0, 0, 1, 1], [], []>} : vector<16x16xf32>, vector<16x8xf32>, vector<16x8xf32> -> vector<16x8xf32>
    %899 = vector.extract_strided_slice %825 {offsets = [16, 0], sizes = [8, 32], strides = [1, 1]} : vector<32x32xf32> to vector<8x32xf32>
    %cst_377 = arith.constant dense<0.000000e+00> : vector<16x32xf32>
    %900 = tpu.matmul %898, %899, %cst_377 {dimension_numbers = #tpu.dot_dimension_numbers<[1], [0], [0], [1], [0, 0, 1, 1], [], []>} : vector<16x8xf32>, vector<8x32xf32>, vector<16x32xf32> -> vector<16x32xf32>
    %901 = arith.addf %880, %900 : vector<16x32xf32>
    %902 = vector.extract_strided_slice %832 {offsets = [0, 24], sizes = [16, 8], strides = [1, 1]} : vector<16x32xf32> to vector<16x8xf32>
    %903 = vector.extract_strided_slice %838 {offsets = [0, 24], sizes = [16, 8], strides = [1, 1]} : vector<16x32xf32> to vector<16x8xf32>
    %cst_378 = arith.constant dense<0.000000e+00> : vector<16x16xf32>
    %904 = tpu.matmul %902, %903, %cst_378 {dimension_numbers = #tpu.dot_dimension_numbers<[1], [1], [0], [0], [0, 0, 1, 0], [], []>} : vector<16x8xf32>, vector<16x8xf32>, vector<16x16xf32> -> vector<16x16xf32>
    %cst_379 = arith.constant 0.353553385 : f32
    %905 = vector.broadcast %cst_379 : f32 to vector<16x16xf32>
    %906 = arith.mulf %904, %905 : vector<16x16xf32>
    %907 = arith.addf %906, %1 : vector<16x16xf32>
    %cst_380 = arith.constant dense<0xFF800000> : vector<16xf32>
    %908 = vector.multi_reduction <maximumf>, %907, %cst_380 [1] : vector<16x16xf32> to vector<16xf32>
    %909 = vector.shape_cast %908 : vector<16xf32> to vector<16x1xf32>
    %910 = vector.broadcast %909 : vector<16x1xf32> to vector<16x16xf32>
    %911 = arith.subf %907, %910 : vector<16x16xf32>
    %912 = math.exp %911 : vector<16x16xf32>
    %cst_381 = arith.constant dense<0.000000e+00> : vector<16xf32>
    %913 = vector.multi_reduction <add>, %912, %cst_381 [1] : vector<16x16xf32> to vector<16xf32>
    %914 = vector.shape_cast %913 : vector<16xf32> to vector<16x1xf32>
    %915 = tpu.reciprocal %914 {approx = true} : vector<16x1xf32> -> vector<16x1xf32>
    %916 = vector.broadcast %915 : vector<16x1xf32> to vector<16x16xf32>
    %917 = arith.mulf %912, %916 : vector<16x16xf32>
    %918 = vector.extract_strided_slice %839 {offsets = [0, 24], sizes = [16, 8], strides = [1, 1]} : vector<16x32xf32> to vector<16x8xf32>
    %cst_382 = arith.constant dense<0.000000e+00> : vector<16x8xf32>
    %919 = tpu.matmul %917, %918, %cst_382 {dimension_numbers = #tpu.dot_dimension_numbers<[1], [0], [0], [1], [0, 0, 1, 1], [], []>} : vector<16x16xf32>, vector<16x8xf32>, vector<16x8xf32> -> vector<16x8xf32>
    %920 = vector.extract_strided_slice %825 {offsets = [24, 0], sizes = [8, 32], strides = [1, 1]} : vector<32x32xf32> to vector<8x32xf32>
    %cst_383 = arith.constant dense<0.000000e+00> : vector<16x32xf32>
    %921 = tpu.matmul %919, %920, %cst_383 {dimension_numbers = #tpu.dot_dimension_numbers<[1], [0], [0], [1], [0, 0, 1, 1], [], []>} : vector<16x8xf32>, vector<8x32xf32>, vector<16x32xf32> -> vector<16x32xf32>
    %922 = arith.addf %901, %921 : vector<16x32xf32>
    %923 = vector.broadcast %827 : vector<1x32xf32> to vector<16x32xf32>
    %924 = arith.addf %922, %923 : vector<16x32xf32>
    %925 = arith.addf %793, %924 : vector<16x32xf32>
    %c1_384 = arith.constant 1 : index
    %c0_385 = arith.constant 0 : index
    %c0_386 = arith.constant 0 : index
    %926 = vector.load %arg16[%c1_384, %c0_385, %c0_386] : memref<2x1x32xf32, #tpu.memory_space<vmem>>, vector<1x1x32xf32>
    %927 = vector.shape_cast %926 : vector<1x1x32xf32> to vector<1x32xf32>
    %c1_387 = arith.constant 1 : index
    %c0_388 = arith.constant 0 : index
    %c0_389 = arith.constant 0 : index
    %928 = vector.load %arg15[%c1_387, %c0_388, %c0_389] : memref<2x1x32xf32, #tpu.memory_space<vmem>>, vector<1x1x32xf32>
    %929 = vector.shape_cast %928 : vector<1x1x32xf32> to vector<1x32xf32>
    %cst_390 = arith.constant dense<0.000000e+00> : vector<16xf32>
    %930 = vector.multi_reduction <add>, %925, %cst_390 [1] : vector<16x32xf32> to vector<16xf32>
    %931 = vector.shape_cast %930 : vector<16xf32> to vector<16x1xf32>
    %cst_391 = arith.constant 3.200000e+01 : f32
    %932 = vector.broadcast %cst_391 : f32 to vector<16x1xf32>
    %933 = arith.divf %931, %932 : vector<16x1xf32>
    %934 = vector.broadcast %933 : vector<16x1xf32> to vector<16x32xf32>
    %935 = arith.subf %925, %934 : vector<16x32xf32>
    %936 = arith.mulf %935, %935 : vector<16x32xf32>
    %cst_392 = arith.constant dense<0.000000e+00> : vector<16xf32>
    %937 = vector.multi_reduction <add>, %936, %cst_392 [1] : vector<16x32xf32> to vector<16xf32>
    %938 = vector.shape_cast %937 : vector<16xf32> to vector<16x1xf32>
    %cst_393 = arith.constant 3.200000e+01 : f32
    %939 = vector.broadcast %cst_393 : f32 to vector<16x1xf32>
    %940 = arith.divf %938, %939 : vector<16x1xf32>
    %941 = vector.broadcast %933 : vector<16x1xf32> to vector<16x32xf32>
    %942 = arith.subf %925, %941 : vector<16x32xf32>
    %cst_394 = arith.constant 9.99999997E-7 : f32
    %943 = vector.broadcast %cst_394 : f32 to vector<16x1xf32>
    %944 = arith.addf %940, %943 : vector<16x1xf32>
    %945 = math.rsqrt %944 : vector<16x1xf32>
    %946 = vector.broadcast %945 : vector<16x1xf32> to vector<16x32xf32>
    %947 = arith.mulf %942, %946 : vector<16x32xf32>
    %948 = vector.broadcast %927 : vector<1x32xf32> to vector<16x32xf32>
    %949 = arith.mulf %947, %948 : vector<16x32xf32>
    %950 = vector.broadcast %929 : vector<1x32xf32> to vector<16x32xf32>
    %951 = arith.addf %949, %950 : vector<16x32xf32>
    %c1_395 = arith.constant 1 : index
    %c0_396 = arith.constant 0 : index
    %c0_397 = arith.constant 0 : index
    %952 = vector.load %arg21[%c1_395, %c0_396, %c0_397] : memref<2x32x64xf32, #tpu.memory_space<vmem>>, vector<1x32x64xf32>
    %953 = vector.shape_cast %952 : vector<1x32x64xf32> to vector<32x64xf32>
    %c1_398 = arith.constant 1 : index
    %c0_399 = arith.constant 0 : index
    %c0_400 = arith.constant 0 : index
    %954 = vector.load %arg5[%c1_398, %c0_399, %c0_400] : memref<2x1x64xf32, #tpu.memory_space<vmem>>, vector<1x1x64xf32>
    %955 = vector.shape_cast %954 : vector<1x1x64xf32> to vector<1x64xf32>
    %c1_401 = arith.constant 1 : index
    %c0_402 = arith.constant 0 : index
    %c0_403 = arith.constant 0 : index
    %956 = vector.load %arg22[%c1_401, %c0_402, %c0_403] : memref<2x64x32xf32, #tpu.memory_space<vmem>>, vector<1x64x32xf32>
    %957 = vector.shape_cast %956 : vector<1x64x32xf32> to vector<64x32xf32>
    %c1_404 = arith.constant 1 : index
    %c0_405 = arith.constant 0 : index
    %c0_406 = arith.constant 0 : index
    %958 = vector.load %arg6[%c1_404, %c0_405, %c0_406] : memref<2x1x32xf32, #tpu.memory_space<vmem>>, vector<1x1x32xf32>
    %959 = vector.shape_cast %958 : vector<1x1x32xf32> to vector<1x32xf32>
    %cst_407 = arith.constant dense<0.000000e+00> : vector<16x64xf32>
    %960 = tpu.matmul %951, %953, %cst_407 {dimension_numbers = #tpu.dot_dimension_numbers<[1], [0], [0], [1], [0, 0, 1, 1], [], []>} : vector<16x32xf32>, vector<32x64xf32>, vector<16x64xf32> -> vector<16x64xf32>
    %961 = vector.broadcast %955 : vector<1x64xf32> to vector<16x64xf32>
    %962 = arith.addf %960, %961 : vector<16x64xf32>
    %cst_408 = arith.constant 0.000000e+00 : f32
    %963 = vector.broadcast %cst_408 : f32 to vector<16x64xf32>
    %964 = arith.maximumf %962, %963 : vector<16x64xf32>
    %cst_409 = arith.constant dense<0.000000e+00> : vector<16x32xf32>
    %965 = tpu.matmul %964, %957, %cst_409 {dimension_numbers = #tpu.dot_dimension_numbers<[1], [0], [0], [1], [0, 0, 1, 1], [], []>} : vector<16x64xf32>, vector<64x32xf32>, vector<16x32xf32> -> vector<16x32xf32>
    %966 = vector.broadcast %959 : vector<1x32xf32> to vector<16x32xf32>
    %967 = arith.addf %965, %966 : vector<16x32xf32>
    %968 = arith.addf %925, %967 : vector<16x32xf32>
    %c0_410 = arith.constant 0 : index
    %c0_411 = arith.constant 0 : index
    %969 = vector.load %arg24[%c0_410, %c0_411] : memref<1x32xf32, #tpu.memory_space<vmem>>, vector<1x32xf32>
    %c0_412 = arith.constant 0 : index
    %c0_413 = arith.constant 0 : index
    %970 = vector.load %arg23[%c0_412, %c0_413] : memref<1x32xf32, #tpu.memory_space<vmem>>, vector<1x32xf32>
    %cst_414 = arith.constant dense<0.000000e+00> : vector<16xf32>
    %971 = vector.multi_reduction <add>, %968, %cst_414 [1] : vector<16x32xf32> to vector<16xf32>
    %972 = vector.shape_cast %971 : vector<16xf32> to vector<16x1xf32>
    %cst_415 = arith.constant 3.200000e+01 : f32
    %973 = vector.broadcast %cst_415 : f32 to vector<16x1xf32>
    %974 = arith.divf %972, %973 : vector<16x1xf32>
    %975 = vector.broadcast %974 : vector<16x1xf32> to vector<16x32xf32>
    %976 = arith.subf %968, %975 : vector<16x32xf32>
    %977 = arith.mulf %976, %976 : vector<16x32xf32>
    %cst_416 = arith.constant dense<0.000000e+00> : vector<16xf32>
    %978 = vector.multi_reduction <add>, %977, %cst_416 [1] : vector<16x32xf32> to vector<16xf32>
    %979 = vector.shape_cast %978 : vector<16xf32> to vector<16x1xf32>
    %cst_417 = arith.constant 3.200000e+01 : f32
    %980 = vector.broadcast %cst_417 : f32 to vector<16x1xf32>
    %981 = arith.divf %979, %980 : vector<16x1xf32>
    %982 = vector.broadcast %974 : vector<16x1xf32> to vector<16x32xf32>
    %983 = arith.subf %968, %982 : vector<16x32xf32>
    %cst_418 = arith.constant 9.99999997E-7 : f32
    %984 = vector.broadcast %cst_418 : f32 to vector<16x1xf32>
    %985 = arith.addf %981, %984 : vector<16x1xf32>
    %986 = math.rsqrt %985 : vector<16x1xf32>
    %987 = vector.broadcast %986 : vector<16x1xf32> to vector<16x32xf32>
    %988 = arith.mulf %983, %987 : vector<16x32xf32>
    %989 = vector.broadcast %969 : vector<1x32xf32> to vector<16x32xf32>
    %990 = arith.mulf %988, %989 : vector<16x32xf32>
    %991 = vector.broadcast %970 : vector<1x32xf32> to vector<16x32xf32>
    %992 = arith.addf %990, %991 : vector<16x32xf32>
    %c0_419 = arith.constant 0 : index
    %c0_420 = arith.constant 0 : index
    %993 = vector.load %arg40[%c0_419, %c0_420] : memref<32x128xf32, #tpu.memory_space<vmem>>, vector<32x128xf32>
    %cst_421 = arith.constant dense<0.000000e+00> : vector<16x128xf32>
    %994 = tpu.matmul %992, %993, %cst_421 {dimension_numbers = #tpu.dot_dimension_numbers<[1], [0], [0], [1], [0, 0, 1, 1], [], []>} : vector<16x32xf32>, vector<32x128xf32>, vector<16x128xf32> -> vector<16x128xf32>
    %c0_422 = arith.constant 0 : index
    %c0_423 = arith.constant 0 : index
    %995 = vector.load %arg39[%c0_422, %c0_423] : memref<1x128xf32, #tpu.memory_space<vmem>>, vector<1x128xf32>
    %996 = vector.broadcast %995 : vector<1x128xf32> to vector<16x128xf32>
    %997 = arith.addf %994, %996 : vector<16x128xf32>
    %cst_424 = arith.constant dense<0xFF800000> : vector<16xf32>
    %998 = vector.multi_reduction <maximumf>, %997, %cst_424 [1] : vector<16x128xf32> to vector<16xf32>
    %999 = vector.shape_cast %998 : vector<16xf32> to vector<16x1xf32>
    %1000 = vector.broadcast %999 : vector<16x1xf32> to vector<16x128xf32>
    %1001 = arith.subf %997, %1000 : vector<16x128xf32>
    %1002 = math.exp %1001 : vector<16x128xf32>
    %cst_425 = arith.constant dense<0.000000e+00> : vector<16xf32>
    %1003 = vector.multi_reduction <add>, %1002, %cst_425 [1] : vector<16x128xf32> to vector<16xf32>
    %1004 = vector.shape_cast %1003 : vector<16xf32> to vector<16x1xf32>
    %1005 = math.log %1004 : vector<16x1xf32>
    %1006 = vector.broadcast %1005 : vector<16x1xf32> to vector<16x128xf32>
    %1007 = arith.subf %1001, %1006 : vector<16x128xf32>
    %c0_426 = arith.constant 0 : index
    %c0_427 = arith.constant 0 : index
    %1008 = vector.load %arg41[%c0_426, %c0_427] : memref<16x128xf32, #tpu.memory_space<vmem>>, vector<16x128xf32>
    tpu.vector_store %arg41[%c0_426, %c0_427], %1007 {strides = array<i32>} : memref<16x128xf32, #tpu.memory_space<vmem>>, vector<16x128xf32>,
    return
  }
}

</mosaic_0001>

<bundles_post_ra>
// kernel: transformer_forward.1
= control target key start
LH: loop header
LB: loop body
LE: loop exit
PB: predicated region body
PF: predicated region fallthrough
CT: control target
= control target key end

     0   :  { %vm180_vm0 = vcmask 261120   ;;  %v5604_v4 = vmov 32.0   ;;  %s5605_s6 = smov 30   ;;  %s5606_s10 = smov 29   ;;  %vm290_vm8 = vcmask 64512   ;;  %vm326_vm9 = vcmask 130048   ;;  %s6926_s0 = inlined_call_operand.smem [shape: u32[42], index: -1, kind: input, shape index: {}] }
   0x1   :  { %s1_s5 = sld [smem:[%s6926_s0]]   ;;  %5346 = vrcp.f32 %v5604_v4  ;;  %s5607_s14 = smov 28  }
   0x2   :  { %s5682_s9 = sld [smem:[%s6926_s0 + %s5605_s6]]   ;;  %s5608_s18 = smov 36  }
   0x3   :  { %s5687_s13 = sld [smem:[%s6926_s0 + %s5606_s10]]   ;;  %s5609_s22 = smov 96  }
   0x4   :  { %s5693_s17 = sld [smem:[%s6926_s0 + %s5607_s14]]   ;;  %s5610_s23 = smov 2  }
   0x5   :  { %s5698_s21 = sld [smem:[%s6926_s0 + %s5608_s18]]   ;;  %s5611_s27 = smov 64  }
   0x6   :  { %s5728_s26 = sld [smem:[%s6926_s0 + %s5610_s23]]   ;;  %s5612_s28 = smov 88  }
   0x7   :  { %v5664_v0 = vld [vmem:[%s1_s5] sm:$0xff]  ;;  %v5668_v2 = vld [vmem:[%s1_s5 + $0x8] sm:$0xff]  ;;  %v5347_v5 = vpop.eup %5346  ;;  %s5613_s29 = smov 120   ;;  %s6938_s30 = smov 80  }
   0x8   :  { %v181_v1 = vsel %vm180_vm0, %v5664_v0, 0.0  ;;  %v184_v3 = vsel %vm180_vm0, %v5668_v2, 0.0  ;;  %v188_v6 = vmul.f32 32.0, %v5347_v5  ;;  %vm192_vm1 = vweird.f32 %v5347_v5  ;;  %v5301_v39 = vld [vmem:[%s5682_s9] ss:$0 sm:$0xff]  ;;  %s6932_s1 = smov 112  }
   0x9   :  { %182 = vadd.xlane.f32.xlu0 %v181_v1  ;;  %v5302_v43 = vld [vmem:[%s5687_s13] ss:$0 sm:$0xff]  ;;  %s6934_s2 = smov 104   ;;  %s6936_s3 = smov 72  }
   0xa   :  { %v189_v7 = vsub.f32 1.0, %v188_v6  ;;  %v5303_v54 = vld [vmem:[%s5693_s17] ss:$0 sm:$0xff]  ;;  %s5618_s4 = smov 35   ;;  %s6927_s8 = smov 56  }
   0xb   :  { %v245_v21 = vld [vmem:[%s5698_s21 + $0x18] sm:$0xff]  ;;  %v244_v22 = vld [vmem:[%s5698_s21 + $0x10] sm:$0xff]  ;;  %v243_v23 = vld [vmem:[%s5698_s21 + $0x8] sm:$0xff]  ;;  %s5775_s7 = sld [smem:[%s6926_s0 + %s5618_s4]]   ;;  %s6929_s10 = smov 48  }
   0xc   :  { %v190_v8 = vmul.f32 %v5347_v5, %v189_v7  ;;  %273 = vmatpush.msra.mxu0 %v245_v21  ;;  %v242_v24 = vld [vmem:[%s5698_s21] sm:$0xff]  ;;  %v5736_v4 = vld [vmem:[%s5728_s26 + $0x8] sm:$0xff]  ;;  %s6930_s11 = smov 40   ;;  %s5622_s12 = smov 27  }
   0xd   :  { %v5731_v61 = vld [vmem:[%s5728_s26] sm:$0xff]  ;;  %s5837_s16 = sld [smem:[%s6926_s0 + %s5622_s12]]   ;;  %s5623_s18 = smov 32  }
   0xe   :  { %v191_v9 = vadd.f32 %v5347_v5, %v190_v8  ;;  %274 = vmatpush.msra.mxu0 %v244_v22  ;;  %s5853_s23 = sld [smem:[%s6926_s0 + %s5623_s18]]   ;;  %s5624_s24 = smov 31  }
   0xf   :  { %s5873_s5 = sld [smem:[%s6926_s0 + %s5624_s24]]   ;;  %s5625_s6 = smov 25  }
  0x10   :  { %v5672_v10 = vsel %vm192_vm1, %v5347_v5, %v191_v9  ;;  %275 = vmatpush.msra.mxu0 %v243_v23  ;;  %s5878_s15 = sld [smem:[%s6926_s0 + %s5625_s6]]   ;;  %s5626_s18 = smov 33   ;;  %vm918_vm1 = vcmask 523264  }
  0x11   :  { %185 = vadd.xlane.f32.xlu0 %v184_v3  ;;  %s5627_s24 = smov 34   ;;  %s5628_s12 = smov 26  }
  0x12   :  { %276 = vmatpush.msra.mxu0 %v242_v24  ;;  %v247_v24 = vld [vmem:[%s5775_s7] sm:$0xff]  ;;  %s5892_s6 = sld [smem:[%s6926_s0 + %s5627_s24]]   ;;  %s5631_s4 = smov 11  }
  0x13   :  { %s5909_s19 = sld [smem:[%s6926_s0 + %s5628_s12]]   ;;  %s5633_s24 = smov 18  }
  0x14   :  { %s6085_s14 = sld [smem:[%s6926_s0 + %s5633_s24]]  }
  0x7c   :  { %v183_v11 = vpop.xlane.xlu0 %182 }
  0x7d   :  { %v194_v12 = vmul.f32 %v5672_v10, %v183_v11 }
  0x7f   :  { %v196_v13 = vsub.f32 %v5664_v0, %v194_v12 }
  0x81   :  { %v198_v14 = vmul.f32 %v196_v13, %v196_v13 }
  0x83   :  { %v200_v15 = vsel %vm180_vm0, %v198_v14, 0.0 }
  0x84   :  { %201 = vadd.xlane.f32.xlu1 %v200_v15  ;;  %v186_v16 = vpop.xlane.xlu0 %185 }
  0x85   :  { %v195_v17 = vmul.f32 %v5672_v10, %v186_v16 }
  0x87   :  { %v197_v18 = vsub.f32 %v5668_v2, %v195_v17 }
  0x89   :  { %v199_v19 = vmul.f32 %v197_v18, %v197_v18 }
  0x8b   :  { %v203_v20 = vsel %vm180_vm0, %v199_v19, 0.0 }
  0x8c   :  { %204 = vadd.xlane.f32.xlu1 %v203_v20 }
  0xf7   :  { %v202_v25 = vpop.xlane.xlu1 %201 }
  0xf8   :  { %v206_v26 = vmul.f32 %v202_v25, %v5672_v10 }
  0xfa   :  { %v208_v27 = vadd.f32 1e-06, %v206_v26 }
  0xfc   :  { %5348 = vrsqrt.f32 %v208_v27  ;;  %vm216_vm3 = vweird.f32 %v208_v27 }
  0xff   :  { %v205_v28 = vpop.xlane.xlu1 %204 }
 0x100   :  { %v207_v29 = vmul.f32 %v205_v28, %v5672_v10 }
 0x102   :  { %v5349_v30 = vpop.eup %5348  ;;  %v209_v31 = vadd.f32 1e-06, %v207_v29 }
 0x103   :  { %v211_v32 = vmul.f32 %v5349_v30, %v208_v27  ;;  %vm217_vm2 = vweird.f32 %v5349_v30 }
 0x104   :  { %5350 = vrsqrt.f32 %v209_v31  ;;  %vm218_vm4 = vmor %vm216_vm3, %vm217_vm2  ;;  %vm226_vm6 = vweird.f32 %v209_v31 }
 0x105   :  { %v212_v33 = vmul.f32 %v5349_v30, %v211_v32 }
 0x107   :  { %v213_v34 = vmul.f32 0.5, %v212_v33 }
 0x109   :  { %v214_v35 = vsub.f32 1.5, %v213_v34 }
 0x10a   :  { %v5351_v36 = vpop.eup %5350 }
 0x10b   :  { %v215_v37 = vmul.f32 %v5349_v30, %v214_v35  ;;  %v221_v38 = vmul.f32 %v5351_v36, %v209_v31  ;;  %vm227_vm5 = vweird.f32 %v5351_v36 }
 0x10c   :  { %vm228_vm7 = vmor %vm226_vm6, %vm227_vm5 }
 0x10d   :  { %v222_v40 = vmul.f32 %v5351_v36, %v221_v38  ;;  %v219_v41 = vsel %vm218_vm4, %v5349_v30, %v215_v37 }
 0x10e   :  { %v230_v42 = vmul.f32 %v219_v41, %v196_v13 }
 0x10f   :  { %v223_v44 = vmul.f32 0.5, %v222_v40 }
 0x110   :  { %v235_v45 = vmul.f32 %v5301_v39, %v230_v42 }
 0x111   :  { %v224_v46 = vsub.f32 1.5, %v223_v44 }
 0x112   :  { %v240_v47 = vadd.f32 %v5302_v43, %v235_v45 }
 0x113   :  { %v225_v48 = vmul.f32 %v5351_v36, %v224_v46 }
 0x114   :  { %4813 = vmatmul.msk.f32.vlgmr.msra.gmra.mxu0 %vm180_vm0, %v240_v47 }
 0x115   :  { %v229_v49 = vsel %vm228_vm7, %v5351_v36, %v225_v48 }
 0x116   :  { %v231_v50 = vmul.f32 %v229_v49, %v197_v18 }
 0x118   :  { %v236_v51 = vmul.f32 %v5301_v39, %v231_v50 }
 0x11a   :  { %v241_v52 = vadd.f32 %v5302_v43, %v236_v51 }
 0x11c   :  { %4814 = vmatmul.msk.f32.gmra.mxu0 %vm180_vm0, %v241_v52 }
 0x191   :  { %v278_v53 = vpop.f32.mrf.mxu0 }
 0x192   :  { %v5715_v57 = vadd.f32 %v5303_v54, %v278_v53 }
 0x199   :  { %v281_v55 = vpop.f32.mrf.mxu0 }
 0x19a   :  { %v5711_v56 = vadd.f32 %v5303_v54, %v281_v55 }
 0x19c   :  { %288 = vrot.lane.b32.xlu2 %v5711_v56, %s5609_s22  ;;  %v5742_v8 = vpack.i.bf16 %v5715_v57, %v5711_v56 }
 0x1a4   :  { %286 = vrot.lane.b32.xlu2 %v5715_v57, %s5609_s22 }
 0x1f6   :  { %v289_v58 = vpop.permute.xlu2 %288 }
 0x1f7   :  { %4815 = vmatpush.xpose.msk.msra.mxu1 %vm290_vm8, %v289_v58 }
 0x1fe   :  { %v287_v59 = vpop.permute.xlu2 %286 }
 0x1ff   :  { %4816 = vmatpush.xpose.msk.msra.mxu1 %vm290_vm8, %v287_v59 }
 0x202   :  { %4817 = vmatmul.msk.f32.vlgmr.msra.gmra.mxu1 %vm290_vm8, %v5715_v57 }
 0x203   :  { %534 = vmatpush.msrb.mxu1 %v247_v24 }
 0x20a   :  { %4818 = vmatmul.msk.f32.gmra.mxu1 %vm290_vm8, %v5711_v56 }
 0x27f   :  { %v316_v60 = vpop.f32.mrf.mxu1 }
 0x280   :  { %v322_v62 = vmul.f32 0.35355338, %v316_v60 }
 0x282   :  { %v324_v63 = vadd.f32 %v322_v62, %v5731_v61 }
 0x284   :  { %v327_v1 = vsel %vm326_vm9, %v324_v63, -inf }
 0x285   :  { %328 = vmax.xlane.f32.xlu0 %v327_v1 }
 0x287   :  { %v319_v3 = vpop.f32.mrf.mxu1 }
 0x288   :  { %v323_v5 = vmul.f32 0.35355338, %v319_v3 }
 0x28a   :  { %v325_v6 = vadd.f32 %v323_v5, %v5736_v4 }
 0x28c   :  { %v330_v7 = vsel %vm326_vm9, %v325_v6, -inf }
 0x28d   :  { %331 = vmax.xlane.f32.xlu1 %v330_v7 }
 0x2a6   :  { %5162 = vrot.lane.b32.xlu1 %v5742_v8, %s5611_s27 }
 0x2ae   :  { %388 = vrot.lane.b32.xlu1 %v5715_v57, %s5612_s28 }
 0x2b6   :  { %386 = vrot.lane.b32.xlu1 %v5711_v56, %s5613_s29 }
 0x2be   :  { %546 = vrot.lane.b32.xlu1 %v5715_v57, %s6938_s30 }
 0x2c6   :  { %542 = vrot.lane.b32.xlu1 %v5715_v57, %s6932_s1 }
 0x2ce   :  { %544 = vrot.lane.b32.xlu1 %v5711_v56, %s6932_s1 }
 0x2f8   :  { %v329_v9 = vpop.xlane.xlu0 %328 }
 0x2f9   :  { %v333_v11 = vsub.f32 %v324_v63, %v329_v9 }
 0x2fb   :  { %v335_v12 = vmul.f32 1.442695, %v333_v11 }
 0x2fd   :  { %5352 = vpow2.f32 %v335_v12 }
 0x300   :  { %v332_v13 = vpop.xlane.xlu1 %331 }
 0x301   :  { %v334_v14 = vsub.f32 %v325_v6, %v332_v13 }
 0x303   :  { %v5353_v15 = vpop.eup %5352  ;;  %v337_v16 = vmul.f32 1.442695, %v334_v14 }
 0x304   :  { %v339_v17 = vsel %vm326_vm9, %v5353_v15, 0.0 }
 0x305   :  { %5354 = vpow2.f32 %v337_v16  ;;  %340 = vadd.xlane.f32.xlu2 %v339_v17 }
 0x30b   :  { %v5355_v18 = vpop.eup %5354 }
 0x30c   :  { %v342_v19 = vsel %vm326_vm9, %v5355_v18, 0.0 }
 0x30d   :  { %343 = vadd.xlane.f32.xlu0 %v342_v19 }
 0x318   :  { %v5163_v20 = vpop.permute.xlu1 %5162 }
 0x319   :  { %v5164_v21 = vunpack.i.l.bf16 %v5163_v20  ;;  %v5165_v22 = vunpack.i.h.bf16 %v5163_v20 }
 0x31b   :  { %375 = vmatpush.msrb.mxu0 %v5164_v21  ;;  %5107 = vmatpush.msra.mxu2 %v5164_v21 }
 0x31d   :  { %548 = vrot.lane.b32.xlu2 %v5711_v56, %s6938_s30  ;;  %376 = vmatpush.msrb.mxu0 %v5165_v22 }
 0x31e   :  { %5108 = vmatpush.msra.mxu2 %v5165_v22 }
 0x320   :  { %v389_v29 = vpop.permute.xlu1 %388 }
 0x321   :  { %390 = vrot.lane.b32.xlu0 %v5711_v56, %s5612_s28 }
 0x325   :  { %675 = vrot.lane.b32.xlu2 %v5711_v56, %s6934_s2 }
 0x328   :  { %v387_v31 = vpop.permute.xlu1 %386 }
 0x329   :  { %384 = vrot.lane.b32.xlu0 %v5715_v57, %s5613_s29 }
 0x330   :  { %v547_v35 = vpop.permute.xlu1 %546 }
 0x331   :  { %679 = vrot.lane.b32.xlu0 %v5711_v56, %s6936_s3 }
 0x338   :  { %v543_v37 = vpop.permute.xlu1 %542 }
 0x339   :  { %677 = vrot.lane.b32.xlu0 %v5715_v57, %s6936_s3 }
 0x340   :  { %v545_v39 = vpop.permute.xlu1 %544 }
 0x341   :  { %673 = vrot.lane.b32.xlu0 %v5715_v57, %s6934_s2 }
 0x378   :  { %v341_v23 = vpop.xlane.xlu2 %340 }
 0x379   :  { %5356 = vrcp.f32 %v341_v23 }
 0x37f   :  { %v5357_v25 = vpop.eup %5356 }
 0x380   :  { %v344_v26 = vpop.xlane.xlu0 %343  ;;  %v347_v27 = vmul.f32 %v5357_v25, %v5353_v15  ;;  %v549_v33 = vpop.permute.xlu2 %548 }
 0x381   :  { %5358 = vrcp.f32 %v344_v26 }
 0x382   :  { %4819 = vmatmul.msk.f32.vlgmr.msrb.gmra.mxu0 %vm326_vm9, %v347_v27 }
 0x387   :  { %v5359_v28 = vpop.eup %5358 }
 0x388   :  { %v348_v30 = vmul.f32 %v5359_v28, %v5355_v18  ;;  %v676_v43 = vpop.permute.xlu2 %675 }
 0x38a   :  { %4820 = vmatmul.msk.f32.vlgmr.msra.gmra.mxu2 %vm326_vm9, %v348_v30 }
 0x393   :  { %v391_v32 = vpop.permute.xlu0 %390 }
 0x394   :  { %4821 = vmatpush.xpose.msk.msra.mxu3 %vm290_vm8, %v391_v32 }
 0x398   :  { %4822 = vmatpush.xpose.msk.msra.mxu3 %vm290_vm8, %v389_v29 }
 0x39b   :  { %v385_v34 = vpop.permute.xlu0 %384 }
 0x39c   :  { %4831 = vmatpush.xpose.msk.msrb.mxu3 %vm290_vm8, %v549_v33 }
 0x39d   :  { %4823 = vmatmul.msk.f32.vlgmr.msra.gmra.mxu3 %vm290_vm8, %v385_v34 }
 0x3a0   :  { %4832 = vmatpush.xpose.msk.msrb.mxu3 %vm290_vm8, %v547_v35 }
 0x3a3   :  { %v680_v36 = vpop.permute.xlu0 %679 }
 0x3a4   :  { %4839 = vmatpush.xpose.msk.msra.mxu1 %vm290_vm8, %v680_v36 }
 0x3a5   :  { %4824 = vmatmul.msk.f32.gmra.mxu3 %vm290_vm8, %v387_v31 }
 0x3ab   :  { %v678_v38 = vpop.permute.xlu0 %677 }
 0x3ac   :  { %4840 = vmatpush.xpose.msk.msra.mxu1 %vm290_vm8, %v678_v38 }
 0x3ad   :  { %4833 = vmatmul.msk.f32.vlgmr.msrb.gmra.mxu3 %vm290_vm8, %v543_v37 }
 0x3b3   :  { %v674_v42 = vpop.permute.xlu0 %673 }
 0x3b5   :  { %4834 = vmatmul.msk.f32.gmra.mxu3 %vm290_vm8, %v545_v39 }
 0x3ff   :  { %v378_v40 = vpop.f32.mrf.mxu0 }
 0x400   :  { %4829 = vmatmul.msk.f32.vlgmr.msrb.gmra.mxu1 %vm290_vm8, %v378_v40 }
 0x40d   :  { %v381_v41 = vpop.f32.mrf.mxu2 }
 0x40e   :  { %4830 = vmatmul.msk.f32.gmra.mxu1 %vm290_vm8, %v381_v41 }
 0x416   :  { %4841 = vmatmul.msk.f32.vlgmr.msra.gmra.mxu1 %vm290_vm8, %v674_v42 }
 0x41e   :  { %4842 = vmatmul.msk.f32.gmra.mxu1 %vm290_vm8, %v676_v43 }
 0x420   :  { %v417_v44 = vpop.f32.mrf.mxu3 }
 0x421   :  { %v423_v45 = vmul.f32 0.35355338, %v417_v44 }
 0x423   :  { %v425_v46 = vadd.f32 %v423_v45, %v5731_v61 }
 0x425   :  { %v427_v47 = vsel %vm326_vm9, %v425_v46, -inf }
 0x426   :  { %428 = vmax.xlane.f32.xlu0 %v427_v47 }
 0x428   :  { %v420_v48 = vpop.f32.mrf.mxu3 }
 0x429   :  { %v424_v49 = vmul.f32 0.35355338, %v420_v48 }
 0x42b   :  { %v426_v50 = vadd.f32 %v424_v49, %v5736_v4 }
 0x42d   :  { %v430_v51 = vsel %vm326_vm9, %v426_v50, -inf }
 0x42e   :  { %431 = vmax.xlane.f32.xlu1 %v430_v51 }
 0x430   :  { %v575_v52 = vpop.f32.mrf.mxu3 }
 0x431   :  { %v581_v53 = vmul.f32 0.35355338, %v575_v52 }
 0x433   :  { %v583_v54 = vadd.f32 %v581_v53, %v5731_v61 }
 0x435   :  { %v585_v55 = vsel %vm326_vm9, %v583_v54, -inf }
 0x436   :  { %586 = vmax.xlane.f32.xlu0 %v585_v55 }
 0x438   :  { %v578_v56 = vpop.f32.mrf.mxu3 }
 0x439   :  { %v582_v57 = vmul.f32 0.35355338, %v578_v56 }
 0x43b   :  { %v584_v58 = vadd.f32 %v582_v57, %v5736_v4  ;;  %v248_v57 = vld [vmem:[%s5775_s7 + $0x8] sm:$0xff] }
 0x43c   :  { %505 = vmatpush.msra.mxu0 %v248_v57 }
 0x43d   :  { %v588_v59 = vsel %vm326_vm9, %v584_v58, -inf }
 0x43e   :  { %589 = vmax.xlane.f32.xlu1 %v588_v59  ;;  %v249_v59 = vld [vmem:[%s5775_s7 + $0x10] sm:$0xff] }
 0x43f   :  { %663 = vmatpush.msrb.mxu0 %v249_v59 }
 0x47d   :  { %v5802_v60 = vpop.f32.mrf.mxu1 }
 0x48b   :  { %v5804_v62 = vpop.f32.mrf.mxu1 }
 0x493   :  { %v706_v63 = vpop.f32.mrf.mxu1 }
 0x494   :  { %v712_v1 = vmul.f32 0.35355338, %v706_v63 }
 0x496   :  { %v714_v3 = vadd.f32 %v712_v1, %v5731_v61 }
 0x498   :  { %v716_v6 = vsel %vm326_vm9, %v714_v3, -inf }
 0x499   :  { %v429_v5 = vpop.xlane.xlu0 %428  ;;  %717 = vmax.xlane.f32.xlu2 %v716_v6 }
 0x49a   :  { %v433_v7 = vsub.f32 %v425_v46, %v429_v5 }
 0x49b   :  { %v709_v11 = vpop.f32.mrf.mxu1 }
 0x49c   :  { %v435_v9 = vmul.f32 1.442695, %v433_v7  ;;  %v713_v12 = vmul.f32 0.35355338, %v709_v11 }
 0x49e   :  { %5360 = vpow2.f32 %v435_v9  ;;  %v715_v13 = vadd.f32 %v713_v12, %v5736_v4 }
 0x4a0   :  { %v719_v15 = vsel %vm326_vm9, %v715_v13, -inf }
 0x4a1   :  { %v432_v14 = vpop.xlane.xlu1 %431  ;;  %720 = vmax.xlane.f32.xlu2 %v719_v15 }
 0x4a2   :  { %v434_v16 = vsub.f32 %v426_v50, %v432_v14 }
 0x4a4   :  { %v5361_v17 = vpop.eup %5360  ;;  %v437_v18 = vmul.f32 1.442695, %v434_v16 }
 0x4a5   :  { %v439_v19 = vsel %vm326_vm9, %v5361_v17, 0.0 }
 0x4a6   :  { %5362 = vpow2.f32 %v437_v18  ;;  %440 = vadd.xlane.f32.xlu0 %v439_v19 }
 0x4a9   :  { %v587_v20 = vpop.xlane.xlu0 %586 }
 0x4aa   :  { %v591_v21 = vsub.f32 %v583_v54, %v587_v20 }
 0x4ac   :  { %v5363_v22 = vpop.eup %5362  ;;  %v593_v23 = vmul.f32 1.442695, %v591_v21 }
 0x4ad   :  { %v442_v24 = vsel %vm326_vm9, %v5363_v22, 0.0 }
 0x4ae   :  { %5364 = vpow2.f32 %v593_v23  ;;  %443 = vadd.xlane.f32.xlu1 %v442_v24 }
 0x4b1   :  { %v590_v30 = vpop.xlane.xlu1 %589 }
 0x4b2   :  { %v592_v34 = vsub.f32 %v584_v58, %v590_v30 }
 0x4b4   :  { %v5365_v25 = vpop.eup %5364  ;;  %v595_v38 = vmul.f32 1.442695, %v592_v34 }
 0x4b5   :  { %v597_v26 = vsel %vm326_vm9, %v5365_v25, 0.0 }
 0x4b6   :  { %598 = vadd.xlane.f32.xlu1 %v597_v26  ;;  %v5304_v26 = vld [vmem:[%s5837_s16] ss:$0 sm:$0xff] }
 0x4b9   :  { %5167 = vrot.lane.b32.xlu2 %v5742_v8, %s6927_s8  ;;  %s5883_s8 = sld [smem:[%s6926_s0 + %s5626_s18]]  }
 0x4ba   :  { %s6029_s18 = sld [smem:[%s6926_s0 + %s5631_s4]]   ;;  %s5637_s4 = smov 37  }
 0x4c1   :  { %5177 = vrot.lane.b32.xlu2 %v5742_v8, %s6929_s10 }
 0x50c   :  { %v718_v27 = vpop.xlane.xlu2 %717 }
 0x50d   :  { %v722_v28 = vsub.f32 %v714_v3, %v718_v27 }
 0x50f   :  { %v724_v29 = vmul.f32 1.442695, %v722_v28 }
 0x511   :  { %5366 = vpow2.f32 %v724_v29 }
 0x514   :  { %v721_v31 = vpop.xlane.xlu2 %720 }
 0x515   :  { %v723_v32 = vsub.f32 %v715_v13, %v721_v31 }
 0x517   :  { %v5367_v33 = vpop.eup %5366  ;;  %v726_v35 = vmul.f32 1.442695, %v723_v32 }
 0x518   :  { %v728_v37 = vsel %vm326_vm9, %v5367_v33, 0.0 }
 0x519   :  { %v441_v36 = vpop.xlane.xlu0 %440  ;;  %5368 = vpow2.f32 %v726_v35  ;;  %729 = vadd.xlane.f32.xlu0 %v728_v37 }
 0x51a   :  { %5370 = vrcp.f32 %v441_v36 }
 0x51b   :  { %5372 = vpow2.f32 %v595_v38 }
 0x51c   :  { %v5168_v39 = vpop.permute.xlu2 %5167 }
 0x51d   :  { %v5169_v40 = vunpack.i.l.bf16 %v5168_v39  ;;  %v5170_v42 = vunpack.i.h.bf16 %v5168_v39 }
 0x51f   :  { %v5369_v41 = vpop.eup %5368  ;;  %475 = vmatpush.msrb.mxu2 %v5169_v40 }
 0x520   :  { %v5371_v43 = vpop.eup %5370  ;;  %v731_v45 = vsel %vm326_vm9, %v5369_v41, 0.0 }
 0x521   :  { %v444_v44 = vpop.xlane.xlu1 %443  ;;  %732 = vadd.xlane.f32.xlu1 %v731_v45  ;;  %476 = vmatpush.msrb.mxu2 %v5170_v42  ;;  %v447_v46 = vmul.f32 %v5371_v43, %v5361_v17  ;;  %v5373_v48 = vpop.eup %5372  ;;  %v250_v17 = vld [vmem:[%s5775_s7 + $0x18] sm:$0xff] }
 0x522   :  { %5374 = vrcp.f32 %v444_v44  ;;  %v600_v53 = vsel %vm326_vm9, %v5373_v48, 0.0 }
 0x523   :  { %4825 = vmatmul.msk.f32.vlgmr.msrb.gmra.mxu2 %vm326_vm9, %v447_v46  ;;  %v870_v46 = vld [vmem:[%s5883_s8 + $0x18] sm:$0xff] }
 0x524   :  { %v5178_v47 = vpop.permute.xlu2 %5177 }
 0x525   :  { %v5179_v49 = vunpack.i.l.bf16 %v5178_v47  ;;  %v5180_v51 = vunpack.i.h.bf16 %v5178_v47  ;;  %v869_v47 = vld [vmem:[%s5883_s8 + $0x10] sm:$0xff] }
 0x527   :  { %633 = vmatpush.msra.mxu2 %v5179_v49  ;;  %v867_v49 = vld [vmem:[%s5883_s8] sm:$0xff] }
 0x528   :  { %v5375_v50 = vpop.eup %5374 }
 0x529   :  { %v599_v52 = vpop.xlane.xlu1 %598  ;;  %v448_v54 = vmul.f32 %v5375_v50, %v5363_v22  ;;  %601 = vadd.xlane.f32.xlu1 %v600_v53  ;;  %634 = vmatpush.msra.mxu2 %v5180_v51  ;;  %v879_v53 = vld [vmem:[%s5892_s6 + $0x38] sm:$0xff] }
 0x52a   :  { %5376 = vrcp.f32 %v599_v52  ;;  %933 = vmatpush.msrb.mxu1 %v879_v53  ;;  %v4854_v53 = vld [vmem:[%s5698_s21 + $0x28] sm:$0xff] }
 0x52b   :  { %4826 = vmatmul.msk.f32.gmra.mxu2 %vm326_vm9, %v448_v54  ;;  %v878_v54 = vld [vmem:[%s5892_s6 + $0x30] sm:$0xff] }
 0x52c   :  { %794 = vmatpush.msrb.mxu2 %v250_v17  ;;  %934 = vmatpush.msrb.mxu1 %v878_v54  ;;  %v4853_v54 = vld [vmem:[%s5698_s21 + $0x20] sm:$0xff] }
 0x52d   :  { %5172 = vrot.lane.b32.xlu0 %v5742_v8, %s6930_s11 }
 0x530   :  { %v5377_v55 = vpop.eup %5376 }
 0x531   :  { %v605_v56 = vmul.f32 %v5377_v55, %v5365_v25  ;;  %v877_v55 = vld [vmem:[%s5892_s6 + $0x28] sm:$0xff] }
 0x532   :  { %935 = vmatpush.msrb.mxu1 %v877_v55 }
 0x533   :  { %4835 = vmatmul.msk.f32.vlgmr.msra.gmra.mxu2 %vm326_vm9, %v605_v56 }
 0x58c   :  { %v730_v63 = vpop.xlane.xlu0 %729 }
 0x58d   :  { %5378 = vrcp.f32 %v730_v63 }
 0x593   :  { %v5379_v5 = vpop.eup %5378 }
 0x594   :  { %v733_v58 = vpop.xlane.xlu1 %732  ;;  %v736_v9 = vmul.f32 %v5379_v5, %v5367_v33 }
 0x59c   :  { %v602_v1 = vpop.xlane.xlu1 %601 }
 0x59d   :  { %5380 = vrcp.f32 %v602_v1  ;;  %v875_v1 = vld [vmem:[%s5892_s6 + $0x18] sm:$0xff] }
 0x59e   :  { %5382 = vrcp.f32 %v733_v58  ;;  %v876_v58 = vld [vmem:[%s5892_s6 + $0x20] sm:$0xff] }
 0x59f   :  { %v5173_v3 = vpop.permute.xlu0 %5172  ;;  %936 = vmatpush.msrb.mxu1 %v876_v58 }
 0x5a0   :  { %v5174_v6 = vunpack.i.l.bf16 %v5173_v3  ;;  %v5175_v7 = vunpack.i.h.bf16 %v5173_v3 }
 0x5a1   :  { %937 = vmatpush.msrb.mxu1 %v875_v1 }
 0x5a2   :  { %764 = vmatpush.msra.mxu3 %v5174_v6 }
 0x5a3   :  { %v5381_v8 = vpop.eup %5380 }
 0x5a4   :  { %765 = vmatpush.msra.mxu3 %v5175_v7  ;;  %v606_v11 = vmul.f32 %v5381_v8, %v5373_v48  ;;  %v5383_v13 = vpop.eup %5382  ;;  %v868_v48 = vld [vmem:[%s5883_s8 + $0x8] sm:$0xff] }
 0x5a5   :  { %4843 = vmatmul.msk.f32.vlgmr.msra.gmra.mxu3 %vm326_vm9, %v736_v9  ;;  %v737_v14 = vmul.f32 %v5383_v13, %v5369_v41 }
 0x5a6   :  { %v478_v12 = vpop.f32.mrf.mxu2  ;;  %4836 = vmatmul.msk.f32.gmra.mxu2 %vm326_vm9, %v606_v11 }
 0x5a7   :  { %4827 = vmatmul.msk.f32.vlgmr.msra.gmra.mxu0 %vm290_vm8, %v478_v12  ;;  %v5305_v12 = vld [vmem:[%s5853_s23] ss:$0 sm:$0xff] }
 0x5a8   :  { %902 = vmatpush.msra.mxu0 %v870_v46 }
 0x5aa   :  { %903 = vmatpush.msra.mxu0 %v869_v47 }
 0x5ac   :  { %904 = vmatpush.msra.mxu0 %v868_v48 }
 0x5ad   :  { %4844 = vmatmul.msk.f32.gmra.mxu3 %vm326_vm9, %v737_v14 }
 0x5ae   :  { %v481_v15 = vpop.f32.mrf.mxu2  ;;  %905 = vmatpush.msra.mxu0 %v867_v49 }
 0x5af   :  { %4828 = vmatmul.msk.f32.gmra.mxu0 %vm290_vm8, %v481_v15 }
 0x5b6   :  { %v636_v16 = vpop.f32.mrf.mxu2 }
 0x5b7   :  { %4837 = vmatmul.msk.f32.vlgmr.msrb.gmra.mxu0 %vm290_vm8, %v636_v16  ;;  %v5306_v16 = vld [vmem:[%s5873_s5] ss:$0 sm:$0xff] }
 0x624   :  { %v507_v21 = vpop.f32.mrf.mxu0 }
 0x625   :  { %v537_v24 = vadd.f32 %v5802_v60, %v507_v21 }
 0x628   :  { %v767_v18 = vpop.f32.mrf.mxu3 }
 0x629   :  { %v639_v19 = vpop.f32.mrf.mxu2  ;;  %4845 = vmatmul.msk.f32.vlgmr.msrb.gmra.mxu2 %vm290_vm8, %v767_v18 }
 0x62a   :  { %4838 = vmatmul.msk.f32.gmra.mxu0 %vm290_vm8, %v639_v19 }
 0x62c   :  { %v510_v22 = vpop.f32.mrf.mxu0 }
 0x62d   :  { %v540_v31 = vadd.f32 %v5804_v62, %v510_v22 }
 0x630   :  { %v770_v20 = vpop.f32.mrf.mxu3 }
 0x631   :  { %4846 = vmatmul.msk.f32.gmra.mxu2 %vm290_vm8, %v770_v20 }
 0x634   :  { %v665_v23 = vpop.f32.mrf.mxu0 }
 0x635   :  { %v671_v25 = vadd.f32 %v665_v23, %v537_v24 }
 0x6a7   :  { %v668_v30 = vpop.f32.mrf.mxu0 }
 0x6a8   :  { %v672_v33 = vadd.f32 %v668_v30, %v540_v31 }
 0x6ac   :  { %v796_v27 = vpop.f32.mrf.mxu2 }
 0x6ad   :  { %v802_v28 = vadd.f32 %v796_v27, %v671_v25  ;;  %v873_v27 = vld [vmem:[%s5892_s6 + $0x8] sm:$0xff] }
 0x6af   :  { %v807_v29 = vadd.f32 %v5304_v26, %v802_v28  ;;  %v872_v28 = vld [vmem:[%s5892_s6] sm:$0xff] }
 0x6b1   :  { %v5846_v32 = vadd.f32 %v807_v29, %v5664_v0  ;;  %v5307_v29 = vld [vmem:[%s5878_s15] ss:$0 sm:$0xff] }
 0x6b3   :  { %v813_v34 = vsel %vm180_vm0, %v5846_v32, 0.0 }
 0x6b4   :  { %v799_v35 = vpop.f32.mrf.mxu2  ;;  %814 = vadd.xlane.f32.xlu0 %v813_v34 }
 0x6b5   :  { %v803_v36 = vadd.f32 %v799_v35, %v672_v33 }
 0x6b7   :  { %v808_v37 = vadd.f32 %v5304_v26, %v803_v36  ;;  %v874_v26 = vld [vmem:[%s5892_s6 + $0x10] sm:$0xff] }
 0x6b8   :  { %938 = vmatpush.msrb.mxu1 %v874_v26  ;;  %v5311_v26 = vld [vmem:[%s5693_s17 + $0x1] ss:$0 sm:$0xff] }
 0x6b9   :  { %v5856_v60 = vadd.f32 %v808_v37, %v5668_v2  ;;  %v5308_v37 = vld [vmem:[%s5909_s19] ss:$0 sm:$0xff] }
 0x6ba   :  { %939 = vmatpush.msrb.mxu1 %v873_v27 }
 0x6bb   :  { %v816_v0 = vsel %vm180_vm0, %v5856_v60, 0.0 }
 0x6bc   :  { %817 = vadd.xlane.f32.xlu2 %v816_v0  ;;  %940 = vmatpush.msrb.mxu1 %v872_v28 }
 0x727   :  { %v815_v62 = vpop.xlane.xlu0 %814 }
 0x728   :  { %v819_v38 = vmul.f32 %v815_v62, %v5672_v10 }
 0x72a   :  { %v821_v39 = vsub.f32 %v5846_v32, %v819_v38 }
 0x72c   :  { %v823_v40 = vmul.f32 %v821_v39, %v821_v39 }
 0x72e   :  { %v825_v41 = vsel %vm180_vm0, %v823_v40, 0.0 }
 0x72f   :  { %826 = vadd.xlane.f32.xlu1 %v825_v41  ;;  %v818_v42 = vpop.xlane.xlu2 %817 }
 0x730   :  { %v820_v43 = vmul.f32 %v818_v42, %v5672_v10 }
 0x732   :  { %v5865_v44 = vsub.f32 %v5856_v60, %v820_v43 }
 0x734   :  { %v824_v2 = vmul.f32 %v5865_v44, %v5865_v44 }
 0x736   :  { %v828_v45 = vsel %vm180_vm0, %v824_v2, 0.0 }
 0x737   :  { %829 = vadd.xlane.f32.xlu1 %v828_v45 }
 0x7a2   :  { %v827_v50 = vpop.xlane.xlu1 %826 }
 0x7a3   :  { %v831_v51 = vmul.f32 %v827_v50, %v5672_v10 }
 0x7a5   :  { %v833_v52 = vadd.f32 1e-06, %v831_v51  ;;  %v4856_v51 = vld [vmem:[%s5698_s21 + $0x38] sm:$0xff] }
 0x7a6   :  { %1043 = vmatpush.msrb.mxu3 %v4856_v51 }
 0x7a7   :  { %5384 = vrsqrt.f32 %v833_v52  ;;  %vm841_vm11 = vweird.f32 %v833_v52 }
 0x7aa   :  { %v830_v56 = vpop.xlane.xlu1 %829 }
 0x7ab   :  { %v832_v57 = vmul.f32 %v830_v56, %v5672_v10 }
 0x7ad   :  { %v5385_v59 = vpop.eup %5384  ;;  %v834_v63 = vadd.f32 1e-06, %v832_v57 }
 0x7ae   :  { %v836_v3 = vmul.f32 %v5385_v59, %v833_v52  ;;  %vm842_vm10 = vweird.f32 %v5385_v59  ;;  %v4855_v52 = vld [vmem:[%s5698_s21 + $0x30] sm:$0xff] }
 0x7af   :  { %5386 = vrsqrt.f32 %v834_v63  ;;  %vm843_vm12 = vmor %vm841_vm11, %vm842_vm10  ;;  %vm851_vm14 = vweird.f32 %v834_v63  ;;  %1044 = vmatpush.msrb.mxu3 %v4855_v52 }
 0x7b0   :  { %v837_v5 = vmul.f32 %v5385_v59, %v836_v3 }
 0x7b1   :  { %1045 = vmatpush.msrb.mxu3 %v4854_v53 }
 0x7b2   :  { %v838_v6 = vmul.f32 0.5, %v837_v5 }
 0x7b3   :  { %1046 = vmatpush.msrb.mxu3 %v4853_v54  ;;  %v4858_v54 = vld [vmem:[%s5775_s7 + $0x20] sm:$0xff] }
 0x7b4   :  { %v839_v7 = vsub.f32 1.5, %v838_v6 }
 0x7b5   :  { %v5387_v8 = vpop.eup %5386 }
 0x7b6   :  { %v840_v9 = vmul.f32 %v5385_v59, %v839_v7  ;;  %v846_v11 = vmul.f32 %v5387_v8, %v834_v63  ;;  %vm852_vm13 = vweird.f32 %v5387_v8 }
 0x7b7   :  { %vm853_vm15 = vmor %vm851_vm14, %vm852_vm13 }
 0x7b8   :  { %v844_v13 = vsel %vm843_vm12, %v5385_v59, %v840_v9  ;;  %v847_v14 = vmul.f32 %v5387_v8, %v846_v11 }
 0x7b9   :  { %v855_v15 = vmul.f32 %v844_v13, %v821_v39 }
 0x7ba   :  { %v848_v17 = vmul.f32 0.5, %v847_v14 }
 0x7bb   :  { %v860_v18 = vmul.f32 %v5305_v12, %v855_v15 }
 0x7bc   :  { %v849_v19 = vsub.f32 1.5, %v848_v17 }
 0x7bd   :  { %v865_v20 = vadd.f32 %v5306_v16, %v860_v18 }
 0x7be   :  { %v850_v21 = vmul.f32 %v5387_v8, %v849_v19 }
 0x7bf   :  { %4847 = vmatmul.msk.f32.vlgmr.msra.gmra.mxu0 %vm180_vm0, %v865_v20 }
 0x7c0   :  { %v854_v22 = vsel %vm853_vm15, %v5387_v8, %v850_v21 }
 0x7c1   :  { %v856_v23 = vmul.f32 %v854_v22, %v5865_v44 }
 0x7c3   :  { %v861_v24 = vmul.f32 %v5305_v12, %v856_v23  ;;  %v5309_v12 = vld [vmem:[%s5682_s9 + $0x1] ss:$0 sm:$0xff]  ;;  %s5629_s9 = smov 1  }
 0x7c4   :  { %s5989_s21 = sld [smem:[%s6926_s0 + %s5629_s9]]   ;;  %s6940_s9 = smov 56  }
 0x7c5   :  { %v866_v25 = vadd.f32 %v5306_v16, %v861_v24  ;;  %v5310_v16 = vld [vmem:[%s5687_s13 + $0x1] ss:$0 sm:$0xff]  ;;  %s5632_s13 = smov 20  }
 0x7c6   :  { %s6071_s20 = sld [smem:[%s6926_s0 + %s5632_s13]]   ;;  %s5638_s13 = smov 17  }
 0x7c7   :  { %4848 = vmatmul.msk.f32.gmra.mxu0 %vm180_vm0, %v866_v25 }
 0x83c   :  { %v907_v30 = vpop.f32.mrf.mxu0 }
 0x83d   :  { %v908_v31 = vadd.f32 %v5307_v29, %v907_v30 }
 0x83f   :  { %v913_v33 = vmax.f32 %v908_v31, 0.0 }
 0x841   :  { %4849 = vmatmul.msk.f32.vlgmr.msrb.gmra.mxu1 %vm918_vm1, %v913_v33 }
 0x844   :  { %v910_v34 = vpop.f32.mrf.mxu0 }
 0x845   :  { %v911_v35 = vadd.f32 %v5307_v29, %v910_v34 }
 0x847   :  { %v914_v36 = vmax.f32 %v911_v35, 0.0 }
 0x849   :  { %4850 = vmatmul.msk.f32.gmra.mxu1 %vm918_vm1, %v914_v36 }
 0x8be   :  { %v942_v0 = vpop.f32.mrf.mxu1 }
 0x8bf   :  { %v943_v62 = vadd.f32 %v5308_v37, %v942_v0 }
 0x8c1   :  { %v5919_v38 = vadd.f32 %v943_v62, %v5846_v32 }
 0x8c3   :  { %v954_v39 = vsel %vm180_vm0, %v5919_v38, 0.0 }
 0x8c4   :  { %955 = vadd.xlane.f32.xlu1 %v954_v39 }
 0x8c6   :  { %v945_v40 = vpop.f32.mrf.mxu1 }
 0x8c7   :  { %v946_v41 = vadd.f32 %v5308_v37, %v945_v40 }
 0x8c9   :  { %v5924_v42 = vadd.f32 %v946_v41, %v5856_v60 }
 0x8cb   :  { %v957_v43 = vsel %vm180_vm0, %v5924_v42, 0.0 }
 0x8cc   :  { %958 = vadd.xlane.f32.xlu1 %v957_v43 }
 0x937   :  { %v956_v44 = vpop.xlane.xlu1 %955 }
 0x938   :  { %v960_v32 = vmul.f32 %v956_v44, %v5672_v10 }
 0x93a   :  { %v962_v2 = vsub.f32 %v5919_v38, %v960_v32 }
 0x93c   :  { %v964_v45 = vmul.f32 %v962_v2, %v962_v2 }
 0x93e   :  { %v966_v46 = vsel %vm180_vm0, %v964_v45, 0.0 }
 0x93f   :  { %967 = vadd.xlane.f32.xlu1 %v966_v46  ;;  %v959_v47 = vpop.xlane.xlu1 %958 }
 0x940   :  { %v961_v60 = vmul.f32 %v959_v47, %v5672_v10 }
 0x942   :  { %v963_v48 = vsub.f32 %v5924_v42, %v961_v60 }
 0x944   :  { %v965_v49 = vmul.f32 %v963_v48, %v963_v48 }
 0x946   :  { %v969_v50 = vsel %vm180_vm0, %v965_v49, 0.0 }
 0x947   :  { %970 = vadd.xlane.f32.xlu1 %v969_v50 }
 0x9b2   :  { %v968_v55 = vpop.xlane.xlu1 %967 }
 0x9b3   :  { %v972_v56 = vmul.f32 %v968_v55, %v5672_v10 }
 0x9b5   :  { %v974_v57 = vadd.f32 1e-06, %v972_v56 }
 0x9b7   :  { %5388 = vrsqrt.f32 %v974_v57  ;;  %vm982_vm3 = vweird.f32 %v974_v57 }
 0x9ba   :  { %v971_v58 = vpop.xlane.xlu1 %970 }
 0x9bb   :  { %v973_v59 = vmul.f32 %v971_v58, %v5672_v10 }
 0x9bd   :  { %v5389_v63 = vpop.eup %5388  ;;  %v975_v1 = vadd.f32 1e-06, %v973_v59 }
 0x9be   :  { %v977_v3 = vmul.f32 %v5389_v63, %v974_v57  ;;  %vm983_vm2 = vweird.f32 %v5389_v63 }
 0x9bf   :  { %5390 = vrsqrt.f32 %v975_v1  ;;  %vm984_vm4 = vmor %vm982_vm3, %vm983_vm2  ;;  %vm992_vm6 = vweird.f32 %v975_v1 }
 0x9c0   :  { %v978_v5 = vmul.f32 %v5389_v63, %v977_v3 }
 0x9c2   :  { %v979_v6 = vmul.f32 0.5, %v978_v5 }
 0x9c4   :  { %v980_v7 = vsub.f32 1.5, %v979_v6 }
 0x9c5   :  { %v5391_v8 = vpop.eup %5390 }
 0x9c6   :  { %v981_v9 = vmul.f32 %v5389_v63, %v980_v7  ;;  %v987_v11 = vmul.f32 %v5391_v8, %v975_v1  ;;  %vm993_vm5 = vweird.f32 %v5391_v8 }
 0x9c7   :  { %vm994_vm7 = vmor %vm992_vm6, %vm993_vm5 }
 0x9c8   :  { %v985_v13 = vsel %vm984_vm4, %v5389_v63, %v981_v9  ;;  %v988_v14 = vmul.f32 %v5391_v8, %v987_v11 }
 0x9c9   :  { %v996_v15 = vmul.f32 %v985_v13, %v962_v2  ;;  %v1779_v13 = vld [vmem:[%s5989_s21] sm:$0xff] }
 0x9ca   :  { %v989_v17 = vmul.f32 0.5, %v988_v14  ;;  %v1783_v14 = vsel %vm180_vm0, %v1779_v13, 0.0 }
 0x9cb   :  { %v1001_v18 = vmul.f32 %v5309_v12, %v996_v15  ;;  %v1780_v15 = vld [vmem:[%s5989_s21 + $0x8] sm:$0xff] }
 0x9cc   :  { %v990_v19 = vsub.f32 1.5, %v989_v17 }
 0x9cd   :  { %v1006_v20 = vadd.f32 %v5310_v16, %v1001_v18 }
 0x9ce   :  { %v991_v21 = vmul.f32 %v5391_v8, %v990_v19 }
 0x9cf   :  { %4863 = vmatmul.msk.f32.vlgmr.msrb.gmra.mxu3 %vm180_vm0, %v1006_v20 }
 0x9d0   :  { %v995_v22 = vsel %vm994_vm7, %v5391_v8, %v991_v21 }
 0x9d1   :  { %v997_v23 = vmul.f32 %v995_v22, %v963_v48 }
 0x9d3   :  { %v1002_v24 = vmul.f32 %v5309_v12, %v997_v23 }
 0x9d5   :  { %v1007_v25 = vadd.f32 %v5310_v16, %v1002_v24  ;;  %v1786_v16 = vsel %vm180_vm0, %v1780_v15, 0.0  ;;  %v5596_v24 = vld [vmem:[%s5728_s26 + $0x8] sm:$0xff] }
 0x9d7   :  { %4864 = vmatmul.msk.f32.gmra.mxu3 %vm180_vm0, %v1007_v25 }
 0xa52   :  { %v1048_v27 = vpop.f32.mrf.mxu3 }
 0xa53   :  { %v1049_v28 = vadd.f32 %v5311_v26, %v1048_v27 }
 0xa55   :  { %1056 = vrot.lane.b32.xlu0 %v1049_v28, %s5609_s22 }
 0xa5a   :  { %v1051_v29 = vpop.f32.mrf.mxu3 }
 0xa5b   :  { %v1052_v30 = vadd.f32 %v5311_v26, %v1051_v29 }
 0xa5d   :  { %1058 = vrot.lane.b32.xlu2 %v1052_v30, %s5609_s22  ;;  %v5955_v41 = vpack.i.bf16 %v1049_v28, %v1052_v30 }
 0xab7   :  { %v1059_v31 = vpop.permute.xlu2 %1058 }
 0xab8   :  { %4865 = vmatpush.xpose.msk.msra.mxu2 %vm290_vm8, %v1059_v31 }
 0xac7   :  { %v1057_v33 = vpop.permute.xlu0 %1056 }
 0xac8   :  { %4866 = vmatpush.xpose.msk.msra.mxu2 %vm290_vm8, %v1057_v33 }
 0xacb   :  { %4867 = vmatmul.msk.f32.vlgmr.msra.gmra.mxu2 %vm290_vm8, %v1049_v28 }
 0xad3   :  { %4868 = vmatmul.msk.f32.gmra.mxu2 %vm290_vm8, %v1052_v30 }
 0xb4e   :  { %v1085_v34 = vpop.f32.mrf.mxu2 }
 0xb4f   :  { %v1091_v35 = vmul.f32 0.35355338, %v1085_v34 }
 0xb51   :  { %v1093_v36 = vadd.f32 %v1091_v35, %v5731_v61 }
 0xb53   :  { %v1095_v37 = vsel %vm326_vm9, %v1093_v36, -inf }
 0xb54   :  { %1096 = vmax.xlane.f32.xlu1 %v1095_v37 }
 0xb56   :  { %v1088_v0 = vpop.f32.mrf.mxu2 }
 0xb57   :  { %v1092_v62 = vmul.f32 0.35355338, %v1088_v0  ;;  %v5597_v0 = vld [vmem:[%s5728_s26] sm:$0xff]  ;;  %s5630_s26 = smov 12  }
 0xb58   :  { %s6022_s25 = sld [smem:[%s6926_s0 + %s5630_s26]]   ;;  %s5642_s26 = smov 8  }
 0xb59   :  { %v1094_v39 = vadd.f32 %v1092_v62, %v5736_v4 }
 0xb5b   :  { %v1098_v40 = vsel %vm326_vm9, %v1094_v39, -inf }
 0xb5c   :  { %1099 = vmax.xlane.f32.xlu1 %v1098_v40 }
 0xb75   :  { %5182 = vrot.lane.b32.xlu1 %v5955_v41, %s5611_s27 }
 0xb7d   :  { %1447 = vrot.lane.b32.xlu1 %v1052_v30, %s6936_s3 }
 0xb85   :  { %1445 = vrot.lane.b32.xlu1 %v1049_v28, %s6936_s3 }
 0xb8d   :  { %1158 = vrot.lane.b32.xlu1 %v1052_v30, %s5612_s28 }
 0xb95   :  { %1443 = vrot.lane.b32.xlu1 %v1052_v30, %s6934_s2 }
 0xb9d   :  { %1152 = vrot.lane.b32.xlu1 %v1049_v28, %s5613_s29 }
 0xba5   :  { %1316 = vrot.lane.b32.xlu1 %v1052_v30, %s6938_s30 }
 0xbad   :  { %1312 = vrot.lane.b32.xlu1 %v1052_v30, %s6932_s1 }
 0xbc7   :  { %v1097_v61 = vpop.xlane.xlu1 %1096 }
 0xbc8   :  { %v1101_v4 = vsub.f32 %v1093_v36, %v1097_v61 }
 0xbca   :  { %v1103_v43 = vmul.f32 1.442695, %v1101_v4 }
 0xbcc   :  { %5392 = vpow2.f32 %v1103_v43 }
 0xbcf   :  { %v1100_v44 = vpop.xlane.xlu1 %1099 }
 0xbd0   :  { %v1102_v32 = vsub.f32 %v1094_v39, %v1100_v44 }
 0xbd2   :  { %v5393_v2 = vpop.eup %5392  ;;  %v1105_v45 = vmul.f32 1.442695, %v1102_v32 }
 0xbd3   :  { %v1107_v46 = vsel %vm326_vm9, %v5393_v2, 0.0 }
 0xbd4   :  { %5394 = vpow2.f32 %v1105_v45  ;;  %1108 = vadd.xlane.f32.xlu0 %v1107_v46 }
 0xbda   :  { %v5395_v47 = vpop.eup %5394 }
 0xbdb   :  { %v1110_v60 = vsel %vm326_vm9, %v5395_v47, 0.0 }
 0xbdc   :  { %1111 = vadd.xlane.f32.xlu2 %v1110_v60 }
 0xbe7   :  { %v5183_v48 = vpop.permute.xlu1 %5182 }
 0xbe8   :  { %v5184_v49 = vunpack.i.l.bf16 %v5183_v48  ;;  %1441 = vrot.lane.b32.xlu0 %v1049_v28, %s6934_s2  ;;  %v5185_v50 = vunpack.i.h.bf16 %v5183_v48 }
 0xbea   :  { %1143 = vmatpush.msrb.mxu0 %v5184_v49 }
 0xbec   :  { %1144 = vmatpush.msrb.mxu0 %v5185_v50 }
 0xbee   :  { %1302 = vmatpush.msra.mxu0 %v4858_v54 }
 0xbef   :  { %v1448_v51 = vpop.permute.xlu1 %1447 }
 0xbf0   :  { %1154 = vrot.lane.b32.xlu0 %v1052_v30, %s5613_s29 }
 0xbf4   :  { %1156 = vrot.lane.b32.xlu2 %v1049_v28, %s5612_s28 }
 0xbf7   :  { %v1446_v52 = vpop.permute.xlu1 %1445 }
 0xbf8   :  { %1310 = vrot.lane.b32.xlu0 %v1049_v28, %s6932_s1 }
 0xbfc   :  { %1314 = vrot.lane.b32.xlu2 %v1049_v28, %s6938_s30 }
 0xbff   :  { %v1159_v53 = vpop.permute.xlu1 %1158 }
 0xc00   :  { %4871 = vmatpush.xpose.msk.msra.mxu1 %vm290_vm8, %v1159_v53 }
 0xc07   :  { %v1444_v55 = vpop.permute.xlu1 %1443 }
 0xc0f   :  { %v1153_v58 = vpop.permute.xlu1 %1152 }
 0xc17   :  { %v1317_v6 = vpop.permute.xlu1 %1316 }
 0xc1f   :  { %v1313_v12 = vpop.permute.xlu1 %1312 }
 0xc22   :  { %1784 = vadd.xlane.f32.xlu0 %v1783_v14 }
 0xc2a   :  { %1787 = vadd.xlane.f32.xlu0 %v1786_v16 }
 0xc47   :  { %v1109_v56 = vpop.xlane.xlu0 %1108 }
 0xc48   :  { %5396 = vrcp.f32 %v1109_v56 }
 0xc4e   :  { %v5397_v57 = vpop.eup %5396 }
 0xc4f   :  { %v1115_v59 = vmul.f32 %v5397_v57, %v5393_v2  ;;  %v1112_v63 = vpop.xlane.xlu2 %1111 }
 0xc50   :  { %5398 = vrcp.f32 %v1112_v63 }
 0xc51   :  { %4869 = vmatmul.msk.f32.vlgmr.msrb.gmra.mxu0 %vm326_vm9, %v1115_v59 }
 0xc52   :  { %4889 = vmatpush.xpose.msk.msrb.mxu0 %vm290_vm8, %v1448_v51 }
 0xc56   :  { %v5399_v1 = vpop.eup %5398  ;;  %4890 = vmatpush.xpose.msk.msrb.mxu0 %vm290_vm8, %v1446_v52 }
 0xc57   :  { %v1157_v3 = vpop.permute.xlu2 %1156  ;;  %v1116_v5 = vmul.f32 %v5399_v1, %v5395_v47 }
 0xc58   :  { %4872 = vmatpush.xpose.msk.msra.mxu1 %vm290_vm8, %v1157_v3 }
 0xc59   :  { %4870 = vmatmul.msk.f32.gmra.mxu0 %vm326_vm9, %v1116_v5 }
 0xc5a   :  { %v1442_v7 = vpop.permute.xlu0 %1441 }
 0xc5b   :  { %4873 = vmatmul.msk.f32.vlgmr.msra.gmra.mxu1 %vm290_vm8, %v1153_v58 }
 0xc5c   :  { %4881 = vmatpush.xpose.msk.msrb.mxu1 %vm290_vm8, %v1317_v6 }
 0xc5f   :  { %v1315_v8 = vpop.permute.xlu2 %1314 }
 0xc60   :  { %4882 = vmatpush.xpose.msk.msrb.mxu1 %vm290_vm8, %v1315_v8 }
 0xc62   :  { %v1155_v9 = vpop.permute.xlu0 %1154 }
 0xc63   :  { %4874 = vmatmul.msk.f32.gmra.mxu1 %vm290_vm8, %v1155_v9 }
 0xc6a   :  { %v1311_v11 = vpop.permute.xlu0 %1310 }
 0xc6b   :  { %4883 = vmatmul.msk.f32.vlgmr.msrb.gmra.mxu1 %vm290_vm8, %v1311_v11 }
 0xc73   :  { %4884 = vmatmul.msk.f32.gmra.mxu1 %vm290_vm8, %v1313_v12 }
 0xc95   :  { %v1785_v27 = vpop.xlane.xlu0 %1784 }
 0xc96   :  { %v1789_v47 = vmul.f32 %v1785_v27, %v5672_v10 }
 0xc98   :  { %v6024_v49 = vsub.f32 %v1779_v13, %v1789_v47 }
 0xc9a   :  { %v1793_v52 = vmul.f32 %v6024_v49, %v6024_v49 }
 0xc9c   :  { %v1795_v53 = vsel %vm180_vm0, %v1793_v52, 0.0 }
 0xc9d   :  { %v1788_v28 = vpop.xlane.xlu0 %1787 }
 0xc9e   :  { %v1790_v29 = vmul.f32 %v1788_v28, %v5672_v10 }
 0xca0   :  { %v6005_v30 = vsub.f32 %v1780_v15, %v1790_v29 }
 0xca2   :  { %v1794_v31 = vmul.f32 %v6005_v30, %v6005_v30 }
 0xca4   :  { %v1798_v33 = vsel %vm180_vm0, %v1794_v31, 0.0 }
 0xcce   :  { %v1146_v17 = vpop.f32.mrf.mxu0 }
 0xccf   :  { %4879 = vmatmul.msk.f32.vlgmr.msra.gmra.mxu0 %vm290_vm8, %v1146_v17 }
 0xcd6   :  { %v1149_v18 = vpop.f32.mrf.mxu0 }
 0xcd7   :  { %4880 = vmatmul.msk.f32.gmra.mxu0 %vm290_vm8, %v1149_v18 }
 0xcd8   :  { %v1185_v19 = vpop.f32.mrf.mxu1 }
 0xcd9   :  { %v1191_v39 = vmul.f32 0.35355338, %v1185_v19 }
 0xcdb   :  { %v1193_v43 = vadd.f32 %v5597_v0, %v1191_v39  ;;  %v1839_v39 = vld [vmem:[%s6071_s20 + $0x10] sm:$0xff] }
 0xcdd   :  { %v1195_v45 = vsel %vm326_vm9, %v1193_v43, -inf }
 0xcdf   :  { %4891 = vmatmul.msk.f32.vlgmr.msrb.gmra.mxu0 %vm290_vm8, %v1442_v7 }
 0xce0   :  { %v1188_v20 = vpop.f32.mrf.mxu1 }
 0xce1   :  { %v1192_v32 = vmul.f32 0.35355338, %v1188_v20 }
 0xce3   :  { %v1194_v60 = vadd.f32 %v5596_v24, %v1192_v32 }
 0xce5   :  { %v1198_v50 = vsel %vm326_vm9, %v1194_v60, -inf }
 0xce7   :  { %4892 = vmatmul.msk.f32.gmra.mxu0 %vm290_vm8, %v1444_v55 }
 0xce8   :  { %v1343_v21 = vpop.f32.mrf.mxu1 }
 0xce9   :  { %v1349_v2 = vmul.f32 0.35355338, %v1343_v21 }
 0xceb   :  { %v1351_v48 = vadd.f32 %v5597_v0, %v1349_v2 }
 0xced   :  { %v1353_v51 = vsel %vm326_vm9, %v1351_v48, -inf }
 0xcf0   :  { %v1346_v22 = vpop.f32.mrf.mxu1 }
 0xcf1   :  { %v1350_v23 = vmul.f32 0.35355338, %v1346_v22 }
 0xcf3   :  { %v6000_v25 = vadd.f32 %v5596_v24, %v1350_v23 }
 0xcf5   :  { %v1356_v26 = vsel %vm326_vm9, %v6000_v25, -inf }
 0xcf6   :  { %1357 = vmax.xlane.f32.xlu0 %v1356_v26 }
 0xcfe   :  { %1799 = vadd.xlane.f32.xlu0 %v1798_v33 }
 0xd4c   :  { %v6010_v34 = vpop.f32.mrf.mxu0 }
 0xd54   :  { %v6012_v35 = vpop.f32.mrf.mxu0 }
 0xd5c   :  { %v1474_v36 = vpop.f32.mrf.mxu0 }
 0xd5d   :  { %v1480_v37 = vmul.f32 0.35355338, %v1474_v36 }
 0xd5f   :  { %v1482_v62 = vadd.f32 %v5597_v0, %v1480_v37 }
 0xd61   :  { %v1484_v40 = vsel %vm326_vm9, %v1482_v62, -inf }
 0xd62   :  { %1485 = vmax.xlane.f32.xlu2 %v1484_v40  ;;  %v1838_v40 = vld [vmem:[%s6071_s20 + $0x8] sm:$0xff] }
 0xd64   :  { %v1477_v61 = vpop.f32.mrf.mxu0 }
 0xd65   :  { %v1481_v4 = vmul.f32 0.35355338, %v1477_v61 }
 0xd67   :  { %v1483_v44 = vadd.f32 %v5596_v24, %v1481_v4  ;;  %v1837_v4 = vld [vmem:[%s6071_s20] sm:$0xff] }
 0xd69   :  { %v1487_v46 = vsel %vm326_vm9, %v1483_v44, -inf  ;;  %v1358_v18 = vpop.xlane.xlu0 %1357 }
 0xd6a   :  { %1196 = vmax.xlane.f32.xlu2 %v1195_v45  ;;  %1488 = vmax.xlane.f32.xlu1 %v1487_v46  ;;  %v1360_v21 = vsub.f32 %v6000_v25, %v1358_v18 }
 0xd6c   :  { %v1363_v23 = vmul.f32 1.442695, %v1360_v21 }
 0xd71   :  { %v1800_v37 = vpop.xlane.xlu0 %1799 }
 0xd72   :  { %1199 = vmax.xlane.f32.xlu2 %v1198_v50  ;;  %1354 = vmax.xlane.f32.xlu1 %v1353_v51  ;;  %v1802_v0 = vmul.f32 %v1800_v37, %v5672_v10  ;;  %v4860_v37 = vld [vmem:[%s5775_s7 + $0x30] sm:$0xff] }
 0xd7a   :  { %1796 = vadd.xlane.f32.xlu2 %v1795_v53 }
 0xd92   :  { %5187 = vrot.lane.b32.xlu2 %v5955_v41, %s6930_s11 }
 0xd9a   :  { %5197 = vrot.lane.b32.xlu2 %v5955_v41, %s6929_s10 }
 0xdd5   :  { %v1486_v54 = vpop.xlane.xlu2 %1485 }
 0xdd6   :  { %v1490_v55 = vsub.f32 %v1482_v62, %v1486_v54  ;;  %v1840_v62 = vld [vmem:[%s6071_s20 + $0x18] sm:$0xff] }
 0xdd8   :  { %v1492_v56 = vmul.f32 1.442695, %v1490_v55 }
 0xdda   :  { %5400 = vpow2.f32 %v1492_v56 }
 0xddd   :  { %v1197_v57 = vpop.xlane.xlu2 %1196  ;;  %v1489_v58 = vpop.xlane.xlu1 %1488 }
 0xdde   :  { %v1201_v59 = vsub.f32 %v1193_v43, %v1197_v57  ;;  %v1491_v63 = vsub.f32 %v1483_v44, %v1489_v58 }
 0xde0   :  { %v6040_v1 = vpop.eup %5400  ;;  %v1203_v3 = vmul.f32 1.442695, %v1201_v59  ;;  %v1494_v5 = vmul.f32 1.442695, %v1491_v63  ;;  %v5312_v63 = vld [vmem:[%s6022_s25] ss:$0 sm:$0xff] }
 0xde1   :  { %v1496_v6 = vsel %vm326_vm9, %v6040_v1, 0.0 }
 0xde2   :  { %5402 = vpow2.f32 %v1203_v3  ;;  %1497 = vadd.xlane.f32.xlu1 %v1496_v6  ;;  %v5313_v6 = vld [vmem:[%s6029_s18] ss:$0 sm:$0xff] }
 0xde3   :  { %5404 = vpow2.f32 %v1494_v5 }
 0xde5   :  { %v1200_v7 = vpop.xlane.xlu2 %1199  ;;  %v1355_v8 = vpop.xlane.xlu1 %1354 }
 0xde6   :  { %v1202_v9 = vsub.f32 %v1194_v60, %v1200_v7  ;;  %v1359_v13 = vsub.f32 %v1351_v48, %v1355_v8 }
 0xde8   :  { %v6044_v11 = vpop.eup %5402  ;;  %v1205_v12 = vmul.f32 1.442695, %v1202_v9  ;;  %v1361_v17 = vmul.f32 1.442695, %v1359_v13 }
 0xde9   :  { %v6046_v14 = vpop.eup %5404  ;;  %v1207_v15 = vsel %vm326_vm9, %v6044_v11, 0.0 }
 0xdea   :  { %5406 = vpow2.f32 %v1205_v12  ;;  %1208 = vadd.xlane.f32.xlu0 %v1207_v15  ;;  %v1499_v16 = vsel %vm326_vm9, %v6046_v14, 0.0 }
 0xdeb   :  { %1500 = vadd.xlane.f32.xlu1 %v1499_v16  ;;  %5408 = vpow2.f32 %v1361_v17 }
 0xdec   :  { %5410 = vpow2.f32 %v1363_v23 }
 0xded   :  { %v1797_v19 = vpop.xlane.xlu2 %1796 }
 0xdee   :  { %v1801_v33 = vmul.f32 %v1797_v19, %v5672_v10 }
 0xdf0   :  { %v6052_v20 = vpop.eup %5406  ;;  %v1803_v36 = vadd.f32 1e-06, %v1801_v33  ;;  %v4859_v33 = vld [vmem:[%s5775_s7 + $0x28] sm:$0xff] }
 0xdf1   :  { %v1210_v22 = vsel %vm326_vm9, %v6052_v20, 0.0  ;;  %v6057_v26 = vpop.eup %5408  ;;  %1273 = vmatpush.msrb.mxu2 %v4859_v33 }
 0xdf2   :  { %1211 = vadd.xlane.f32.xlu0 %v1210_v22  ;;  %v1365_v29 = vsel %vm326_vm9, %v6057_v26, 0.0  ;;  %v6061_v31 = vpop.eup %5410  ;;  %5412 = vrsqrt.f32 %v1803_v36  ;;  %vm1811_vm10 = vweird.f32 %v1803_v36 }
 0xdf3   :  { %v1368_v25 = vsel %vm326_vm9, %v6061_v31, 0.0  ;;  %1431 = vmatpush.msra.mxu2 %v4860_v37 }
 0xdf5   :  { %v5188_v24 = vpop.permute.xlu2 %5187 }
 0xdf6   :  { %v5189_v27 = vunpack.i.l.bf16 %v5188_v24  ;;  %v5190_v28 = vunpack.i.h.bf16 %v5188_v24 }
 0xdf8   :  { %1532 = vmatpush.msra.mxu1 %v5189_v27  ;;  %v5413_v61 = vpop.eup %5412 }
 0xdf9   :  { %v1806_v43 = vmul.f32 %v5413_v61, %v1803_v36  ;;  %vm1812_vm11 = vweird.f32 %v5413_v61 }
 0xdfa   :  { %1533 = vmatpush.msra.mxu1 %v5190_v28  ;;  %1366 = vadd.xlane.f32.xlu0 %v1365_v29  ;;  %vm1813_vm12 = vmor %vm1811_vm10, %vm1812_vm11 }
 0xdfb   :  { %v1807_v44 = vmul.f32 %v5413_v61, %v1806_v43 }
 0xdfc   :  { %1868 = vmatpush.msrb.mxu1 %v1840_v62 }
 0xdfd   :  { %v1808_v46 = vmul.f32 0.5, %v1807_v44  ;;  %v5198_v16 = vpop.permute.xlu2 %5197 }
 0xdfe   :  { %1869 = vmatpush.msrb.mxu1 %v1839_v39  ;;  %v5199_v19 = vunpack.i.l.bf16 %v5198_v16  ;;  %v5200_v21 = vunpack.i.h.bf16 %v5198_v16 }
 0xdff   :  { %v1809_v60 = vsub.f32 1.5, %v1808_v46 }
 0xe00   :  { %1870 = vmatpush.msrb.mxu1 %v1838_v40 }
 0xe01   :  { %v1810_v53 = vmul.f32 %v5413_v61, %v1809_v60 }
 0xe02   :  { %1369 = vadd.xlane.f32.xlu0 %v1368_v25  ;;  %1871 = vmatpush.msrb.mxu1 %v1837_v4  ;;  %v4861_v25 = vld [vmem:[%s5775_s7 + $0x38] sm:$0xff]  ;;  %s5634_s7 = smov 4  }
 0xe03   :  { %v1814_v55 = vsel %vm1813_vm12, %v5413_v61, %v1810_v53  ;;  %s6141_s17 = sld [smem:[%s6926_s0 + %s5634_s7]]  }
 0xe04   :  { %5192 = vrot.lane.b32.xlu1 %v5955_v41, %s6940_s9  ;;  %v1804_v41 = vadd.f32 1e-06, %v1802_v0  ;;  %v1825_v57 = vmul.f32 %v1814_v55, %v6024_v49  ;;  %s6383_s7 = sld [smem:[%s6926_s0 + %s5642_s26]]   ;;  %s5646_s26 = smov 15  }
 0xe06   :  { %5414 = vrsqrt.f32 %v1804_v41  ;;  %vm1821_vm13 = vweird.f32 %v1804_v41  ;;  %v1830_v3 = vmul.f32 %v5312_v63, %v1825_v57 }
 0xe08   :  { %v1835_v7 = vadd.f32 %v5313_v6, %v1830_v3 }
 0xe0c   :  { %v5415_v32 = vpop.eup %5414 }
 0xe0d   :  { %v1816_v45 = vmul.f32 %v5415_v32, %v1804_v41  ;;  %vm1822_vm14 = vweird.f32 %v5415_v32 }
 0xe0e   :  { %vm1823_vm15 = vmor %vm1821_vm13, %vm1822_vm14 }
 0xe0f   :  { %v1817_v47 = vmul.f32 %v5415_v32, %v1816_v45 }
 0xe11   :  { %v1818_v52 = vmul.f32 0.5, %v1817_v47 }
 0xe13   :  { %v1819_v54 = vsub.f32 1.5, %v1818_v52 }
 0xe15   :  { %v1820_v59 = vmul.f32 %v5415_v32, %v1819_v54 }
 0xe17   :  { %v1824_v5 = vsel %vm1823_vm15, %v5415_v32, %v1820_v59 }
 0xe18   :  { %v1826_v49 = vmul.f32 %v1824_v5, %v6005_v30 }
 0xe1a   :  { %v1831_v9 = vmul.f32 %v5312_v63, %v1826_v49 }
 0xe1c   :  { %v1836_v13 = vadd.f32 %v5313_v6, %v1831_v9 }
 0xe55   :  { %v1498_v2 = vpop.xlane.xlu1 %1497 }
 0xe56   :  { %5416 = vrcp.f32 %v1498_v2 }
 0xe5c   :  { %v5417_v48 = vpop.eup %5416 }
 0xe5d   :  { %v1504_v50 = vmul.f32 %v5417_v48, %v6040_v1  ;;  %v1209_v1 = vpop.xlane.xlu0 %1208  ;;  %v5315_v48 = vld [vmem:[%s5837_s16 + $0x1] ss:$0 sm:$0xff]  ;;  %s6308_s16 = sld [smem:[%s6926_s0 + %s5637_s4]]   ;;  %s5640_s4 = smov 10  }
 0xe5e   :  { %v1501_v51 = vpop.xlane.xlu1 %1500 }
 0xe5f   :  { %5418 = vrcp.f32 %v1501_v51  ;;  %4893 = vmatmul.msk.f32.vlgmr.msra.gmra.mxu1 %vm326_vm9, %v1504_v50 }
 0xe60   :  { %5420 = vrcp.f32 %v1209_v1 }
 0xe65   :  { %v5419_v56 = vpop.eup %5418  ;;  %v1212_v8 = vpop.xlane.xlu0 %1211 }
 0xe66   :  { %v1505_v58 = vmul.f32 %v5419_v56, %v6046_v14  ;;  %v5421_v14 = vpop.eup %5420  ;;  %5422 = vrcp.f32 %v1212_v8 }
 0xe67   :  { %v1215_v18 = vmul.f32 %v5421_v14, %v6044_v11  ;;  %v6162_v14 = vld [vmem:[%s6141_s17 + $0x8] sm:$0xff] }
 0xe68   :  { %4894 = vmatmul.msk.f32.gmra.mxu1 %vm326_vm9, %v1505_v58 }
 0xe6c   :  { %v5423_v22 = vpop.eup %5422 }
 0xe6d   :  { %v1367_v30 = vpop.xlane.xlu0 %1366  ;;  %v1216_v23 = vmul.f32 %v5423_v22, %v6052_v20  ;;  %v4910_v22 = vld [vmem:[%s5892_s6 + $0x70] sm:$0xff] }
 0xe6e   :  { %5424 = vrcp.f32 %v1367_v30 }
 0xe70   :  { %4917 = vmatmul.msk.f32.vlgmr.msrb.gmra.mxu1 %vm180_vm0, %v1835_v7 }
 0xe74   :  { %v5425_v27 = vpop.eup %5424 }
 0xe75   :  { %v1370_v24 = vpop.xlane.xlu0 %1369  ;;  %v1373_v11 = vmul.f32 %v5425_v27, %v6057_v26  ;;  %v5314_v26 = vld [vmem:[%s6085_s14] ss:$0 sm:$0xff]  ;;  %v4907_v27 = vld [vmem:[%s5892_s6 + $0x58] sm:$0xff] }
 0xe76   :  { %v5193_v12 = vpop.permute.xlu1 %5192  ;;  %5426 = vrcp.f32 %v1370_v24  ;;  %v4908_v24 = vld [vmem:[%s5892_s6 + $0x60] sm:$0xff] }
 0xe77   :  { %v5194_v15 = vunpack.i.l.bf16 %v5193_v12  ;;  %v5195_v17 = vunpack.i.h.bf16 %v5193_v12 }
 0xe78   :  { %4918 = vmatmul.msk.f32.gmra.mxu1 %vm180_vm0, %v1836_v13 }
 0xe79   :  { %1243 = vmatpush.msra.mxu3 %v5194_v15 }
 0xe7b   :  { %1244 = vmatpush.msra.mxu3 %v5195_v17 }
 0xe7c   :  { %4875 = vmatmul.msk.f32.vlgmr.msra.gmra.mxu3 %vm326_vm9, %v1215_v18  ;;  %v5427_v28 = vpop.eup %5426 }
 0xe7d   :  { %1401 = vmatpush.msrb.mxu3 %v5199_v19  ;;  %v1374_v29 = vmul.f32 %v5427_v28, %v6061_v31  ;;  %v4905_v28 = vld [vmem:[%s5892_s6 + $0x48] sm:$0xff] }
 0xe7f   :  { %1402 = vmatpush.msrb.mxu3 %v5200_v21  ;;  %v4911_v21 = vld [vmem:[%s5892_s6 + $0x78] sm:$0xff] }
 0xe80   :  { %1706 = vmatpush.msra.mxu0 %v4911_v21 }
 0xe81   :  { %1562 = vmatpush.msra.mxu3 %v4861_v25 }
 0xe82   :  { %1707 = vmatpush.msra.mxu0 %v4910_v22 }
 0xe84   :  { %4876 = vmatmul.msk.f32.gmra.mxu3 %vm326_vm9, %v1216_v23  ;;  %v4909_v23 = vld [vmem:[%s5892_s6 + $0x68] sm:$0xff] }
 0xe85   :  { %1708 = vmatpush.msra.mxu0 %v4909_v23 }
 0xe87   :  { %1709 = vmatpush.msra.mxu0 %v4908_v24 }
 0xe89   :  { %1710 = vmatpush.msra.mxu0 %v4907_v27 }
 0xe8c   :  { %4885 = vmatmul.msk.f32.vlgmr.msrb.gmra.mxu3 %vm326_vm9, %v1373_v11  ;;  %v4906_v11 = vld [vmem:[%s5892_s6 + $0x50] sm:$0xff] }
 0xe8d   :  { %1711 = vmatpush.msra.mxu0 %v4906_v11 }
 0xe8f   :  { %1712 = vmatpush.msra.mxu0 %v4905_v28 }
 0xe94   :  { %4886 = vmatmul.msk.f32.gmra.mxu3 %vm326_vm9, %v1374_v29  ;;  %v4904_v29 = vld [vmem:[%s5892_s6 + $0x40] sm:$0xff] }
 0xe95   :  { %1713 = vmatpush.msra.mxu0 %v4904_v29 }
 0xedc   :  { %v1535_v20 = vpop.f32.mrf.mxu1 }
 0xedd   :  { %4895 = vmatmul.msk.f32.vlgmr.msra.gmra.mxu3 %vm290_vm8, %v1535_v20 }
 0xee5   :  { %v1538_v36 = vpop.f32.mrf.mxu1 }
 0xee6   :  { %4896 = vmatmul.msk.f32.gmra.mxu3 %vm290_vm8, %v1538_v36 }
 0xeed   :  { %v1873_v0 = vpop.f32.mrf.mxu1 }
 0xeee   :  { %v6107_v62 = vadd.f32 %v5314_v26, %v1873_v0 }
 0xef0   :  { %1881 = vrot.lane.b32.xlu1 %v6107_v62, %s5609_s22 }
 0xef5   :  { %v1876_v31 = vpop.f32.mrf.mxu1 }
 0xef6   :  { %v6111_v39 = vadd.f32 %v5314_v26, %v1876_v31  ;;  %v4902_v31 = vld [vmem:[%s5883_s8 + $0x38] sm:$0xff] }
 0xef8   :  { %1883 = vrot.lane.b32.xlu2 %v6111_v39, %s5609_s22  ;;  %v6190_v0 = vpack.i.bf16 %v6107_v62, %v6111_v39 }
 0xeff   :  { %v1246_v41 = vpop.f32.mrf.mxu3 }
 0xf00   :  { %4877 = vmatmul.msk.f32.vlgmr.msrb.gmra.mxu2 %vm290_vm8, %v1246_v41  ;;  %v4901_v41 = vld [vmem:[%s5883_s8 + $0x30] sm:$0xff] }
 0xf01   :  { %1676 = vmatpush.msrb.mxu2 %v4902_v31 }
 0xf03   :  { %1677 = vmatpush.msrb.mxu2 %v4901_v41 }
 0xf07   :  { %v1249_v40 = vpop.f32.mrf.mxu3 }
 0xf08   :  { %4878 = vmatmul.msk.f32.gmra.mxu2 %vm290_vm8, %v1249_v40  ;;  %v4900_v40 = vld [vmem:[%s5883_s8 + $0x28] sm:$0xff] }
 0xf09   :  { %1678 = vmatpush.msrb.mxu2 %v4900_v40 }
 0xf0f   :  { %v1404_v61 = vpop.f32.mrf.mxu3 }
 0xf10   :  { %4887 = vmatmul.msk.f32.vlgmr.msra.gmra.mxu2 %vm290_vm8, %v1404_v61  ;;  %v4899_v61 = vld [vmem:[%s5883_s8 + $0x20] sm:$0xff]  ;;  %s5635_s8 = smov 19  }
 0xf11   :  { %1679 = vmatpush.msrb.mxu2 %v4899_v61  ;;  %s6226_s6 = sld [smem:[%s6926_s0 + %s5635_s8]]   ;;  %s5641_s8 = smov 13  }
 0xf17   :  { %v1407_v4 = vpop.f32.mrf.mxu3  ;;  %v1842_v21 = vld [vmem:[%s6226_s6] sm:$0xff] }
 0xf18   :  { %4888 = vmatmul.msk.f32.gmra.mxu2 %vm290_vm8, %v1407_v4 }
 0xf52   :  { %v1884_v43 = vpop.permute.xlu2 %1883 }
 0xf53   :  { %4919 = vmatpush.xpose.msk.msrb.mxu3 %vm290_vm8, %v1884_v43 }
 0xf60   :  { %v1564_v46 = vpop.f32.mrf.mxu3 }
 0xf62   :  { %v1882_v44 = vpop.permute.xlu1 %1881 }
 0xf63   :  { %4920 = vmatpush.xpose.msk.msrb.mxu3 %vm290_vm8, %v1882_v44 }
 0xf66   :  { %4921 = vmatmul.msk.f32.vlgmr.msrb.gmra.mxu3 %vm290_vm8, %v6107_v62 }
 0xf69   :  { %v1567_v57 = vpop.f32.mrf.mxu3 }
 0xf6e   :  { %4922 = vmatmul.msk.f32.gmra.mxu3 %vm290_vm8, %v6111_v39 }
 0xf83   :  { %v1275_v32 = vpop.f32.mrf.mxu2 }
 0xf84   :  { %v1305_v45 = vadd.f32 %v6010_v34, %v1275_v32 }
 0xf8b   :  { %v1278_v2 = vpop.f32.mrf.mxu2 }
 0xf8c   :  { %v1308_v52 = vadd.f32 %v6012_v35, %v1278_v2  ;;  %v6144_v35 = vld [vmem:[%s6141_s17] sm:$0xff] }
 0xf93   :  { %v1433_v47 = vpop.f32.mrf.mxu2 }
 0xf94   :  { %v1439_v60 = vadd.f32 %v1433_v47, %v1305_v45 }
 0xf96   :  { %v1570_v50 = vadd.f32 %v1564_v46, %v1439_v60 }
 0xf98   :  { %v1575_v51 = vadd.f32 %v5315_v48, %v1570_v50 }
 0xf9a   :  { %v6129_v53 = vadd.f32 %v1575_v51, %v5919_v38 }
 0xf9b   :  { %v1436_v54 = vpop.f32.mrf.mxu2 }
 0xf9c   :  { %v1440_v55 = vadd.f32 %v1436_v54, %v1308_v52  ;;  %v1583_v56 = vsel %vm180_vm0, %v6129_v53, 0.0 }
 0xf9d   :  { %1584 = vadd.xlane.f32.xlu0 %v1583_v56 }
 0xf9e   :  { %v1571_v58 = vadd.f32 %v1567_v57, %v1440_v55 }
 0xfa0   :  { %v1576_v34 = vadd.f32 %v5315_v48, %v1571_v58  ;;  %v5316_v58 = vld [vmem:[%s5853_s23 + $0x1] ss:$0 sm:$0xff] }
 0xfa2   :  { %v6134_v59 = vadd.f32 %v1576_v34, %v5924_v42 }
 0xfa4   :  { %v1586_v63 = vsel %vm180_vm0, %v6134_v59, 0.0 }
 0xfa5   :  { %1587 = vadd.xlane.f32.xlu2 %v1586_v63 }
 0xfe9   :  { %v1910_v38 = vpop.f32.mrf.mxu3 }
 0xfea   :  { %v1916_v1 = vmul.f32 0.35355338, %v1910_v38  ;;  %v5317_v38 = vld [vmem:[%s5873_s5 + $0x1] ss:$0 sm:$0xff]  ;;  %s6321_s5 = sld [smem:[%s6926_s0 + %s5638_s13]]  }
 0xfeb   :  { %s6354_s13 = sld [smem:[%s6926_s0 + %s5640_s4]]  }
 0xfec   :  { %v1918_v3 = vadd.f32 %v1916_v1, %v6144_v35 }
 0xfee   :  { %v1920_v42 = vsel %vm326_vm9, %v1918_v3, -inf }
 0xfef   :  { %1921 = vmax.xlane.f32.xlu1 %v1920_v42 }
 0xff1   :  { %v1913_v49 = vpop.f32.mrf.mxu3 }
 0xff2   :  { %v1917_v9 = vmul.f32 0.35355338, %v1913_v49 }
 0xff4   :  { %v1919_v16 = vadd.f32 %v1917_v9, %v6162_v14 }
 0xff6   :  { %v1923_v18 = vsel %vm326_vm9, %v1919_v16, -inf }
0x1008   :  { %1983 = vrot.lane.b32.xlu1 %v6111_v39, %s5612_s28 }
0x1010   :  { %2141 = vrot.lane.b32.xlu1 %v6111_v39, %s6938_s30  ;;  %v1585_v5 = vpop.xlane.xlu0 %1584 }
0x1011   :  { %v1589_v6 = vmul.f32 %v1585_v5, %v5672_v10 }
0x1013   :  { %v6154_v7 = vsub.f32 %v6129_v53, %v1589_v6 }
0x1015   :  { %v1593_v8 = vmul.f32 %v6154_v7, %v6154_v7 }
0x1017   :  { %v1595_v12 = vsel %vm180_vm0, %v1593_v8, 0.0 }
0x1018   :  { %2270 = vrot.lane.b32.xlu1 %v6107_v62, %s6936_s3  ;;  %1596 = vadd.xlane.f32.xlu0 %v1595_v12  ;;  %v1588_v13 = vpop.xlane.xlu2 %1587 }
0x1019   :  { %v1590_v15 = vmul.f32 %v1588_v13, %v5672_v10 }
0x101b   :  { %v6167_v17 = vsub.f32 %v6134_v59, %v1590_v15 }
0x101d   :  { %v1594_v19 = vmul.f32 %v6167_v17, %v6167_v17 }
0x101f   :  { %v1598_v30 = vsel %vm180_vm0, %v1594_v19, 0.0 }
0x1020   :  { %2137 = vrot.lane.b32.xlu1 %v6111_v39, %s6932_s1  ;;  %1924 = vmax.xlane.f32.xlu0 %v1923_v18 }
0x1028   :  { %1599 = vadd.xlane.f32.xlu0 %v1598_v30 }
0x1062   :  { %v1922_v25 = vpop.xlane.xlu1 %1921 }
0x1063   :  { %v1926_v33 = vsub.f32 %v1918_v3, %v1922_v25 }
0x1065   :  { %v1928_v20 = vmul.f32 1.442695, %v1926_v33  ;;  %v5318_v33 = vld [vmem:[%s5878_s15 + $0x1] ss:$0 sm:$0xff]  ;;  %s5636_s15 = smov 38  }
0x1066   :  { %s6296_s24 = sld [smem:[%s6926_s0 + %s5636_s15]]   ;;  %s5639_s15 = smov 14  }
0x1067   :  { %5428 = vpow2.f32 %v1928_v20 }
0x106d   :  { %v6183_v36 = vpop.eup %5428 }
0x106e   :  { %v1932_v37 = vsel %vm326_vm9, %v6183_v36, 0.0 }
0x106f   :  { %1933 = vadd.xlane.f32.xlu0 %v1932_v37 }
0x107a   :  { %v1984_v26 = vpop.permute.xlu1 %1983 }
0x107b   :  { %4925 = vmatpush.xpose.msk.msrb.mxu0 %vm290_vm8, %v1984_v26 }
0x1082   :  { %v2142_v23 = vpop.permute.xlu1 %2141 }
0x1083   :  { %5202 = vrot.lane.b32.xlu0 %v6190_v0, %s5611_s27 }
0x108a   :  { %v2271_v27 = vpop.permute.xlu1 %2270 }
0x108b   :  { %v1597_v4 = vpop.xlane.xlu0 %1596  ;;  %1977 = vrot.lane.b32.xlu0 %v6107_v62, %s5613_s29 }
0x108c   :  { %v1601_v43 = vmul.f32 %v1597_v4, %v5672_v10 }
0x108e   :  { %v1603_v44 = vadd.f32 1e-06, %v1601_v43 }
0x1090   :  { %5430 = vrsqrt.f32 %v1603_v44  ;;  %vm1611_vm3 = vweird.f32 %v1603_v44 }
0x1092   :  { %v2138_v4 = vpop.permute.xlu1 %2137 }
0x1093   :  { %v1925_v32 = vpop.xlane.xlu0 %1924  ;;  %1979 = vrot.lane.b32.xlu0 %v6111_v39, %s5613_s29 }
0x1094   :  { %v1927_v2 = vsub.f32 %v1919_v16, %v1925_v32 }
0x1096   :  { %v5431_v45 = vpop.eup %5430  ;;  %v1930_v46 = vmul.f32 1.442695, %v1927_v2 }
0x1097   :  { %v1606_v47 = vmul.f32 %v5431_v45, %v1603_v44  ;;  %vm1612_vm2 = vweird.f32 %v5431_v45 }
0x1098   :  { %5432 = vpow2.f32 %v1930_v46  ;;  %vm1613_vm4 = vmor %vm1611_vm3, %vm1612_vm2 }
0x1099   :  { %v1607_v60 = vmul.f32 %v5431_v45, %v1606_v47 }
0x109b   :  { %v1608_v48 = vmul.f32 0.5, %v1607_v60  ;;  %2272 = vrot.lane.b32.xlu0 %v6111_v39, %s6936_s3  ;;  %v1600_v50 = vpop.xlane.xlu0 %1599 }
0x109c   :  { %v1602_v51 = vmul.f32 %v1600_v50, %v5672_v10 }
0x109d   :  { %v1609_v52 = vsub.f32 1.5, %v1608_v48 }
0x109e   :  { %v5433_v54 = vpop.eup %5432  ;;  %v1604_v55 = vadd.f32 1e-06, %v1602_v51 }
0x109f   :  { %v1610_v56 = vmul.f32 %v5431_v45, %v1609_v52  ;;  %v1935_v57 = vsel %vm326_vm9, %v5433_v54, 0.0 }
0x10a0   :  { %5434 = vrsqrt.f32 %v1604_v55  ;;  %1936 = vadd.xlane.f32.xlu2 %v1935_v57  ;;  %vm1621_vm6 = vweird.f32 %v1604_v55 }
0x10a1   :  { %v1614_v34 = vsel %vm1613_vm4, %v5431_v45, %v1610_v56 }
0x10a2   :  { %v1625_v63 = vmul.f32 %v1614_v34, %v6154_v7 }
0x10a3   :  { %2135 = vrot.lane.b32.xlu0 %v6107_v62, %s6932_s1 }
0x10a4   :  { %v1630_v1 = vmul.f32 %v5316_v58, %v1625_v63 }
0x10a6   :  { %v5435_v3 = vpop.eup %5434  ;;  %v1635_v42 = vadd.f32 %v5317_v38, %v1630_v1 }
0x10a7   :  { %v1616_v5 = vmul.f32 %v5435_v3, %v1604_v55  ;;  %vm1622_vm5 = vweird.f32 %v5435_v3 }
0x10a8   :  { %4913 = vmatmul.msk.f32.vlgmr.msrb.gmra.mxu2 %vm180_vm0, %v1635_v42  ;;  %vm1623_vm7 = vmor %vm1621_vm6, %vm1622_vm5 }
0x10a9   :  { %v1617_v6 = vmul.f32 %v5435_v3, %v1616_v5 }
0x10ab   :  { %v1618_v49 = vmul.f32 0.5, %v1617_v6  ;;  %2268 = vrot.lane.b32.xlu0 %v6111_v39, %s6934_s2 }
0x10ad   :  { %v1619_v8 = vsub.f32 1.5, %v1618_v49 }
0x10af   :  { %v1620_v9 = vmul.f32 %v5435_v3, %v1619_v8 }
0x10b1   :  { %v1624_v7 = vsel %vm1623_vm7, %v5435_v3, %v1620_v9 }
0x10b2   :  { %v1626_v12 = vmul.f32 %v1624_v7, %v6167_v17 }
0x10b4   :  { %v1631_v13 = vmul.f32 %v5316_v58, %v1626_v12 }
0x10b6   :  { %v1636_v15 = vadd.f32 %v5317_v38, %v1631_v13 }
0x10b8   :  { %1981 = vrot.lane.b32.xlu2 %v6107_v62, %s5612_s28  ;;  %4914 = vmatmul.msk.f32.gmra.mxu2 %vm180_vm0, %v1636_v15 }
0x10c0   :  { %2139 = vrot.lane.b32.xlu2 %v6107_v62, %s6938_s30 }
0x10c8   :  { %2266 = vrot.lane.b32.xlu2 %v6107_v62, %s6934_s2 }
0x10e2   :  { %v1934_v39 = vpop.xlane.xlu0 %1933 }
0x10e3   :  { %5436 = vrcp.f32 %v1934_v39 }
0x10e9   :  { %v5437_v17 = vpop.eup %5436 }
0x10ea   :  { %v1940_v30 = vmul.f32 %v5437_v17, %v6183_v36 }
0x10f5   :  { %v5203_v16 = vpop.permute.xlu0 %5202 }
0x10f6   :  { %v5204_v18 = vunpack.i.l.bf16 %v5203_v16  ;;  %v5205_v19 = vunpack.i.h.bf16 %v5203_v16 }
0x10f8   :  { %1968 = vmatpush.msra.mxu2 %v5204_v18 }
0x10fa   :  { %1969 = vmatpush.msra.mxu2 %v5205_v19 }
0x10fb   :  { %4923 = vmatmul.msk.f32.vlgmr.msra.gmra.mxu2 %vm326_vm9, %v1940_v30 }
0x10fc   :  { %2127 = vmatpush.msrb.mxu2 %v1842_v21 }
0x10fd   :  { %v1978_v62 = vpop.permute.xlu0 %1977 }
0x1105   :  { %v1980_v22 = vpop.permute.xlu0 %1979 }
0x110d   :  { %v2273_v24 = vpop.permute.xlu0 %2272 }
0x110e   :  { %4943 = vmatpush.xpose.msk.msra.mxu2 %vm290_vm8, %v2273_v24 }
0x1112   :  { %4944 = vmatpush.xpose.msk.msra.mxu2 %vm290_vm8, %v2271_v27 }
0x1113   :  { %v1937_v11 = vpop.xlane.xlu2 %1936 }
0x1114   :  { %5438 = vrcp.f32 %v1937_v11 }
0x1115   :  { %v2136_v61 = vpop.permute.xlu0 %2135 }
0x111a   :  { %v5439_v28 = vpop.eup %5438 }
0x111b   :  { %v1982_v29 = vpop.permute.xlu2 %1981  ;;  %v1941_v25 = vmul.f32 %v5439_v28, %v5433_v54 }
0x111c   :  { %4926 = vmatpush.xpose.msk.msrb.mxu0 %vm290_vm8, %v1982_v29 }
0x111d   :  { %4924 = vmatmul.msk.f32.gmra.mxu2 %vm326_vm9, %v1941_v25  ;;  %v2269_v2 = vpop.permute.xlu0 %2268 }
0x1123   :  { %v2140_v26 = vpop.permute.xlu2 %2139 }
0x112b   :  { %v1681_v20 = vpop.f32.mrf.mxu2  ;;  %v2267_v32 = vpop.permute.xlu2 %2266 }
0x112c   :  { %v1682_v36 = vadd.f32 %v5318_v33, %v1681_v20 }
0x112e   :  { %v1687_v37 = vmax.f32 %v1682_v36, 0.0  ;;  %v5319_v36 = vld [vmem:[%s5909_s19 + $0x1] ss:$0 sm:$0xff]  ;;  %s6378_s19 = sld [smem:[%s6926_s0 + %s5641_s8]]   ;;  %s5647_s8 = smov 16  }
0x1130   :  { %4915 = vmatmul.msk.f32.vlgmr.msra.gmra.mxu0 %vm918_vm1, %v1687_v37 }
0x1131   :  { %4935 = vmatpush.xpose.msk.msra.mxu0 %vm290_vm8, %v2142_v23 }
0x1135   :  { %4936 = vmatpush.xpose.msk.msra.mxu0 %vm290_vm8, %v2140_v26 }
0x113b   :  { %v1684_v31 = vpop.f32.mrf.mxu2 }
0x113c   :  { %v1685_v41 = vadd.f32 %v5318_v33, %v1684_v31 }
0x113e   :  { %v1688_v40 = vmax.f32 %v1685_v41, 0.0 }
0x1140   :  { %4916 = vmatmul.msk.f32.gmra.mxu0 %vm918_vm1, %v1688_v40 }
0x1148   :  { %4927 = vmatmul.msk.f32.vlgmr.msrb.gmra.mxu0 %vm290_vm8, %v1978_v62 }
0x1150   :  { %4928 = vmatmul.msk.f32.gmra.mxu0 %vm290_vm8, %v1980_v22 }
0x1158   :  { %4937 = vmatmul.msk.f32.vlgmr.msra.gmra.mxu0 %vm290_vm8, %v2136_v61 }
0x1160   :  { %4938 = vmatmul.msk.f32.gmra.mxu0 %vm290_vm8, %v2138_v4 }
0x117e   :  { %v1971_v43 = vpop.f32.mrf.mxu2 }
0x117f   :  { %4933 = vmatmul.msk.f32.vlgmr.msrb.gmra.mxu2 %vm290_vm8, %v1971_v43 }
0x11a0   :  { %v1974_v44 = vpop.f32.mrf.mxu2 }
0x11a1   :  { %4934 = vmatmul.msk.f32.gmra.mxu2 %vm290_vm8, %v1974_v44 }
0x11a9   :  { %4945 = vmatmul.msk.f32.vlgmr.msra.gmra.mxu2 %vm290_vm8, %v2267_v32 }
0x11ad   :  { %v6248_v45 = vpop.f32.mrf.mxu0 }
0x11ae   :  { %v1716_v41 = vadd.f32 %v5319_v36, %v6248_v45 }
0x11b0   :  { %v1721_v40 = vadd.f32 %v1716_v41, %v6129_v53 }
0x11b1   :  { %4946 = vmatmul.msk.f32.gmra.mxu2 %vm290_vm8, %v2269_v2 }
0x11b2   :  { %v1725_v61 = vsel %vm180_vm0, %v1721_v40, 0.0 }
0x11bd   :  { %v6250_v46 = vpop.f32.mrf.mxu0 }
0x11be   :  { %v1719_v37 = vadd.f32 %v5319_v36, %v6250_v46 }
0x11c0   :  { %v6281_v26 = vadd.f32 %v1719_v37, %v6134_v59 }
0x11c2   :  { %v1728_v31 = vsel %vm180_vm0, %v6281_v26, 0.0 }
0x11c5   :  { %v2010_v47 = vpop.f32.mrf.mxu0 }
0x11c6   :  { %v2016_v60 = vmul.f32 0.35355338, %v2010_v47 }
0x11c8   :  { %v2018_v48 = vadd.f32 %v2016_v60, %v6144_v35 }
0x11ca   :  { %v2020_v50 = vsel %vm326_vm9, %v2018_v48, -inf }
0x11cb   :  { %2021 = vmax.xlane.f32.xlu2 %v2020_v50 }
0x11cd   :  { %v2013_v51 = vpop.f32.mrf.mxu0 }
0x11ce   :  { %v2017_v52 = vmul.f32 0.35355338, %v2013_v51 }
0x11d0   :  { %v2019_v54 = vadd.f32 %v2017_v52, %v6162_v14 }
0x11d2   :  { %v2023_v55 = vsel %vm326_vm9, %v2019_v54, -inf }
0x11d3   :  { %2024 = vmax.xlane.f32.xlu1 %v2023_v55 }
0x11d5   :  { %v2168_v56 = vpop.f32.mrf.mxu0 }
0x11d6   :  { %v2174_v57 = vmul.f32 0.35355338, %v2168_v56 }
0x11d8   :  { %v2176_v58 = vadd.f32 %v2174_v57, %v6144_v35 }
0x11da   :  { %v2178_v34 = vsel %vm326_vm9, %v2176_v58, -inf }
0x11db   :  { %2179 = vmax.xlane.f32.xlu0 %v2178_v34 }
0x11dd   :  { %v2171_v63 = vpop.f32.mrf.mxu0 }
0x11de   :  { %v2175_v38 = vmul.f32 0.35355338, %v2171_v63 }
0x11e0   :  { %v2177_v1 = vadd.f32 %v2175_v38, %v6162_v14 }
0x11e2   :  { %v2181_v3 = vsel %vm326_vm9, %v2177_v1, -inf }
0x11e3   :  { %2182 = vmax.xlane.f32.xlu2 %v2181_v3 }
0x1202   :  { %v6260_v42 = vpop.f32.mrf.mxu2 }
0x1224   :  { %v6262_v5 = vpop.f32.mrf.mxu2 }
0x122c   :  { %v2299_v6 = vpop.f32.mrf.mxu2 }
0x122d   :  { %v2305_v49 = vmul.f32 0.35355338, %v2299_v6 }
0x122f   :  { %v2307_v8 = vadd.f32 %v2305_v49, %v6144_v35 }
0x1231   :  { %v2309_v9 = vsel %vm326_vm9, %v2307_v8, -inf }
0x1232   :  { %2310 = vmax.xlane.f32.xlu1 %v2309_v9 }
0x1234   :  { %v2302_v7 = vpop.f32.mrf.mxu2 }
0x1235   :  { %v2306_v12 = vmul.f32 0.35355338, %v2302_v7 }
0x1237   :  { %v2308_v13 = vadd.f32 %v2306_v12, %v6162_v14 }
0x1239   :  { %v2312_v15 = vsel %vm326_vm9, %v2308_v13, -inf }
0x123a   :  { %2313 = vmax.xlane.f32.xlu0 %v2312_v15 }
0x123e   :  { %v2022_v39 = vpop.xlane.xlu2 %2021 }
0x123f   :  { %v2026_v16 = vsub.f32 %v2018_v48, %v2022_v39 }
0x1241   :  { %v2028_v17 = vmul.f32 1.442695, %v2026_v16 }
0x1243   :  { %5440 = vpow2.f32 %v2028_v17 }
0x1246   :  { %v2025_v18 = vpop.xlane.xlu1 %2024 }
0x1247   :  { %v2027_v19 = vsub.f32 %v2019_v54, %v2025_v18  ;;  %v1843_v18 = vld [vmem:[%s6226_s6 + $0x8] sm:$0xff] }
0x1248   :  { %2098 = vmatpush.msra.mxu3 %v1843_v18 }
0x1249   :  { %v5441_v30 = vpop.eup %5440  ;;  %v2030_v21 = vmul.f32 1.442695, %v2027_v19 }
0x124a   :  { %v2032_v35 = vsel %vm326_vm9, %v5441_v30, 0.0 }
0x124b   :  { %5442 = vpow2.f32 %v2030_v21  ;;  %5207 = vrot.lane.b32.xlu1 %v6190_v0, %s6940_s9  ;;  %2033 = vadd.xlane.f32.xlu2 %v2032_v35 }
0x124e   :  { %v2180_v62 = vpop.xlane.xlu0 %2179 }
0x124f   :  { %v2184_v14 = vsub.f32 %v2176_v58, %v2180_v62 }
0x1251   :  { %v5443_v22 = vpop.eup %5442  ;;  %v2186_v23 = vmul.f32 1.442695, %v2184_v14  ;;  %v1844_v14 = vld [vmem:[%s6226_s6 + $0x10] sm:$0xff] }
0x1252   :  { %v2035_v24 = vsel %vm326_vm9, %v5443_v22, 0.0  ;;  %2256 = vmatpush.msrb.mxu3 %v1844_v14 }
0x1253   :  { %5444 = vpow2.f32 %v2186_v23  ;;  %5217 = vrot.lane.b32.xlu1 %v6190_v0, %s6930_s11  ;;  %2036 = vadd.xlane.f32.xlu0 %v2035_v24 }
0x1256   :  { %v2183_v27 = vpop.xlane.xlu2 %2182 }
0x1257   :  { %v2185_v11 = vsub.f32 %v2177_v1, %v2183_v27 }
0x1259   :  { %v5445_v28 = vpop.eup %5444  ;;  %v2188_v29 = vmul.f32 1.442695, %v2185_v11  ;;  %v1845_v11 = vld [vmem:[%s6226_s6 + $0x18] sm:$0xff] }
0x125a   :  { %v2190_v25 = vsel %vm326_vm9, %v5445_v28, 0.0 }
0x125b   :  { %5446 = vpow2.f32 %v2188_v29  ;;  %2191 = vadd.xlane.f32.xlu2 %v2190_v25 }
0x1261   :  { %v5447_v33 = vpop.eup %5446 }
0x1262   :  { %v2193_v20 = vsel %vm326_vm9, %v5447_v33, 0.0 }
0x1263   :  { %2194 = vadd.xlane.f32.xlu2 %v2193_v20 }
0x1267   :  { %5212 = vrot.lane.b32.xlu0 %v6190_v0, %s6929_s10  ;;  %s5648_s10 = smov 5  }
0x1268   :  { %s6558_s4 = sld [smem:[%s6926_s0 + %s5648_s10]]   ;;  %s5650_s10 = smov 22  }
0x127d   :  { %1729 = vadd.xlane.f32.xlu1 %v1728_v31  ;;  %v5321_v31 = vld [vmem:[%s6321_s5] ss:$0 sm:$0xff] }
0x1291   :  { %1726 = vadd.xlane.f32.xlu0 %v1725_v61 }
0x12a5   :  { %v2311_v4 = vpop.xlane.xlu1 %2310 }
0x12a6   :  { %v2315_v43 = vsub.f32 %v2307_v8, %v2311_v4 }
0x12a8   :  { %v2317_v0 = vmul.f32 1.442695, %v2315_v43 }
0x12aa   :  { %5448 = vpow2.f32 %v2317_v0  ;;  %v5598_v0 = vld [vmem:[%s5989_s21] sm:$0xff] }
0x12ad   :  { %v2314_v44 = vpop.xlane.xlu0 %2313 }
0x12ae   :  { %v2316_v32 = vsub.f32 %v2308_v13, %v2314_v44 }
0x12b0   :  { %v5449_v2 = vpop.eup %5448  ;;  %v2319_v59 = vmul.f32 1.442695, %v2316_v32 }
0x12b1   :  { %v2321_v46 = vsel %vm326_vm9, %v5449_v2, 0.0 }
0x12b2   :  { %5450 = vpow2.f32 %v2319_v59  ;;  %2322 = vadd.xlane.f32.xlu2 %v2321_v46 }
0x12b8   :  { %v5451_v47 = vpop.eup %5450 }
0x12b9   :  { %v2324_v45 = vsel %vm326_vm9, %v5451_v47, 0.0 }
0x12ba   :  { %2325 = vadd.xlane.f32.xlu2 %v2324_v45 }
0x12bd   :  { %v5208_v53 = vpop.permute.xlu1 %5207 }
0x12be   :  { %v5209_v60 = vunpack.i.l.bf16 %v5208_v53  ;;  %v2034_v48 = vpop.xlane.xlu2 %2033  ;;  %v5210_v50 = vunpack.i.h.bf16 %v5208_v53  ;;  %v5599_v53 = vld [vmem:[%s5989_s21 + $0x8] sm:$0xff]  ;;  %s6349_s21 = sld [smem:[%s6926_s0 + %s5639_s15]]   ;;  %s5644_s15 = smov 9  }
0x12bf   :  { %5452 = vrcp.f32 %v2034_v48  ;;  %s6455_s12 = sld [smem:[%s6926_s0 + %s5644_s15]]  }
0x12c0   :  { %2068 = vmatpush.msra.mxu1 %v5209_v60 }
0x12c2   :  { %2069 = vmatpush.msra.mxu1 %v5210_v50 }
0x12c5   :  { %v5453_v51 = vpop.eup %5452  ;;  %v5218_v52 = vpop.permute.xlu1 %5217 }
0x12c6   :  { %v2040_v54 = vmul.f32 %v5453_v51, %v5441_v30  ;;  %v5219_v55 = vunpack.i.l.bf16 %v5218_v52  ;;  %v2037_v56 = vpop.xlane.xlu0 %2036  ;;  %v5220_v57 = vunpack.i.h.bf16 %v5218_v52  ;;  %v2463_v52 = vld [vmem:[%s6354_s13 + $0x18] sm:$0xff] }
0x12c7   :  { %5454 = vrcp.f32 %v2037_v56 }
0x12c8   :  { %4929 = vmatmul.msk.f32.vlgmr.msra.gmra.mxu1 %vm326_vm9, %v2040_v54  ;;  %2357 = vmatpush.msrb.mxu0 %v5219_v55 }
0x12ca   :  { %2358 = vmatpush.msrb.mxu0 %v5220_v57 }
0x12cd   :  { %v5455_v58 = vpop.eup %5454 }
0x12ce   :  { %v2041_v34 = vmul.f32 %v5455_v58, %v5443_v22  ;;  %v2192_v63 = vpop.xlane.xlu2 %2191 }
0x12cf   :  { %5456 = vrcp.f32 %v2192_v63  ;;  %v2461_v63 = vld [vmem:[%s6354_s13 + $0x8] sm:$0xff] }
0x12d0   :  { %4930 = vmatmul.msk.f32.gmra.mxu1 %vm326_vm9, %v2041_v34 }
0x12d5   :  { %v5457_v3 = vpop.eup %5456 }
0x12d6   :  { %v2195_v38 = vpop.xlane.xlu2 %2194  ;;  %v2198_v8 = vmul.f32 %v5457_v3, %v5445_v28  ;;  %v2460_v3 = vld [vmem:[%s6354_s13] sm:$0xff] }
0x12d7   :  { %5458 = vrcp.f32 %v2195_v38 }
0x12d9   :  { %v5213_v1 = vpop.permute.xlu0 %5212 }
0x12da   :  { %v5214_v6 = vunpack.i.l.bf16 %v5213_v1  ;;  %v5215_v49 = vunpack.i.h.bf16 %v5213_v1 }
0x12dc   :  { %2226 = vmatpush.msrb.mxu1 %v5214_v6 }
0x12dd   :  { %v5459_v9 = vpop.eup %5458 }
0x12de   :  { %2227 = vmatpush.msrb.mxu1 %v5215_v49  ;;  %v2199_v7 = vmul.f32 %v5459_v9, %v5447_v33 }
0x12df   :  { %4939 = vmatmul.msk.f32.vlgmr.msrb.gmra.mxu1 %vm326_vm9, %v2198_v8 }
0x12e0   :  { %2387 = vmatpush.msra.mxu1 %v1845_v11 }
0x12e7   :  { %4940 = vmatmul.msk.f32.gmra.mxu1 %vm326_vm9, %v2199_v7  ;;  %v5226_v7 = vpack.i.bf16 %v2460_v3, %v2461_v63 }
0x12f0   :  { %v1730_v59 = vpop.xlane.xlu1 %1729 }
0x1304   :  { %v1727_v12 = vpop.xlane.xlu0 %1726 }
0x1305   :  { %v1731_v13 = vmul.f32 %v1727_v12, %v5672_v10 }
0x1307   :  { %v6300_v15 = vsub.f32 %v1721_v40, %v1731_v13 }
0x1309   :  { %v1735_v39 = vmul.f32 %v6300_v15, %v6300_v15 }
0x130b   :  { %v1737_v16 = vsel %vm180_vm0, %v1735_v39, 0.0 }
0x130c   :  { %1738 = vadd.xlane.f32.xlu2 %v1737_v16 }
0x1325   :  { %v2323_v17 = vpop.xlane.xlu2 %2322 }
0x1326   :  { %5460 = vrcp.f32 %v2323_v17 }
0x132c   :  { %v5461_v19 = vpop.eup %5460 }
0x132d   :  { %v2329_v30 = vmul.f32 %v5461_v19, %v5449_v2  ;;  %v2326_v21 = vpop.xlane.xlu2 %2325 }
0x132e   :  { %5462 = vrcp.f32 %v2326_v21 }
0x132f   :  { %4947 = vmatmul.msk.f32.vlgmr.msrb.gmra.mxu0 %vm326_vm9, %v2329_v30 }
0x1334   :  { %v5463_v35 = vpop.eup %5462 }
0x1335   :  { %v2330_v62 = vmul.f32 %v5463_v35, %v5451_v47  ;;  %v1732_v47 = vmul.f32 %v1730_v59, %v5672_v10 }
0x1337   :  { %4948 = vmatmul.msk.f32.gmra.mxu0 %vm326_vm9, %v2330_v62  ;;  %v6339_v48 = vsub.f32 %v6281_v26, %v1732_v47  ;;  %v2462_v26 = vld [vmem:[%s6354_s13 + $0x10] sm:$0xff] }
0x1338   :  { %v5221_v54 = vpack.i.bf16 %v2462_v26, %v2463_v52 }
0x1339   :  { %v1736_v50 = vmul.f32 %v6339_v48, %v6339_v48 }
0x133a   :  { %5222 = vrot.lane.b32.xlu0 %v5221_v54, %s5609_s22 }
0x133b   :  { %v1740_v51 = vsel %vm180_vm0, %v1736_v50, 0.0 }
0x1345   :  { %v2071_v22 = vpop.f32.mrf.mxu1 }
0x1346   :  { %4931 = vmatmul.msk.f32.vlgmr.msra.gmra.mxu3 %vm290_vm8, %v2071_v22 }
0x1347   :  { %2491 = vmatpush.msra.mxu3 %v2463_v52 }
0x1349   :  { %2492 = vmatpush.msra.mxu3 %v2462_v26 }
0x134b   :  { %2493 = vmatpush.msra.mxu3 %v2461_v63 }
0x134d   :  { %v2074_v23 = vpop.f32.mrf.mxu1  ;;  %2494 = vmatpush.msra.mxu3 %v2460_v3 }
0x134e   :  { %4932 = vmatmul.msk.f32.gmra.mxu3 %vm290_vm8, %v2074_v23 }
0x135c   :  { %v2229_v24 = vpop.f32.mrf.mxu1 }
0x135d   :  { %4941 = vmatmul.msk.f32.vlgmr.msrb.gmra.mxu3 %vm290_vm8, %v2229_v24 }
0x1364   :  { %v2232_v27 = vpop.f32.mrf.mxu1 }
0x1365   :  { %4942 = vmatmul.msk.f32.gmra.mxu3 %vm290_vm8, %v2232_v27 }
0x137f   :  { %v1739_v55 = vpop.xlane.xlu2 %1738 }
0x1380   :  { %v1743_v12 = vmul.f32 %v1739_v55, %v5672_v10 }
0x1382   :  { %v1745_v13 = vadd.f32 1e-06, %v1743_v12 }
0x1384   :  { %5464 = vrsqrt.f32 %v1745_v13  ;;  %vm1753_vm11 = vweird.f32 %v1745_v13 }
0x138a   :  { %v5465_v21 = vpop.eup %5464 }
0x138b   :  { %v1748_v35 = vmul.f32 %v5465_v21, %v1745_v13  ;;  %vm1754_vm10 = vweird.f32 %v5465_v21 }
0x138c   :  { %vm1755_vm12 = vmor %vm1753_vm11, %vm1754_vm10 }
0x138d   :  { %v1749_v62 = vmul.f32 %v5465_v21, %v1748_v35 }
0x138f   :  { %v1750_v22 = vmul.f32 0.5, %v1749_v62 }
0x1391   :  { %v1751_v24 = vsub.f32 1.5, %v1750_v22 }
0x1393   :  { %v1752_v11 = vmul.f32 %v5465_v21, %v1751_v24 }
0x13ac   :  { %v2360_v28 = vpop.f32.mrf.mxu0  ;;  %v5223_v16 = vpop.permute.xlu0 %5222 }
0x13ad   :  { %4949 = vmatmul.msk.f32.vlgmr.msra.gmra.mxu1 %vm290_vm8, %v2360_v28  ;;  %v5224_v18 = vunpack.i.l.bf16 %v5223_v16  ;;  %v5225_v19 = vunpack.i.h.bf16 %v5223_v16 }
0x13af   :  { %2539 = vmatpush.msrb.mxu2 %v5224_v18 }
0x13b1   :  { %2540 = vmatpush.msrb.mxu2 %v5225_v19 }
0x13b4   :  { %v2363_v29 = vpop.f32.mrf.mxu0 }
0x13b5   :  { %4950 = vmatmul.msk.f32.gmra.mxu1 %vm290_vm8, %v2363_v29  ;;  %v6389_v29 = vld [vmem:[%s6383_s7] ss:$0 sm:$0xff] }
0x13c9   :  { %v2100_v25 = vpop.f32.mrf.mxu3 }
0x13ca   :  { %v2130_v36 = vadd.f32 %v6260_v42, %v2100_v25 }
0x13d1   :  { %v2103_v33 = vpop.f32.mrf.mxu3 }
0x13d2   :  { %v2133_v43 = vadd.f32 %v6262_v5, %v2103_v33  ;;  %v1756_v33 = vsel %vm1755_vm12, %v5465_v21, %v1752_v11 }
0x13e0   :  { %v2258_v20 = vpop.f32.mrf.mxu3 }
0x13e1   :  { %v2264_v37 = vadd.f32 %v2258_v20, %v2130_v36 }
0x13e8   :  { %v2261_v4 = vpop.f32.mrf.mxu3 }
0x13e9   :  { %v2265_v32 = vadd.f32 %v2261_v4, %v2133_v43 }
0x142a   :  { %v2389_v41 = vpop.f32.mrf.mxu1 }
0x142b   :  { %v2395_v40 = vadd.f32 %v2389_v41, %v2264_v37  ;;  %v1767_v41 = vmul.f32 %v1756_v33, %v6300_v15 }
0x142d   :  { %v2400_v61 = vadd.f32 %v5321_v31, %v2395_v40 }
0x142f   :  { %v6330_v44 = vadd.f32 %v5598_v0, %v2400_v61  ;;  %v5323_v0 = vld [vmem:[%s6308_s16] ss:$0 sm:$0xff]  ;;  %s6533_s16 = sld [smem:[%s6926_s0 + %s5646_s26]]  }
0x1431   :  { %v2406_v2 = vsel %vm180_vm0, %v6330_v44, 0.0 }
0x1432   :  { %2407 = vadd.xlane.f32.xlu2 %v2406_v2  ;;  %v2392_v46 = vpop.f32.mrf.mxu1 }
0x1433   :  { %v2396_v42 = vadd.f32 %v2392_v46, %v2265_v32 }
0x1435   :  { %v2401_v45 = vadd.f32 %v5321_v31, %v2396_v42  ;;  %v5320_v31 = vld [vmem:[%s6296_s24] ss:$0 sm:$0xff]  ;;  %s5643_s24 = smov 3  }
0x1436   :  { %v1772_v61 = vmul.f32 %v5320_v31, %v1767_v41  ;;  %s6422_s23 = sld [smem:[%s6926_s0 + %s5643_s24]]   ;;  %s5645_s24 = smov 7  }
0x1437   :  { %v6336_v60 = vadd.f32 %v5599_v53, %v2401_v45  ;;  %s6517_s15 = sld [smem:[%s6926_s0 + %s5645_s24]]   ;;  %s5649_s24 = smov 21  }
0x1438   :  { %v6398_v15 = vadd.f32 %v5323_v0, %v1772_v61 }
0x1439   :  { %v2409_v5 = vsel %vm180_vm0, %v6336_v60, 0.0 }
0x143a   :  { %2410 = vadd.xlane.f32.xlu2 %v2409_v5 }
0x143c   :  { %v6430_v11 = vld [vmem:[%s6422_s23 + $0x8] sm:$0xff] }
0x1442   :  { %1741 = vadd.xlane.f32.xlu2 %v1740_v51 }
0x14a5   :  { %v2408_v56 = vpop.xlane.xlu2 %2407 }
0x14a6   :  { %v2412_v57 = vmul.f32 %v2408_v56, %v5672_v10 }
0x14a8   :  { %v6361_v58 = vsub.f32 %v6330_v44, %v2412_v57  ;;  %v5322_v57 = vld [vmem:[%s6349_s21] ss:$0 sm:$0xff] }
0x14aa   :  { %v2416_v34 = vmul.f32 %v6361_v58, %v6361_v58 }
0x14ac   :  { %v2418_v38 = vsel %vm180_vm0, %v2416_v34, 0.0 }
0x14ad   :  { %2419 = vadd.xlane.f32.xlu2 %v2418_v38  ;;  %v2411_v1 = vpop.xlane.xlu2 %2410  ;;  %v5324_v38 = vld [vmem:[%s6378_s19] ss:$0 sm:$0xff] }
0x14ae   :  { %v2413_v6 = vmul.f32 %v2411_v1, %v5672_v10 }
0x14b0   :  { %v6370_v49 = vsub.f32 %v6336_v60, %v2413_v6 }
0x14b2   :  { %v2417_v8 = vmul.f32 %v6370_v49, %v6370_v49 }
0x14b4   :  { %v2421_v9 = vsel %vm180_vm0, %v2417_v8, 0.0 }
0x14b5   :  { %2422 = vadd.xlane.f32.xlu1 %v2421_v9  ;;  %v1742_v39 = vpop.xlane.xlu2 %1741 }
0x14b6   :  { %v1744_v17 = vmul.f32 %v1742_v39, %v5672_v10 }
0x14b8   :  { %v1746_v30 = vadd.f32 1e-06, %v1744_v17 }
0x14ba   :  { %5466 = vrsqrt.f32 %v1746_v30  ;;  %vm1763_vm14 = vweird.f32 %v1746_v30 }
0x14c0   :  { %v5467_v14 = vpop.eup %5466 }
0x14c1   :  { %v1758_v23 = vmul.f32 %v5467_v14, %v1746_v30  ;;  %vm1764_vm13 = vweird.f32 %v5467_v14 }
0x14c2   :  { %vm1765_vm15 = vmor %vm1763_vm14, %vm1764_vm13 }
0x14c3   :  { %v1759_v27 = vmul.f32 %v5467_v14, %v1758_v23 }
0x14c5   :  { %5227 = vrot.lane.b32.xlu2 %v5226_v7, %s5609_s22  ;;  %v1760_v28 = vmul.f32 0.5, %v1759_v27 }
0x14c7   :  { %v1761_v20 = vsub.f32 1.5, %v1760_v28 }
0x14c9   :  { %v1762_v40 = vmul.f32 %v5467_v14, %v1761_v20 }
0x14cb   :  { %v1766_v32 = vsel %vm1765_vm15, %v5467_v14, %v1762_v40  ;;  %v6425_v14 = vld [vmem:[%s6422_s23] sm:$0xff] }
0x14cc   :  { %v1768_v53 = vmul.f32 %v1766_v32, %v6339_v48 }
0x14ce   :  { %2518 = vrot.lane.b32.xlu1 %v6389_v29, %s5609_s22  ;;  %v1773_v51 = vmul.f32 %v5320_v31, %v1768_v53 }
0x14d0   :  { %v6403_v56 = vadd.f32 %v5323_v0, %v1773_v51 }
0x1520   :  { %v2420_v25 = vpop.xlane.xlu2 %2419 }
0x1521   :  { %v2424_v36 = vmul.f32 %v2420_v25, %v5672_v10 }
0x1523   :  { %v2426_v37 = vadd.f32 1e-06, %v2424_v36 }
0x1525   :  { %5468 = vrsqrt.f32 %v2426_v37  ;;  %vm2434_vm3 = vweird.f32 %v2426_v37 }
0x1528   :  { %v2423_v4 = vpop.xlane.xlu1 %2422  ;;  %v5228_v43 = vpop.permute.xlu2 %5227 }
0x1529   :  { %v2425_v2 = vmul.f32 %v2423_v4, %v5672_v10  ;;  %v5229_v59 = vunpack.i.l.bf16 %v5228_v43  ;;  %v5230_v47 = vunpack.i.h.bf16 %v5228_v43 }
0x152b   :  { %v5469_v46 = vpop.eup %5468  ;;  %v2427_v42 = vadd.f32 1e-06, %v2425_v2  ;;  %2541 = vmatpush.msrb.mxu2 %v5229_v59 }
0x152c   :  { %v2429_v45 = vmul.f32 %v5469_v46, %v2426_v37  ;;  %vm2435_vm2 = vweird.f32 %v5469_v46 }
0x152d   :  { %5470 = vrsqrt.f32 %v2427_v42  ;;  %2542 = vmatpush.msrb.mxu2 %v5230_v47  ;;  %vm2436_vm4 = vmor %vm2434_vm3, %vm2435_vm2  ;;  %vm2444_vm6 = vweird.f32 %v2427_v42 }
0x152e   :  { %v2430_v5 = vmul.f32 %v5469_v46, %v2429_v45  ;;  %4953 = vmatmul.msk.f32.vlgmr.msrb.gmra.mxu2 %vm180_vm0, %v6398_v15 }
0x1530   :  { %v2431_v50 = vmul.f32 0.5, %v2430_v5 }
0x1532   :  { %v2432_v26 = vsub.f32 1.5, %v2431_v50 }
0x1533   :  { %v5471_v52 = vpop.eup %5470 }
0x1534   :  { %v2433_v54 = vmul.f32 %v5469_v46, %v2432_v26  ;;  %v2439_v55 = vmul.f32 %v5471_v52, %v2427_v42  ;;  %vm2445_vm5 = vweird.f32 %v5471_v52 }
0x1535   :  { %vm2446_vm7 = vmor %vm2444_vm6, %vm2445_vm5 }
0x1536   :  { %v2437_v48 = vsel %vm2436_vm4, %v5469_v46, %v2433_v54  ;;  %v2440_v34 = vmul.f32 %v5471_v52, %v2439_v55  ;;  %4954 = vmatmul.msk.f32.gmra.mxu2 %vm180_vm0, %v6403_v56  ;;  %v2465_v46 = vld [vmem:[%s6455_s12] sm:$0xff] }
0x1537   :  { %v2448_v63 = vmul.f32 %v2437_v48, %v6361_v58 }
0x1538   :  { %v2441_v1 = vmul.f32 0.5, %v2440_v34 }
0x1539   :  { %v2453_v3 = vmul.f32 %v5322_v57, %v2448_v63 }
0x153a   :  { %v2442_v6 = vsub.f32 1.5, %v2441_v1 }
0x153b   :  { %v2458_v8 = vadd.f32 %v5324_v38, %v2453_v3 }
0x153c   :  { %v2443_v9 = vmul.f32 %v5471_v52, %v2442_v6 }
0x153d   :  { %4951 = vmatmul.msk.f32.vlgmr.msra.gmra.mxu3 %vm180_vm0, %v2458_v8 }
0x153e   :  { %v2447_v7 = vsel %vm2446_vm7, %v5471_v52, %v2443_v9 }
0x153f   :  { %v2449_v12 = vmul.f32 %v2447_v7, %v6370_v49 }
0x1540   :  { %v2519_v58 = vpop.permute.xlu1 %2518 }
0x1541   :  { %v2454_v13 = vmul.f32 %v5322_v57, %v2449_v12 }
0x1543   :  { %v2459_v39 = vadd.f32 %v5324_v38, %v2454_v13 }
0x1545   :  { %4952 = vmatmul.msk.f32.gmra.mxu3 %vm180_vm0, %v2459_v39 }
0x15b1   :  { %v2544_v16 = vpop.f32.mrf.mxu2 }
0x15b2   :  { %v2545_v19 = vadd.f32 %v2544_v16, %v2519_v58 }
0x15b9   :  { %v2547_v17 = vpop.f32.mrf.mxu2 }
0x15ba   :  { %v2548_v18 = vadd.f32 %v2547_v17, %v2519_v58 }
0x15bc   :  { %4955 = vmatpush.xpose.msk.msra.mxu0 %vm290_vm8, %v2548_v18  ;;  %v6434_v33 = vpack.i.bf16 %v2545_v19, %v2548_v18 }
0x15c0   :  { %v2496_v30 = vpop.f32.mrf.mxu3  ;;  %4956 = vmatpush.xpose.msk.msra.mxu0 %vm290_vm8, %v2545_v19 }
0x15c1   :  { %v2497_v21 = vadd.f32 %v6389_v29, %v2496_v30 }
0x15c3   :  { %4957 = vmatmul.msk.f32.vlgmr.msra.gmra.mxu0 %vm290_vm8, %v2497_v21 }
0x15c8   :  { %v2499_v35 = vpop.f32.mrf.mxu3 }
0x15c9   :  { %v2500_v49 = vadd.f32 %v6389_v29, %v2499_v35 }
0x15cb   :  { %4958 = vmatmul.msk.f32.gmra.mxu0 %vm290_vm8, %v2500_v49 }
0x1640   :  { %v2579_v62 = vpop.f32.mrf.mxu0 }
0x1641   :  { %v2585_v22 = vmul.f32 0.35355338, %v2579_v62 }
0x1643   :  { %v2587_v23 = vadd.f32 %v2585_v22, %v6425_v14 }
0x1645   :  { %v2589_v24 = vsel %vm326_vm9, %v2587_v23, -inf }
0x1646   :  { %2590 = vmax.xlane.f32.xlu0 %v2589_v24 }
0x1648   :  { %v2582_v27 = vpop.f32.mrf.mxu0 }
0x1649   :  { %v2586_v28 = vmul.f32 0.35355338, %v2582_v27 }
0x164b   :  { %v2588_v29 = vadd.f32 %v2586_v28, %v6430_v11 }
0x164d   :  { %v2592_v25 = vsel %vm326_vm9, %v2588_v29, -inf }
0x164e   :  { %2593 = vmax.xlane.f32.xlu2 %v2592_v25 }
0x165a   :  { %5232 = vrot.lane.b32.xlu0 %v6434_v33, %s5609_s22 }
0x1662   :  { %2646 = vrot.lane.b32.xlu0 %v2497_v21, %s5613_s29 }
0x166a   :  { %2648 = vrot.lane.b32.xlu0 %v2500_v49, %s5613_s29 }
0x1672   :  { %2810 = vrot.lane.b32.xlu0 %v2548_v18, %s6932_s1 }
0x167a   :  { %2939 = vrot.lane.b32.xlu0 %v2545_v19, %s6934_s2 }
0x1682   :  { %2806 = vrot.lane.b32.xlu0 %v2500_v49, %s6932_s1 }
0x16b9   :  { %v2591_v20 = vpop.xlane.xlu0 %2590 }
0x16ba   :  { %v2595_v36 = vsub.f32 %v2587_v23, %v2591_v20 }
0x16bc   :  { %v2597_v37 = vmul.f32 1.442695, %v2595_v36 }
0x16be   :  { %5472 = vpow2.f32 %v2597_v37 }
0x16c1   :  { %v2594_v31 = vpop.xlane.xlu2 %2593 }
0x16c2   :  { %v2596_v41 = vsub.f32 %v2588_v29, %v2594_v31 }
0x16c4   :  { %v5473_v40 = vpop.eup %5472  ;;  %v2599_v61 = vmul.f32 1.442695, %v2596_v41 }
0x16c5   :  { %v2601_v4 = vsel %vm326_vm9, %v5473_v40, 0.0 }
0x16c6   :  { %5474 = vpow2.f32 %v2599_v61  ;;  %2602 = vadd.xlane.f32.xlu1 %v2601_v4 }
0x16cc   :  { %v5475_v43 = vpop.eup %5474  ;;  %v5233_v0 = vpop.permute.xlu0 %5232 }
0x16cd   :  { %v5234_v32 = vunpack.i.l.bf16 %v5233_v0  ;;  %v2604_v2 = vsel %vm326_vm9, %v5475_v43, 0.0  ;;  %v5235_v59 = vunpack.i.h.bf16 %v5233_v0 }
0x16ce   :  { %2605 = vadd.xlane.f32.xlu2 %v2604_v2 }
0x16cf   :  { %2637 = vmatpush.msrb.mxu1 %v5234_v32 }
0x16d1   :  { %2638 = vmatpush.msrb.mxu1 %v5235_v59 }
0x16d3   :  { %2796 = vmatpush.msra.mxu1 %v2465_v46 }
0x16d4   :  { %v2647_v42 = vpop.permute.xlu0 %2646 }
0x16dc   :  { %v2649_v53 = vpop.permute.xlu0 %2648 }
0x16df   :  { %2650 = vrot.lane.b32.xlu1 %v2545_v19, %s5613_s29 }
0x16e4   :  { %v2811_v54 = vpop.permute.xlu0 %2810 }
0x16e6   :  { %2652 = vrot.lane.b32.xlu2 %v2548_v18, %s5613_s29 }
0x16e7   :  { %2808 = vrot.lane.b32.xlu1 %v2545_v19, %s6932_s1 }
0x16ec   :  { %v2940_v48 = vpop.permute.xlu0 %2939 }
0x16ee   :  { %2941 = vrot.lane.b32.xlu2 %v2548_v18, %s6934_s2 }
0x16ef   :  { %2935 = vrot.lane.b32.xlu1 %v2497_v21, %s6934_s2 }
0x16f4   :  { %v2807_v38 = vpop.permute.xlu0 %2806 }
0x16f6   :  { %2804 = vrot.lane.b32.xlu2 %v2497_v21, %s6932_s1  ;;  %s6541_s1 = sld [smem:[%s6926_s0 + %s5647_s8]]  }
0x16fe   :  { %2937 = vrot.lane.b32.xlu2 %v2500_v49, %s6934_s2  ;;  %s5651_s2 = smov 6  }
0x1739   :  { %v2603_v47 = vpop.xlane.xlu1 %2602 }
0x173a   :  { %5476 = vrcp.f32 %v2603_v47 }
0x1740   :  { %v5477_v45 = vpop.eup %5476 }
0x1741   :  { %v2609_v5 = vmul.f32 %v5477_v45, %v5473_v40  ;;  %v2606_v50 = vpop.xlane.xlu2 %2605 }
0x1742   :  { %5478 = vrcp.f32 %v2606_v50 }
0x1743   :  { %4959 = vmatmul.msk.f32.vlgmr.msrb.gmra.mxu1 %vm326_vm9, %v2609_v5 }
0x1748   :  { %v5479_v51 = vpop.eup %5478 }
0x1749   :  { %v2653_v26 = vpop.permute.xlu2 %2652  ;;  %v2610_v52 = vmul.f32 %v5479_v51, %v5475_v43 }
0x174a   :  { %4961 = vmatpush.xpose.msk.msrb.mxu3 %vm290_vm8, %v2653_v26 }
0x174b   :  { %4960 = vmatmul.msk.f32.gmra.mxu1 %vm326_vm9, %v2610_v52 }
0x1751   :  { %v2651_v55 = vpop.permute.xlu1 %2650  ;;  %v2942_v57 = vpop.permute.xlu2 %2941 }
0x1752   :  { %4962 = vmatpush.xpose.msk.msrb.mxu3 %vm290_vm8, %v2651_v55  ;;  %4979 = vmatpush.xpose.msk.msrb.mxu1 %vm290_vm8, %v2942_v57 }
0x1755   :  { %4963 = vmatmul.msk.f32.vlgmr.msrb.gmra.mxu3 %vm290_vm8, %v2647_v42 }
0x1756   :  { %4971 = vmatpush.xpose.msk.msra.mxu3 %vm290_vm8, %v2811_v54  ;;  %4980 = vmatpush.xpose.msk.msrb.mxu1 %vm290_vm8, %v2940_v48 }
0x1759   :  { %v2809_v34 = vpop.permute.xlu1 %2808  ;;  %v2805_v63 = vpop.permute.xlu2 %2804 }
0x175a   :  { %4972 = vmatpush.xpose.msk.msra.mxu3 %vm290_vm8, %v2809_v34 }
0x175d   :  { %4964 = vmatmul.msk.f32.gmra.mxu3 %vm290_vm8, %v2649_v53 }
0x1761   :  { %v2936_v6 = vpop.permute.xlu1 %2935  ;;  %v2938_v8 = vpop.permute.xlu2 %2937 }
0x1765   :  { %4973 = vmatmul.msk.f32.vlgmr.msra.gmra.mxu3 %vm290_vm8, %v2805_v63 }
0x176d   :  { %4974 = vmatmul.msk.f32.gmra.mxu3 %vm290_vm8, %v2807_v38 }
0x17c0   :  { %v2640_v1 = vpop.f32.mrf.mxu1 }
0x17c1   :  { %4969 = vmatmul.msk.f32.vlgmr.msra.gmra.mxu1 %vm290_vm8, %v2640_v1 }
0x17c8   :  { %v2643_v3 = vpop.f32.mrf.mxu1 }
0x17c9   :  { %4970 = vmatmul.msk.f32.gmra.mxu1 %vm290_vm8, %v2643_v3 }
0x17d1   :  { %4981 = vmatmul.msk.f32.vlgmr.msrb.gmra.mxu1 %vm290_vm8, %v2936_v6 }
0x17d8   :  { %v2679_v9 = vpop.f32.mrf.mxu3 }
0x17d9   :  { %v2685_v7 = vmul.f32 0.35355338, %v2679_v9  ;;  %4982 = vmatmul.msk.f32.gmra.mxu1 %vm290_vm8, %v2938_v8 }
0x17db   :  { %v2687_v12 = vadd.f32 %v2685_v7, %v6425_v14 }
0x17dd   :  { %v2689_v13 = vsel %vm326_vm9, %v2687_v12, -inf }
0x17de   :  { %2690 = vmax.xlane.f32.xlu1 %v2689_v13 }
0x17e0   :  { %v2682_v39 = vpop.f32.mrf.mxu3 }
0x17e1   :  { %v2686_v16 = vmul.f32 0.35355338, %v2682_v39 }
0x17e3   :  { %v2688_v58 = vadd.f32 %v2686_v16, %v6430_v11 }
0x17e5   :  { %v2692_v17 = vsel %vm326_vm9, %v2688_v58, -inf }
0x17e6   :  { %2693 = vmax.xlane.f32.xlu0 %v2692_v17 }
0x17e8   :  { %v2837_v18 = vpop.f32.mrf.mxu3 }
0x17e9   :  { %v2843_v19 = vmul.f32 0.35355338, %v2837_v18 }
0x17eb   :  { %v2845_v30 = vadd.f32 %v2843_v19, %v6425_v14 }
0x17ed   :  { %v2847_v21 = vsel %vm326_vm9, %v2845_v30, -inf }
0x17ee   :  { %2848 = vmax.xlane.f32.xlu1 %v2847_v21 }
0x17f0   :  { %v2840_v23 = vpop.f32.mrf.mxu3 }
0x17f1   :  { %v2844_v29 = vmul.f32 0.35355338, %v2840_v23 }
0x17f3   :  { %v2846_v31 = vadd.f32 %v2844_v29, %v6430_v11 }
0x17f5   :  { %v2850_v4 = vsel %vm326_vm9, %v2846_v31, -inf }
0x183e   :  { %v6480_v35 = vpop.f32.mrf.mxu1 }
0x1846   :  { %v6482_v49 = vpop.f32.mrf.mxu1 }
0x184e   :  { %v2968_v62 = vpop.f32.mrf.mxu1 }
0x184f   :  { %v2974_v22 = vmul.f32 0.35355338, %v2968_v62 }
0x1851   :  { %v2691_v24 = vpop.xlane.xlu1 %2690  ;;  %v2976_v27 = vadd.f32 %v2974_v22, %v6425_v14  ;;  %v2466_v22 = vld [vmem:[%s6455_s12 + $0x8] sm:$0xff] }
0x1852   :  { %v2695_v28 = vsub.f32 %v2687_v12, %v2691_v24  ;;  %2767 = vmatpush.msrb.mxu0 %v2466_v22 }
0x1853   :  { %v2978_v25 = vsel %vm326_vm9, %v2976_v27, -inf }
0x1854   :  { %v2697_v20 = vmul.f32 1.442695, %v2695_v28  ;;  %2979 = vmax.xlane.f32.xlu2 %v2978_v25  ;;  %v2467_v28 = vld [vmem:[%s6455_s12 + $0x10] sm:$0xff] }
0x1855   :  { %2925 = vmatpush.msra.mxu0 %v2467_v28 }
0x1856   :  { %5480 = vpow2.f32 %v2697_v20  ;;  %v2971_v36 = vpop.f32.mrf.mxu1 }
0x1857   :  { %v2975_v37 = vmul.f32 0.35355338, %v2971_v36 }
0x1859   :  { %v2977_v41 = vadd.f32 %v2975_v37, %v6430_v11  ;;  %v2694_v40 = vpop.xlane.xlu0 %2693 }
0x185a   :  { %v2696_v61 = vsub.f32 %v2688_v58, %v2694_v40 }
0x185b   :  { %v2981_v43 = vsel %vm326_vm9, %v2977_v41, -inf }
0x185c   :  { %v5481_v14 = vpop.eup %5480  ;;  %v2699_v0 = vmul.f32 1.442695, %v2696_v61  ;;  %2851 = vmax.xlane.f32.xlu2 %v2850_v4  ;;  %2982 = vmax.xlane.f32.xlu0 %v2981_v43 }
0x185d   :  { %v2701_v32 = vsel %vm326_vm9, %v5481_v14, 0.0 }
0x185e   :  { %5482 = vpow2.f32 %v2699_v0  ;;  %2702 = vadd.xlane.f32.xlu1 %v2701_v32 }
0x1861   :  { %v2849_v2 = vpop.xlane.xlu1 %2848 }
0x1862   :  { %v2853_v59 = vsub.f32 %v2845_v30, %v2849_v2 }
0x1864   :  { %v5483_v46 = vpop.eup %5482  ;;  %v2855_v42 = vmul.f32 1.442695, %v2853_v59 }
0x1865   :  { %v2704_v11 = vsel %vm326_vm9, %v5483_v46, 0.0 }
0x1866   :  { %5484 = vpow2.f32 %v2855_v42  ;;  %2705 = vadd.xlane.f32.xlu2 %v2704_v11 }
0x186c   :  { %v5485_v47 = vpop.eup %5484 }
0x186d   :  { %v2859_v45 = vsel %vm326_vm9, %v5485_v47, 0.0 }
0x186e   :  { %2860 = vadd.xlane.f32.xlu2 %v2859_v45  ;;  %v5326_v45 = vld [vmem:[%s6517_s15] ss:$0 sm:$0xff] }
0x1870   :  { %5237 = vrot.lane.b32.xlu0 %v6434_v33, %s5612_s28 }
0x1878   :  { %5247 = vrot.lane.b32.xlu0 %v6434_v33, %s6938_s30  ;;  %s6572_s30 = sld [smem:[%s6926_s0 + %s5650_s10]]  }
0x1879   :  { %s6589_s10 = sld [smem:[%s6926_s0 + %s5651_s2]]  }
0x187e   :  { %v3137_v28 = vld [vmem:[%s6572_s30 + $0x18] sm:$0xff] }
0x18c7   :  { %v2980_v53 = vpop.xlane.xlu2 %2979 }
0x18c8   :  { %v2984_v5 = vsub.f32 %v2976_v27, %v2980_v53 }
0x18ca   :  { %v2986_v50 = vmul.f32 1.442695, %v2984_v5 }
0x18cc   :  { %5486 = vpow2.f32 %v2986_v50 }
0x18cf   :  { %v2983_v51 = vpop.xlane.xlu0 %2982  ;;  %v2852_v26 = vpop.xlane.xlu2 %2851 }
0x18d0   :  { %v2985_v52 = vsub.f32 %v2977_v41, %v2983_v51  ;;  %v2854_v57 = vsub.f32 %v2846_v31, %v2852_v26 }
0x18d1   :  { %v2703_v38 = vpop.xlane.xlu1 %2702 }
0x18d2   :  { %v5487_v54 = vpop.eup %5486  ;;  %v2988_v55 = vmul.f32 1.442695, %v2985_v52  ;;  %v2857_v34 = vmul.f32 1.442695, %v2854_v57 }
0x18d3   :  { %v2990_v48 = vsel %vm326_vm9, %v5487_v54, 0.0 }
0x18d4   :  { %5488 = vpow2.f32 %v2988_v55  ;;  %2991 = vadd.xlane.f32.xlu1 %v2990_v48 }
0x18d5   :  { %5490 = vpow2.f32 %v2857_v34 }
0x18d6   :  { %5492 = vrcp.f32 %v2703_v38 }
0x18d9   :  { %v2706_v6 = vpop.xlane.xlu2 %2705 }
0x18da   :  { %v5489_v63 = vpop.eup %5488  ;;  %5494 = vrcp.f32 %v2706_v6 }
0x18db   :  { %v2993_v1 = vsel %vm326_vm9, %v5489_v63, 0.0  ;;  %v5491_v3 = vpop.eup %5490 }
0x18dc   :  { %2994 = vadd.xlane.f32.xlu2 %v2993_v1  ;;  %v5493_v9 = vpop.eup %5492  ;;  %v2862_v12 = vsel %vm326_vm9, %v5491_v3, 0.0 }
0x18dd   :  { %v2709_v39 = vmul.f32 %v5493_v9, %v5481_v14  ;;  %v2468_v14 = vld [vmem:[%s6455_s12 + $0x18] sm:$0xff] }
0x18e0   :  { %v5495_v17 = vpop.eup %5494 }
0x18e1   :  { %v2861_v16 = vpop.xlane.xlu2 %2860  ;;  %v2710_v30 = vmul.f32 %v5495_v17, %v5483_v46 }
0x18e2   :  { %v5238_v8 = vpop.permute.xlu0 %5237  ;;  %5496 = vrcp.f32 %v2861_v16 }
0x18e3   :  { %v5239_v7 = vunpack.i.l.bf16 %v5238_v8  ;;  %v5240_v13 = vunpack.i.h.bf16 %v5238_v8 }
0x18e4   :  { %2863 = vadd.xlane.f32.xlu2 %v2862_v12 }
0x18e5   :  { %2737 = vmatpush.msra.mxu2 %v5239_v7 }
0x18e7   :  { %2738 = vmatpush.msra.mxu2 %v5240_v13 }
0x18e8   :  { %4965 = vmatmul.msk.f32.vlgmr.msra.gmra.mxu2 %vm326_vm9, %v2709_v39  ;;  %v5497_v21 = vpop.eup %5496 }
0x18e9   :  { %v2867_v62 = vmul.f32 %v5497_v21, %v5485_v47  ;;  %v3139_v21 = vld [vmem:[%s6572_s30 + $0x28] sm:$0xff] }
0x18ea   :  { %v5248_v58 = vpop.permute.xlu0 %5247 }
0x18eb   :  { %v5249_v18 = vunpack.i.l.bf16 %v5248_v58  ;;  %v5250_v19 = vunpack.i.h.bf16 %v5248_v58 }
0x18ed   :  { %2895 = vmatpush.msrb.mxu2 %v5249_v18  ;;  %5242 = vrot.lane.b32.xlu1 %v6434_v33, %s6936_s3  ;;  %s6563_s3 = sld [smem:[%s6926_s0 + %s5649_s24]]  }
0x18ef   :  { %2896 = vmatpush.msrb.mxu2 %v5250_v19  ;;  %v3141_v19 = vld [vmem:[%s6572_s30 + $0x38] sm:$0xff] }
0x18f0   :  { %4966 = vmatmul.msk.f32.gmra.mxu2 %vm326_vm9, %v2710_v30  ;;  %v3140_v30 = vld [vmem:[%s6572_s30 + $0x30] sm:$0xff]  ;;  %3194 = vmatpush.msra.mxu1 %v3141_v19  ;;  %v4994_v19 = vld [vmem:[%s6071_s20 + $0x28] sm:$0xff] }
0x18f1   :  { %3056 = vmatpush.msra.mxu2 %v2468_v14 }
0x18f2   :  { %3195 = vmatpush.msra.mxu1 %v3140_v30  ;;  %v4993_v30 = vld [vmem:[%s6071_s20 + $0x20] sm:$0xff] }
0x18f3   :  { %v3132_v12 = vld [vmem:[%s6563_s3 + $0x18] sm:$0xff]  ;;  %v3131_v13 = vld [vmem:[%s6563_s3 + $0x10] sm:$0xff]  ;;  %v3130_v39 = vld [vmem:[%s6563_s3 + $0x8] sm:$0xff] }
0x18f4   :  { %v3129_v16 = vld [vmem:[%s6563_s3] sm:$0xff]  ;;  %3196 = vmatpush.msra.mxu1 %v3139_v21 }
0x18f8   :  { %4975 = vmatmul.msk.f32.vlgmr.msrb.gmra.mxu2 %vm326_vm9, %v2867_v62 }
0x1947   :  { %v2992_v24 = vpop.xlane.xlu1 %2991 }
0x194f   :  { %v2995_v23 = vpop.xlane.xlu2 %2994 }
0x1957   :  { %v2864_v27 = vpop.xlane.xlu2 %2863 }
0x1958   :  { %5498 = vrcp.f32 %v2864_v27 }
0x1959   :  { %5500 = vrcp.f32 %v2992_v24 }
0x195a   :  { %5502 = vrcp.f32 %v2995_v23  ;;  %v3138_v23 = vld [vmem:[%s6572_s30 + $0x20] sm:$0xff] }
0x195b   :  { %3197 = vmatpush.msra.mxu1 %v3138_v23 }
0x195d   :  { %3198 = vmatpush.msra.mxu1 %v3137_v28 }
0x195e   :  { %v5499_v29 = vpop.eup %5498 }
0x195f   :  { %v5243_v25 = vpop.permute.xlu1 %5242  ;;  %v2868_v33 = vmul.f32 %v5499_v29, %v5491_v3  ;;  %v5501_v20 = vpop.eup %5500 }
0x1960   :  { %v5244_v36 = vunpack.i.l.bf16 %v5243_v25  ;;  %v5245_v37 = vunpack.i.h.bf16 %v5243_v25  ;;  %v2998_v31 = vmul.f32 %v5501_v20, %v5487_v54  ;;  %v5503_v41 = vpop.eup %5502 }
0x1961   :  { %4976 = vmatmul.msk.f32.gmra.mxu2 %vm326_vm9, %v2868_v33  ;;  %v2999_v61 = vmul.f32 %v5503_v41, %v5489_v63  ;;  %v5327_v41 = vld [vmem:[%s6541_s1] ss:$0 sm:$0xff] }
0x1962   :  { %3026 = vmatpush.msrb.mxu3 %v5244_v36 }
0x1964   :  { %3027 = vmatpush.msrb.mxu3 %v5245_v37 }
0x1965   :  { %4983 = vmatmul.msk.f32.vlgmr.msrb.gmra.mxu3 %vm326_vm9, %v2998_v31 }
0x196b   :  { %v2740_v40 = vpop.f32.mrf.mxu2 }
0x196c   :  { %4967 = vmatmul.msk.f32.vlgmr.msrb.gmra.mxu0 %vm290_vm8, %v2740_v40 }
0x196d   :  { %4984 = vmatmul.msk.f32.gmra.mxu3 %vm326_vm9, %v2999_v61  ;;  %3164 = vmatpush.msrb.mxu0 %v3132_v12 }
0x196f   :  { %3165 = vmatpush.msrb.mxu0 %v3131_v13 }
0x1971   :  { %3166 = vmatpush.msrb.mxu0 %v3130_v39 }
0x1973   :  { %v2743_v4 = vpop.f32.mrf.mxu2  ;;  %3167 = vmatpush.msrb.mxu0 %v3129_v16 }
0x1974   :  { %4968 = vmatmul.msk.f32.gmra.mxu0 %vm290_vm8, %v2743_v4  ;;  %v5328_v4 = vld [vmem:[%s6533_s16] ss:$0 sm:$0xff] }
0x197b   :  { %v2898_v43 = vpop.f32.mrf.mxu2 }
0x197c   :  { %4977 = vmatmul.msk.f32.vlgmr.msra.gmra.mxu0 %vm290_vm8, %v2898_v43 }
0x19e4   :  { %v2901_v0 = vpop.f32.mrf.mxu2 }
0x19e5   :  { %4978 = vmatmul.msk.f32.gmra.mxu0 %vm290_vm8, %v2901_v0 }
0x19e8   :  { %v3029_v32 = vpop.f32.mrf.mxu3 }
0x19e9   :  { %4985 = vmatmul.msk.f32.vlgmr.msra.gmra.mxu2 %vm290_vm8, %v3029_v32  ;;  %v2769_v59 = vpop.f32.mrf.mxu0 }
0x19ea   :  { %v2799_v11 = vadd.f32 %v6480_v35, %v2769_v59 }
0x19f0   :  { %v3032_v2 = vpop.f32.mrf.mxu3 }
0x19f1   :  { %4986 = vmatmul.msk.f32.gmra.mxu2 %vm290_vm8, %v3032_v2  ;;  %v2772_v46 = vpop.f32.mrf.mxu0 }
0x19f2   :  { %v2802_v26 = vadd.f32 %v6482_v49, %v2772_v46 }
0x19f9   :  { %v2927_v42 = vpop.f32.mrf.mxu0 }
0x19fa   :  { %v2933_v47 = vadd.f32 %v2927_v42, %v2799_v11 }
0x1a62   :  { %v2930_v51 = vpop.f32.mrf.mxu0 }
0x1a63   :  { %v2934_v54 = vadd.f32 %v2930_v51, %v2802_v26 }
0x1a6c   :  { %v3058_v53 = vpop.f32.mrf.mxu2 }
0x1a6d   :  { %v3064_v5 = vadd.f32 %v3058_v53, %v2933_v47  ;;  %v3135_v53 = vld [vmem:[%s6572_s30 + $0x8] sm:$0xff] }
0x1a6f   :  { %v3069_v50 = vadd.f32 %v5326_v45, %v3064_v5  ;;  %v3134_v5 = vld [vmem:[%s6572_s30] sm:$0xff] }
0x1a71   :  { %v6526_v52 = vadd.f32 %v3069_v50, %v6330_v44  ;;  %v5329_v50 = vld [vmem:[%s6558_s4] ss:$0 sm:$0xff] }
0x1a73   :  { %v3075_v55 = vsel %vm180_vm0, %v6526_v52, 0.0 }
0x1a74   :  { %3076 = vadd.xlane.f32.xlu0 %v3075_v55  ;;  %v3061_v57 = vpop.f32.mrf.mxu2 }
0x1a75   :  { %v3065_v48 = vadd.f32 %v3061_v57, %v2934_v54 }
0x1a77   :  { %v3070_v34 = vadd.f32 %v5326_v45, %v3065_v48  ;;  %v3136_v45 = vld [vmem:[%s6572_s30 + $0x10] sm:$0xff] }
0x1a78   :  { %3199 = vmatpush.msra.mxu1 %v3136_v45  ;;  %v5333_v45 = vld [vmem:[%s6085_s14 + $0x1] ss:$0 sm:$0xff]  ;;  %s6945_s14 = smov 40  }
0x1a79   :  { %v6536_v35 = vadd.f32 %v3070_v34, %v6336_v60  ;;  %v5330_v34 = vld [vmem:[%s6589_s10] ss:$0 sm:$0xff] }
0x1a7a   :  { %3200 = vmatpush.msra.mxu1 %v3135_v53 }
0x1a7b   :  { %v3078_v44 = vsel %vm180_vm0, %v6536_v35, 0.0 }
0x1a7c   :  { %3079 = vadd.xlane.f32.xlu2 %v3078_v44  ;;  %3201 = vmatpush.msra.mxu1 %v3134_v5 }
0x1ae7   :  { %v3077_v49 = vpop.xlane.xlu0 %3076 }
0x1ae8   :  { %v3081_v63 = vmul.f32 %v3077_v49, %v5672_v10 }
0x1aea   :  { %v3083_v38 = vsub.f32 %v6526_v52, %v3081_v63 }
0x1aec   :  { %v3085_v1 = vmul.f32 %v3083_v38, %v3083_v38 }
0x1aee   :  { %v3087_v3 = vsel %vm180_vm0, %v3085_v1, 0.0 }
0x1aef   :  { %3088 = vadd.xlane.f32.xlu1 %v3087_v3  ;;  %v3080_v60 = vpop.xlane.xlu2 %3079 }
0x1af0   :  { %v3082_v6 = vmul.f32 %v3080_v60, %v5672_v10 }
0x1af2   :  { %v6550_v8 = vsub.f32 %v6536_v35, %v3082_v6 }
0x1af4   :  { %v3086_v9 = vmul.f32 %v6550_v8, %v6550_v8 }
0x1af6   :  { %v3090_v7 = vsel %vm180_vm0, %v3086_v9, 0.0 }
0x1af7   :  { %3091 = vadd.xlane.f32.xlu2 %v3090_v7 }
0x1b62   :  { %v3089_v58 = vpop.xlane.xlu1 %3088 }
0x1b63   :  { %v3093_v17 = vmul.f32 %v3089_v58, %v5672_v10 }
0x1b65   :  { %v3095_v18 = vadd.f32 1e-06, %v3093_v17  ;;  %v4996_v17 = vld [vmem:[%s6071_s20 + $0x38] sm:$0xff] }
0x1b66   :  { %3304 = vmatpush.msra.mxu3 %v4996_v17 }
0x1b67   :  { %5504 = vrsqrt.f32 %v3095_v18  ;;  %vm3103_vm11 = vweird.f32 %v3095_v18 }
0x1b6a   :  { %v3092_v62 = vpop.xlane.xlu2 %3091 }
0x1b6b   :  { %v3094_v22 = vmul.f32 %v3092_v62, %v5672_v10 }
0x1b6d   :  { %v5505_v24 = vpop.eup %5504  ;;  %v3096_v27 = vadd.f32 1e-06, %v3094_v22 }
0x1b6e   :  { %v3098_v29 = vmul.f32 %v5505_v24, %v3095_v18  ;;  %vm3104_vm10 = vweird.f32 %v5505_v24  ;;  %v4995_v18 = vld [vmem:[%s6071_s20 + $0x30] sm:$0xff]  ;;  %s6943_s20 = smov 104  }
0x1b6f   :  { %5506 = vrsqrt.f32 %v3096_v27  ;;  %vm3105_vm12 = vmor %vm3103_vm11, %vm3104_vm10  ;;  %vm3113_vm14 = vweird.f32 %v3096_v27  ;;  %3305 = vmatpush.msra.mxu3 %v4995_v18 }
0x1b70   :  { %v3099_v25 = vmul.f32 %v5505_v24, %v3098_v29 }
0x1b71   :  { %3306 = vmatpush.msra.mxu3 %v4994_v19 }
0x1b72   :  { %v3100_v33 = vmul.f32 0.5, %v3099_v25 }
0x1b73   :  { %3307 = vmatpush.msra.mxu3 %v4993_v30 }
0x1b74   :  { %v3101_v20 = vsub.f32 1.5, %v3100_v33 }
0x1b75   :  { %v5507_v36 = vpop.eup %5506 }
0x1b76   :  { %v3102_v37 = vmul.f32 %v5505_v24, %v3101_v20  ;;  %v3108_v31 = vmul.f32 %v5507_v36, %v3096_v27  ;;  %vm3114_vm13 = vweird.f32 %v5507_v36 }
0x1b77   :  { %vm3115_vm15 = vmor %vm3113_vm14, %vm3114_vm13 }
0x1b78   :  { %v3106_v40 = vsel %vm3105_vm12, %v5505_v24, %v3102_v37  ;;  %v3109_v61 = vmul.f32 %v5507_v36, %v3108_v31 }
0x1b79   :  { %v3117_v43 = vmul.f32 %v3106_v40, %v3083_v38 }
0x1b7a   :  { %v3110_v14 = vmul.f32 0.5, %v3109_v61 }
0x1b7b   :  { %v3122_v0 = vmul.f32 %v5327_v41, %v3117_v43 }
0x1b7c   :  { %v3111_v32 = vsub.f32 1.5, %v3110_v14 }
0x1b7d   :  { %v3127_v2 = vadd.f32 %v5328_v4, %v3122_v0 }
0x1b7e   :  { %v3112_v59 = vmul.f32 %v5507_v36, %v3111_v32 }
0x1b7f   :  { %4987 = vmatmul.msk.f32.vlgmr.msrb.gmra.mxu0 %vm180_vm0, %v3127_v2 }
0x1b80   :  { %v3116_v46 = vsel %vm3115_vm15, %v5507_v36, %v3112_v59 }
0x1b81   :  { %v3118_v42 = vmul.f32 %v3116_v46, %v6550_v8 }
0x1b83   :  { %v3123_v11 = vmul.f32 %v5327_v41, %v3118_v42  ;;  %v5331_v41 = vld [vmem:[%s6022_s25 + $0x1] ss:$0 sm:$0xff]  ;;  %s6941_s25 = smov 80  }
0x1b85   :  { %v3128_v47 = vadd.f32 %v5328_v4, %v3123_v11  ;;  %v5332_v4 = vld [vmem:[%s6029_s18 + $0x1] ss:$0 sm:$0xff]  ;;  %s6942_s18 = smov 72  }
0x1b87   :  { %4988 = vmatmul.msk.f32.gmra.mxu0 %vm180_vm0, %v3128_v47 }
0x1bfc   :  { %v3169_v51 = vpop.f32.mrf.mxu0 }
0x1bfd   :  { %v3170_v26 = vadd.f32 %v5329_v50, %v3169_v51 }
0x1bff   :  { %v3175_v54 = vmax.f32 %v3170_v26, 0.0 }
0x1c01   :  { %4989 = vmatmul.msk.f32.vlgmr.msra.gmra.mxu1 %vm918_vm1, %v3175_v54 }
0x1c04   :  { %v3172_v55 = vpop.f32.mrf.mxu0 }
0x1c05   :  { %v3173_v57 = vadd.f32 %v5329_v50, %v3172_v55 }
0x1c07   :  { %v3176_v48 = vmax.f32 %v3173_v57, 0.0 }
0x1c09   :  { %4990 = vmatmul.msk.f32.gmra.mxu1 %vm918_vm1, %v3176_v48 }
0x1c7e   :  { %v3203_v44 = vpop.f32.mrf.mxu1 }
0x1c7f   :  { %v3204_v49 = vadd.f32 %v5330_v34, %v3203_v44 }
0x1c81   :  { %v6599_v63 = vadd.f32 %v3204_v49, %v6526_v52 }
0x1c83   :  { %v3215_v38 = vsel %vm180_vm0, %v6599_v63, 0.0 }
0x1c84   :  { %3216 = vadd.xlane.f32.xlu2 %v3215_v38  ;;  %v6642_v38 = vld [vmem:[%s6141_s17] sm:$0xff] }
0x1c86   :  { %v3206_v1 = vpop.f32.mrf.mxu1 }
0x1c87   :  { %v3207_v3 = vadd.f32 %v5330_v34, %v3206_v1 }
0x1c89   :  { %v6604_v60 = vadd.f32 %v3207_v3, %v6536_v35 }
0x1c8b   :  { %v3218_v6 = vsel %vm180_vm0, %v6604_v60, 0.0 }
0x1c8c   :  { %3219 = vadd.xlane.f32.xlu2 %v3218_v6 }
0x1cf7   :  { %v3217_v8 = vpop.xlane.xlu2 %3216 }
0x1cf8   :  { %v3221_v52 = vmul.f32 %v3217_v8, %v5672_v10 }
0x1cfa   :  { %v3223_v9 = vsub.f32 %v6599_v63, %v3221_v52  ;;  %v6647_v52 = vld [vmem:[%s6141_s17 + $0x8] sm:$0xff]  ;;  %s6946_s17 = smov 48  }
0x1cfc   :  { %v3225_v7 = vmul.f32 %v3223_v9, %v3223_v9 }
0x1cfe   :  { %v3227_v12 = vsel %vm180_vm0, %v3225_v7, 0.0 }
0x1cff   :  { %3228 = vadd.xlane.f32.xlu2 %v3227_v12  ;;  %v3220_v13 = vpop.xlane.xlu2 %3219 }
0x1d00   :  { %v3222_v35 = vmul.f32 %v3220_v13, %v5672_v10 }
0x1d02   :  { %v3224_v39 = vsub.f32 %v6604_v60, %v3222_v35 }
0x1d04   :  { %v3226_v16 = vmul.f32 %v3224_v39, %v3224_v39 }
0x1d06   :  { %v3230_v58 = vsel %vm180_vm0, %v3226_v16, 0.0 }
0x1d07   :  { %3231 = vadd.xlane.f32.xlu0 %v3230_v58 }
0x1d72   :  { %v3229_v21 = vpop.xlane.xlu2 %3228 }
0x1d73   :  { %v3233_v62 = vmul.f32 %v3229_v21, %v5672_v10 }
0x1d75   :  { %v3235_v22 = vadd.f32 1e-06, %v3233_v62  ;;  %v4998_v62 = vld [vmem:[%s6226_s6 + $0x20] sm:$0xff] }
0x1d77   :  { %5508 = vrsqrt.f32 %v3235_v22  ;;  %vm3243_vm3 = vweird.f32 %v3235_v22 }
0x1d7a   :  { %v3232_v23 = vpop.xlane.xlu0 %3231 }
0x1d7b   :  { %v3234_v24 = vmul.f32 %v3232_v23, %v5672_v10 }
0x1d7d   :  { %v5509_v27 = vpop.eup %5508  ;;  %v3236_v28 = vadd.f32 1e-06, %v3234_v24 }
0x1d7e   :  { %v3238_v29 = vmul.f32 %v5509_v27, %v3235_v22  ;;  %vm3244_vm2 = vweird.f32 %v5509_v27 }
0x1d7f   :  { %5510 = vrsqrt.f32 %v3236_v28  ;;  %vm3245_vm4 = vmor %vm3243_vm3, %vm3244_vm2  ;;  %vm3253_vm6 = vweird.f32 %v3236_v28 }
0x1d80   :  { %v3239_v25 = vmul.f32 %v5509_v27, %v3238_v29 }
0x1d82   :  { %v3240_v33 = vmul.f32 0.5, %v3239_v25 }
0x1d84   :  { %v3241_v20 = vsub.f32 1.5, %v3240_v33 }
0x1d85   :  { %v5511_v36 = vpop.eup %5510 }
0x1d86   :  { %v3242_v37 = vmul.f32 %v5509_v27, %v3241_v20  ;;  %v3248_v31 = vmul.f32 %v5511_v36, %v3236_v28  ;;  %vm3254_vm5 = vweird.f32 %v5511_v36 }
0x1d87   :  { %vm3255_vm7 = vmor %vm3253_vm6, %vm3254_vm5 }
0x1d88   :  { %v3246_v40 = vsel %vm3245_vm4, %v5509_v27, %v3242_v37  ;;  %v3249_v61 = vmul.f32 %v5511_v36, %v3248_v31 }
0x1d89   :  { %v3257_v43 = vmul.f32 %v3246_v40, %v3223_v9 }
0x1d8a   :  { %v3250_v14 = vmul.f32 0.5, %v3249_v61 }
0x1d8b   :  { %v3262_v0 = vmul.f32 %v5331_v41, %v3257_v43 }
0x1d8c   :  { %v3251_v32 = vsub.f32 1.5, %v3250_v14 }
0x1d8d   :  { %v3267_v2 = vadd.f32 %v5332_v4, %v3262_v0 }
0x1d8e   :  { %v3252_v59 = vmul.f32 %v5511_v36, %v3251_v32 }
0x1d8f   :  { %5003 = vmatmul.msk.f32.vlgmr.msra.gmra.mxu3 %vm180_vm0, %v3267_v2 }
0x1d90   :  { %v3256_v46 = vsel %vm3255_vm7, %v5511_v36, %v3252_v59 }
0x1d91   :  { %v3258_v42 = vmul.f32 %v3256_v46, %v3224_v39 }
0x1d93   :  { %v3263_v11 = vmul.f32 %v5331_v41, %v3258_v42 }
0x1d95   :  { %v3268_v47 = vadd.f32 %v5332_v4, %v3263_v11 }
0x1d97   :  { %5004 = vmatmul.msk.f32.gmra.mxu3 %vm180_vm0, %v3268_v47 }
0x1e12   :  { %v3309_v53 = vpop.f32.mrf.mxu3 }
0x1e13   :  { %v3310_v5 = vadd.f32 %v5333_v45, %v3309_v53 }
0x1e15   :  { %3317 = vrot.lane.b32.xlu0 %v3310_v5, %s5609_s22 }
0x1e1a   :  { %v3312_v50 = vpop.f32.mrf.mxu3 }
0x1e1b   :  { %v3313_v51 = vadd.f32 %v5333_v45, %v3312_v50 }
0x1e1d   :  { %3319 = vrot.lane.b32.xlu2 %v3313_v51, %s5609_s22  ;;  %v6627_v26 = vpack.i.bf16 %v3310_v5, %v3313_v51 }
0x1e25   :  { %5252 = vrot.lane.b32.xlu2 %v6627_v26, %s5611_s27  ;;  %s6944_s27 = smov 112  }
0x1e2d   :  { %3417 = vrot.lane.b32.xlu2 %v3310_v5, %s5612_s28 }
0x1e35   :  { %3413 = vrot.lane.b32.xlu2 %v3310_v5, %s5613_s29 }
0x1e3d   :  { %3415 = vrot.lane.b32.xlu2 %v3313_v51, %s5613_s29 }
0x1e45   :  { %3575 = vrot.lane.b32.xlu2 %v3310_v5, %s6941_s25 }
0x1e4d   :  { %3708 = vrot.lane.b32.xlu2 %v3313_v51, %s6942_s18 }
0x1e55   :  { %3702 = vrot.lane.b32.xlu2 %v3310_v5, %s6943_s20 }
0x1e77   :  { %v3320_v54 = vpop.permute.xlu2 %3319 }
0x1e78   :  { %5005 = vmatpush.xpose.msk.msrb.mxu2 %vm290_vm8, %v3320_v54 }
0x1e7f   :  { %v5253_v55 = vpop.permute.xlu2 %5252 }
0x1e80   :  { %v5254_v57 = vunpack.i.l.bf16 %v5253_v55  ;;  %v5255_v48 = vunpack.i.h.bf16 %v5253_v55 }
0x1e82   :  { %3404 = vmatpush.msra.mxu0 %v5254_v57 }
0x1e84   :  { %3405 = vmatpush.msra.mxu0 %v5255_v48 }
0x1e86   :  { %3563 = vmatpush.msrb.mxu0 %v4998_v62 }
0x1e87   :  { %v3318_v34 = vpop.permute.xlu0 %3317  ;;  %v3418_v21 = vpop.permute.xlu2 %3417 }
0x1e88   :  { %5006 = vmatpush.xpose.msk.msrb.mxu2 %vm290_vm8, %v3318_v34 }
0x1e8b   :  { %5007 = vmatmul.msk.f32.vlgmr.msrb.gmra.mxu2 %vm290_vm8, %v3310_v5 }
0x1e8f   :  { %v3414_v22 = vpop.permute.xlu2 %3413 }
0x1e93   :  { %5008 = vmatmul.msk.f32.gmra.mxu2 %vm290_vm8, %v3313_v51 }
0x1e97   :  { %v3416_v23 = vpop.permute.xlu2 %3415 }
0x1e9f   :  { %v3576_v24 = vpop.permute.xlu2 %3575 }
0x1ea7   :  { %v3709_v33 = vpop.permute.xlu2 %3708 }
0x1eaf   :  { %v3703_v14 = vpop.permute.xlu2 %3702 }
0x1f0e   :  { %v3346_v44 = vpop.f32.mrf.mxu2 }
0x1f0f   :  { %v3352_v49 = vmul.f32 0.35355338, %v3346_v44 }
0x1f11   :  { %v3354_v1 = vadd.f32 %v6642_v38, %v3352_v49 }
0x1f13   :  { %v3356_v3 = vsel %vm326_vm9, %v3354_v1, -inf }
0x1f14   :  { %3357 = vmax.xlane.f32.xlu1 %v3356_v3 }
0x1f16   :  { %v3349_v6 = vpop.f32.mrf.mxu2 }
0x1f17   :  { %v3353_v8 = vmul.f32 0.35355338, %v3349_v6 }
0x1f19   :  { %v3355_v9 = vadd.f32 %v6647_v52, %v3353_v8 }
0x1f1b   :  { %v3359_v7 = vsel %vm326_vm9, %v3355_v9, -inf }
0x1f1c   :  { %3360 = vmax.xlane.f32.xlu1 %v3359_v7 }
0x1f87   :  { %v3358_v12 = vpop.xlane.xlu1 %3357 }
0x1f88   :  { %v3362_v13 = vsub.f32 %v3354_v1, %v3358_v12 }
0x1f8a   :  { %v3364_v35 = vmul.f32 1.442695, %v3362_v13 }
0x1f8c   :  { %5512 = vpow2.f32 %v3364_v35 }
0x1f8f   :  { %v3361_v39 = vpop.xlane.xlu1 %3360 }
0x1f90   :  { %v3363_v16 = vsub.f32 %v3355_v9, %v3361_v39 }
0x1f92   :  { %v5513_v58 = vpop.eup %5512  ;;  %v3366_v17 = vmul.f32 1.442695, %v3363_v16 }
0x1f93   :  { %v3368_v18 = vsel %vm326_vm9, %v5513_v58, 0.0 }
0x1f94   :  { %5514 = vpow2.f32 %v3366_v17  ;;  %3369 = vadd.xlane.f32.xlu1 %v3368_v18 }
0x1f9a   :  { %v5515_v19 = vpop.eup %5514 }
0x1f9b   :  { %v3371_v30 = vsel %vm326_vm9, %v5515_v19, 0.0 }
0x1f9c   :  { %3372 = vadd.xlane.f32.xlu0 %v3371_v30 }
0x1fad   :  { %3419 = vrot.lane.b32.xlu1 %v3313_v51, %s5612_s28 }
0x1fb0   :  { %3706 = vrot.lane.b32.xlu0 %v3310_v5, %s6942_s18 }
0x1fb5   :  { %3577 = vrot.lane.b32.xlu1 %v3313_v51, %s6941_s25 }
0x1fbd   :  { %3571 = vrot.lane.b32.xlu1 %v3310_v5, %s6944_s27 }
0x1fc5   :  { %3573 = vrot.lane.b32.xlu1 %v3313_v51, %s6944_s27 }
0x1fcd   :  { %3704 = vrot.lane.b32.xlu1 %v3313_v51, %s6943_s20 }
0x2007   :  { %v3370_v27 = vpop.xlane.xlu1 %3369 }
0x2008   :  { %5516 = vrcp.f32 %v3370_v27 }
0x200e   :  { %v5517_v28 = vpop.eup %5516 }
0x200f   :  { %v3376_v29 = vmul.f32 %v5517_v28, %v5513_v58  ;;  %v3373_v25 = vpop.xlane.xlu0 %3372 }
0x2010   :  { %5518 = vrcp.f32 %v3373_v25 }
0x2011   :  { %5009 = vmatmul.msk.f32.vlgmr.msra.gmra.mxu0 %vm326_vm9, %v3376_v29 }
0x2012   :  { %5029 = vmatpush.xpose.msk.msra.mxu0 %vm290_vm8, %v3709_v33 }
0x2016   :  { %v5519_v20 = vpop.eup %5518 }
0x2017   :  { %v3377_v36 = vmul.f32 %v5519_v20, %v5515_v19 }
0x2019   :  { %5010 = vmatmul.msk.f32.gmra.mxu0 %vm326_vm9, %v3377_v36 }
0x201f   :  { %v3420_v37 = vpop.permute.xlu1 %3419 }
0x2020   :  { %5011 = vmatpush.xpose.msk.msrb.mxu1 %vm290_vm8, %v3420_v37 }
0x2022   :  { %v3707_v31 = vpop.permute.xlu0 %3706 }
0x2023   :  { %5030 = vmatpush.xpose.msk.msra.mxu0 %vm290_vm8, %v3707_v31 }
0x2024   :  { %5012 = vmatpush.xpose.msk.msrb.mxu1 %vm290_vm8, %v3418_v21 }
0x2027   :  { %5013 = vmatmul.msk.f32.vlgmr.msrb.gmra.mxu1 %vm290_vm8, %v3414_v22  ;;  %v3578_v41 = vpop.permute.xlu1 %3577 }
0x2028   :  { %5021 = vmatpush.xpose.msk.msra.mxu1 %vm290_vm8, %v3578_v41 }
0x202c   :  { %5022 = vmatpush.xpose.msk.msra.mxu1 %vm290_vm8, %v3576_v24 }
0x202f   :  { %5014 = vmatmul.msk.f32.gmra.mxu1 %vm290_vm8, %v3416_v23  ;;  %v3572_v40 = vpop.permute.xlu1 %3571 }
0x2037   :  { %5023 = vmatmul.msk.f32.vlgmr.msra.gmra.mxu1 %vm290_vm8, %v3572_v40  ;;  %v3574_v61 = vpop.permute.xlu1 %3573 }
0x203f   :  { %5024 = vmatmul.msk.f32.gmra.mxu1 %vm290_vm8, %v3574_v61  ;;  %v3705_v2 = vpop.permute.xlu1 %3704 }
0x208e   :  { %v3407_v4 = vpop.f32.mrf.mxu0 }
0x208f   :  { %5019 = vmatmul.msk.f32.vlgmr.msrb.gmra.mxu0 %vm290_vm8, %v3407_v4 }
0x2096   :  { %v3410_v43 = vpop.f32.mrf.mxu0 }
0x2097   :  { %5020 = vmatmul.msk.f32.gmra.mxu0 %vm290_vm8, %v3410_v43 }
0x209f   :  { %5031 = vmatmul.msk.f32.vlgmr.msra.gmra.mxu0 %vm290_vm8, %v3703_v14 }
0x20a4   :  { %v3446_v0 = vpop.f32.mrf.mxu1 }
0x20a5   :  { %v3452_v32 = vmul.f32 0.35355338, %v3446_v0 }
0x20a7   :  { %v3454_v59 = vadd.f32 %v6642_v38, %v3452_v32  ;;  %5032 = vmatmul.msk.f32.gmra.mxu0 %vm290_vm8, %v3705_v2 }
0x20a9   :  { %v3456_v46 = vsel %vm326_vm9, %v3454_v59, -inf }
0x20aa   :  { %3457 = vmax.xlane.f32.xlu2 %v3456_v46 }
0x20ac   :  { %v3449_v42 = vpop.f32.mrf.mxu1 }
0x20ad   :  { %v3453_v11 = vmul.f32 0.35355338, %v3449_v42 }
0x20af   :  { %v3455_v47 = vadd.f32 %v6647_v52, %v3453_v11 }
0x20b1   :  { %v3459_v45 = vsel %vm326_vm9, %v3455_v47, -inf }
0x20b2   :  { %3460 = vmax.xlane.f32.xlu0 %v3459_v45 }
0x20b4   :  { %v3604_v53 = vpop.f32.mrf.mxu1 }
0x20b5   :  { %v3610_v5 = vmul.f32 0.35355338, %v3604_v53 }
0x20b7   :  { %v3612_v50 = vadd.f32 %v6642_v38, %v3610_v5 }
0x20b9   :  { %v3614_v51 = vsel %vm326_vm9, %v3612_v50, -inf }
0x20ba   :  { %3615 = vmax.xlane.f32.xlu1 %v3614_v51 }
0x20bc   :  { %v3607_v54 = vpop.f32.mrf.mxu1 }
0x20bd   :  { %v3611_v55 = vmul.f32 0.35355338, %v3607_v54 }
0x20bf   :  { %v3613_v57 = vadd.f32 %v6647_v52, %v3611_v55 }
0x20c1   :  { %v3617_v48 = vsel %vm326_vm9, %v3613_v57, -inf }
0x20c2   :  { %3618 = vmax.xlane.f32.xlu2 %v3617_v48 }
0x210c   :  { %v6684_v34 = vpop.f32.mrf.mxu0 }
0x2114   :  { %v6686_v44 = vpop.f32.mrf.mxu0 }
0x211c   :  { %v3735_v49 = vpop.f32.mrf.mxu0 }
0x211d   :  { %v3741_v1 = vmul.f32 0.35355338, %v3735_v49  ;;  %v3458_v3 = vpop.xlane.xlu2 %3457 }
0x211e   :  { %v3462_v6 = vsub.f32 %v3454_v59, %v3458_v3  ;;  %v4999_v3 = vld [vmem:[%s6226_s6 + $0x28] sm:$0xff] }
0x211f   :  { %v3743_v8 = vadd.f32 %v6642_v38, %v3741_v1  ;;  %3534 = vmatpush.msra.mxu2 %v4999_v3  ;;  %v5337_v3 = vld [vmem:[%s6383_s7 + $0x1] ss:$0 sm:$0xff] }
0x2120   :  { %v3464_v9 = vmul.f32 1.442695, %v3462_v6 }
0x2121   :  { %v3745_v7 = vsel %vm326_vm9, %v3743_v8, -inf }
0x2122   :  { %5520 = vpow2.f32 %v3464_v9  ;;  %3746 = vmax.xlane.f32.xlu0 %v3745_v7 }
0x2124   :  { %v3738_v12 = vpop.f32.mrf.mxu0 }
0x2125   :  { %v3742_v13 = vmul.f32 0.35355338, %v3738_v12  ;;  %v3461_v35 = vpop.xlane.xlu0 %3460  ;;  %v5000_v12 = vld [vmem:[%s6226_s6 + $0x30] sm:$0xff] }
0x2126   :  { %v3463_v39 = vsub.f32 %v3455_v47, %v3461_v35  ;;  %3692 = vmatpush.msrb.mxu2 %v5000_v12 }
0x2127   :  { %v3744_v16 = vadd.f32 %v6647_v52, %v3742_v13 }
0x2128   :  { %v5521_v58 = vpop.eup %5520  ;;  %v3466_v17 = vmul.f32 1.442695, %v3463_v39  ;;  %v5001_v39 = vld [vmem:[%s6226_s6 + $0x38] sm:$0xff] }
0x2129   :  { %v3468_v18 = vsel %vm326_vm9, %v5521_v58, 0.0  ;;  %v3748_v19 = vsel %vm326_vm9, %v3744_v16, -inf }
0x212a   :  { %5522 = vpow2.f32 %v3466_v17  ;;  %3469 = vadd.xlane.f32.xlu1 %v3468_v18  ;;  %3749 = vmax.xlane.f32.xlu2 %v3748_v19 }
0x212d   :  { %v3616_v38 = vpop.xlane.xlu1 %3615 }
0x212e   :  { %v3620_v30 = vsub.f32 %v3612_v50, %v3616_v38 }
0x2130   :  { %v5523_v21 = vpop.eup %5522  ;;  %v3622_v62 = vmul.f32 1.442695, %v3620_v30 }
0x2131   :  { %v3471_v22 = vsel %vm326_vm9, %v5523_v21, 0.0 }
0x2132   :  { %5524 = vpow2.f32 %v3622_v62  ;;  %3472 = vadd.xlane.f32.xlu2 %v3471_v22 }
0x2135   :  { %v3619_v23 = vpop.xlane.xlu2 %3618 }
0x2136   :  { %v3621_v24 = vsub.f32 %v3613_v57, %v3619_v23  ;;  %5257 = vrot.lane.b32.xlu0 %v6627_v26, %s6940_s9 }
0x2138   :  { %v5525_v52 = vpop.eup %5524  ;;  %v3624_v27 = vmul.f32 1.442695, %v3621_v24  ;;  %v5334_v24 = vld [vmem:[%s6321_s5 + $0x1] ss:$0 sm:$0xff]  ;;  %s5654_s5 = smov 39  }
0x2139   :  { %v3626_v28 = vsel %vm326_vm9, %v5525_v52, 0.0 }
0x213a   :  { %5526 = vpow2.f32 %v3624_v27  ;;  %3627 = vadd.xlane.f32.xlu1 %v3626_v28 }
0x213e   :  { %5267 = vrot.lane.b32.xlu0 %v6627_v26, %s6945_s14 }
0x2140   :  { %v5527_v29 = vpop.eup %5526 }
0x2141   :  { %v3629_v25 = vsel %vm326_vm9, %v5527_v29, 0.0 }
0x2142   :  { %3630 = vadd.xlane.f32.xlu1 %v3629_v25 }
0x214a   :  { %5262 = vrot.lane.b32.xlu2 %v6627_v26, %s6946_s17 }
0x2195   :  { %v3747_v33 = vpop.xlane.xlu0 %3746 }
0x2196   :  { %v3751_v20 = vsub.f32 %v3743_v8, %v3747_v33 }
0x2198   :  { %v3753_v36 = vmul.f32 1.442695, %v3751_v20 }
0x219a   :  { %5528 = vpow2.f32 %v3753_v36 }
0x219d   :  { %v3750_v37 = vpop.xlane.xlu2 %3749  ;;  %v3470_v61 = vpop.xlane.xlu1 %3469 }
0x219e   :  { %v3752_v31 = vsub.f32 %v3744_v16, %v3750_v37 }
0x21a0   :  { %v5529_v41 = vpop.eup %5528  ;;  %v3755_v40 = vmul.f32 1.442695, %v3752_v31 }
0x21a1   :  { %v3757_v4 = vsel %vm326_vm9, %v5529_v41, 0.0 }
0x21a2   :  { %5530 = vpow2.f32 %v3755_v40  ;;  %3758 = vadd.xlane.f32.xlu1 %v3757_v4 }
0x21a3   :  { %5532 = vrcp.f32 %v3470_v61 }
0x21a5   :  { %v3473_v43 = vpop.xlane.xlu2 %3472 }
0x21a6   :  { %5534 = vrcp.f32 %v3473_v43 }
0x21a8   :  { %v5531_v14 = vpop.eup %5530  ;;  %v5258_v0 = vpop.permute.xlu0 %5257 }
0x21a9   :  { %v5533_v32 = vpop.eup %5532  ;;  %v5259_v2 = vunpack.i.l.bf16 %v5258_v0  ;;  %v3760_v26 = vsel %vm326_vm9, %v5531_v14, 0.0  ;;  %v5260_v59 = vunpack.i.h.bf16 %v5258_v0 }
0x21aa   :  { %3761 = vadd.xlane.f32.xlu1 %v3760_v26  ;;  %v3476_v46 = vmul.f32 %v5533_v32, %v5521_v58  ;;  %v5040_v26 = vld [vmem:[%s6354_s13 + $0x28] sm:$0xff] }
0x21ab   :  { %3504 = vmatpush.msrb.mxu3 %v5259_v2  ;;  %v5039_v2 = vld [vmem:[%s6354_s13 + $0x20] sm:$0xff] }
0x21ac   :  { %v5535_v5 = vpop.eup %5534 }
0x21ad   :  { %3505 = vmatpush.msrb.mxu3 %v5260_v59  ;;  %v5263_v42 = vpop.permute.xlu2 %5262  ;;  %v3628_v47 = vpop.xlane.xlu1 %3627  ;;  %v3477_v54 = vmul.f32 %v5535_v5, %v5523_v21  ;;  %v5276_v59 = vpack.i.bf16 %v5039_v2, %v5040_v26 }
0x21ae   :  { %v5264_v11 = vunpack.i.l.bf16 %v5263_v42  ;;  %5015 = vmatmul.msk.f32.vlgmr.msrb.gmra.mxu3 %vm326_vm9, %v3476_v46  ;;  %v5265_v45 = vunpack.i.h.bf16 %v5263_v42  ;;  %5536 = vrcp.f32 %v3628_v47 }
0x21b0   :  { %v5268_v53 = vpop.permute.xlu0 %5267  ;;  %3662 = vmatpush.msra.mxu3 %v5264_v11 }
0x21b1   :  { %v5269_v50 = vunpack.i.l.bf16 %v5268_v53  ;;  %v5270_v51 = vunpack.i.h.bf16 %v5268_v53 }
0x21b2   :  { %3663 = vmatpush.msra.mxu3 %v5265_v45 }
0x21b3   :  { %3793 = vmatpush.msrb.mxu1 %v5269_v50 }
0x21b4   :  { %v5537_v57 = vpop.eup %5536  ;;  %3823 = vmatpush.msrb.mxu3 %v5001_v39 }
0x21b5   :  { %3794 = vmatpush.msrb.mxu1 %v5270_v51  ;;  %v3631_v55 = vpop.xlane.xlu1 %3630  ;;  %v3634_v48 = vmul.f32 %v5537_v57, %v5525_v52 }
0x21b6   :  { %5016 = vmatmul.msk.f32.gmra.mxu3 %vm326_vm9, %v3477_v54  ;;  %5538 = vrcp.f32 %v3631_v55 }
0x21bc   :  { %v5539_v49 = vpop.eup %5538 }
0x21bd   :  { %v3635_v1 = vmul.f32 %v5539_v49, %v5527_v29 }
0x21be   :  { %5025 = vmatmul.msk.f32.vlgmr.msra.gmra.mxu3 %vm326_vm9, %v3634_v48 }
0x21c6   :  { %5026 = vmatmul.msk.f32.gmra.mxu3 %vm326_vm9, %v3635_v1 }
0x2215   :  { %v3759_v6 = vpop.xlane.xlu1 %3758 }
0x2216   :  { %5540 = vrcp.f32 %v3759_v6 }
0x221c   :  { %v5541_v8 = vpop.eup %5540 }
0x221d   :  { %v3765_v9 = vmul.f32 %v5541_v8, %v5529_v41  ;;  %v3762_v7 = vpop.xlane.xlu1 %3761 }
0x221e   :  { %5542 = vrcp.f32 %v3762_v7  ;;  %v5335_v7 = vld [vmem:[%s6349_s21 + $0x1] ss:$0 sm:$0xff] }
0x221f   :  { %5033 = vmatmul.msk.f32.vlgmr.msrb.gmra.mxu1 %vm326_vm9, %v3765_v9 }
0x2224   :  { %v5543_v13 = vpop.eup %5542 }
0x2225   :  { %v3766_v35 = vmul.f32 %v5543_v13, %v5531_v14 }
0x2227   :  { %5034 = vmatmul.msk.f32.gmra.mxu1 %vm326_vm9, %v3766_v35  ;;  %v5336_v35 = vld [vmem:[%s6378_s19 + $0x1] ss:$0 sm:$0xff]  ;;  %s6910_s19 = sld [smem:[%s6926_s0 + %s5654_s5]]  }
0x2231   :  { %v3507_v16 = vpop.f32.mrf.mxu3 }
0x2232   :  { %5017 = vmatmul.msk.f32.vlgmr.msra.gmra.mxu2 %vm290_vm8, %v3507_v16 }
0x2239   :  { %v3510_v58 = vpop.f32.mrf.mxu3 }
0x223a   :  { %5018 = vmatmul.msk.f32.gmra.mxu2 %vm290_vm8, %v3510_v58 }
0x2241   :  { %v3665_v17 = vpop.f32.mrf.mxu3 }
0x2242   :  { %5027 = vmatmul.msk.f32.vlgmr.msrb.gmra.mxu2 %vm290_vm8, %v3665_v17 }
0x2249   :  { %v3668_v18 = vpop.f32.mrf.mxu3 }
0x224a   :  { %5028 = vmatmul.msk.f32.gmra.mxu2 %vm290_vm8, %v3668_v18 }
0x229c   :  { %v3796_v19 = vpop.f32.mrf.mxu1 }
0x229d   :  { %5035 = vmatmul.msk.f32.vlgmr.msrb.gmra.mxu3 %vm290_vm8, %v3796_v19 }
0x22a4   :  { %v3799_v38 = vpop.f32.mrf.mxu1 }
0x22a5   :  { %5036 = vmatmul.msk.f32.gmra.mxu3 %vm290_vm8, %v3799_v38 }
0x22b5   :  { %v3536_v30 = vpop.f32.mrf.mxu2 }
0x22b6   :  { %v3566_v22 = vadd.f32 %v6684_v34, %v3536_v30 }
0x22bd   :  { %v3539_v21 = vpop.f32.mrf.mxu2 }
0x22be   :  { %v3569_v25 = vadd.f32 %v6686_v44, %v3539_v21  ;;  %v5042_v44 = vld [vmem:[%s6354_s13 + $0x38] sm:$0xff] }
0x22bf   :  { %3933 = vmatpush.msra.mxu2 %v5042_v44 }
0x22c5   :  { %v3694_v62 = vpop.f32.mrf.mxu2 }
0x22c6   :  { %v3700_v23 = vadd.f32 %v3694_v62, %v3566_v22 }
0x22cd   :  { %v3697_v29 = vpop.f32.mrf.mxu2 }
0x22ce   :  { %v3701_v20 = vadd.f32 %v3697_v29, %v3569_v25 }
0x2320   :  { %v3825_v52 = vpop.f32.mrf.mxu3 }
0x2321   :  { %v3831_v27 = vadd.f32 %v3825_v52, %v3700_v23 }
0x2323   :  { %v3836_v28 = vadd.f32 %v5334_v24, %v3831_v27 }
0x2325   :  { %v6723_v33 = vadd.f32 %v3836_v28, %v6599_v63  ;;  %v5041_v63 = vld [vmem:[%s6354_s13 + $0x30] sm:$0xff] }
0x2326   :  { %3934 = vmatpush.msra.mxu2 %v5041_v63  ;;  %v5271_v47 = vpack.i.bf16 %v5041_v63, %v5042_v44  ;;  %v6761_v63 = vld [vmem:[%s6422_s23] sm:$0xff] }
0x2327   :  { %v3844_v36 = vsel %vm180_vm0, %v6723_v33, 0.0 }
0x2328   :  { %3845 = vadd.xlane.f32.xlu0 %v3844_v36  ;;  %v3828_v37 = vpop.f32.mrf.mxu3  ;;  %3935 = vmatpush.msra.mxu2 %v5040_v26 }
0x2329   :  { %v3832_v34 = vadd.f32 %v3828_v37, %v3701_v20 }
0x232a   :  { %3936 = vmatpush.msra.mxu2 %v5039_v2 }
0x232b   :  { %v3837_v31 = vadd.f32 %v5334_v24, %v3832_v34 }
0x232d   :  { %v6728_v41 = vadd.f32 %v3837_v31, %v6604_v60 }
0x232f   :  { %v3847_v40 = vsel %vm180_vm0, %v6728_v41, 0.0 }
0x2330   :  { %3848 = vadd.xlane.f32.xlu2 %v3847_v40 }
0x233c   :  { %5277 = vrot.lane.b32.xlu0 %v5276_v59, %s5609_s22 }
0x2348   :  { %3960 = vrot.lane.b32.xlu2 %v5337_v3, %s5609_s22 }
0x239b   :  { %v3846_v61 = vpop.xlane.xlu0 %3845 }
0x239c   :  { %v3850_v4 = vmul.f32 %v3846_v61, %v5672_v10 }
0x239e   :  { %v3852_v43 = vsub.f32 %v6723_v33, %v3850_v4 }
0x23a0   :  { %v3854_v14 = vmul.f32 %v3852_v43, %v3852_v43 }
0x23a2   :  { %v3856_v0 = vsel %vm180_vm0, %v3854_v14, 0.0 }
0x23a3   :  { %3857 = vadd.xlane.f32.xlu1 %v3856_v0  ;;  %v3849_v60 = vpop.xlane.xlu2 %3848  ;;  %v6766_v0 = vld [vmem:[%s6422_s23 + $0x8] sm:$0xff] }
0x23a4   :  { %v3851_v32 = vmul.f32 %v3849_v60, %v5672_v10 }
0x23a6   :  { %v3853_v46 = vsub.f32 %v6728_v41, %v3851_v32 }
0x23a8   :  { %v3855_v42 = vmul.f32 %v3853_v46, %v3853_v46 }
0x23aa   :  { %v3859_v11 = vsel %vm180_vm0, %v3855_v42, 0.0 }
0x23ab   :  { %3860 = vadd.xlane.f32.xlu1 %v3859_v11  ;;  %v3961_v25 = vpop.permute.xlu2 %3960 }
0x23ae   :  { %v5278_v62 = vpop.permute.xlu0 %5277 }
0x23af   :  { %v5279_v52 = vunpack.i.l.bf16 %v5278_v62  ;;  %v5280_v28 = vunpack.i.h.bf16 %v5278_v62 }
0x23c4   :  { %5272 = vrot.lane.b32.xlu1 %v5271_v47, %s5609_s22 }
0x2416   :  { %v3858_v45 = vpop.xlane.xlu1 %3857 }
0x2417   :  { %v3862_v53 = vmul.f32 %v3858_v45, %v5672_v10 }
0x2419   :  { %v3864_v5 = vadd.f32 1e-06, %v3862_v53 }
0x241b   :  { %5544 = vrsqrt.f32 %v3864_v5  ;;  %vm3872_vm11 = vweird.f32 %v3864_v5 }
0x241e   :  { %v3861_v50 = vpop.xlane.xlu1 %3860 }
0x241f   :  { %v3863_v51 = vmul.f32 %v3861_v50, %v5672_v10 }
0x2421   :  { %v5545_v54 = vpop.eup %5544  ;;  %v3865_v55 = vadd.f32 1e-06, %v3863_v51 }
0x2422   :  { %v3867_v57 = vmul.f32 %v5545_v54, %v3864_v5  ;;  %vm3873_vm10 = vweird.f32 %v5545_v54 }
0x2423   :  { %5546 = vrsqrt.f32 %v3865_v55  ;;  %vm3874_vm12 = vmor %vm3872_vm11, %vm3873_vm10  ;;  %vm3882_vm14 = vweird.f32 %v3865_v55 }
0x2424   :  { %v3868_v48 = vmul.f32 %v5545_v54, %v3867_v57  ;;  %v5044_v57 = vld [vmem:[%s6455_s12 + $0x20] sm:$0xff] }
0x2426   :  { %v3869_v49 = vmul.f32 0.5, %v3868_v48 }
0x2428   :  { %v3870_v1 = vsub.f32 1.5, %v3869_v49 }
0x2429   :  { %v5547_v6 = vpop.eup %5546 }
0x242a   :  { %v3871_v8 = vmul.f32 %v5545_v54, %v3870_v1  ;;  %v3877_v9 = vmul.f32 %v5547_v6, %v3865_v55  ;;  %vm3883_vm13 = vweird.f32 %v5547_v6 }
0x242b   :  { %vm3884_vm15 = vmor %vm3882_vm14, %vm3883_vm13 }
0x242c   :  { %v3875_v12 = vsel %vm3874_vm12, %v5545_v54, %v3871_v8  ;;  %v3878_v13 = vmul.f32 %v5547_v6, %v3877_v9 }
0x242d   :  { %v3886_v39 = vmul.f32 %v3875_v12, %v3852_v43 }
0x242e   :  { %v3879_v16 = vmul.f32 0.5, %v3878_v13 }
0x242f   :  { %v3891_v58 = vmul.f32 %v5335_v7, %v3886_v39 }
0x2430   :  { %v3880_v17 = vsub.f32 1.5, %v3879_v16 }
0x2431   :  { %v3896_v18 = vadd.f32 %v5336_v35, %v3891_v58 }
0x2432   :  { %v3881_v19 = vmul.f32 %v5547_v6, %v3880_v17 }
0x2433   :  { %5049 = vmatmul.msk.f32.vlgmr.msra.gmra.mxu2 %vm180_vm0, %v3896_v18 }
0x2434   :  { %v3885_v38 = vsel %vm3884_vm15, %v5547_v6, %v3881_v19 }
0x2435   :  { %v3887_v30 = vmul.f32 %v3885_v38, %v3853_v46 }
0x2436   :  { %v5273_v21 = vpop.permute.xlu1 %5272 }
0x2437   :  { %v5274_v22 = vunpack.i.l.bf16 %v5273_v21  ;;  %v3892_v23 = vmul.f32 %v5335_v7, %v3887_v30  ;;  %v5275_v24 = vunpack.i.h.bf16 %v5273_v21 }
0x2439   :  { %3975 = vmatpush.msrb.mxu0 %v5274_v22  ;;  %v3897_v27 = vadd.f32 %v5336_v35, %v3892_v23 }
0x243b   :  { %5050 = vmatmul.msk.f32.gmra.mxu2 %vm180_vm0, %v3897_v27  ;;  %3976 = vmatpush.msrb.mxu0 %v5275_v24 }
0x243d   :  { %3977 = vmatpush.msrb.mxu0 %v5279_v52 }
0x243f   :  { %3978 = vmatpush.msrb.mxu0 %v5280_v28 }
0x2440   :  { %5051 = vmatmul.msk.f32.vlgmr.msrb.gmra.mxu0 %vm180_vm0, %v6398_v15 }
0x2448   :  { %5052 = vmatmul.msk.f32.gmra.mxu0 %vm180_vm0, %v6403_v56 }
0x24b6   :  { %v3938_v37 = vpop.f32.mrf.mxu2 }
0x24b7   :  { %v3939_v31 = vadd.f32 %v5337_v3, %v3938_v37 }
0x24bd   :  { %v3980_v29 = vpop.f32.mrf.mxu0 }
0x24be   :  { %v3981_v34 = vadd.f32 %v3980_v29, %v3961_v25  ;;  %v3941_v40 = vpop.f32.mrf.mxu2 }
0x24bf   :  { %v3942_v15 = vadd.f32 %v5337_v3, %v3941_v40 }
0x24c5   :  { %v3983_v20 = vpop.f32.mrf.mxu0 }
0x24c6   :  { %v3984_v36 = vadd.f32 %v3983_v20, %v3961_v25 }
0x24c8   :  { %5053 = vmatpush.xpose.msk.msra.mxu1 %vm290_vm8, %v3984_v36  ;;  %v6770_v2 = vpack.i.bf16 %v3981_v34, %v3984_v36 }
0x24cc   :  { %5054 = vmatpush.xpose.msk.msra.mxu1 %vm290_vm8, %v3981_v34 }
0x24cf   :  { %5055 = vmatmul.msk.f32.vlgmr.msra.gmra.mxu1 %vm290_vm8, %v3939_v31 }
0x24d7   :  { %5056 = vmatmul.msk.f32.gmra.mxu1 %vm290_vm8, %v3942_v15 }
0x254c   :  { %v4015_v56 = vpop.f32.mrf.mxu1 }
0x254d   :  { %v4021_v44 = vmul.f32 0.35355338, %v4015_v56 }
0x254f   :  { %v4023_v61 = vadd.f32 %v6761_v63, %v4021_v44 }
0x2551   :  { %v4025_v4 = vsel %vm326_vm9, %v4023_v61, -inf }
0x2552   :  { %4026 = vmax.xlane.f32.xlu1 %v4025_v4 }
0x2554   :  { %v4018_v43 = vpop.f32.mrf.mxu1 }
0x2555   :  { %v4022_v14 = vmul.f32 0.35355338, %v4018_v43 }
0x2557   :  { %v4024_v60 = vadd.f32 %v6766_v0, %v4022_v14 }
0x2559   :  { %v4028_v32 = vsel %vm326_vm9, %v4024_v60, -inf }
0x255a   :  { %4029 = vmax.xlane.f32.xlu0 %v4028_v32 }
0x256b   :  { %5282 = vrot.lane.b32.xlu1 %v6770_v2, %s5609_s22  ;;  %s5652_s22 = smov 23  }
0x2573   :  { %4082 = vrot.lane.b32.xlu1 %v3939_v31, %s5613_s29 }
0x257b   :  { %4377 = vrot.lane.b32.xlu1 %v3984_v36, %s6943_s20 }
0x2583   :  { %4084 = vrot.lane.b32.xlu1 %v3942_v15, %s5613_s29 }
0x258b   :  { %4371 = vrot.lane.b32.xlu1 %v3939_v31, %s6943_s20 }
0x2593   :  { %4373 = vrot.lane.b32.xlu1 %v3942_v15, %s6943_s20 }
0x25c5   :  { %v4027_v26 = vpop.xlane.xlu1 %4026 }
0x25c6   :  { %v4031_v59 = vsub.f32 %v4023_v61, %v4027_v26 }
0x25c8   :  { %v4033_v46 = vmul.f32 1.442695, %v4031_v59 }
0x25ca   :  { %5548 = vpow2.f32 %v4033_v46 }
0x25cd   :  { %v4030_v42 = vpop.xlane.xlu0 %4029 }
0x25ce   :  { %v4032_v11 = vsub.f32 %v4024_v60, %v4030_v42 }
0x25d0   :  { %v5549_v47 = vpop.eup %5548  ;;  %v4035_v45 = vmul.f32 1.442695, %v4032_v11 }
0x25d1   :  { %v4037_v53 = vsel %vm326_vm9, %v5549_v47, 0.0 }
0x25d2   :  { %5550 = vpow2.f32 %v4035_v45  ;;  %4038 = vadd.xlane.f32.xlu2 %v4037_v53 }
0x25d8   :  { %v5551_v5 = vpop.eup %5550 }
0x25d9   :  { %v4040_v50 = vsel %vm326_vm9, %v5551_v5, 0.0 }
0x25da   :  { %4041 = vadd.xlane.f32.xlu0 %v4040_v50 }
0x25dd   :  { %v5283_v51 = vpop.permute.xlu1 %5282 }
0x25de   :  { %v5284_v54 = vunpack.i.l.bf16 %v5283_v51  ;;  %v5285_v55 = vunpack.i.h.bf16 %v5283_v51 }
0x25e0   :  { %4073 = vmatpush.msra.mxu3 %v5284_v54 }
0x25e2   :  { %4074 = vmatpush.msra.mxu3 %v5285_v55 }
0x25e4   :  { %4232 = vmatpush.msrb.mxu3 %v5044_v57 }
0x25e5   :  { %v4083_v48 = vpop.permute.xlu1 %4082 }
0x25ea   :  { %4088 = vrot.lane.b32.xlu2 %v3984_v36, %s5613_s29 }
0x25ed   :  { %v4378_v9 = vpop.permute.xlu1 %4377 }
0x25ee   :  { %4086 = vrot.lane.b32.xlu0 %v3981_v34, %s5613_s29 }
0x25f2   :  { %4375 = vrot.lane.b32.xlu2 %v3981_v34, %s6943_s20 }
0x25f5   :  { %v4085_v16 = vpop.permute.xlu1 %4084 }
0x25f6   :  { %4246 = vrot.lane.b32.xlu0 %v3984_v36, %s6944_s27 }
0x25fa   :  { %4240 = vrot.lane.b32.xlu2 %v3939_v31, %s6944_s27 }
0x25fd   :  { %v4372_v30 = vpop.permute.xlu1 %4371 }
0x25fe   :  { %4244 = vrot.lane.b32.xlu0 %v3981_v34, %s6944_s27 }
0x2605   :  { %v4374_v22 = vpop.permute.xlu1 %4373 }
0x2606   :  { %4242 = vrot.lane.b32.xlu0 %v3942_v15, %s6944_s27 }
0x2645   :  { %v4039_v49 = vpop.xlane.xlu2 %4038 }
0x2646   :  { %5552 = vrcp.f32 %v4039_v49 }
0x264c   :  { %v5553_v1 = vpop.eup %5552 }
0x264d   :  { %v4045_v3 = vmul.f32 %v5553_v1, %v5549_v47  ;;  %v4089_v6 = vpop.permute.xlu2 %4088  ;;  %v4042_v8 = vpop.xlane.xlu0 %4041 }
0x264e   :  { %5554 = vrcp.f32 %v4042_v8  ;;  %5059 = vmatpush.xpose.msk.msrb.mxu2 %vm290_vm8, %v4089_v6 }
0x264f   :  { %5057 = vmatmul.msk.f32.vlgmr.msra.gmra.mxu3 %vm326_vm9, %v4045_v3 }
0x2650   :  { %5077 = vmatpush.xpose.msk.msra.mxu3 %vm290_vm8, %v4378_v9 }
0x2654   :  { %v5555_v7 = vpop.eup %5554 }
0x2655   :  { %v4376_v12 = vpop.permute.xlu2 %4375  ;;  %v4046_v13 = vmul.f32 %v5555_v7, %v5551_v5 }
0x2656   :  { %5078 = vmatpush.xpose.msk.msra.mxu3 %vm290_vm8, %v4376_v12 }
0x2657   :  { %5058 = vmatmul.msk.f32.gmra.mxu3 %vm326_vm9, %v4046_v13 }
0x265d   :  { %v4241_v17 = vpop.permute.xlu2 %4240 }
0x2660   :  { %v4087_v35 = vpop.permute.xlu0 %4086 }
0x2661   :  { %5060 = vmatpush.xpose.msk.msrb.mxu2 %vm290_vm8, %v4087_v35 }
0x2664   :  { %5061 = vmatmul.msk.f32.vlgmr.msrb.gmra.mxu2 %vm290_vm8, %v4083_v48 }
0x2668   :  { %v4247_v39 = vpop.permute.xlu0 %4246 }
0x2669   :  { %5069 = vmatpush.xpose.msk.msra.mxu2 %vm290_vm8, %v4247_v39 }
0x266c   :  { %5062 = vmatmul.msk.f32.gmra.mxu2 %vm290_vm8, %v4085_v16 }
0x2670   :  { %v4245_v58 = vpop.permute.xlu0 %4244 }
0x2671   :  { %5070 = vmatpush.xpose.msk.msra.mxu2 %vm290_vm8, %v4245_v58 }
0x2674   :  { %5071 = vmatmul.msk.f32.vlgmr.msra.gmra.mxu2 %vm290_vm8, %v4241_v17 }
0x2678   :  { %v4243_v18 = vpop.permute.xlu0 %4242 }
0x267c   :  { %5072 = vmatmul.msk.f32.gmra.mxu2 %vm290_vm8, %v4243_v18 }
0x26d2   :  { %v4076_v19 = vpop.f32.mrf.mxu3 }
0x26d3   :  { %5067 = vmatmul.msk.f32.vlgmr.msrb.gmra.mxu3 %vm290_vm8, %v4076_v19 }
0x26da   :  { %v4079_v38 = vpop.f32.mrf.mxu3 }
0x26db   :  { %5068 = vmatmul.msk.f32.gmra.mxu3 %vm290_vm8, %v4079_v38 }
0x26e3   :  { %5079 = vmatmul.msk.f32.vlgmr.msra.gmra.mxu3 %vm290_vm8, %v4372_v30 }
0x26e7   :  { %v4115_v21 = vpop.f32.mrf.mxu2 }
0x26e8   :  { %v4121_v62 = vmul.f32 0.35355338, %v4115_v21 }
0x26ea   :  { %v4123_v23 = vadd.f32 %v6761_v63, %v4121_v62 }
0x26eb   :  { %5080 = vmatmul.msk.f32.gmra.mxu3 %vm290_vm8, %v4374_v22 }
0x26ec   :  { %v4125_v24 = vsel %vm326_vm9, %v4123_v23, -inf }
0x26ed   :  { %4126 = vmax.xlane.f32.xlu2 %v4125_v24 }
0x26ef   :  { %v4118_v52 = vpop.f32.mrf.mxu2 }
0x26f0   :  { %v4122_v27 = vmul.f32 0.35355338, %v4118_v52 }
0x26f2   :  { %v4124_v28 = vadd.f32 %v6766_v0, %v4122_v27 }
0x26f4   :  { %v4128_v29 = vsel %vm326_vm9, %v4124_v28, -inf }
0x26f5   :  { %4129 = vmax.xlane.f32.xlu1 %v4128_v29 }
0x26f7   :  { %v4273_v25 = vpop.f32.mrf.mxu2 }
0x26f8   :  { %v4279_v20 = vmul.f32 0.35355338, %v4273_v25 }
0x26fa   :  { %v4281_v36 = vadd.f32 %v6761_v63, %v4279_v20 }
0x26fc   :  { %v4283_v37 = vsel %vm326_vm9, %v4281_v36, -inf }
0x26fd   :  { %4284 = vmax.xlane.f32.xlu2 %v4283_v37 }
0x26ff   :  { %v4276_v4 = vpop.f32.mrf.mxu2 }
0x2700   :  { %v4280_v26 = vmul.f32 0.35355338, %v4276_v4 }
0x2702   :  { %v4282_v47 = vadd.f32 %v6766_v0, %v4280_v26  ;;  %v5047_v26 = vld [vmem:[%s6455_s12 + $0x38] sm:$0xff] }
0x2704   :  { %v4286_v51 = vsel %vm326_vm9, %v4282_v47, -inf }
0x2756   :  { %v6811_v34 = vpop.f32.mrf.mxu3 }
0x275e   :  { %v6813_v31 = vpop.f32.mrf.mxu3 }
0x2760   :  { %v4127_v40 = vpop.xlane.xlu2 %4126 }
0x2761   :  { %v4131_v15 = vsub.f32 %v4123_v23, %v4127_v40 }
0x2763   :  { %v4133_v56 = vmul.f32 1.442695, %v4131_v15 }
0x2765   :  { %5556 = vpow2.f32 %v4133_v56 }
0x2766   :  { %v4404_v44 = vpop.f32.mrf.mxu3 }
0x2767   :  { %v4410_v61 = vmul.f32 0.35355338, %v4404_v44 }
0x2768   :  { %v4130_v43 = vpop.xlane.xlu1 %4129 }
0x2769   :  { %v4412_v14 = vadd.f32 %v6761_v63, %v4410_v61  ;;  %v4132_v60 = vsub.f32 %v4124_v28, %v4130_v43 }
0x276b   :  { %v5557_v32 = vpop.eup %5556  ;;  %v4414_v59 = vsel %vm326_vm9, %v4412_v14, -inf  ;;  %v4135_v42 = vmul.f32 1.442695, %v4132_v60  ;;  %v5046_v60 = vld [vmem:[%s6455_s12 + $0x30] sm:$0xff] }
0x276c   :  { %4415 = vmax.xlane.f32.xlu0 %v4414_v59  ;;  %v4137_v46 = vsel %vm326_vm9, %v5557_v32, 0.0 }
0x276d   :  { %4138 = vadd.xlane.f32.xlu2 %v4137_v46  ;;  %5558 = vpow2.f32 %v4135_v42 }
0x276e   :  { %v4407_v11 = vpop.f32.mrf.mxu3 }
0x276f   :  { %v4411_v45 = vmul.f32 0.35355338, %v4407_v11 }
0x2770   :  { %v4285_v53 = vpop.xlane.xlu2 %4284 }
0x2771   :  { %v4413_v5 = vadd.f32 %v6766_v0, %v4411_v45  ;;  %v4289_v50 = vsub.f32 %v4281_v36, %v4285_v53 }
0x2773   :  { %v4417_v63 = vsel %vm326_vm9, %v4413_v5, -inf  ;;  %v4291_v54 = vmul.f32 1.442695, %v4289_v50  ;;  %v5559_v55 = vpop.eup %5558 }
0x2774   :  { %4418 = vmax.xlane.f32.xlu1 %v4417_v63  ;;  %4287 = vmax.xlane.f32.xlu0 %v4286_v51  ;;  %v4140_v57 = vsel %vm326_vm9, %v5559_v55, 0.0 }
0x2775   :  { %5560 = vpow2.f32 %v4291_v54 }
0x277b   :  { %v5561_v48 = vpop.eup %5560 }
0x277c   :  { %4141 = vadd.xlane.f32.xlu0 %v4140_v57  ;;  %v4295_v49 = vsel %vm326_vm9, %v5561_v48, 0.0  ;;  %v5338_v57 = vld [vmem:[%s6517_s15 + $0x1] ss:$0 sm:$0xff]  ;;  %s5655_s15 = smov 41  }
0x277d   :  { %s4812_s11 = sld [smem:[%s6926_s0 + %s5655_s15]]  }
0x2784   :  { %4296 = vadd.xlane.f32.xlu0 %v4295_v49 }
0x278d   :  { %5287 = vrot.lane.b32.xlu1 %v6770_v2, %s5612_s28 }
0x2795   :  { %5297 = vrot.lane.b32.xlu1 %v6770_v2, %s6941_s25 }
0x27df   :  { %v4416_v0 = vpop.xlane.xlu0 %4415 }
0x27e0   :  { %v4420_v1 = vsub.f32 %v4412_v14, %v4416_v0  ;;  %v4139_v17 = vpop.xlane.xlu2 %4138 }
0x27e2   :  { %v4422_v3 = vmul.f32 1.442695, %v4420_v1 }
0x27e4   :  { %5562 = vpow2.f32 %v4422_v3 }
0x27e7   :  { %v4419_v6 = vpop.xlane.xlu1 %4418  ;;  %v4288_v8 = vpop.xlane.xlu0 %4287 }
0x27e8   :  { %v4421_v9 = vsub.f32 %v4413_v5, %v4419_v6  ;;  %v4290_v13 = vsub.f32 %v4282_v47, %v4288_v8 }
0x27ea   :  { %v5563_v7 = vpop.eup %5562  ;;  %v4424_v12 = vmul.f32 1.442695, %v4421_v9  ;;  %v4293_v39 = vmul.f32 1.442695, %v4290_v13 }
0x27eb   :  { %v4426_v35 = vsel %vm326_vm9, %v5563_v7, 0.0 }
0x27ec   :  { %5564 = vpow2.f32 %v4424_v12  ;;  %4427 = vadd.xlane.f32.xlu2 %v4426_v35 }
0x27ed   :  { %5566 = vpow2.f32 %v4293_v39 }
0x27ee   :  { %5568 = vrcp.f32 %v4139_v17 }
0x27ef   :  { %v4142_v38 = vpop.xlane.xlu0 %4141 }
0x27f0   :  { %5570 = vrcp.f32 %v4142_v38 }
0x27f2   :  { %v5565_v16 = vpop.eup %5564 }
0x27f3   :  { %v4429_v58 = vsel %vm326_vm9, %v5565_v16, 0.0  ;;  %v5567_v18 = vpop.eup %5566 }
0x27f4   :  { %4430 = vadd.xlane.f32.xlu0 %v4429_v58  ;;  %v4298_v19 = vsel %vm326_vm9, %v5567_v18, 0.0  ;;  %v5569_v21 = vpop.eup %5568 }
0x27f5   :  { %v4145_v23 = vmul.f32 %v5569_v21, %v5557_v32  ;;  %v5089_v21 = vld [vmem:[%s6563_s3 + $0x30] sm:$0xff] }
0x27f6   :  { %v5571_v27 = vpop.eup %5570 }
0x27f7   :  { %v4297_v24 = vpop.xlane.xlu0 %4296  ;;  %v4146_v25 = vmul.f32 %v5571_v27, %v5559_v55  ;;  %v5099_v27 = vld [vmem:[%s6572_s30 + $0x78] sm:$0xff] }
0x27f8   :  { %5572 = vrcp.f32 %v4297_v24  ;;  %4636 = vmatpush.msrb.mxu3 %v5099_v27 }
0x27fc   :  { %4299 = vadd.xlane.f32.xlu0 %v4298_v19 }
0x27fe   :  { %v5573_v20 = vpop.eup %5572 }
0x27ff   :  { %v5288_v30 = vpop.permute.xlu1 %5287  ;;  %v4303_v36 = vmul.f32 %v5573_v20, %v5561_v48 }
0x2800   :  { %v5289_v62 = vunpack.i.l.bf16 %v5288_v30  ;;  %v5290_v22 = vunpack.i.h.bf16 %v5288_v30  ;;  %v5090_v30 = vld [vmem:[%s6563_s3 + $0x38] sm:$0xff] }
0x2802   :  { %4173 = vmatpush.msra.mxu0 %v5289_v62  ;;  %v5088_v62 = vld [vmem:[%s6563_s3 + $0x28] sm:$0xff] }
0x2804   :  { %4174 = vmatpush.msra.mxu0 %v5290_v22  ;;  %5292 = vrot.lane.b32.xlu2 %v6770_v2, %s6942_s18  ;;  %v5045_v2 = vld [vmem:[%s6455_s12 + $0x28] sm:$0xff]  ;;  %v5087_v22 = vld [vmem:[%s6563_s3 + $0x20] sm:$0xff]  ;;  %s4811_s12 = sld [smem:[%s6926_s0 + %s6945_s14]]  }
0x2805   :  { %5063 = vmatmul.msk.f32.vlgmr.msra.gmra.mxu0 %vm326_vm9, %v4145_v23  ;;  %4203 = vmatpush.msrb.mxu1 %v5045_v2 }
0x2807   :  { %v5298_v52 = vpop.permute.xlu1 %5297  ;;  %4361 = vmatpush.msra.mxu1 %v5046_v60  ;;  %v5339_v60 = vld [vmem:[%s6541_s1 + $0x1] ss:$0 sm:$0xff]  ;;  %s5653_s1 = smov 24  }
0x2808   :  { %v5299_v28 = vunpack.i.l.bf16 %v5298_v52  ;;  %v5300_v29 = vunpack.i.h.bf16 %v5298_v52  ;;  %s6900_s6 = sld [smem:[%s6926_s0 + %s5653_s1]]  }
0x280a   :  { %4331 = vmatpush.msrb.mxu0 %v5299_v28  ;;  %v5098_v28 = vld [vmem:[%s6572_s30 + $0x70] sm:$0xff] }
0x280b   :  { %4637 = vmatpush.msrb.mxu3 %v5098_v28 }
0x280c   :  { %4332 = vmatpush.msrb.mxu0 %v5300_v29  ;;  %v5097_v29 = vld [vmem:[%s6572_s30 + $0x68] sm:$0xff] }
0x280d   :  { %5064 = vmatmul.msk.f32.gmra.mxu0 %vm326_vm9, %v4146_v25  ;;  %4638 = vmatpush.msrb.mxu3 %v5097_v29 }
0x280e   :  { %4492 = vmatpush.msra.mxu0 %v5047_v26 }
0x2815   :  { %5073 = vmatmul.msk.f32.vlgmr.msrb.gmra.mxu0 %vm326_vm9, %v4303_v36  ;;  %v5096_v36 = vld [vmem:[%s6572_s30 + $0x60] sm:$0xff] }
0x2816   :  { %4639 = vmatpush.msrb.mxu3 %v5096_v36 }
0x285f   :  { %v4428_v37 = vpop.xlane.xlu2 %4427 }
0x2860   :  { %5574 = vrcp.f32 %v4428_v37 }
0x2866   :  { %v5575_v56 = vpop.eup %5574 }
0x2867   :  { %v5293_v40 = vpop.permute.xlu2 %5292  ;;  %v4431_v15 = vpop.xlane.xlu0 %4430  ;;  %v4434_v4 = vmul.f32 %v5575_v56, %v5563_v7 }
0x2868   :  { %v5294_v44 = vunpack.i.l.bf16 %v5293_v40  ;;  %v5295_v61 = vunpack.i.h.bf16 %v5293_v40  ;;  %5576 = vrcp.f32 %v4431_v15  ;;  %v5095_v40 = vld [vmem:[%s6572_s30 + $0x58] sm:$0xff] }
0x2869   :  { %4640 = vmatpush.msrb.mxu3 %v5095_v40 }
0x286a   :  { %4462 = vmatpush.msrb.mxu2 %v5294_v44 }
0x286c   :  { %4463 = vmatpush.msrb.mxu2 %v5295_v61 }
0x286d   :  { %5081 = vmatmul.msk.f32.vlgmr.msrb.gmra.mxu2 %vm326_vm9, %v4434_v4 }
0x286e   :  { %v5577_v14 = vpop.eup %5576 }
0x286f   :  { %v4300_v43 = vpop.xlane.xlu0 %4299  ;;  %v4435_v32 = vmul.f32 %v5577_v14, %v5565_v16 }
0x2870   :  { %5578 = vrcp.f32 %v4300_v43 }
0x2875   :  { %5082 = vmatmul.msk.f32.gmra.mxu2 %vm326_vm9, %v4435_v32 }
0x2876   :  { %v5579_v59 = vpop.eup %5578 }
0x2877   :  { %v4304_v46 = vmul.f32 %v5579_v59, %v5567_v18  ;;  %v5340_v59 = vld [vmem:[%s6533_s16 + $0x1] ss:$0 sm:$0xff] }
0x2879   :  { %5074 = vmatmul.msk.f32.gmra.mxu0 %vm326_vm9, %v4304_v46 }
0x2882   :  { %v4176_v42 = vpop.f32.mrf.mxu0 }
0x2883   :  { %5065 = vmatmul.msk.f32.vlgmr.msrb.gmra.mxu1 %vm290_vm8, %v4176_v42 }
0x2884   :  { %4606 = vmatpush.msrb.mxu1 %v5090_v30 }
0x2886   :  { %4607 = vmatpush.msrb.mxu1 %v5089_v21 }
0x2888   :  { %4608 = vmatpush.msrb.mxu1 %v5088_v62 }
0x288a   :  { %v4179_v11 = vpop.f32.mrf.mxu0  ;;  %4609 = vmatpush.msrb.mxu1 %v5087_v22  ;;  %v4712_v22 = vld [vmem:[%s4811_s12 + $0x18] sm:$0xff] }
0x288b   :  { %5066 = vmatmul.msk.f32.gmra.mxu1 %vm290_vm8, %v4179_v11  ;;  %4735 = vmatpush.msra.mxu2 %v4712_v22 }
0x2892   :  { %v4334_v47 = vpop.f32.mrf.mxu0 }
0x2893   :  { %5075 = vmatmul.msk.f32.vlgmr.msra.gmra.mxu1 %vm290_vm8, %v4334_v47 }
0x28f0   :  { %v4465_v45 = vpop.f32.mrf.mxu2 }
0x28f1   :  { %5083 = vmatmul.msk.f32.vlgmr.msra.gmra.mxu0 %vm290_vm8, %v4465_v45 }
0x28f6   :  { %v4337_v53 = vpop.f32.mrf.mxu0 }
0x28f7   :  { %5076 = vmatmul.msk.f32.gmra.mxu1 %vm290_vm8, %v4337_v53 }
0x28f8   :  { %v4468_v5 = vpop.f32.mrf.mxu2 }
0x28f9   :  { %5084 = vmatmul.msk.f32.gmra.mxu0 %vm290_vm8, %v4468_v5 }
0x2900   :  { %v4205_v50 = vpop.f32.mrf.mxu1 }
0x2901   :  { %v4235_v54 = vadd.f32 %v6811_v34, %v4205_v50 }
0x2908   :  { %v4208_v63 = vpop.f32.mrf.mxu1 }
0x2909   :  { %v4238_v1 = vadd.f32 %v6813_v31, %v4208_v63 }
0x2910   :  { %v4363_v51 = vpop.f32.mrf.mxu1 }
0x2911   :  { %v4369_v55 = vadd.f32 %v4363_v51, %v4235_v54  ;;  %v5094_v54 = vld [vmem:[%s6572_s30 + $0x50] sm:$0xff] }
0x2912   :  { %4641 = vmatpush.msrb.mxu3 %v5094_v54 }
0x296e   :  { %v4494_v48 = vpop.f32.mrf.mxu0 }
0x296f   :  { %v4500_v49 = vadd.f32 %v4494_v48, %v4369_v55  ;;  %v5093_v55 = vld [vmem:[%s6572_s30 + $0x48] sm:$0xff]  ;;  %v5341_v48 = vld [vmem:[%s6558_s4 + $0x1] ss:$0 sm:$0xff] }
0x2970   :  { %4642 = vmatpush.msrb.mxu3 %v5093_v55 }
0x2971   :  { %v4505_v0 = vadd.f32 %v5338_v57, %v4500_v49 }
0x2973   :  { %v6852_v3 = vadd.f32 %v4505_v0, %v6723_v33 }
0x2974   :  { %v4366_v6 = vpop.f32.mrf.mxu1 }
0x2975   :  { %v4370_v8 = vadd.f32 %v4366_v6, %v4238_v1  ;;  %v4513_v9 = vsel %vm180_vm0, %v6852_v3, 0.0 }
0x2976   :  { %4514 = vadd.xlane.f32.xlu1 %v4513_v9  ;;  %v4497_v7 = vpop.f32.mrf.mxu0 }
0x2977   :  { %v4501_v12 = vadd.f32 %v4497_v7, %v4370_v8  ;;  %v5342_v7 = vld [vmem:[%s6589_s10 + $0x1] ss:$0 sm:$0xff] }
0x2979   :  { %v4506_v13 = vadd.f32 %v5338_v57, %v4501_v12  ;;  %v5092_v57 = vld [vmem:[%s6572_s30 + $0x40] sm:$0xff]  ;;  %s6894_s30 = sld [smem:[%s6926_s0 + %s5652_s22]]  }
0x297a   :  { %4643 = vmatpush.msrb.mxu3 %v5092_v57 }
0x297b   :  { %v6857_v34 = vadd.f32 %v4506_v13, %v6728_v41 }
0x297d   :  { %v4516_v35 = vsel %vm180_vm0, %v6857_v34, 0.0 }
0x297e   :  { %4517 = vadd.xlane.f32.xlu0 %v4516_v35 }
0x29e9   :  { %v4515_v33 = vpop.xlane.xlu1 %4514 }
0x29ea   :  { %v4519_v31 = vmul.f32 %v4515_v33, %v5672_v10 }
0x29ec   :  { %v4521_v39 = vsub.f32 %v6852_v3, %v4519_v31 }
0x29ee   :  { %v4523_v16 = vmul.f32 %v4521_v39, %v4521_v39 }
0x29f0   :  { %v4525_v58 = vsel %vm180_vm0, %v4523_v16, 0.0 }
0x29f1   :  { %4526 = vadd.xlane.f32.xlu2 %v4525_v58  ;;  %v4518_v17 = vpop.xlane.xlu0 %4517 }
0x29f2   :  { %v4520_v41 = vmul.f32 %v4518_v17, %v5672_v10 }
0x29f4   :  { %v4522_v18 = vsub.f32 %v6857_v34, %v4520_v41 }
0x29f6   :  { %v4524_v19 = vmul.f32 %v4522_v18, %v4522_v18 }
0x29f8   :  { %v4528_v38 = vsel %vm180_vm0, %v4524_v19, 0.0 }
0x29f9   :  { %4529 = vadd.xlane.f32.xlu0 %v4528_v38 }
0x2a64   :  { %v4527_v23 = vpop.xlane.xlu2 %4526 }
0x2a65   :  { %v4531_v24 = vmul.f32 %v4527_v23, %v5672_v10  ;;  %v4711_v23 = vld [vmem:[%s4811_s12 + $0x10] sm:$0xff] }
0x2a66   :  { %4736 = vmatpush.msra.mxu2 %v4711_v23 }
0x2a67   :  { %v4533_v52 = vadd.f32 1e-06, %v4531_v24  ;;  %v4710_v24 = vld [vmem:[%s4811_s12 + $0x8] sm:$0xff] }
0x2a68   :  { %4737 = vmatpush.msra.mxu2 %v4710_v24 }
0x2a69   :  { %5580 = vrsqrt.f32 %v4533_v52  ;;  %vm4541_vm9 = vweird.f32 %v4533_v52 }
0x2a6c   :  { %v4530_v25 = vpop.xlane.xlu0 %4529 }
0x2a6d   :  { %v4532_v20 = vmul.f32 %v4530_v25, %v5672_v10 }
0x2a6f   :  { %v5581_v37 = vpop.eup %5580  ;;  %v4534_v2 = vadd.f32 1e-06, %v4532_v20 }
0x2a70   :  { %v4536_v15 = vmul.f32 %v5581_v37, %v4533_v52  ;;  %vm4542_vm8 = vweird.f32 %v5581_v37  ;;  %v4709_v52 = vld [vmem:[%s4811_s12] sm:$0xff] }
0x2a71   :  { %5582 = vrsqrt.f32 %v4534_v2  ;;  %vm4543_vm2 = vmor %vm4541_vm9, %vm4542_vm8  ;;  %vm4551_vm4 = vweird.f32 %v4534_v2  ;;  %4738 = vmatpush.msra.mxu2 %v4709_v52 }
0x2a72   :  { %v4537_v56 = vmul.f32 %v5581_v37, %v4536_v15 }
0x2a74   :  { %v4538_v44 = vmul.f32 0.5, %v4537_v56 }
0x2a76   :  { %v4539_v61 = vsub.f32 1.5, %v4538_v44 }
0x2a77   :  { %v5583_v4 = vpop.eup %5582 }
0x2a78   :  { %v4540_v43 = vmul.f32 %v5581_v37, %v4539_v61  ;;  %v4546_v14 = vmul.f32 %v5583_v4, %v4534_v2  ;;  %vm4552_vm3 = vweird.f32 %v5583_v4 }
0x2a79   :  { %vm4553_vm5 = vmor %vm4551_vm4, %vm4552_vm3 }
0x2a7a   :  { %v4544_v32 = vsel %vm4543_vm2, %v5581_v37, %v4540_v43  ;;  %v4547_v26 = vmul.f32 %v5583_v4, %v4546_v14  ;;  %v5343_v43 = vld [vmem:[%s6900_s6] ss:$0 sm:$0xff] }
0x2a7b   :  { %v4555_v46 = vmul.f32 %v4544_v32, %v4521_v39  ;;  %v5344_v32 = vld [vmem:[%s6894_s30] ss:$0 sm:$0xff] }
0x2a7c   :  { %v4548_v42 = vmul.f32 0.5, %v4547_v26 }
0x2a7d   :  { %v4560_v11 = vmul.f32 %v5339_v60, %v4555_v46 }
0x2a7e   :  { %v4549_v47 = vsub.f32 1.5, %v4548_v42 }
0x2a7f   :  { %v4565_v45 = vadd.f32 %v5340_v59, %v4560_v11 }
0x2a80   :  { %v4550_v53 = vmul.f32 %v5583_v4, %v4549_v47 }
0x2a81   :  { %5101 = vmatmul.msk.f32.vlgmr.msrb.gmra.mxu1 %vm180_vm0, %v4565_v45 }
0x2a82   :  { %v4554_v5 = vsel %vm4553_vm5, %v5583_v4, %v4550_v53 }
0x2a83   :  { %v4556_v50 = vmul.f32 %v4554_v5, %v4522_v18 }
0x2a85   :  { %v4561_v63 = vmul.f32 %v5339_v60, %v4556_v50  ;;  %v5345_v50 = vld [vmem:[%s6910_s19] ss:$0 sm:$0xff] }
0x2a87   :  { %v4566_v51 = vadd.f32 %v5340_v59, %v4561_v63 }
0x2a89   :  { %5102 = vmatmul.msk.f32.gmra.mxu1 %vm180_vm0, %v4566_v51 }
0x2afe   :  { %v4611_v49 = vpop.f32.mrf.mxu1 }
0x2aff   :  { %v4612_v0 = vadd.f32 %v5341_v48, %v4611_v49 }
0x2b01   :  { %v4617_v1 = vmax.f32 %v4612_v0, 0.0 }
0x2b03   :  { %5103 = vmatmul.msk.f32.vlgmr.msrb.gmra.mxu3 %vm918_vm1, %v4617_v1 }
0x2b06   :  { %v4614_v6 = vpop.f32.mrf.mxu1 }
0x2b07   :  { %v4615_v8 = vadd.f32 %v5341_v48, %v4614_v6 }
0x2b09   :  { %v4618_v9 = vmax.f32 %v4615_v8, 0.0 }
0x2b0b   :  { %5104 = vmatmul.msk.f32.gmra.mxu3 %vm918_vm1, %v4618_v9 }
0x2b86   :  { %v4645_v12 = vpop.f32.mrf.mxu3 }
0x2b87   :  { %v4646_v13 = vadd.f32 %v5342_v7, %v4645_v12 }
0x2b89   :  { %v4651_v35 = vadd.f32 %v4646_v13, %v6852_v3 }
0x2b8b   :  { %v4655_v33 = vsel %vm180_vm0, %v4651_v35, 0.0 }
0x2b8c   :  { %4656 = vadd.xlane.f32.xlu0 %v4655_v33 }
0x2b8e   :  { %v4648_v31 = vpop.f32.mrf.mxu3 }
0x2b8f   :  { %v4649_v39 = vadd.f32 %v5342_v7, %v4648_v31 }
0x2b91   :  { %v4652_v16 = vadd.f32 %v4649_v39, %v6857_v34 }
0x2b93   :  { %v4658_v3 = vsel %vm180_vm0, %v4652_v16, 0.0 }
0x2b94   :  { %4659 = vadd.xlane.f32.xlu0 %v4658_v3 }
0x2bff   :  { %v4657_v58 = vpop.xlane.xlu0 %4656 }
0x2c00   :  { %v4661_v17 = vmul.f32 %v4657_v58, %v5672_v10 }
0x2c02   :  { %v4663_v41 = vsub.f32 %v4651_v35, %v4661_v17 }
0x2c04   :  { %v4665_v18 = vmul.f32 %v4663_v41, %v4663_v41 }
0x2c06   :  { %v4667_v19 = vsel %vm180_vm0, %v4665_v18, 0.0 }
0x2c07   :  { %4668 = vadd.xlane.f32.xlu0 %v4667_v19  ;;  %v4660_v38 = vpop.xlane.xlu0 %4659 }
0x2c08   :  { %v4662_v34 = vmul.f32 %v4660_v38, %v5672_v10 }
0x2c0a   :  { %v4664_v30 = vsub.f32 %v4652_v16, %v4662_v34 }
0x2c0c   :  { %v4666_v21 = vmul.f32 %v4664_v30, %v4664_v30 }
0x2c0e   :  { %v4670_v62 = vsel %vm180_vm0, %v4666_v21, 0.0 }
0x2c0f   :  { %4671 = vadd.xlane.f32.xlu0 %v4670_v62 }
0x2c7a   :  { %v4669_v27 = vpop.xlane.xlu0 %4668 }
0x2c7b   :  { %v4673_v28 = vmul.f32 %v4669_v27, %v5672_v10 }
0x2c7d   :  { %v4675_v29 = vadd.f32 1e-06, %v4673_v28 }
0x2c7f   :  { %5584 = vrsqrt.f32 %v4675_v29  ;;  %vm4683_vm6 = vweird.f32 %v4675_v29 }
0x2c82   :  { %v4672_v25 = vpop.xlane.xlu0 %4671 }
0x2c83   :  { %v4674_v20 = vmul.f32 %v4672_v25, %v5672_v10 }
0x2c85   :  { %v5585_v36 = vpop.eup %5584  ;;  %v4676_v37 = vadd.f32 1e-06, %v4674_v20 }
0x2c86   :  { %v4678_v2 = vmul.f32 %v5585_v36, %v4675_v29  ;;  %vm4684_vm1 = vweird.f32 %v5585_v36 }
0x2c87   :  { %5586 = vrsqrt.f32 %v4676_v37  ;;  %vm4685_vm7 = vmor %vm4683_vm6, %vm4684_vm1  ;;  %vm4693_vm11 = vweird.f32 %v4676_v37 }
0x2c88   :  { %v4679_v40 = vmul.f32 %v5585_v36, %v4678_v2 }
0x2c8a   :  { %v4680_v15 = vmul.f32 0.5, %v4679_v40 }
0x2c8c   :  { %v4681_v56 = vsub.f32 1.5, %v4680_v15 }
0x2c8d   :  { %v5587_v44 = vpop.eup %5586 }
0x2c8e   :  { %v4682_v61 = vmul.f32 %v5585_v36, %v4681_v56  ;;  %v4688_v4 = vmul.f32 %v5587_v44, %v4676_v37  ;;  %vm4694_vm10 = vweird.f32 %v5587_v44 }
0x2c8f   :  { %vm4695_vm12 = vmor %vm4693_vm11, %vm4694_vm10 }
0x2c90   :  { %v4686_v14 = vsel %vm4685_vm7, %v5585_v36, %v4682_v61  ;;  %v4689_v60 = vmul.f32 %v5587_v44, %v4688_v4 }
0x2c91   :  { %v4697_v10 = vmul.f32 %v4686_v14, %v4663_v41 }
0x2c92   :  { %v4690_v26 = vmul.f32 0.5, %v4689_v60 }
0x2c93   :  { %v4702_v59 = vmul.f32 %v5343_v43, %v4697_v10 }
0x2c94   :  { %v4691_v46 = vsub.f32 1.5, %v4690_v26 }
0x2c95   :  { %v4707_v42 = vadd.f32 %v5344_v32, %v4702_v59 }
0x2c96   :  { %v4692_v11 = vmul.f32 %v5587_v44, %v4691_v46 }
0x2c97   :  { %5105 = vmatmul.msk.f32.vlgmr.msra.gmra.mxu2 %vm180_vm0, %v4707_v42 }
0x2c98   :  { %v4696_v47 = vsel %vm4695_vm12, %v5587_v44, %v4692_v11 }
0x2c99   :  { %v4698_v45 = vmul.f32 %v4696_v47, %v4664_v30 }
0x2c9b   :  { %v4703_v53 = vmul.f32 %v5343_v43, %v4698_v45 }
0x2c9d   :  { %v4708_v5 = vadd.f32 %v5344_v32, %v4703_v53 }
0x2c9f   :  { %5106 = vmatmul.msk.f32.gmra.mxu2 %vm180_vm0, %v4708_v5 }
0x2d1a   :  { %v4740_v63 = vpop.f32.mrf.mxu2 }
0x2d1b   :  { %v4741_v51 = vadd.f32 %v5345_v50, %v4740_v63 }
0x2d1d   :  { %4746 = vmax.xlane.f32.xlu1 %v4741_v51 }
0x2d22   :  { %v4743_v54 = vpop.f32.mrf.mxu2 }
0x2d23   :  { %v4744_v55 = vadd.f32 %v5345_v50, %v4743_v54 }
0x2d25   :  { %4748 = vmax.xlane.f32.xlu2 %v4744_v55 }
0x2d90   :  { %v4747_v57 = vpop.xlane.xlu1 %4746 }
0x2d91   :  { %v4750_v48 = vsub.f32 %v4741_v51, %v4747_v57 }
0x2d93   :  { %v4752_v49 = vmul.f32 1.442695, %v4750_v48 }
0x2d95   :  { %5588 = vpow2.f32 %v4752_v49 }
0x2d98   :  { %v4749_v0 = vpop.xlane.xlu2 %4748 }
0x2d99   :  { %v4751_v1 = vsub.f32 %v4744_v55, %v4749_v0 }
0x2d9b   :  { %v5589_v6 = vpop.eup %5588  ;;  %v4754_v8 = vmul.f32 1.442695, %v4751_v1 }
0x2d9c   :  { %4756 = vadd.xlane.f32.xlu0 %v5589_v6 }
0x2d9d   :  { %5590 = vpow2.f32 %v4754_v8 }
0x2da3   :  { %v5591_v9 = vpop.eup %5590 }
0x2da4   :  { %4758 = vadd.xlane.f32.xlu1 %v5591_v9 }
0x2e0f   :  { %v4757_v7 = vpop.xlane.xlu0 %4756 }
0x2e10   :  { %5592 = vlog2.f32 %v4757_v7 }
0x2e16   :  { %v5593_v12 = vpop.eup %5592 }
0x2e17   :  { %v4761_v13 = vmul.f32 0.6931472, %v5593_v12  ;;  %v4759_v35 = vpop.xlane.xlu1 %4758 }
0x2e18   :  { %5594 = vlog2.f32 %v4759_v35 }
0x2e19   :  { %v4764_v33 = vsub.f32 %v4750_v48, %v4761_v13 }
0x2e1b   :  { %4766 = vst [vmem:[%s4812_s11] sm:$0xff] %v4764_v33 }
0x2e1e   :  { %v5595_v31 = vpop.eup %5594 }
0x2e1f   :  { %v4763_v39 = vmul.f32 0.6931472, %v5595_v31 }
0x2e21   :  { %v4765_v16 = vsub.f32 %v4751_v1, %v4763_v39 }
0x2e23   :  { %4767 = vst [vmem:[%s4812_s11 + $0x8] sm:$0xff] %v4765_v16 }

</bundles_post_ra>
